<compile_context>
chip_gen: v7x
topology: tpu7x:2x2x1
jax: 0.10.0
libtpu: 0.0.40
codegen_flags: <defaults>
</compile_context>

<pallas_src>
import jax
import jax.numpy as jnp
from jax.experimental import pallas as pl
from jax.experimental.pallas import tpu as pltpu


# ----------------------------------------------------------------------------
# Pallas kernels
# ----------------------------------------------------------------------------
def _conv_relu_pool_kernel(p_ref, w_ref, b_ref, o_ref):
    """Fused conv (as matmul over im2col patches) + bias + ReLU + 2x2 max-pool.

    p_ref: (1, 4, HWo, K) bf16 -- 4 = the pool-window taps, rows = pooled positions
    w_ref: (K, Cout) bf16      b_ref: (1, Cout) f32      o_ref: (1, HWo, Cout) bf16
    """
    m = jnp.dot(p_ref[0, 0], w_ref[...], preferred_element_type=jnp.float32)
    for t in range(1, 4):
        s = jnp.dot(p_ref[0, t], w_ref[...], preferred_element_type=jnp.float32)
        m = jnp.maximum(m, s)
    # max over taps commutes with the (per-channel) bias add and with ReLU.
    o_ref[0] = jnp.maximum(m + b_ref[...], 0.0).astype(o_ref.dtype)


def _fc_stack_kernel(x_ref, w1_ref, b1_ref, w2_ref, b2_ref, w3_ref, b3_ref, o_ref):
    """Fused fc1 -> fc2 -> fc3 (no activations between them, as in the module).

    Intermediates never leave VMEM.  bf16 weights/activations, f32 accumulation.
    """
    h = jnp.dot(x_ref[...], w1_ref[...], preferred_element_type=jnp.float32) + b1_ref[...]
    h = jnp.dot(h.astype(w2_ref.dtype), w2_ref[...],
                preferred_element_type=jnp.float32) + b2_ref[...]
    h = jnp.dot(h.astype(w3_ref.dtype), w3_ref[...],
                preferred_element_type=jnp.float32) + b3_ref[...]
    o_ref[...] = h.astype(o_ref.dtype)


# ----------------------------------------------------------------------------
# Pallas wrappers
# ----------------------------------------------------------------------------
def conv_relu_pool(patches, w, b):
    """patches: (N, 4, HWo, K) bf16 -> (N, HWo, Cout) bf16, grid over batch."""
    N, T, HWo, K = patches.shape
    Cout = w.shape[1]
    return pl.pallas_call(
        _conv_relu_pool_kernel,
        out_shape=jax.ShapeDtypeStruct((N, HWo, Cout), jnp.bfloat16),
        grid=(N,),
        in_specs=[
            pl.BlockSpec((1, T, HWo, K), lambda n: (n, 0, 0, 0)),
            pl.BlockSpec((K, Cout), lambda n: (0, 0)),
            pl.BlockSpec((1, Cout), lambda n: (0, 0)),
        ],
        out_specs=pl.BlockSpec((1, HWo, Cout), lambda n: (n, 0, 0)),
        compiler_params=pltpu.CompilerParams(dimension_semantics=("parallel",)),
    )(patches, w, b)


def fc_stack(x, w1, b1, w2, b2, w3, b3):
    """Single pallas_call for the whole FC stack.  x: (M, 3136) bf16 -> (M, 128) f32."""
    M = x.shape[0]
    Np = w3.shape[1]
    return pl.pallas_call(
        _fc_stack_kernel,
        out_shape=jax.ShapeDtypeStruct((M, Np), jnp.float32),
        grid=(1,),
        in_specs=[
            pl.BlockSpec(x.shape, lambda i: (0, 0)),
            pl.BlockSpec(w1.shape, lambda i: (0, 0)),
            pl.BlockSpec(b1.shape, lambda i: (0, 0)),
            pl.BlockSpec(w2.shape, lambda i: (0, 0)),
            pl.BlockSpec(b2.shape, lambda i: (0, 0)),
            pl.BlockSpec(w3.shape, lambda i: (0, 0)),
            pl.BlockSpec(b3.shape, lambda i: (0, 0)),
        ],
        out_specs=pl.BlockSpec((M, Np), lambda i: (0, 0)),
        compiler_params=pltpu.CompilerParams(dimension_semantics=("arbitrary",)),
    )(x, w1, b1, w2, b2, w3, b3)


# ----------------------------------------------------------------------------
# Host-side glue: tap-grouped im2col (3x3, pad=1) for the fused conv+pool kernel
# ----------------------------------------------------------------------------
def pool_grouped_patches(x_nhwc):
    """NHWC (N,H,W,C) -> (N, 4, (H//2)*(W//2), 9*C).

    Row r of tap t holds the 3x3 patch (order: kh, kw, cin) of the pre-pool conv
    output position that is tap t of pooled position r.
    """
    N, H, W, C = x_nhwc.shape
    xp = jnp.pad(x_nhwc, ((0, 0), (1, 1), (1, 1), (0, 0)))
    cols = [xp[:, dh:dh + H, dw:dw + W, :] for dh in range(3) for dw in range(3)]
    p = jnp.stack(cols, axis=3).reshape(N, H, W, 9 * C)          # k = (kh, kw, cin)
    p = (
        p.reshape(N, H // 2, 2, W // 2, 2, 9 * C)
        .transpose(0, 2, 4, 1, 3, 5)                             # (N, 2, 2, Ho, Wo, 9C)
        .reshape(N, 4, (H // 2) * (W // 2), 9 * C)
    )
    return p


# ----------------------------------------------------------------------------
# Model: parameters + forward
# ----------------------------------------------------------------------------
def make_params(key):
    """Synthetic parameters matching the PyTorch module shapes.

    Conv weights are generated in torch layout (Cout, Cin, kh, kw) and converted
    to im2col layout (kh*kw*Cin, Cout).  fc1 is generated in torch NCHW-flatten
    row order and the NHWC->NCHW permutation is folded into it at build time.
    fc3 is zero-padded to 128 output columns (sliced back to 10 in the wrapper).
    """
    ks = jax.random.split(key, 10)
    rnd = lambda k, shape, s: jax.random.normal(k, shape, jnp.float32) * s

    w1_t = rnd(ks[0], (32, 1, 3, 3), 0.20)
    w2_t = rnd(ks[2], (64, 32, 3, 3), 0.05)
    conv1_w = w1_t.transpose(2, 3, 1, 0).reshape(9 * 1, 32)      # rows: (kh, kw, cin)
    conv2_w = w2_t.transpose(2, 3, 1, 0).reshape(9 * 32, 64)

    # fc1: rows indexed by torch flatten order i_t = c*49 + h*7 + w; permute so the
    # kernel consumes the conv output flattened in (h, w, c) order with no transpose.
    fc1_w_torch = rnd(ks[4], (7 * 7 * 64, 600), 0.02)
    hw = jnp.arange(49)
    c = jnp.arange(64)
    perm = (c[None, :] * 49 + hw[:, None]).reshape(-1)           # perm[(h*7+w)*64+c] = c*49+h*7+w
    fc1_w = fc1_w_torch[perm]

    fc2_w = rnd(ks[6], (600, 128), 0.04)
    fc3_w = jnp.zeros((128, 128), jnp.float32).at[:, :10].set(rnd(ks[8], (128, 10), 0.09))
    fc3_b = jnp.zeros((1, 128), jnp.float32).at[:, :10].set(rnd(ks[9], (1, 10), 0.01))

    return {
        "conv1_w": conv1_w.astype(jnp.bfloat16), "conv1_b": rnd(ks[1], (1, 32), 0.01),
        "conv2_w": conv2_w.astype(jnp.bfloat16), "conv2_b": rnd(ks[3], (1, 64), 0.01),
        "fc1_w": fc1_w.astype(jnp.bfloat16),     "fc1_b": rnd(ks[5], (1, 600), 0.01),
        "fc2_w": fc2_w.astype(jnp.bfloat16),     "fc2_b": rnd(ks[7], (1, 128), 0.01),
        "fc3_w": fc3_w.astype(jnp.bfloat16),     "fc3_b": fc3_b,
    }


def cnn_forward(x_nchw, params):
    """Forward pass.  x_nchw: (N, 1, 28, 28) float32 -> logits (N, 10) float32."""
    N = x_nchw.shape[0]
    x = jnp.transpose(x_nchw, (0, 2, 3, 1))                      # NHWC (N,28,28,1)

    # Stage 1: conv1 + ReLU + pool fused in one kernel.  -> (N,196,32) == NHWC (N,14,14,32)
    p1 = pool_grouped_patches(x).astype(jnp.bfloat16)            # (N,4,196,9)
    h = conv_relu_pool(p1, params["conv1_w"], params["conv1_b"])

    # Stage 2: conv2 + ReLU + pool fused.  -> (N,49,64) == NHWC (N,7,7,64)
    p2 = pool_grouped_patches(h.reshape(N, 14, 14, 32))          # (N,4,49,288) bf16
    h = conv_relu_pool(p2, params["conv2_w"], params["conv2_b"])

    # Flatten in (h, w, c) order; the NCHW nn.Flatten permutation lives in fc1_w.
    hf = h.reshape(N, 49 * 64)

    # Fused FC stack (fc1 -> fc2 -> fc3, no activations, as in the module).
    logits_padded = fc_stack(
        hf,
        params["fc1_w"], params["fc1_b"],
        params["fc2_w"], params["fc2_b"],
        params["fc3_w"], params["fc3_b"],
    )                                                            # (N, 128)
    return logits_padded[:, :10]


# ----------------------------------------------------------------------------
if __name__ == "__main__":
    key = jax.random.PRNGKey(0)
    kx, kp = jax.random.split(key)

    # Input shape fixed by the module (Linear expects 28*28*64//16 features):
    # batch=2, channels=1, spatial=28x28, NCHW like PyTorch.
    x = jax.random.normal(kx, (2, 1, 28, 28), jnp.float32)
    params = make_params(kp)

    fwd = jax.jit(cnn_forward)
    logits = jax.block_until_ready(fwd(x, params))

    assert logits.shape == (2, 10), logits.shape
    assert bool(jnp.all(jnp.isfinite(logits)))
    print("KERNEL_OK")
</pallas_src>

<mosaic_0001>
module attributes {stable_mosaic.version = 11 : i64} {
  func.func @_conv_relu_pool_kernel(%arg0: i32, %arg1: memref<1x4x196x9xbf16, #tpu.memory_space<vmem>>, %arg2: memref<9x32xbf16, #tpu.memory_space<vmem>>, %arg3: memref<1x32xf32, #tpu.memory_space<vmem>>, %arg4: memref<1x196x32xbf16, #tpu.memory_space<vmem>>) attributes {dimension_semantics = [#tpu.dimension_semantics<parallel>], iteration_bounds = array<i64: 2>, scalar_prefetch = 0 : i64, scratch_operands = 0 : i64, tpu.core_type = #tpu.core_type<tc>, window_params = [{transform_indices = @transform_0, window_bounds = array<i64: 1, 4, 196, 9>}, {pipeline_mode = #tpu.pipeline_mode<synchronous>, transform_indices = @transform_1, window_bounds = array<i64: 9, 32>}, {pipeline_mode = #tpu.pipeline_mode<synchronous>, transform_indices = @transform_2, window_bounds = array<i64: 1, 32>}, {transform_indices = @transform_3, window_bounds = array<i64: 1, 196, 32>}]} {
    %c0 = arith.constant 0 : index
    %c0_0 = arith.constant 0 : index
    %c0_1 = arith.constant 0 : index
    %c0_2 = arith.constant 0 : index
    %0 = vector.load %arg1[%c0, %c0_0, %c0_1, %c0_2] : memref<1x4x196x9xbf16, #tpu.memory_space<vmem>>, vector<1x1x196x9xbf16>
    %1 = vector.shape_cast %0 : vector<1x1x196x9xbf16> to vector<196x9xbf16>
    %c0_3 = arith.constant 0 : index
    %c0_4 = arith.constant 0 : index
    %2 = vector.load %arg2[%c0_3, %c0_4] : memref<9x32xbf16, #tpu.memory_space<vmem>>, vector<9x32xbf16>
    %cst = arith.constant dense<0.000000e+00> : vector<196x32xf32>
    %3 = tpu.matmul %1, %2, %cst {dimension_numbers = #tpu.dot_dimension_numbers<[1], [0], [0], [1], [0, 0, 1, 1], [], []>} : vector<196x9xbf16>, vector<9x32xbf16>, vector<196x32xf32> -> vector<196x32xf32>
    %c0_5 = arith.constant 0 : index
    %c1 = arith.constant 1 : index
    %c0_6 = arith.constant 0 : index
    %c0_7 = arith.constant 0 : index
    %4 = vector.load %arg1[%c0_5, %c1, %c0_6, %c0_7] : memref<1x4x196x9xbf16, #tpu.memory_space<vmem>>, vector<1x1x196x9xbf16>
    %5 = vector.shape_cast %4 : vector<1x1x196x9xbf16> to vector<196x9xbf16>
    %c0_8 = arith.constant 0 : index
    %c0_9 = arith.constant 0 : index
    %6 = vector.load %arg2[%c0_8, %c0_9] : memref<9x32xbf16, #tpu.memory_space<vmem>>, vector<9x32xbf16>
    %cst_10 = arith.constant dense<0.000000e+00> : vector<196x32xf32>
    %7 = tpu.matmul %5, %6, %cst_10 {dimension_numbers = #tpu.dot_dimension_numbers<[1], [0], [0], [1], [0, 0, 1, 1], [], []>} : vector<196x9xbf16>, vector<9x32xbf16>, vector<196x32xf32> -> vector<196x32xf32>
    %8 = arith.maximumf %3, %7 : vector<196x32xf32>
    %c0_11 = arith.constant 0 : index
    %c2 = arith.constant 2 : index
    %c0_12 = arith.constant 0 : index
    %c0_13 = arith.constant 0 : index
    %9 = vector.load %arg1[%c0_11, %c2, %c0_12, %c0_13] : memref<1x4x196x9xbf16, #tpu.memory_space<vmem>>, vector<1x1x196x9xbf16>
    %10 = vector.shape_cast %9 : vector<1x1x196x9xbf16> to vector<196x9xbf16>
    %c0_14 = arith.constant 0 : index
    %c0_15 = arith.constant 0 : index
    %11 = vector.load %arg2[%c0_14, %c0_15] : memref<9x32xbf16, #tpu.memory_space<vmem>>, vector<9x32xbf16>
    %cst_16 = arith.constant dense<0.000000e+00> : vector<196x32xf32>
    %12 = tpu.matmul %10, %11, %cst_16 {dimension_numbers = #tpu.dot_dimension_numbers<[1], [0], [0], [1], [0, 0, 1, 1], [], []>} : vector<196x9xbf16>, vector<9x32xbf16>, vector<196x32xf32> -> vector<196x32xf32>
    %13 = arith.maximumf %8, %12 : vector<196x32xf32>
    %c0_17 = arith.constant 0 : index
    %c3 = arith.constant 3 : index
    %c0_18 = arith.constant 0 : index
    %c0_19 = arith.constant 0 : index
    %14 = vector.load %arg1[%c0_17, %c3, %c0_18, %c0_19] : memref<1x4x196x9xbf16, #tpu.memory_space<vmem>>, vector<1x1x196x9xbf16>
    %15 = vector.shape_cast %14 : vector<1x1x196x9xbf16> to vector<196x9xbf16>
    %c0_20 = arith.constant 0 : index
    %c0_21 = arith.constant 0 : index
    %16 = vector.load %arg2[%c0_20, %c0_21] : memref<9x32xbf16, #tpu.memory_space<vmem>>, vector<9x32xbf16>
    %cst_22 = arith.constant dense<0.000000e+00> : vector<196x32xf32>
    %17 = tpu.matmul %15, %16, %cst_22 {dimension_numbers = #tpu.dot_dimension_numbers<[1], [0], [0], [1], [0, 0, 1, 1], [], []>} : vector<196x9xbf16>, vector<9x32xbf16>, vector<196x32xf32> -> vector<196x32xf32>
    %18 = arith.maximumf %13, %17 : vector<196x32xf32>
    %c0_23 = arith.constant 0 : index
    %c0_24 = arith.constant 0 : index
    %19 = vector.load %arg3[%c0_23, %c0_24] : memref<1x32xf32, #tpu.memory_space<vmem>>, vector<1x32xf32>
    %20 = vector.broadcast %19 : vector<1x32xf32> to vector<196x32xf32>
    %21 = arith.addf %18, %20 : vector<196x32xf32>
    %cst_25 = arith.constant 0.000000e+00 : f32
    %22 = vector.broadcast %cst_25 : f32 to vector<196x32xf32>
    %23 = arith.maximumf %21, %22 : vector<196x32xf32>
    %24 = arith.truncf %23 : vector<196x32xf32> to vector<196x32xbf16>
    %c0_26 = arith.constant 0 : index
    %c0_27 = arith.constant 0 : index
    %c0_28 = arith.constant 0 : index
    %25 = vector.load %arg4[%c0_26, %c0_27, %c0_28] : memref<1x196x32xbf16, #tpu.memory_space<vmem>>, vector<1x196x32xbf16>
    %26 = vector.shape_cast %25 : vector<1x196x32xbf16> to vector<196x32xbf16>
    %27 = vector.shape_cast %24 : vector<196x32xbf16> to vector<1x196x32xbf16>
    tpu.vector_store %arg4[%c0_26, %c0_27, %c0_28], %27 {strides = array<i32>} : memref<1x196x32xbf16, #tpu.memory_space<vmem>>, vector<1x196x32xbf16>,
    return
  }
  func.func @transform_0(%arg0: i32) -> (i32, i32, i32, i32) {
    %c0_i32 = arith.constant 0 : i32
    %c0_i32_0 = arith.constant 0 : i32
    %c0_i32_1 = arith.constant 0 : i32
    %c0_i32_2 = arith.constant 0 : i32
    return %arg0, %c0_i32, %c0_i32_0, %c0_i32_1 : i32, i32, i32, i32
  }
  func.func @transform_1(%arg0: i32) -> (i32, i32) {
    %c0_i32 = arith.constant 0 : i32
    %c0_i32_0 = arith.constant 0 : i32
    %c0_i32_1 = arith.constant 0 : i32
    return %c0_i32, %c0_i32_0 : i32, i32
  }
  func.func @transform_2(%arg0: i32) -> (i32, i32) {
    %c0_i32 = arith.constant 0 : i32
    %c0_i32_0 = arith.constant 0 : i32
    %c0_i32_1 = arith.constant 0 : i32
    return %c0_i32, %c0_i32_0 : i32, i32
  }
  func.func @transform_3(%arg0: i32) -> (i32, i32, i32) {
    %c0_i32 = arith.constant 0 : i32
    %c0_i32_0 = arith.constant 0 : i32
    %c0_i32_1 = arith.constant 0 : i32
    return %arg0, %c0_i32, %c0_i32_0 : i32, i32, i32
  }
}

module attributes {stable_mosaic.version = 11 : i64} {
  func.func @_conv_relu_pool_kernel(%arg0: i32, %arg1: memref<1x4x49x288xbf16, #tpu.memory_space<vmem>>, %arg2: memref<288x64xbf16, #tpu.memory_space<vmem>>, %arg3: memref<1x64xf32, #tpu.memory_space<vmem>>, %arg4: memref<1x49x64xbf16, #tpu.memory_space<vmem>>) attributes {dimension_semantics = [#tpu.dimension_semantics<parallel>], iteration_bounds = array<i64: 2>, scalar_prefetch = 0 : i64, scratch_operands = 0 : i64, tpu.core_type = #tpu.core_type<tc>, window_params = [{transform_indices = @transform_0, window_bounds = array<i64: 1, 4, 49, 288>}, {pipeline_mode = #tpu.pipeline_mode<synchronous>, transform_indices = @transform_1, window_bounds = array<i64: 288, 64>}, {pipeline_mode = #tpu.pipeline_mode<synchronous>, transform_indices = @transform_2, window_bounds = array<i64: 1, 64>}, {transform_indices = @transform_3, window_bounds = array<i64: 1, 49, 64>}]} {
    %c0 = arith.constant 0 : index
    %c0_0 = arith.constant 0 : index
    %c0_1 = arith.constant 0 : index
    %c0_2 = arith.constant 0 : index
    %0 = vector.load %arg1[%c0, %c0_0, %c0_1, %c0_2] : memref<1x4x49x288xbf16, #tpu.memory_space<vmem>>, vector<1x1x49x288xbf16>
    %1 = vector.shape_cast %0 : vector<1x1x49x288xbf16> to vector<49x288xbf16>
    %c0_3 = arith.constant 0 : index
    %c0_4 = arith.constant 0 : index
    %2 = vector.load %arg2[%c0_3, %c0_4] : memref<288x64xbf16, #tpu.memory_space<vmem>>, vector<288x64xbf16>
    %cst = arith.constant dense<0.000000e+00> : vector<49x64xf32>
    %3 = tpu.matmul %1, %2, %cst {dimension_numbers = #tpu.dot_dimension_numbers<[1], [0], [0], [1], [0, 0, 1, 1], [], []>} : vector<49x288xbf16>, vector<288x64xbf16>, vector<49x64xf32> -> vector<49x64xf32>
    %c0_5 = arith.constant 0 : index
    %c1 = arith.constant 1 : index
    %c0_6 = arith.constant 0 : index
    %c0_7 = arith.constant 0 : index
    %4 = vector.load %arg1[%c0_5, %c1, %c0_6, %c0_7] : memref<1x4x49x288xbf16, #tpu.memory_space<vmem>>, vector<1x1x49x288xbf16>
    %5 = vector.shape_cast %4 : vector<1x1x49x288xbf16> to vector<49x288xbf16>
    %c0_8 = arith.constant 0 : index
    %c0_9 = arith.constant 0 : index
    %6 = vector.load %arg2[%c0_8, %c0_9] : memref<288x64xbf16, #tpu.memory_space<vmem>>, vector<288x64xbf16>
    %cst_10 = arith.constant dense<0.000000e+00> : vector<49x64xf32>
    %7 = tpu.matmul %5, %6, %cst_10 {dimension_numbers = #tpu.dot_dimension_numbers<[1], [0], [0], [1], [0, 0, 1, 1], [], []>} : vector<49x288xbf16>, vector<288x64xbf16>, vector<49x64xf32> -> vector<49x64xf32>
    %8 = arith.maximumf %3, %7 : vector<49x64xf32>
    %c0_11 = arith.constant 0 : index
    %c2 = arith.constant 2 : index
    %c0_12 = arith.constant 0 : index
    %c0_13 = arith.constant 0 : index
    %9 = vector.load %arg1[%c0_11, %c2, %c0_12, %c0_13] : memref<1x4x49x288xbf16, #tpu.memory_space<vmem>>, vector<1x1x49x288xbf16>
    %10 = vector.shape_cast %9 : vector<1x1x49x288xbf16> to vector<49x288xbf16>
    %c0_14 = arith.constant 0 : index
    %c0_15 = arith.constant 0 : index
    %11 = vector.load %arg2[%c0_14, %c0_15] : memref<288x64xbf16, #tpu.memory_space<vmem>>, vector<288x64xbf16>
    %cst_16 = arith.constant dense<0.000000e+00> : vector<49x64xf32>
    %12 = tpu.matmul %10, %11, %cst_16 {dimension_numbers = #tpu.dot_dimension_numbers<[1], [0], [0], [1], [0, 0, 1, 1], [], []>} : vector<49x288xbf16>, vector<288x64xbf16>, vector<49x64xf32> -> vector<49x64xf32>
    %13 = arith.maximumf %8, %12 : vector<49x64xf32>
    %c0_17 = arith.constant 0 : index
    %c3 = arith.constant 3 : index
    %c0_18 = arith.constant 0 : index
    %c0_19 = arith.constant 0 : index
    %14 = vector.load %arg1[%c0_17, %c3, %c0_18, %c0_19] : memref<1x4x49x288xbf16, #tpu.memory_space<vmem>>, vector<1x1x49x288xbf16>
    %15 = vector.shape_cast %14 : vector<1x1x49x288xbf16> to vector<49x288xbf16>
    %c0_20 = arith.constant 0 : index
    %c0_21 = arith.constant 0 : index
    %16 = vector.load %arg2[%c0_20, %c0_21] : memref<288x64xbf16, #tpu.memory_space<vmem>>, vector<288x64xbf16>
    %cst_22 = arith.constant dense<0.000000e+00> : vector<49x64xf32>
    %17 = tpu.matmul %15, %16, %cst_22 {dimension_numbers = #tpu.dot_dimension_numbers<[1], [0], [0], [1], [0, 0, 1, 1], [], []>} : vector<49x288xbf16>, vector<288x64xbf16>, vector<49x64xf32> -> vector<49x64xf32>
    %18 = arith.maximumf %13, %17 : vector<49x64xf32>
    %c0_23 = arith.constant 0 : index
    %c0_24 = arith.constant 0 : index
    %19 = vector.load %arg3[%c0_23, %c0_24] : memref<1x64xf32, #tpu.memory_space<vmem>>, vector<1x64xf32>
    %20 = vector.broadcast %19 : vector<1x64xf32> to vector<49x64xf32>
    %21 = arith.addf %18, %20 : vector<49x64xf32>
    %cst_25 = arith.constant 0.000000e+00 : f32
    %22 = vector.broadcast %cst_25 : f32 to vector<49x64xf32>
    %23 = arith.maximumf %21, %22 : vector<49x64xf32>
    %24 = arith.truncf %23 : vector<49x64xf32> to vector<49x64xbf16>
    %c0_26 = arith.constant 0 : index
    %c0_27 = arith.constant 0 : index
    %c0_28 = arith.constant 0 : index
    %25 = vector.load %arg4[%c0_26, %c0_27, %c0_28] : memref<1x49x64xbf16, #tpu.memory_space<vmem>>, vector<1x49x64xbf16>
    %26 = vector.shape_cast %25 : vector<1x49x64xbf16> to vector<49x64xbf16>
    %27 = vector.shape_cast %24 : vector<49x64xbf16> to vector<1x49x64xbf16>
    tpu.vector_store %arg4[%c0_26, %c0_27, %c0_28], %27 {strides = array<i32>} : memref<1x49x64xbf16, #tpu.memory_space<vmem>>, vector<1x49x64xbf16>,
    return
  }
  func.func @transform_0(%arg0: i32) -> (i32, i32, i32, i32) {
    %c0_i32 = arith.constant 0 : i32
    %c0_i32_0 = arith.constant 0 : i32
    %c0_i32_1 = arith.constant 0 : i32
    %c0_i32_2 = arith.constant 0 : i32
    return %arg0, %c0_i32, %c0_i32_0, %c0_i32_1 : i32, i32, i32, i32
  }
  func.func @transform_1(%arg0: i32) -> (i32, i32) {
    %c0_i32 = arith.constant 0 : i32
    %c0_i32_0 = arith.constant 0 : i32
    %c0_i32_1 = arith.constant 0 : i32
    return %c0_i32, %c0_i32_0 : i32, i32
  }
  func.func @transform_2(%arg0: i32) -> (i32, i32) {
    %c0_i32 = arith.constant 0 : i32
    %c0_i32_0 = arith.constant 0 : i32
    %c0_i32_1 = arith.constant 0 : i32
    return %c0_i32, %c0_i32_0 : i32, i32
  }
  func.func @transform_3(%arg0: i32) -> (i32, i32, i32) {
    %c0_i32 = arith.constant 0 : i32
    %c0_i32_0 = arith.constant 0 : i32
    %c0_i32_1 = arith.constant 0 : i32
    return %arg0, %c0_i32, %c0_i32_0 : i32, i32, i32
  }
}

module attributes {stable_mosaic.version = 11 : i64} {
  func.func @_fc_stack_kernel(%arg0: i32, %arg1: memref<2x3136xbf16, #tpu.memory_space<vmem>>, %arg2: memref<3136x600xbf16, #tpu.memory_space<vmem>>, %arg3: memref<1x600xf32, #tpu.memory_space<vmem>>, %arg4: memref<600x128xbf16, #tpu.memory_space<vmem>>, %arg5: memref<1x128xf32, #tpu.memory_space<vmem>>, %arg6: memref<128x128xbf16, #tpu.memory_space<vmem>>, %arg7: memref<1x128xf32, #tpu.memory_space<vmem>>, %arg8: memref<2x128xf32, #tpu.memory_space<vmem>>) attributes {dimension_semantics = [#tpu.dimension_semantics<arbitrary>], iteration_bounds = array<i64: 1>, scalar_prefetch = 0 : i64, scratch_operands = 0 : i64, tpu.core_type = #tpu.core_type<tc>, window_params = [{pipeline_mode = #tpu.pipeline_mode<synchronous>, transform_indices = @transform_0, window_bounds = array<i64: 2, 3136>}, {pipeline_mode = #tpu.pipeline_mode<synchronous>, transform_indices = @transform_1, window_bounds = array<i64: 3136, 600>}, {pipeline_mode = #tpu.pipeline_mode<synchronous>, transform_indices = @transform_2, window_bounds = array<i64: 1, 600>}, {pipeline_mode = #tpu.pipeline_mode<synchronous>, transform_indices = @transform_3, window_bounds = array<i64: 600, 128>}, {pipeline_mode = #tpu.pipeline_mode<synchronous>, transform_indices = @transform_4, window_bounds = array<i64: 1, 128>}, {pipeline_mode = #tpu.pipeline_mode<synchronous>, transform_indices = @transform_5, window_bounds = array<i64: 128, 128>}, {pipeline_mode = #tpu.pipeline_mode<synchronous>, transform_indices = @transform_6, window_bounds = array<i64: 1, 128>}, {pipeline_mode = #tpu.pipeline_mode<synchronous>, transform_indices = @transform_7, window_bounds = array<i64: 2, 128>}]} {
    %c0 = arith.constant 0 : index
    %c0_0 = arith.constant 0 : index
    %0 = vector.load %arg1[%c0, %c0_0] : memref<2x3136xbf16, #tpu.memory_space<vmem>>, vector<2x3136xbf16>
    %c0_1 = arith.constant 0 : index
    %c0_2 = arith.constant 0 : index
    %1 = vector.load %arg2[%c0_1, %c0_2] : memref<3136x600xbf16, #tpu.memory_space<vmem>>, vector<3136x600xbf16>
    %cst = arith.constant dense<0.000000e+00> : vector<2x600xf32>
    %2 = tpu.matmul %0, %1, %cst {dimension_numbers = #tpu.dot_dimension_numbers<[1], [0], [0], [1], [0, 0, 1, 1], [], []>} : vector<2x3136xbf16>, vector<3136x600xbf16>, vector<2x600xf32> -> vector<2x600xf32>
    %c0_3 = arith.constant 0 : index
    %c0_4 = arith.constant 0 : index
    %3 = vector.load %arg3[%c0_3, %c0_4] : memref<1x600xf32, #tpu.memory_space<vmem>>, vector<1x600xf32>
    %4 = vector.broadcast %3 : vector<1x600xf32> to vector<2x600xf32>
    %5 = arith.addf %2, %4 : vector<2x600xf32>
    %6 = arith.truncf %5 : vector<2x600xf32> to vector<2x600xbf16>
    %c0_5 = arith.constant 0 : index
    %c0_6 = arith.constant 0 : index
    %7 = vector.load %arg4[%c0_5, %c0_6] : memref<600x128xbf16, #tpu.memory_space<vmem>>, vector<600x128xbf16>
    %cst_7 = arith.constant dense<0.000000e+00> : vector<2x128xf32>
    %8 = tpu.matmul %6, %7, %cst_7 {dimension_numbers = #tpu.dot_dimension_numbers<[1], [0], [0], [1], [0, 0, 1, 1], [], []>} : vector<2x600xbf16>, vector<600x128xbf16>, vector<2x128xf32> -> vector<2x128xf32>
    %c0_8 = arith.constant 0 : index
    %c0_9 = arith.constant 0 : index
    %9 = vector.load %arg5[%c0_8, %c0_9] : memref<1x128xf32, #tpu.memory_space<vmem>>, vector<1x128xf32>
    %10 = vector.broadcast %9 : vector<1x128xf32> to vector<2x128xf32>
    %11 = arith.addf %8, %10 : vector<2x128xf32>
    %12 = arith.truncf %11 : vector<2x128xf32> to vector<2x128xbf16>
    %c0_10 = arith.constant 0 : index
    %c0_11 = arith.constant 0 : index
    %13 = vector.load %arg6[%c0_10, %c0_11] : memref<128x128xbf16, #tpu.memory_space<vmem>>, vector<128x128xbf16>
    %cst_12 = arith.constant dense<0.000000e+00> : vector<2x128xf32>
    %14 = tpu.matmul %12, %13, %cst_12 {dimension_numbers = #tpu.dot_dimension_numbers<[1], [0], [0], [1], [0, 0, 1, 1], [], []>} : vector<2x128xbf16>, vector<128x128xbf16>, vector<2x128xf32> -> vector<2x128xf32>
    %c0_13 = arith.constant 0 : index
    %c0_14 = arith.constant 0 : index
    %15 = vector.load %arg7[%c0_13, %c0_14] : memref<1x128xf32, #tpu.memory_space<vmem>>, vector<1x128xf32>
    %16 = vector.broadcast %15 : vector<1x128xf32> to vector<2x128xf32>
    %17 = arith.addf %14, %16 : vector<2x128xf32>
    %c0_15 = arith.constant 0 : index
    %c0_16 = arith.constant 0 : index
    %18 = vector.load %arg8[%c0_15, %c0_16] : memref<2x128xf32, #tpu.memory_space<vmem>>, vector<2x128xf32>
    tpu.vector_store %arg8[%c0_15, %c0_16], %17 {strides = array<i32>} : memref<2x128xf32, #tpu.memory_space<vmem>>, vector<2x128xf32>,
    return
  }
  func.func @transform_0(%arg0: i32) -> (i32, i32) {
    %c0_i32 = arith.constant 0 : i32
    %c0_i32_0 = arith.constant 0 : i32
    %c0_i32_1 = arith.constant 0 : i32
    return %c0_i32, %c0_i32_0 : i32, i32
  }
  func.func @transform_1(%arg0: i32) -> (i32, i32) {
    %c0_i32 = arith.constant 0 : i32
    %c0_i32_0 = arith.constant 0 : i32
    %c0_i32_1 = arith.constant 0 : i32
    return %c0_i32, %c0_i32_0 : i32, i32
  }
  func.func @transform_2(%arg0: i32) -> (i32, i32) {
    %c0_i32 = arith.constant 0 : i32
    %c0_i32_0 = arith.constant 0 : i32
    %c0_i32_1 = arith.constant 0 : i32
    return %c0_i32, %c0_i32_0 : i32, i32
  }
  func.func @transform_3(%arg0: i32) -> (i32, i32) {
    %c0_i32 = arith.constant 0 : i32
    %c0_i32_0 = arith.constant 0 : i32
    %c0_i32_1 = arith.constant 0 : i32
    return %c0_i32, %c0_i32_0 : i32, i32
  }
  func.func @transform_4(%arg0: i32) -> (i32, i32) {
    %c0_i32 = arith.constant 0 : i32
    %c0_i32_0 = arith.constant 0 : i32
    %c0_i32_1 = arith.constant 0 : i32
    return %c0_i32, %c0_i32_0 : i32, i32
  }
  func.func @transform_5(%arg0: i32) -> (i32, i32) {
    %c0_i32 = arith.constant 0 : i32
    %c0_i32_0 = arith.constant 0 : i32
    %c0_i32_1 = arith.constant 0 : i32
    return %c0_i32, %c0_i32_0 : i32, i32
  }
  func.func @transform_6(%arg0: i32) -> (i32, i32) {
    %c0_i32 = arith.constant 0 : i32
    %c0_i32_0 = arith.constant 0 : i32
    %c0_i32_1 = arith.constant 0 : i32
    return %c0_i32, %c0_i32_0 : i32, i32
  }
  func.func @transform_7(%arg0: i32) -> (i32, i32) {
    %c0_i32 = arith.constant 0 : i32
    %c0_i32_0 = arith.constant 0 : i32
    %c0_i32_1 = arith.constant 0 : i32
    return %c0_i32, %c0_i32_0 : i32, i32
  }
}

</mosaic_0001>

<bundles_post_ra>
// kernel: cnn_forward.3
= control target key start
LH: loop header
LB: loop body
LE: loop exit
PB: predicated region body
PF: predicated region fallthrough
CT: control target
= control target key end

     0   :  { %s2166_s12 = smov 0   ;;  %s2710_s0 = inlined_call_operand.vmem [shape: bf16[2,4,196,9], index: 0, kind: input, shape index: {}]   ;;  %s2711_s1 = inlined_call_operand.vmem [shape: bf16[9,32], index: 1, kind: input, shape index: {}]   ;;  %s2712_s2 = inlined_call_operand.vmem [shape: f32[1,32], index: 2, kind: input, shape index: {}]   ;;  %s2713_s3 = inlined_call_operand.vmem [shape: bf16[2,196,32], index: 3, kind: output, shape index: {}]  }
   0x1 LB: > { %s1557_s13 = sadd.s32 4294967295, %s2141_s12   ;;  %p1561_p0 = scmp.ge.s32.totalorder %s2141_s12, 1  ;;  %s2141_s12 = sphi %s2166_s12, %s13_s12  }
   0x2   : > { %p137_p1 = scmp.lt.s32.totalorder %s2141_s12, 3 }
   0x4   : > { %p138_p2 = pnand %p1561_p0, %p137_p1 }
   0x5   : > { %vm307_vm0 = vcmask (!%p138_p2), 1043456   ;;  %v2143_v0 = vmov (!%p138_p2), 0.0   ;;  %v2082_v1 = vld [vmem:[%s2711_s1] sm:$0x1f] (!%p138_p2)   ;;  %vm308_vm1 = vcmask (!%p138_p2), 1044480   ;;  %p161_p3 = scmp.lt.s32.totalorder (!%p138_p2), %s1557_s13, 1 }
   0x6   : > { %141 = sbr.rel (%p138_p2) target bundleno = 441 (0x1b9), region = 32  ;;  %1853 = vmatprep.subr.bf16.mxu0 (!%p138_p2), %v2143_v0  ;;  %1907 = vmatprep.subr.bf16.mxu1 (!%p138_p2), %v2143_v0  ;;  %v2144_v2 = vmov (!%p138_p2), 65535   ;;  %vm2145_vm2 = vmmov (!%p138_p2), 0   ;;  %vm267_vm3 = vcmask (!%p138_p2), 72704   ;;  %vm1475_vm4 = vcmask (!%p138_p2), 257024  }
   0x7   : > { %v309_v3 = vsel (!%p138_p2), %vm307_vm0, 4294967295, %v2144_v2  ;;  %1855 = vmatprep.mubr.msk.bf16.mxu0 (!%p138_p2), %vm2145_vm2, %v2143_v0  ;;  %1909 = vmatprep.mubr.msk.bf16.mxu1 (!%p138_p2), %vm2145_vm2, %v2143_v0  ;;  %vm1500_vm5 = vcmask (!%p138_p2), 254976  }
   0x8   : > { %v310_v4 = vsel (!%p138_p2), %vm308_vm1, %v309_v3, 0 }
   0x9   : > { %v312_v5 = vand.u32 (!%p138_p2), %v2082_v1, %v310_v4 }
   0xb   : > { %1854 = vmatpush3.bf16.msra.mxu0 (!%p138_p2), %v312_v5  ;;  %1908 = vmatpush3.bf16.msra.mxu1 (!%p138_p2), %v312_v5 }
   0xc   : > { %1961 = vmatprep.subr.bf16.mxu0 (!%p138_p2), %v2143_v0  ;;  %2015 = vmatprep.subr.bf16.mxu1 (!%p138_p2), %v2143_v0 }
   0xd   : > { %s2738_s13 = smov (!%p161_p3, %s1557_s13), 1 }
   0xe   : > { %s2069_s16 = smul.u32 400, %s2738_s13 }
   0xf   : > { %s2070_s22 = smul.u32 100, %s2738_s13 }
  0x10   : > { %s2190_s19 = scalar_lea.vmem %s2710_s0, %s2069_s16 }
  0x11   : > { %v2083_v6 = vld [vmem:[%s2190_s19] sm:$0xff]   ;;  %v2085_v8 = vld [vmem:[%s2190_s19 + $0x8] sm:$0xff]   ;;  %v2087_v10 = vld [vmem:[%s2190_s19 + $0x10] sm:$0xff]   ;;  %s2564_s25 = scalar_lea.vmem %s2713_s3, %s2070_s22 }
  0x12   : > { %v2084_v7 = vld [vmem:[%s2190_s19 + $0x64] sm:$0xff]   ;;  %1856 = vmatmul.mubr.msk.bf16.vlgmr.msra.gmra.mrb[0].mxu0 %vm267_vm3, %v2083_v6  ;;  %v2086_v9 = vld [vmem:[%s2190_s19 + $0x6c] sm:$0xff]   ;;  %v2088_v11 = vld [vmem:[%s2190_s19 + $0x74] sm:$0xff]  }
  0x13   : > { %1910 = vmatmul.mubr.msk.bf16.vlgmr.msra.gmra.mrb[0].mxu1 %vm267_vm3, %v2084_v7  ;;  %1962 = vmatpush3.bf16.msra.mxu0 %v312_v5  ;;  %v2089_v12 = vld [vmem:[%s2190_s19 + $0x18] sm:$0xff]   ;;  %v2091_v14 = vld [vmem:[%s2190_s19 + $0x20] sm:$0xff]   ;;  %v2093_v16 = vld [vmem:[%s2190_s19 + $0x28] sm:$0xff]  }
  0x14   : > { %2016 = vmatpush3.bf16.msra.mxu1 %v312_v5  ;;  %1859 = vmatprep.mubr.msk.bf16.mxu0 %vm2145_vm2, %v2143_v0  ;;  %v2090_v13 = vld [vmem:[%s2190_s19 + $0x7c] sm:$0xff]   ;;  %v2092_v15 = vld [vmem:[%s2190_s19 + $0x84] sm:$0xff]   ;;  %v2094_v17 = vld [vmem:[%s2190_s19 + $0x8c] sm:$0xff]  }
  0x15   : > { %1913 = vmatprep.mubr.msk.bf16.mxu1 %vm2145_vm2, %v2143_v0  ;;  %v2095_v18 = vld [vmem:[%s2190_s19 + $0x30] sm:$0xff]   ;;  %v2097_v20 = vld [vmem:[%s2190_s19 + $0x38] sm:$0xff]   ;;  %v2099_v22 = vld [vmem:[%s2190_s19 + $0x40] sm:$0xff]  }
  0x16   : > { %v2096_v19 = vld [vmem:[%s2190_s19 + $0x94] sm:$0xff]   ;;  %v2098_v21 = vld [vmem:[%s2190_s19 + $0x9c] sm:$0xff]   ;;  %v2100_v23 = vld [vmem:[%s2190_s19 + $0xa4] sm:$0xff]  }
  0x17   : > { %v2101_v24 = vld [vmem:[%s2190_s19 + $0x48] sm:$0xff]   ;;  %v2103_v26 = vld [vmem:[%s2190_s19 + $0x50] sm:$0xff]   ;;  %v2105_v28 = vld [vmem:[%s2190_s19 + $0x58] sm:$0xff]  }
  0x18   : > { %v2102_v25 = vld [vmem:[%s2190_s19 + $0xac] sm:$0xff]   ;;  %v2104_v27 = vld [vmem:[%s2190_s19 + $0xb4] sm:$0xff]   ;;  %v2106_v29 = vld [vmem:[%s2190_s19 + $0xbc] sm:$0xff]  }
  0x19   : > { %v2107_v30 = vld [vmem:[%s2190_s19 + $0x60] ss:$0 sps:$4 sm:$0x33]   ;;  %v2108_v31 = vld [vmem:[%s2190_s19 + $0xc4] ss:$0 sps:$4 sm:$0x33]  }
  0x1a   : > { %1860 = vmatmul.mubr.msk.bf16.gmra.mrb[4].mxu0 %vm267_vm3, %v2085_v8  ;;  %v2109_v32 = vld [vmem:[%s2190_s19 + $0xc8] sm:$0xff]   ;;  %v2111_v34 = vld [vmem:[%s2190_s19 + $0xd0] sm:$0xff]   ;;  %v2113_v36 = vld [vmem:[%s2190_s19 + $0xd8] sm:$0xff]  }
  0x1b   : > { %1914 = vmatmul.mubr.msk.bf16.gmra.mrb[4].mxu1 %vm267_vm3, %v2086_v9  ;;  %1863 = vmatprep.mubr.msk.bf16.mxu0 %vm2145_vm2, %v2143_v0  ;;  %v2110_v33 = vld [vmem:[%s2190_s19 + $0x12c] sm:$0xff]   ;;  %v2112_v35 = vld [vmem:[%s2190_s19 + $0x134] sm:$0xff]   ;;  %v2114_v37 = vld [vmem:[%s2190_s19 + $0x13c] sm:$0xff]  }
  0x1c   : > { %1917 = vmatprep.mubr.msk.bf16.mxu1 %vm2145_vm2, %v2143_v0  ;;  %v2115_v38 = vld [vmem:[%s2190_s19 + $0xe0] sm:$0xff]   ;;  %v2117_v40 = vld [vmem:[%s2190_s19 + $0xe8] sm:$0xff]   ;;  %v2119_v42 = vld [vmem:[%s2190_s19 + $0xf0] sm:$0xff]  }
  0x1d   : > { %v2116_v39 = vld [vmem:[%s2190_s19 + $0x144] sm:$0xff]   ;;  %v2118_v41 = vld [vmem:[%s2190_s19 + $0x14c] sm:$0xff]   ;;  %v2120_v43 = vld [vmem:[%s2190_s19 + $0x154] sm:$0xff]  }
  0x1e   : > { %v2121_v44 = vld [vmem:[%s2190_s19 + $0xf8] sm:$0xff]   ;;  %v2123_v46 = vld [vmem:[%s2190_s19 + $0x100] sm:$0xff]   ;;  %v2125_v48 = vld [vmem:[%s2190_s19 + $0x108] sm:$0xff]  }
  0x1f   : > { %v2122_v45 = vld [vmem:[%s2190_s19 + $0x15c] sm:$0xff]   ;;  %v2124_v47 = vld [vmem:[%s2190_s19 + $0x164] sm:$0xff]   ;;  %v2126_v49 = vld [vmem:[%s2190_s19 + $0x16c] sm:$0xff]  }
  0x20   : > { %v2127_v50 = vld [vmem:[%s2190_s19 + $0x110] sm:$0xff]   ;;  %v2129_v52 = vld [vmem:[%s2190_s19 + $0x118] sm:$0xff]   ;;  %v2131_v54 = vld [vmem:[%s2190_s19 + $0x120] sm:$0xff]  }
  0x21   : > { %v2128_v51 = vld [vmem:[%s2190_s19 + $0x174] sm:$0xff]   ;;  %v2130_v53 = vld [vmem:[%s2190_s19 + $0x17c] sm:$0xff]   ;;  %v2132_v55 = vld [vmem:[%s2190_s19 + $0x184] sm:$0xff]  }
  0x22   : > { %1864 = vmatmul.mubr.msk.bf16.gmra.mrb[8].mxu0 %vm267_vm3, %v2087_v10  ;;  %v2133_v56 = vld [vmem:[%s2190_s19 + $0x128] ss:$0 sps:$4 sm:$0x33]   ;;  %v2134_v57 = vld [vmem:[%s2190_s19 + $0x18c] ss:$0 sps:$4 sm:$0x33]  }
  0x23   : > { %1918 = vmatmul.mubr.msk.bf16.gmra.mrb[8].mxu1 %vm267_vm3, %v2088_v11  ;;  %1867 = vmatprep.mubr.msk.bf16.mxu0 %vm2145_vm2, %v2143_v0 }
  0x24   : > { %1921 = vmatprep.mubr.msk.bf16.mxu1 %vm2145_vm2, %v2143_v0 }
  0x2a   : > { %1868 = vmatmul.mubr.msk.bf16.gmra.mrb[12].mxu0 %vm267_vm3, %v2089_v12 }
  0x2b   : > { %1922 = vmatmul.mubr.msk.bf16.gmra.mrb[12].mxu1 %vm267_vm3, %v2090_v13  ;;  %1871 = vmatprep.mubr.msk.bf16.mxu0 %vm2145_vm2, %v2143_v0 }
  0x2c   : > { %1925 = vmatprep.mubr.msk.bf16.mxu1 %vm2145_vm2, %v2143_v0 }
  0x32   : > { %1872 = vmatmul.mubr.msk.bf16.gmra.mrb[16].mxu0 %vm267_vm3, %v2091_v14 }
  0x33   : > { %1926 = vmatmul.mubr.msk.bf16.gmra.mrb[16].mxu1 %vm267_vm3, %v2092_v15  ;;  %1875 = vmatprep.mubr.msk.bf16.mxu0 %vm2145_vm2, %v2143_v0 }
  0x34   : > { %1929 = vmatprep.mubr.msk.bf16.mxu1 %vm2145_vm2, %v2143_v0 }
  0x3a   : > { %1876 = vmatmul.mubr.msk.bf16.gmra.mrb[20].mxu0 %vm267_vm3, %v2093_v16 }
  0x3b   : > { %1930 = vmatmul.mubr.msk.bf16.gmra.mrb[20].mxu1 %vm267_vm3, %v2094_v17  ;;  %1879 = vmatprep.mubr.msk.bf16.mxu0 %vm2145_vm2, %v2143_v0 }
  0x3c   : > { %1933 = vmatprep.mubr.msk.bf16.mxu1 %vm2145_vm2, %v2143_v0 }
  0x42   : > { %1880 = vmatmul.mubr.msk.bf16.gmra.mrb[24].mxu0 %vm267_vm3, %v2095_v18 }
  0x43   : > { %1934 = vmatmul.mubr.msk.bf16.gmra.mrb[24].mxu1 %vm267_vm3, %v2096_v19  ;;  %1883 = vmatprep.mubr.msk.bf16.mxu0 %vm2145_vm2, %v2143_v0 }
  0x44   : > { %1937 = vmatprep.mubr.msk.bf16.mxu1 %vm2145_vm2, %v2143_v0 }
  0x4a   : > { %1884 = vmatmul.mubr.msk.bf16.gmra.mrb[28].mxu0 %vm267_vm3, %v2097_v20 }
  0x4b   : > { %1938 = vmatmul.mubr.msk.bf16.gmra.mrb[28].mxu1 %vm267_vm3, %v2098_v21  ;;  %1887 = vmatprep.mubr.msk.bf16.mxu0 %vm2145_vm2, %v2143_v0 }
  0x4c   : > { %1941 = vmatprep.mubr.msk.bf16.mxu1 %vm2145_vm2, %v2143_v0 }
  0x52   : > { %1888 = vmatmul.mubr.msk.bf16.gmra.mrb[32].mxu0 %vm267_vm3, %v2099_v22 }
  0x53   : > { %1942 = vmatmul.mubr.msk.bf16.gmra.mrb[32].mxu1 %vm267_vm3, %v2100_v23  ;;  %1891 = vmatprep.mubr.msk.bf16.mxu0 %vm2145_vm2, %v2143_v0 }
  0x54   : > { %1945 = vmatprep.mubr.msk.bf16.mxu1 %vm2145_vm2, %v2143_v0 }
  0x5a   : > { %1892 = vmatmul.mubr.msk.bf16.gmra.mrb[36].mxu0 %vm267_vm3, %v2101_v24 }
  0x5b   : > { %1946 = vmatmul.mubr.msk.bf16.gmra.mrb[36].mxu1 %vm267_vm3, %v2102_v25  ;;  %1895 = vmatprep.mubr.msk.bf16.mxu0 %vm2145_vm2, %v2143_v0 }
  0x5c   : > { %1949 = vmatprep.mubr.msk.bf16.mxu1 %vm2145_vm2, %v2143_v0 }
  0x62   : > { %1896 = vmatmul.mubr.msk.bf16.gmra.mrb[40].mxu0 %vm267_vm3, %v2103_v26 }
  0x63   : > { %1950 = vmatmul.mubr.msk.bf16.gmra.mrb[40].mxu1 %vm267_vm3, %v2104_v27  ;;  %1899 = vmatprep.mubr.msk.bf16.mxu0 %vm2145_vm2, %v2143_v0 }
  0x64   : > { %1953 = vmatprep.mubr.msk.bf16.mxu1 %vm2145_vm2, %v2143_v0 }
  0x6a   : > { %1900 = vmatmul.mubr.msk.bf16.gmra.mrb[44].mxu0 %vm267_vm3, %v2105_v28 }
  0x6b   : > { %1954 = vmatmul.mubr.msk.bf16.gmra.mrb[44].mxu1 %vm267_vm3, %v2106_v29  ;;  %1903 = vmatprep.mubr.msk.bf16.mxu0 %vm2145_vm2, %v2143_v0 }
  0x6c   : > { %1957 = vmatprep.mubr.msk.bf16.mxu1 %vm2145_vm2, %v2143_v0 }
  0x72   : > { %1904 = vmatmul.mubr.msk.bf16.gmra.mrb[48].mxu0 %vm267_vm3, %v2107_v30 }
  0x73   : > { %1958 = vmatmul.mubr.msk.bf16.gmra.mrb[48].mxu1 %vm267_vm3, %v2108_v31  ;;  %1963 = vmatprep.mubr.msk.bf16.mxu0 %vm2145_vm2, %v2143_v0 }
  0x74   : > { %2017 = vmatprep.mubr.msk.bf16.mxu1 %vm2145_vm2, %v2143_v0 }
  0x7a   : > { %1964 = vmatmul.mubr.msk.bf16.vlgmr.msra.gmra.mrb[52].mxu0 %vm267_vm3, %v2109_v32 }
  0x7b   : > { %2018 = vmatmul.mubr.msk.bf16.vlgmr.msra.gmra.mrb[52].mxu1 %vm267_vm3, %v2110_v33  ;;  %1967 = vmatprep.mubr.msk.bf16.mxu0 %vm2145_vm2, %v2143_v0 }
  0x7c   : > { %2021 = vmatprep.mubr.msk.bf16.mxu1 %vm2145_vm2, %v2143_v0 }
  0x82   : > { %1968 = vmatmul.mubr.msk.bf16.gmra.mrb[56].mxu0 %vm267_vm3, %v2111_v34 }
  0x83   : > { %2022 = vmatmul.mubr.msk.bf16.gmra.mrb[56].mxu1 %vm267_vm3, %v2112_v35  ;;  %1971 = vmatprep.mubr.msk.bf16.mxu0 %vm2145_vm2, %v2143_v0 }
  0x84   : > { %2025 = vmatprep.mubr.msk.bf16.mxu1 %vm2145_vm2, %v2143_v0 }
  0x8a   : > { %1972 = vmatmul.mubr.msk.bf16.gmra.mrb[60].mxu0 %vm267_vm3, %v2113_v36 }
  0x8b   : > { %2026 = vmatmul.mubr.msk.bf16.gmra.mrb[60].mxu1 %vm267_vm3, %v2114_v37  ;;  %1975 = vmatprep.mubr.msk.bf16.mxu0 %vm2145_vm2, %v2143_v0 }
  0x8c   : > { %2029 = vmatprep.mubr.msk.bf16.mxu1 %vm2145_vm2, %v2143_v0 }
  0x92   : > { %1976 = vmatmul.mubr.msk.bf16.gmra.mrb[64].mxu0 %vm267_vm3, %v2115_v38 }
  0x93   : > { %2030 = vmatmul.mubr.msk.bf16.gmra.mrb[64].mxu1 %vm267_vm3, %v2116_v39  ;;  %1979 = vmatprep.mubr.msk.bf16.mxu0 %vm2145_vm2, %v2143_v0 }
  0x94   : > { %2033 = vmatprep.mubr.msk.bf16.mxu1 %vm2145_vm2, %v2143_v0 }
  0x9a   : > { %1980 = vmatmul.mubr.msk.bf16.gmra.mrb[68].mxu0 %vm267_vm3, %v2117_v40 }
  0x9b   : > { %2034 = vmatmul.mubr.msk.bf16.gmra.mrb[68].mxu1 %vm267_vm3, %v2118_v41  ;;  %1983 = vmatprep.mubr.msk.bf16.mxu0 %vm2145_vm2, %v2143_v0 }
  0x9c   : > { %2037 = vmatprep.mubr.msk.bf16.mxu1 %vm2145_vm2, %v2143_v0 }
  0xa2   : > { %1984 = vmatmul.mubr.msk.bf16.gmra.mrb[72].mxu0 %vm267_vm3, %v2119_v42 }
  0xa3   : > { %2038 = vmatmul.mubr.msk.bf16.gmra.mrb[72].mxu1 %vm267_vm3, %v2120_v43  ;;  %1987 = vmatprep.mubr.msk.bf16.mxu0 %vm2145_vm2, %v2143_v0 }
  0xa4   : > { %2041 = vmatprep.mubr.msk.bf16.mxu1 %vm2145_vm2, %v2143_v0 }
  0xaa   : > { %1988 = vmatmul.mubr.msk.bf16.gmra.mrb[76].mxu0 %vm267_vm3, %v2121_v44 }
  0xab   : > { %2042 = vmatmul.mubr.msk.bf16.gmra.mrb[76].mxu1 %vm267_vm3, %v2122_v45  ;;  %1991 = vmatprep.mubr.msk.bf16.mxu0 %vm2145_vm2, %v2143_v0 }
  0xac   : > { %2045 = vmatprep.mubr.msk.bf16.mxu1 %vm2145_vm2, %v2143_v0 }
  0xb2   : > { %1992 = vmatmul.mubr.msk.bf16.gmra.mrb[80].mxu0 %vm267_vm3, %v2123_v46 }
  0xb3   : > { %2046 = vmatmul.mubr.msk.bf16.gmra.mrb[80].mxu1 %vm267_vm3, %v2124_v47  ;;  %1995 = vmatprep.mubr.msk.bf16.mxu0 %vm2145_vm2, %v2143_v0 }
  0xb4   : > { %2049 = vmatprep.mubr.msk.bf16.mxu1 %vm2145_vm2, %v2143_v0 }
  0xba   : > { %1996 = vmatmul.mubr.msk.bf16.gmra.mrb[84].mxu0 %vm267_vm3, %v2125_v48 }
  0xbb   : > { %2050 = vmatmul.mubr.msk.bf16.gmra.mrb[84].mxu1 %vm267_vm3, %v2126_v49  ;;  %1999 = vmatprep.mubr.msk.bf16.mxu0 %vm2145_vm2, %v2143_v0 }
  0xbc   : > { %2053 = vmatprep.mubr.msk.bf16.mxu1 %vm2145_vm2, %v2143_v0 }
  0xc2   : > { %2000 = vmatmul.mubr.msk.bf16.gmra.mrb[88].mxu0 %vm267_vm3, %v2127_v50 }
  0xc3   : > { %2054 = vmatmul.mubr.msk.bf16.gmra.mrb[88].mxu1 %vm267_vm3, %v2128_v51  ;;  %2003 = vmatprep.mubr.msk.bf16.mxu0 %vm2145_vm2, %v2143_v0 }
  0xc4   : > { %2057 = vmatprep.mubr.msk.bf16.mxu1 %vm2145_vm2, %v2143_v0 }
  0xca   : > { %2004 = vmatmul.mubr.msk.bf16.gmra.mrb[92].mxu0 %vm267_vm3, %v2129_v52 }
  0xcb   : > { %2058 = vmatmul.mubr.msk.bf16.gmra.mrb[92].mxu1 %vm267_vm3, %v2130_v53  ;;  %2007 = vmatprep.mubr.msk.bf16.mxu0 %vm2145_vm2, %v2143_v0 }
  0xcc   : > { %2061 = vmatprep.mubr.msk.bf16.mxu1 %vm2145_vm2, %v2143_v0 }
  0xd2   : > { %2008 = vmatmul.mubr.msk.bf16.gmra.mrb[96].mxu0 %vm267_vm3, %v2131_v54 }
  0xd3   : > { %2062 = vmatmul.mubr.msk.bf16.gmra.mrb[96].mxu1 %vm267_vm3, %v2132_v55  ;;  %2011 = vmatprep.mubr.msk.bf16.mxu0 %vm2145_vm2, %v2143_v0 }
  0xd4   : > { %2065 = vmatprep.mubr.msk.bf16.mxu1 %vm2145_vm2, %v2143_v0 }
  0xda   : > { %2012 = vmatmul.mubr.msk.bf16.gmra.mrb[100].mxu0 %vm267_vm3, %v2133_v56 }
  0xdb   : > { %2066 = vmatmul.mubr.msk.bf16.gmra.mrb[100].mxu1 %vm267_vm3, %v2134_v57 }
  0xe5   : > { %v2397_v58 = vpop.f32.mrb[0].mxu0 }
  0xe6   : > { %v2399_v59 = vpop.f32.mrb[0].mxu1  ;;  %v1857_v60 = vpop.f32.mrb[1].mxu0 }
  0xe7   : > { %v714_v61 = vmax.f32 %v2397_v58, %v2399_v59  ;;  %v1911_v62 = vpop.f32.mrb[1].mxu1  ;;  %v2403_v63 = vpop.f32.mrb[2].mxu0 }
  0xe8   : > { %v2405_v1 = vpop.f32.mrb[2].mxu1  ;;  %v1858_v0 = vpop.f32.mrb[3].mxu0 }
  0xe9   : > { %v715_v2 = vmax.f32 %v2403_v63, %v2405_v1  ;;  %v1912_v3 = vpop.f32.mrb[3].mxu1 }
  0xed   : > { %v2409_v4 = vpop.f32.mrb[4].mxu0 }
  0xee   : > { %v2411_v5 = vpop.f32.mrb[4].mxu1  ;;  %v1861_v6 = vpop.f32.mrb[5].mxu0 }
  0xef   : > { %v1915_v8 = vpop.f32.mrb[5].mxu1  ;;  %v2415_v9 = vpop.f32.mrb[6].mxu0 }
  0xf0   : > { %v2417_v10 = vpop.f32.mrb[6].mxu1  ;;  %v1862_v11 = vpop.f32.mrb[7].mxu0 }
  0xf1   : > { %v1916_v13 = vpop.f32.mrb[7].mxu1 }
  0xf5   : > { %v2421_v14 = vpop.f32.mrb[8].mxu0 }
  0xf6   : > { %v2423_v15 = vpop.f32.mrb[8].mxu1  ;;  %v1865_v16 = vpop.f32.mrb[9].mxu0 }
  0xf7   : > { %v1919_v18 = vpop.f32.mrb[9].mxu1  ;;  %v2427_v19 = vpop.f32.mrb[10].mxu0 }
  0xf8   : > { %v2429_v20 = vpop.f32.mrb[10].mxu1  ;;  %v1866_v21 = vpop.f32.mrb[11].mxu0 }
  0xf9   : > { %v1920_v23 = vpop.f32.mrb[11].mxu1 }
  0xfd   : > { %v2433_v24 = vpop.f32.mrb[12].mxu0 }
  0xfe   : > { %v2435_v25 = vpop.f32.mrb[12].mxu1  ;;  %v1869_v26 = vpop.f32.mrb[13].mxu0 }
  0xff   : > { %v1923_v28 = vpop.f32.mrb[13].mxu1  ;;  %v2439_v29 = vpop.f32.mrb[14].mxu0 }
 0x100   : > { %v2441_v30 = vpop.f32.mrb[14].mxu1  ;;  %v1870_v31 = vpop.f32.mrb[15].mxu0 }
 0x101   : > { %v1924_v33 = vpop.f32.mrb[15].mxu1 }
 0x105   : > { %v2445_v34 = vpop.f32.mrb[16].mxu0 }
 0x106   : > { %v2447_v35 = vpop.f32.mrb[16].mxu1  ;;  %v1873_v36 = vpop.f32.mrb[17].mxu0 }
 0x107   : > { %v1927_v38 = vpop.f32.mrb[17].mxu1  ;;  %v2451_v39 = vpop.f32.mrb[18].mxu0 }
 0x108   : > { %v2453_v40 = vpop.f32.mrb[18].mxu1  ;;  %v1874_v41 = vpop.f32.mrb[19].mxu0 }
 0x109   : > { %v1928_v43 = vpop.f32.mrb[19].mxu1 }
 0x10d   : > { %v2457_v44 = vpop.f32.mrb[20].mxu0 }
 0x10e   : > { %v2459_v45 = vpop.f32.mrb[20].mxu1  ;;  %v1877_v46 = vpop.f32.mrb[21].mxu0 }
 0x10f   : > { %v1931_v48 = vpop.f32.mrb[21].mxu1  ;;  %v2463_v49 = vpop.f32.mrb[22].mxu0 }
 0x110   : > { %v2465_v50 = vpop.f32.mrb[22].mxu1  ;;  %v1878_v51 = vpop.f32.mrb[23].mxu0 }
 0x111   : > { %v1932_v53 = vpop.f32.mrb[23].mxu1 }
 0x115   : > { %v2469_v54 = vpop.f32.mrb[24].mxu0 }
 0x116   : > { %v2471_v55 = vpop.f32.mrb[24].mxu1  ;;  %v1881_v56 = vpop.f32.mrb[25].mxu0 }
 0x117   : > { %v1935_v60 = vpop.f32.mrb[25].mxu1  ;;  %v2475_v62 = vpop.f32.mrb[26].mxu0 }
 0x118   : > { %v2477_v0 = vpop.f32.mrb[26].mxu1  ;;  %v1882_v3 = vpop.f32.mrb[27].mxu0 }
 0x119   : > { %v1936_v8 = vpop.f32.mrb[27].mxu1 }
 0x11d   : > { %v2481_v11 = vpop.f32.mrb[28].mxu0 }
 0x11e   : > { %v2483_v13 = vpop.f32.mrb[28].mxu1  ;;  %v1885_v16 = vpop.f32.mrb[29].mxu0 }
 0x11f   : > { %v1939_v21 = vpop.f32.mrb[29].mxu1  ;;  %v2487_v23 = vpop.f32.mrb[30].mxu0 }
 0x120   : > { %v2489_v26 = vpop.f32.mrb[30].mxu1  ;;  %v1886_v28 = vpop.f32.mrb[31].mxu0 }
 0x121   : > { %v1940_v33 = vpop.f32.mrb[31].mxu1 }
 0x125   : > { %v2493_v36 = vpop.f32.mrb[32].mxu0 }
 0x126   : > { %v2495_v38 = vpop.f32.mrb[32].mxu1  ;;  %v1889_v41 = vpop.f32.mrb[33].mxu0 }
 0x127   : > { %v1943_v46 = vpop.f32.mrb[33].mxu1  ;;  %v2499_v48 = vpop.f32.mrb[34].mxu0 }
 0x128   : > { %v2501_v51 = vpop.f32.mrb[34].mxu1  ;;  %v1890_v53 = vpop.f32.mrb[35].mxu0 }
 0x129   : > { %v1944_v60 = vpop.f32.mrb[35].mxu1 }
 0x12d   : > { %v2505_v3 = vpop.f32.mrb[36].mxu0 }
 0x12e   : > { %v2507_v8 = vpop.f32.mrb[36].mxu1  ;;  %v1893_v16 = vpop.f32.mrb[37].mxu0 }
 0x12f   : > { %v1947_v28 = vpop.f32.mrb[37].mxu1  ;;  %v2511_v33 = vpop.f32.mrb[38].mxu0 }
 0x130   : > { %v2513_v41 = vpop.f32.mrb[38].mxu1  ;;  %v1894_v46 = vpop.f32.mrb[39].mxu0 }
 0x131   : > { %v1948_v43 = vpop.f32.mrb[39].mxu1 }
 0x135   : > { %v2517_v56 = vpop.f32.mrb[40].mxu0 }
 0x136   : > { %v2519_v60 = vpop.f32.mrb[40].mxu1  ;;  %v1897_v31 = vpop.f32.mrb[41].mxu0 }
 0x137   : > { %v1951_v18 = vpop.f32.mrb[41].mxu1  ;;  %v2523_v21 = vpop.f32.mrb[42].mxu0 }
 0x138   : > { %v2525_v28 = vpop.f32.mrb[42].mxu1  ;;  %v1898_v6 = vpop.f32.mrb[43].mxu0 }
 0x139   : > { %v1952_v57 = vpop.f32.mrb[43].mxu1 }
 0x13d   : > { %v2529_v53 = vpop.f32.mrb[44].mxu0 }
 0x13e   : > { %v2531_v43 = vpop.f32.mrb[44].mxu1  ;;  %v1901_v52 = vpop.f32.mrb[45].mxu0 }
 0x13f   : > { %v1955_v47 = vpop.f32.mrb[45].mxu1  ;;  %v2535_v16 = vpop.f32.mrb[46].mxu0 }
 0x140   : > { %v2537_v18 = vpop.f32.mrb[46].mxu1  ;;  %v1902_v42 = vpop.f32.mrb[47].mxu0 }
 0x141   : > { %v1956_v37 = vpop.f32.mrb[47].mxu1 }
 0x145   : > { %v2541_v46 = vpop.f32.mrb[48].mxu0 }
 0x146   : > { %v2543_v57 = vpop.f32.mrb[48].mxu1  ;;  %v1905_v32 = vpop.f32.mrb[49].mxu0 }
 0x147   : > { %v1959_v27 = vpop.f32.mrb[49].mxu1  ;;  %v447_v47 = vpop.f32.mrb[50].mxu0  ;;  %v2553_v32 = vld [vmem:[%s2712_s2] ss:$0 sm:$0xff] }
 0x148   : > { %v711_v31 = vpop.f32.mrb[50].mxu1  ;;  %v1906_v22 = vpop.f32.mrb[51].mxu0 }
 0x149   : > { %v1960_v17 = vpop.f32.mrb[51].mxu1 }
 0x14d   : > { %v901_v12 = vpop.f32.mrb[52].mxu0 }
 0x14e   : > { %v1003_v42 = vmax.f32 %v714_v61, %v901_v12  ;;  %v1190_v37 = vpop.f32.mrb[52].mxu1  ;;  %v1965_v6 = vpop.f32.mrb[53].mxu0 }
 0x14f   : > { %v2019_v7 = vpop.f32.mrb[53].mxu1  ;;  %v904_v52 = vpop.f32.mrb[54].mxu0 }
 0x150   : > { %v1292_v27 = vmax.f32 %v1003_v42, %v1190_v37  ;;  %v1004_v22 = vmax.f32 %v715_v2, %v904_v52  ;;  %v1193_v17 = vpop.f32.mrb[54].mxu1  ;;  %v1966_v31 = vpop.f32.mrb[55].mxu0  ;;  %v2714_v7 = vmax.f32 %v2409_v4, %v2411_v5 }
 0x151   : > { %v2020_v47 = vpop.f32.mrb[55].mxu1  ;;  %v2715_v31 = vmax.f32 %v2415_v9, %v2417_v10  ;;  %v2716_v9 = vmax.f32 %v2421_v14, %v2423_v15 }
 0x152   : > { %v1324_v58 = vadd.f32 %v2553_v32, %v1292_v27  ;;  %v1293_v59 = vmax.f32 %v1004_v22, %v1193_v17 }
 0x154   : > { %v1349_v61 = vmax.f32 %v1324_v58, 0.0  ;;  %v1325_v12 = vadd.f32 %v2553_v32, %v1293_v59 }
 0x155   : > { %v909_v63 = vpop.f32.mrb[56].mxu0 }
 0x156   : > { %v1772_v1 = vpack.c.bf16 %v1349_v61, %v1349_v61  ;;  %v1350_v2 = vmax.f32 %v1325_v12, 0.0  ;;  %v1005_v6 = vmax.f32 %v2714_v7, %v909_v63  ;;  %v1198_v52 = vpop.f32.mrb[56].mxu1  ;;  %v1969_v42 = vpop.f32.mrb[57].mxu0 }
 0x157   : > { %v2023_v37 = vpop.f32.mrb[57].mxu1  ;;  %v912_v27 = vpop.f32.mrb[58].mxu0 }
 0x158   : > { %1476 = vst.msk [vmem:[%s2564_s25] sm:$0xf] %vm1475_vm4, %v1772_v1  ;;  %v1773_v22 = vpack.c.bf16 %v1350_v2, %v1350_v2  ;;  %v1294_v17 = vmax.f32 %v1005_v6, %v1198_v52  ;;  %v1006_v47 = vmax.f32 %v2715_v31, %v912_v27  ;;  %v1201_v58 = vpop.f32.mrb[58].mxu1  ;;  %v1970_v59 = vpop.f32.mrb[59].mxu0 }
 0x159   : > { %v2024_v61 = vpop.f32.mrb[59].mxu1 }
 0x15a   : > { %1477 = vst.msk [vmem:[%s2564_s25 + $0x4] sm:$0xf] %vm1475_vm4, %v1773_v22  ;;  %v1326_v4 = vadd.f32 %v2553_v32, %v1294_v17  ;;  %v1295_v5 = vmax.f32 %v1006_v47, %v1201_v58  ;;  %v2717_v17 = vmax.f32 %v2427_v19, %v2429_v20  ;;  %v2718_v19 = vmax.f32 %v2433_v24, %v2435_v25 }
 0x15c   : > { %v1351_v12 = vmax.f32 %v1326_v4, 0.0  ;;  %v1327_v63 = vadd.f32 %v2553_v32, %v1295_v5 }
 0x15d   : > { %v917_v1 = vpop.f32.mrb[60].mxu0 }
 0x15e   : > { %v1774_v2 = vpack.c.bf16 %v1351_v12, %v1351_v12  ;;  %v1352_v7 = vmax.f32 %v1327_v63, 0.0  ;;  %v1007_v10 = vmax.f32 %v2716_v9, %v917_v1  ;;  %v1206_v6 = vpop.f32.mrb[60].mxu1  ;;  %v1973_v52 = vpop.f32.mrb[61].mxu0 }
 0x15f   : > { %v2027_v42 = vpop.f32.mrb[61].mxu1  ;;  %v920_v37 = vpop.f32.mrb[62].mxu0  ;;  %v2719_v52 = vmax.f32 %v2439_v29, %v2441_v30  ;;  %v2720_v29 = vmax.f32 %v2445_v34, %v2447_v35 }
 0x160   : > { %1478 = vst.msk [vmem:[%s2564_s25 + $0x8] sm:$0xf] %vm1475_vm4, %v1774_v2  ;;  %v1775_v27 = vpack.c.bf16 %v1352_v7, %v1352_v7  ;;  %v1296_v22 = vmax.f32 %v1007_v10, %v1206_v6  ;;  %v1008_v31 = vmax.f32 %v2717_v17, %v920_v37  ;;  %v1209_v47 = vpop.f32.mrb[62].mxu1  ;;  %v1974_v58 = vpop.f32.mrb[63].mxu0 }
 0x161   : > { %v2028_v59 = vpop.f32.mrb[63].mxu1 }
 0x162   : > { %1479 = vst.msk [vmem:[%s2564_s25 + $0xc] sm:$0xf] %vm1475_vm4, %v1775_v27  ;;  %v1328_v14 = vadd.f32 %v2553_v32, %v1296_v22  ;;  %v1297_v15 = vmax.f32 %v1008_v31, %v1209_v47 }
 0x164   : > { %v1353_v61 = vmax.f32 %v1328_v14, 0.0  ;;  %v1329_v4 = vadd.f32 %v2553_v32, %v1297_v15 }
 0x165   : > { %v925_v5 = vpop.f32.mrb[64].mxu0 }
 0x166   : > { %v1776_v12 = vpack.c.bf16 %v1353_v61, %v1353_v61  ;;  %v1354_v63 = vmax.f32 %v1329_v4, 0.0  ;;  %v1009_v20 = vmax.f32 %v2718_v19, %v925_v5  ;;  %v1214_v1 = vpop.f32.mrb[64].mxu1  ;;  %v1977_v2 = vpop.f32.mrb[65].mxu0 }
 0x167   : > { %v2031_v7 = vpop.f32.mrb[65].mxu1  ;;  %v928_v9 = vpop.f32.mrb[66].mxu0 }
 0x168   : > { %1480 = vst.msk [vmem:[%s2564_s25 + $0x10] sm:$0xf] %vm1475_vm4, %v1776_v12  ;;  %v1777_v10 = vpack.c.bf16 %v1354_v63, %v1354_v63  ;;  %v1298_v6 = vmax.f32 %v1009_v20, %v1214_v1  ;;  %v1010_v42 = vmax.f32 %v2719_v52, %v928_v9  ;;  %v1217_v37 = vpop.f32.mrb[66].mxu1  ;;  %v1978_v27 = vpop.f32.mrb[67].mxu0  ;;  %v2721_v63 = vmax.f32 %v2451_v39, %v2453_v40 }
 0x169   : > { %v2032_v22 = vpop.f32.mrb[67].mxu1  ;;  %v2722_v39 = vmax.f32 %v2457_v44, %v2459_v45 }
 0x16a   : > { %1481 = vst.msk [vmem:[%s2564_s25 + $0x14] sm:$0xf] %vm1475_vm4, %v1777_v10  ;;  %v1330_v24 = vadd.f32 %v2553_v32, %v1298_v6  ;;  %v1299_v25 = vmax.f32 %v1010_v42, %v1217_v37 }
 0x16c   : > { %v1355_v17 = vmax.f32 %v1330_v24, 0.0  ;;  %v1331_v31 = vadd.f32 %v2553_v32, %v1299_v25 }
 0x16d   : > { %v933_v47 = vpop.f32.mrb[68].mxu0 }
 0x16e   : > { %v1778_v58 = vpack.c.bf16 %v1355_v17, %v1355_v17  ;;  %v1356_v59 = vmax.f32 %v1331_v31, 0.0  ;;  %v1011_v30 = vmax.f32 %v2720_v29, %v933_v47  ;;  %v1222_v14 = vpop.f32.mrb[68].mxu1  ;;  %v1981_v15 = vpop.f32.mrb[69].mxu0  ;;  %v2723_v17 = vmax.f32 %v2463_v49, %v2465_v50 }
 0x16f   : > { %v2035_v61 = vpop.f32.mrb[69].mxu1  ;;  %v936_v4 = vpop.f32.mrb[70].mxu0  ;;  %v2724_v49 = vmax.f32 %v2469_v54, %v2471_v55 }
 0x170   : > { %1482 = vst.msk [vmem:[%s2564_s25 + $0x18] sm:$0xf] %vm1475_vm4, %v1778_v58  ;;  %v1779_v5 = vpack.c.bf16 %v1356_v59, %v1356_v59  ;;  %v1300_v12 = vmax.f32 %v1011_v30, %v1222_v14  ;;  %v1012_v19 = vmax.f32 %v2721_v63, %v936_v4  ;;  %v1225_v20 = vpop.f32.mrb[70].mxu1  ;;  %v1982_v1 = vpop.f32.mrb[71].mxu0 }
 0x171   : > { %v2036_v2 = vpop.f32.mrb[71].mxu1  ;;  %v2725_v1 = vmax.f32 %v2475_v62, %v2477_v0  ;;  %v2726_v62 = vmax.f32 %v2481_v11, %v2483_v13 }
 0x172   : > { %1483 = vst.msk [vmem:[%s2564_s25 + $0x1c] sm:$0xf] %vm1475_vm4, %v1779_v5  ;;  %v1332_v34 = vadd.f32 %v2553_v32, %v1300_v12  ;;  %v1301_v35 = vmax.f32 %v1012_v19, %v1225_v20 }
 0x174   : > { %v1357_v7 = vmax.f32 %v1332_v34, 0.0  ;;  %v1333_v9 = vadd.f32 %v2553_v32, %v1301_v35 }
 0x175   : > { %v941_v10 = vpop.f32.mrb[72].mxu0 }
 0x176   : > { %v1780_v6 = vpack.c.bf16 %v1357_v7, %v1357_v7  ;;  %v1358_v52 = vmax.f32 %v1333_v9, 0.0  ;;  %v1013_v40 = vmax.f32 %v2722_v39, %v941_v10  ;;  %v1230_v42 = vpop.f32.mrb[72].mxu1  ;;  %v1985_v37 = vpop.f32.mrb[73].mxu0 }
 0x177   : > { %v2039_v27 = vpop.f32.mrb[73].mxu1  ;;  %v944_v22 = vpop.f32.mrb[74].mxu0 }
 0x178   : > { %1484 = vst.msk [vmem:[%s2564_s25 + $0x20] sm:$0xf] %vm1475_vm4, %v1780_v6  ;;  %v1781_v24 = vpack.c.bf16 %v1358_v52, %v1358_v52  ;;  %v1302_v25 = vmax.f32 %v1013_v40, %v1230_v42  ;;  %v1014_v31 = vmax.f32 %v2723_v17, %v944_v22  ;;  %v1233_v47 = vpop.f32.mrb[74].mxu1  ;;  %v1986_v58 = vpop.f32.mrb[75].mxu0 }
 0x179   : > { %v2040_v59 = vpop.f32.mrb[75].mxu1 }
 0x17a   : > { %1485 = vst.msk [vmem:[%s2564_s25 + $0x24] sm:$0xf] %vm1475_vm4, %v1781_v24  ;;  %v1334_v44 = vadd.f32 %v2553_v32, %v1302_v25  ;;  %v1303_v45 = vmax.f32 %v1014_v31, %v1233_v47  ;;  %v2727_v25 = vmax.f32 %v2487_v23, %v2489_v26  ;;  %v2728_v23 = vmax.f32 %v2493_v36, %v2495_v38 }
 0x17c   : > { %v1359_v29 = vmax.f32 %v1334_v44, 0.0  ;;  %v1335_v30 = vadd.f32 %v2553_v32, %v1303_v45 }
 0x17d   : > { %v949_v14 = vpop.f32.mrb[76].mxu0 }
 0x17e   : > { %v1782_v15 = vpack.c.bf16 %v1359_v29, %v1359_v29  ;;  %v1360_v61 = vmax.f32 %v1335_v30, 0.0  ;;  %v1015_v50 = vmax.f32 %v2724_v49, %v949_v14  ;;  %v1238_v4 = vpop.f32.mrb[76].mxu1  ;;  %v1989_v5 = vpop.f32.mrb[77].mxu0 }
 0x17f   : > { %v2043_v12 = vpop.f32.mrb[77].mxu1  ;;  %v952_v63 = vpop.f32.mrb[78].mxu0  ;;  %v2729_v5 = vmax.f32 %v2499_v48, %v2501_v51  ;;  %v2730_v48 = vmax.f32 %v2505_v3, %v2507_v8 }
 0x180   : > { %1486 = vst.msk [vmem:[%s2564_s25 + $0x28] sm:$0xf] %vm1475_vm4, %v1782_v15  ;;  %v1783_v19 = vpack.c.bf16 %v1360_v61, %v1360_v61  ;;  %v1304_v20 = vmax.f32 %v1015_v50, %v1238_v4  ;;  %v1016_v2 = vmax.f32 %v2725_v1, %v952_v63  ;;  %v1241_v34 = vpop.f32.mrb[78].mxu1  ;;  %v1990_v35 = vpop.f32.mrb[79].mxu0 }
 0x181   : > { %v2044_v7 = vpop.f32.mrb[79].mxu1 }
 0x182   : > { %1487 = vst.msk [vmem:[%s2564_s25 + $0x2c] sm:$0xf] %vm1475_vm4, %v1783_v19  ;;  %v1336_v54 = vadd.f32 %v2553_v32, %v1304_v20  ;;  %v1305_v55 = vmax.f32 %v1016_v2, %v1241_v34 }
 0x184   : > { %v1361_v9 = vmax.f32 %v1336_v54, 0.0  ;;  %v1337_v10 = vadd.f32 %v2553_v32, %v1305_v55 }
 0x185   : > { %v957_v6 = vpop.f32.mrb[80].mxu0 }
 0x186   : > { %v1784_v52 = vpack.c.bf16 %v1361_v9, %v1361_v9  ;;  %v1362_v39 = vmax.f32 %v1337_v10, 0.0  ;;  %v1017_v0 = vmax.f32 %v2726_v62, %v957_v6  ;;  %v1246_v40 = vpop.f32.mrb[80].mxu1  ;;  %v1993_v42 = vpop.f32.mrb[81].mxu0 }
 0x187   : > { %v2047_v37 = vpop.f32.mrb[81].mxu1  ;;  %v960_v27 = vpop.f32.mrb[82].mxu0 }
 0x188   : > { %1488 = vst.msk [vmem:[%s2564_s25 + $0x30] sm:$0xf] %vm1475_vm4, %v1784_v52  ;;  %v1785_v22 = vpack.c.bf16 %v1362_v39, %v1362_v39  ;;  %v1306_v24 = vmax.f32 %v1017_v0, %v1246_v40  ;;  %v1018_v17 = vmax.f32 %v2727_v25, %v960_v27  ;;  %v1249_v31 = vpop.f32.mrb[82].mxu1  ;;  %v1994_v47 = vpop.f32.mrb[83].mxu0  ;;  %v2731_v39 = vmax.f32 %v2511_v33, %v2513_v41 }
 0x189   : > { %v2048_v58 = vpop.f32.mrb[83].mxu1  ;;  %v2732_v33 = vmax.f32 %v2517_v56, %v2519_v60 }
 0x18a   : > { %1489 = vst.msk [vmem:[%s2564_s25 + $0x34] sm:$0xf] %vm1475_vm4, %v1785_v22  ;;  %v1338_v11 = vadd.f32 %v2553_v32, %v1306_v24  ;;  %v1307_v13 = vmax.f32 %v1018_v17, %v1249_v31 }
 0x18c   : > { %v1363_v59 = vmax.f32 %v1338_v11, 0.0  ;;  %v1339_v44 = vadd.f32 %v2553_v32, %v1307_v13 }
 0x18d   : > { %v965_v45 = vpop.f32.mrb[84].mxu0 }
 0x18e   : > { %v1786_v29 = vpack.c.bf16 %v1363_v59, %v1363_v59  ;;  %v1364_v30 = vmax.f32 %v1339_v44, 0.0  ;;  %v1019_v26 = vmax.f32 %v2728_v23, %v965_v45  ;;  %v1254_v14 = vpop.f32.mrb[84].mxu1  ;;  %v1997_v15 = vpop.f32.mrb[85].mxu0  ;;  %v2733_v59 = vmax.f32 %v2523_v21, %v2525_v28 }
 0x18f   : > { %v2051_v61 = vpop.f32.mrb[85].mxu1  ;;  %v968_v49 = vpop.f32.mrb[86].mxu0  ;;  %v2734_v21 = vmax.f32 %v2529_v53, %v2531_v43 }
 0x190   : > { %1490 = vst.msk [vmem:[%s2564_s25 + $0x38] sm:$0xf] %vm1475_vm4, %v1786_v29  ;;  %v1787_v50 = vpack.c.bf16 %v1364_v30, %v1364_v30  ;;  %v1308_v4 = vmax.f32 %v1019_v26, %v1254_v14  ;;  %v1020_v12 = vmax.f32 %v2729_v5, %v968_v49  ;;  %v1257_v63 = vpop.f32.mrb[86].mxu1  ;;  %v1998_v19 = vpop.f32.mrb[87].mxu0 }
 0x191   : > { %v2052_v20 = vpop.f32.mrb[87].mxu1  ;;  %v2735_v19 = vmax.f32 %v2535_v16, %v2537_v18  ;;  %v2736_v16 = vmax.f32 %v2541_v46, %v2543_v57 }
 0x192   : > { %1491 = vst.msk [vmem:[%s2564_s25 + $0x3c] sm:$0xf] %vm1475_vm4, %v1787_v50  ;;  %v1340_v36 = vadd.f32 %v2553_v32, %v1308_v4  ;;  %v1309_v38 = vmax.f32 %v1020_v12, %v1257_v63 }
 0x194   : > { %v1365_v1 = vmax.f32 %v1340_v36, 0.0  ;;  %v1341_v2 = vadd.f32 %v2553_v32, %v1309_v38 }
 0x195   : > { %v973_v34 = vpop.f32.mrb[88].mxu0 }
 0x196   : > { %v1788_v35 = vpack.c.bf16 %v1365_v1, %v1365_v1  ;;  %v1366_v7 = vmax.f32 %v1341_v2, 0.0  ;;  %v1021_v51 = vmax.f32 %v2730_v48, %v973_v34  ;;  %v1262_v54 = vpop.f32.mrb[88].mxu1  ;;  %v2001_v55 = vpop.f32.mrb[89].mxu0 }
 0x197   : > { %v2055_v9 = vpop.f32.mrb[89].mxu1  ;;  %v976_v10 = vpop.f32.mrb[90].mxu0 }
 0x198   : > { %1492 = vst.msk [vmem:[%s2564_s25 + $0x40] sm:$0xf] %vm1475_vm4, %v1788_v35  ;;  %v1789_v6 = vpack.c.bf16 %v1366_v7, %v1366_v7  ;;  %v1310_v52 = vmax.f32 %v1021_v51, %v1262_v54  ;;  %v1022_v62 = vmax.f32 %v2731_v39, %v976_v10  ;;  %v1265_v0 = vpop.f32.mrb[90].mxu1  ;;  %v2002_v40 = vpop.f32.mrb[91].mxu0 }
 0x199   : > { %v2056_v42 = vpop.f32.mrb[91].mxu1 }
 0x19a   : > { %1493 = vst.msk [vmem:[%s2564_s25 + $0x44] sm:$0xf] %vm1475_vm4, %v1789_v6  ;;  %v1342_v3 = vadd.f32 %v2553_v32, %v1310_v52  ;;  %v1311_v8 = vmax.f32 %v1022_v62, %v1265_v0 }
 0x19c   : > { %v1367_v37 = vmax.f32 %v1342_v3, 0.0  ;;  %v1343_v27 = vadd.f32 %v2553_v32, %v1311_v8 }
 0x19d   : > { %v981_v22 = vpop.f32.mrb[92].mxu0 }
 0x19e   : > { %v1790_v24 = vpack.c.bf16 %v1367_v37, %v1367_v37  ;;  %v1368_v25 = vmax.f32 %v1343_v27, 0.0  ;;  %v1023_v41 = vmax.f32 %v2732_v33, %v981_v22  ;;  %v1270_v17 = vpop.f32.mrb[92].mxu1  ;;  %v2005_v31 = vpop.f32.mrb[93].mxu0 }
 0x19f   : > { %v2059_v47 = vpop.f32.mrb[93].mxu1  ;;  %v984_v58 = vpop.f32.mrb[94].mxu0 }
 0x1a0   : > { %1494 = vst.msk [vmem:[%s2564_s25 + $0x48] sm:$0xf] %vm1475_vm4, %v1790_v24  ;;  %v1791_v11 = vpack.c.bf16 %v1368_v25, %v1368_v25  ;;  %v1312_v13 = vmax.f32 %v1023_v41, %v1270_v17  ;;  %v1024_v44 = vmax.f32 %v2733_v59, %v984_v58  ;;  %v1273_v45 = vpop.f32.mrb[94].mxu1  ;;  %v2006_v29 = vpop.f32.mrb[95].mxu0 }
 0x1a1   : > { %v2060_v30 = vpop.f32.mrb[95].mxu1 }
 0x1a2   : > { %1495 = vst.msk [vmem:[%s2564_s25 + $0x4c] sm:$0xf] %vm1475_vm4, %v1791_v11  ;;  %v1344_v56 = vadd.f32 %v2553_v32, %v1312_v13  ;;  %v1313_v60 = vmax.f32 %v1024_v44, %v1273_v45 }
 0x1a4   : > { %v1369_v23 = vmax.f32 %v1344_v56, 0.0  ;;  %v1345_v26 = vadd.f32 %v2553_v32, %v1313_v60 }
 0x1a5   : > { %v989_v14 = vpop.f32.mrb[96].mxu0 }
 0x1a6   : > { %v1792_v15 = vpack.c.bf16 %v1369_v23, %v1369_v23  ;;  %v1370_v61 = vmax.f32 %v1345_v26, 0.0  ;;  %v1025_v28 = vmax.f32 %v2734_v21, %v989_v14  ;;  %v1278_v49 = vpop.f32.mrb[96].mxu1  ;;  %v2009_v50 = vpop.f32.mrb[97].mxu0 }
 0x1a7   : > { %v2063_v4 = vpop.f32.mrb[97].mxu1  ;;  %v992_v5 = vpop.f32.mrb[98].mxu0 }
 0x1a8   : > { %1496 = vst.msk [vmem:[%s2564_s25 + $0x50] sm:$0xf] %vm1475_vm4, %v1792_v15  ;;  %v1793_v12 = vpack.c.bf16 %v1370_v61, %v1370_v61  ;;  %v1314_v63 = vmax.f32 %v1025_v28, %v1278_v49  ;;  %v1026_v20 = vmax.f32 %v2735_v19, %v992_v5  ;;  %v1281_v36 = vpop.f32.mrb[98].mxu1  ;;  %v2010_v38 = vpop.f32.mrb[99].mxu0 }
 0x1a9   : > { %v2064_v1 = vpop.f32.mrb[99].mxu1 }
 0x1aa   : > { %1497 = vst.msk [vmem:[%s2564_s25 + $0x54] sm:$0xf] %vm1475_vm4, %v1793_v12  ;;  %v1346_v53 = vadd.f32 %v2553_v32, %v1314_v63  ;;  %v1315_v43 = vmax.f32 %v1026_v20, %v1281_v36 }
 0x1ac   : > { %v1371_v2 = vmax.f32 %v1346_v53, 0.0  ;;  %v1347_v34 = vadd.f32 %v2553_v32, %v1315_v43 }
 0x1ad   : > { %v997_v35 = vpop.f32.mrb[100].mxu0 }
 0x1ae   : > { %v1794_v7 = vpack.c.bf16 %v1371_v2, %v1371_v2  ;;  %v1372_v48 = vmax.f32 %v1347_v34, 0.0  ;;  %v1027_v18 = vmax.f32 %v2736_v16, %v997_v35  ;;  %v1286_v51 = vpop.f32.mrb[100].mxu1  ;;  %v2013_v54 = vpop.f32.mrb[101].mxu0 }
 0x1af   : > { %v2067_v55 = vpop.f32.mrb[101].mxu1  ;;  %v1000_v9 = vpop.f32.mrb[102].mxu0 }
 0x1b0   : > { %1498 = vst.msk [vmem:[%s2564_s25 + $0x58] sm:$0xf] %vm1475_vm4, %v1794_v7  ;;  %v1795_v10 = vpack.c.bf16 %v1372_v48, %v1372_v48  ;;  %v1316_v6 = vmax.f32 %v1027_v18, %v1286_v51  ;;  %v1289_v52 = vpop.f32.mrb[102].mxu1  ;;  %v2014_v39 = vpop.f32.mrb[103].mxu0 }
 0x1b1   : > { %v2068_v62 = vpop.f32.mrb[103].mxu1 }
 0x1b2   : > { %1499 = vst.msk [vmem:[%s2564_s25 + $0x5c] sm:$0xf] %vm1475_vm4, %v1795_v10  ;;  %v1348_v0 = vadd.f32 %v2553_v32, %v1316_v6 }
 0x1b4   : > { %v1373_v40 = vmax.f32 %v1348_v0, 0.0 }
 0x1b6   : > { %v1796_v46 = vpack.c.bf16 %v1373_v40, %v1373_v40 }
 0x1b8   : > { %1501 = vst.msk [vmem:[%s2564_s25 + $0x60] sm:$0x3] %vm1500_vm5, %v1796_v46 }
 0x1b9 PF: > { %s13_s12 = sadd.s32 1, %s2141_s12  }
 0x1ba   : > { %p10_p4 = scmp.ge.s32.totalorder %s13_s12, 4  }
 0x1bc   :  { %12 = sbr.rel (!%p10_p4) target bundleno = 1 (0x1), region = 65 }

// kernel: cnn_forward.4
= control target key start
LH: loop header
LB: loop body
LE: loop exit
PB: predicated region body
PF: predicated region fallthrough
CT: control target
= control target key end

     0   :  { %s1791_s12 = smov 0   ;;  %s2099_s0 = inlined_call_operand.vmem [shape: bf16[2,4,49,288], index: 0, kind: input, shape index: {}]   ;;  %s2100_s1 = inlined_call_operand.vmem [shape: bf16[288,64], index: 1, kind: input, shape index: {}]   ;;  %s2101_s2 = inlined_call_operand.vmem [shape: f32[1,64], index: 2, kind: input, shape index: {}]   ;;  %s2102_s3 = inlined_call_operand.vmem [shape: bf16[2,49,64], index: 3, kind: output, shape index: {}]  }
   0x1 LB: > { %s1295_s13 = sadd.s32 4294967295, %s1769_s12   ;;  %p1299_p0 = scmp.ge.s32.totalorder %s1769_s12, 1  ;;  %s1769_s12 = sphi %s1791_s12, %s13_s12  }
   0x2   : > { %p137_p1 = scmp.lt.s32.totalorder %s1769_s12, 3 }
   0x4   : > { %p138_p2 = pnand %p1299_p0, %p137_p1 }
   0x5   : > { %v1802_v0 = vld [vmem:[%s2100_s1 + $0x40] sm:$0xff] (!%p138_p2)   ;;  %v1814_v2 = vld [vmem:[%s2100_s1 + $0x48] sm:$0xff] (!%p138_p2)   ;;  %p161_p3 = scmp.lt.s32.totalorder (!%p138_p2), %s1295_s13, 1  ;;  %v1828_v4 = vld [vmem:[%s2100_s1 + $0x50] sm:$0xff] (!%p138_p2)   ;;  %vm385_vm0 = vcmask (!%p138_p2), 261120   ;;  %vm1227_vm1 = vcmask (!%p138_p2), 519168  }
   0x6   : > { %141 = sbr.rel (%p138_p2) target bundleno = 353 (0x161), region = 32  ;;  %v1807_v1 = vld [vmem:[%s2100_s1] sm:$0xff] (!%p138_p2)   ;;  %1443 = vmatprep.subr.bf16.mxu0 (!%p138_p2), %v1802_v0  ;;  %1489 = vmatprep.subr.bf16.mxu1 (!%p138_p2), %v1802_v0  ;;  %v1821_v3 = vld [vmem:[%s2100_s1 + $0x8] sm:$0xff] (!%p138_p2)   ;;  %v1837_v5 = vld [vmem:[%s2100_s1 + $0x10] sm:$0xff] (!%p138_p2)   ;;  %vm1234_vm2 = vcmask (!%p138_p2), 516096  }
   0x7   : > { %1444 = vmatpush3.bf16.msra.mxu0 (!%p138_p2), %v1807_v1  ;;  %1490 = vmatpush3.bf16.msra.mxu1 (!%p138_p2), %v1807_v1  ;;  %v1844_v6 = vld [vmem:[%s2100_s1 + $0x58] sm:$0xff] (!%p138_p2)   ;;  %v1859_v8 = vld [vmem:[%s2100_s1 + $0x60] sm:$0xff] (!%p138_p2)   ;;  %v1878_v10 = vld [vmem:[%s2100_s1 + $0x68] sm:$0xff] (!%p138_p2)   ;;  %vm1235_vm3 = vsmask.f32 (!%p138_p2), 256 }
   0x8   : > { %1445 = vmatprep.subr.bf16.mxu0 (!%p138_p2), %v1814_v2  ;;  %1491 = vmatprep.subr.bf16.mxu1 (!%p138_p2), %v1814_v2  ;;  %v1852_v7 = vld [vmem:[%s2100_s1 + $0x18] sm:$0xff] (!%p138_p2)   ;;  %v1871_v9 = vld [vmem:[%s2100_s1 + $0x20] sm:$0xff] (!%p138_p2)   ;;  %v1887_v13 = vld [vmem:[%s2100_s1 + $0x28] sm:$0xff] (!%p138_p2)  }
   0x9   : > { %v1894_v14 = vld [vmem:[%s2100_s1 + $0x70] sm:$0xff] (!%p138_p2)   ;;  %v1908_v16 = vld [vmem:[%s2100_s1 + $0x78] sm:$0xff] (!%p138_p2)   ;;  %v1922_v18 = vld [vmem:[%s2100_s1 + $0x80] sm:$0xff] (!%p138_p2)  }
   0xa   : > { %v1901_v15 = vld [vmem:[%s2100_s1 + $0x30] sm:$0xff] (!%p138_p2)   ;;  %v1915_v17 = vld [vmem:[%s2100_s1 + $0x38] sm:$0xff] (!%p138_p2)   ;;  %v1935_v23 = vld [vmem:[%s2100_s1 + $0x88] sm:$0xff] (!%p138_p2)  }
   0xb   : > { %1446 = vmatpush3.bf16.msra.mxu0 (!%p138_p2), %v1821_v3  ;;  %1492 = vmatpush3.bf16.msra.mxu1 (!%p138_p2), %v1821_v3  ;;  %vm1236_vm4 = vmand (!%p138_p2), %vm1234_vm2, %vm1235_vm3 }
   0xc   : > { %1447 = vmatprep.subr.bf16.mxu0 (!%p138_p2), %v1828_v4  ;;  %1493 = vmatprep.subr.bf16.mxu1 (!%p138_p2), %v1828_v4 }
   0xd   : > { %s2104_s13 = smov (!%p161_p3, %s1295_s13), 1 }
   0xe   : > { %s1675_s28 = smul.u32 336, %s2104_s13 }
   0xf   : > { %1448 = vmatpush3.bf16.msra.mxu0 %v1837_v5  ;;  %1494 = vmatpush3.bf16.msra.mxu1 %v1837_v5  ;;  %s1676_s4 = smul.u32 28, %s2104_s13 }
  0x10   : > { %1449 = vmatprep.subr.bf16.mxu0 %v1844_v6  ;;  %1495 = vmatprep.subr.bf16.mxu1 %v1844_v6  ;;  %s1864_s8 = scalar_lea.vmem %s2099_s0, %s1675_s28 }
  0x11   : > { %v1703_v11 = vld [vmem:[%s1864_s8 + $0x4] ss:$12 sps:$4 sm:$0xff]   ;;  %v1701_v19 = vld [vmem:[%s1864_s8] ss:$12 sps:$4 sm:$0xff]   ;;  %v1708_v21 = vld [vmem:[%s1864_s8 + $0x1c] ss:$12 sps:$4 sm:$0xff]   ;;  %s2079_s7 = scalar_lea.vmem %s2102_s3, %s1676_s4 }
  0x12   : > { %v1706_v12 = vld [vmem:[%s1864_s8 + $0x58] ss:$12 sps:$4 sm:$0xff]   ;;  %430 = vmatprep.mubr.bf16.mxu0 %v1703_v11  ;;  %v1704_v20 = vld [vmem:[%s1864_s8 + $0x54] ss:$12 sps:$4 sm:$0xff]   ;;  %v1710_v22 = vld [vmem:[%s1864_s8 + $0x70] ss:$12 sps:$4 sm:$0xff]  }
  0x13   : > { %1450 = vmatpush3.bf16.msra.mxu0 %v1852_v7  ;;  %1496 = vmatpush3.bf16.msra.mxu1 %v1852_v7  ;;  %v1712_v24 = vld [vmem:[%s1864_s8 + $0x18] ss:$12 sps:$4 sm:$0xff]   ;;  %v1714_v26 = vld [vmem:[%s1864_s8 + $0x34] ss:$12 sps:$4 sm:$0xff]   ;;  %v184_v28 = vld [vmem:[%s1864_s8 + $0x48] sm:$0x11] }
  0x14   : > { %1451 = vmatprep.subr.bf16.mxu0 %v1859_v8  ;;  %1497 = vmatprep.subr.bf16.mxu1 %v1859_v8  ;;  %v1713_v25 = vld [vmem:[%s1864_s8 + $0x6c] ss:$12 sps:$4 sm:$0xff]   ;;  %v1716_v27 = vld [vmem:[%s1864_s8 + $0x88] ss:$12 sps:$4 sm:$0xff]   ;;  %v1348_v29 = vld [vmem:[%s1864_s8 + $0x9c] sm:$0x11]  ;;  %v1312_v32 = vcombine.high %v184_v28, %v184_v28  ;;  %v1311_v34 = vcombine.low %v184_v28, %v184_v28 }
  0x15   : > { %640 = vmatprep.mubr.bf16.mxu1 %v1706_v12  ;;  %v1718_v30 = vld [vmem:[%s1864_s8 + $0x30] ss:$12 sps:$4 sm:$0xff]   ;;  %v1360_v33 = vcombine.high %v1348_v29, %v1348_v29  ;;  %v1359_v35 = vcombine.low %v1348_v29, %v1348_v29  ;;  %v1725_v36 = vld [vmem:[%s1864_s8 + $0x8] ss:$12 sps:$4 sm:$0xff]   ;;  %v1728_v37 = vld [vmem:[%s1864_s8 + $0xac] ss:$12 sps:$4 sm:$0xff]  }
  0x16   : > { %v1719_v31 = vld [vmem:[%s1864_s8 + $0x84] ss:$12 sps:$4 sm:$0xff]   ;;  %v1726_v38 = vld [vmem:[%s1864_s8 + $0xa8] ss:$12 sps:$4 sm:$0xff]   ;;  %v1729_v39 = vld [vmem:[%s1864_s8 + $0x20] ss:$12 sps:$4 sm:$0xff]  }
  0x17   : > { %1452 = vmatpush3.bf16.msra.mxu0 %v1871_v9  ;;  %1498 = vmatpush3.bf16.msra.mxu1 %v1871_v9  ;;  %v1730_v40 = vld [vmem:[%s1864_s8 + $0x38] ss:$12 sps:$4 sm:$0xff]   ;;  %v1733_v42 = vld [vmem:[%s1864_s8 + $0x50] ss:$0 sps:$4 sm:$0x11]  }
  0x18   : > { %1453 = vmatprep.subr.bf16.mxu0 %v1878_v10  ;;  %1499 = vmatprep.subr.bf16.mxu1 %v1878_v10  ;;  %v1731_v41 = vld [vmem:[%s1864_s8 + $0xc4] ss:$12 sps:$4 sm:$0xff]   ;;  %v1734_v43 = vld [vmem:[%s1864_s8 + $0xc0] ss:$12 sps:$4 sm:$0xff]   ;;  %v1735_v44 = vld [vmem:[%s1864_s8 + $0x5c] ss:$12 sps:$4 sm:$0xff]  }
  0x19   : > { %v1736_v45 = vld [vmem:[%s1864_s8 + $0xdc] ss:$12 sps:$4 sm:$0xff]   ;;  %v1738_v46 = vld [vmem:[%s1864_s8 + $0x74] ss:$12 sps:$4 sm:$0xff]   ;;  %v1739_v47 = vld [vmem:[%s1864_s8 + $0xd8] ss:$12 sps:$4 sm:$0xff]  }
  0x1a   : > { %v1378_v48 = vld [vmem:[%s1864_s8 + $0xf0] sm:$0x11]  ;;  %v1740_v49 = vld [vmem:[%s1864_s8 + $0x8c] ss:$12 sps:$4 sm:$0xff]   ;;  %v1745_v55 = vld [vmem:[%s1864_s8 + $0xfc] ss:$12 sps:$4 sm:$0xff]  }
  0x1b   : > { %1454 = vmatpush3.bf16.msra.mxu0 %v1887_v13  ;;  %1500 = vmatpush3.bf16.msra.mxu1 %v1887_v13  ;;  %v1390_v50 = vcombine.high %v1378_v48, %v1378_v48  ;;  %v1742_v51 = vld [vmem:[%s1864_s8 + $0xa4] ss:$0 sps:$4 sm:$0x11]   ;;  %v1389_v52 = vcombine.low %v1378_v48, %v1378_v48  ;;  %v1744_v53 = vld [vmem:[%s1864_s8 + $0xb0] ss:$12 sps:$4 sm:$0xff]  }
  0x1c   : > { %1455 = vmatprep.subr.bf16.mxu0 %v1894_v14  ;;  %1501 = vmatprep.subr.bf16.mxu1 %v1894_v14  ;;  %v1747_v54 = vld [vmem:[%s1864_s8 + $0x100] ss:$12 sps:$4 sm:$0xff]   ;;  %v1748_v56 = vld [vmem:[%s1864_s8 + $0xc8] ss:$12 sps:$4 sm:$0xff]   ;;  %v1750_v58 = vld [vmem:[%s1864_s8 + $0x118] ss:$12 sps:$4 sm:$0xff]  }
  0x1d   : > { %v1749_v57 = vld [vmem:[%s1864_s8 + $0xe0] ss:$12 sps:$4 sm:$0xff]   ;;  %v1752_v59 = vld [vmem:[%s1864_s8 + $0xf8] ss:$0 sps:$4 sm:$0x11]  }
  0x1e   : > { %v1753_v60 = vld [vmem:[%s1864_s8 + $0x114] ss:$12 sps:$4 sm:$0xff]   ;;  %v1754_v61 = vld [vmem:[%s1864_s8 + $0x130] ss:$12 sps:$4 sm:$0xff]   ;;  %v1408_v63 = vld [vmem:[%s1864_s8 + $0x144] sm:$0x11] }
  0x1f   : > { %1456 = vmatpush3.bf16.msra.mxu0 %v1901_v15  ;;  %1502 = vmatpush3.bf16.msra.mxu1 %v1901_v15  ;;  %v1756_v62 = vld [vmem:[%s1864_s8 + $0x104] ss:$12 sps:$4 sm:$0xff]  }
  0x20   : > { %1457 = vmatprep.subr.bf16.mxu0 %v1908_v16  ;;  %1503 = vmatprep.subr.bf16.mxu1 %v1908_v16 }
  0x23   : > { %1458 = vmatpush3.bf16.msra.mxu0 %v1915_v17  ;;  %1504 = vmatpush3.bf16.msra.mxu1 %v1915_v17 }
  0x24   : > { %1535 = vmatprep.subr.bf16.mxu1 %v1802_v0  ;;  %1627 = vmatprep.subr.bf16.mxu0 %v1922_v18 }
  0x26   : > { %431 = vmatmul.mubr.bf16.vlgmr.msra.gmra.mrb[0].mxu0 %v1701_v19  ;;  %641 = vmatmul.mubr.bf16.vlgmr.msra.gmra.mrb[0].mxu1 %v1704_v20 }
  0x27   : > { %1536 = vmatpush3.bf16.msra.mxu1 %v1807_v1  ;;  %1628 = vmatpush3.bf16.msra.mxu0 %v1922_v18 }
  0x28   : > { %1537 = vmatprep.subr.bf16.mxu1 %v1814_v2  ;;  %438 = vmatprep.mubr.bf16.mxu0 %v1708_v21 }
  0x29   : > { %648 = vmatprep.mubr.bf16.mxu1 %v1710_v22  ;;  %1629 = vmatprep.subr.bf16.mxu0 %v1935_v23 }
  0x2b   : > { %1538 = vmatpush3.bf16.msra.mxu1 %v1821_v3  ;;  %1630 = vmatpush3.bf16.msra.mxu0 %v1935_v23 }
  0x2c   : > { %1539 = vmatprep.subr.bf16.mxu1 %v1828_v4  ;;  %1639 = vmatprep.subr.bf16.mxu0 %v1922_v18 }
  0x2e   : > { %439 = vmatmul.mubr.bf16.gmra.mrb[4].mxu0 %v1712_v24  ;;  %649 = vmatmul.mubr.bf16.gmra.mrb[4].mxu1 %v1713_v25 }
  0x2f   : > { %1540 = vmatpush3.bf16.msra.mxu1 %v1837_v5  ;;  %446 = vmatprep.mubr.bf16.mxu0 %v1714_v26 }
  0x30   : > { %1541 = vmatprep.subr.bf16.mxu1 %v1844_v6  ;;  %656 = vmatprep.mubr.bf16.mxu1 %v1716_v27 }
  0x33   : > { %1542 = vmatpush3.bf16.msra.mxu1 %v1852_v7 }
  0x34   : > { %1543 = vmatprep.subr.bf16.mxu1 %v1859_v8 }
  0x36   : > { %447 = vmatmul.mubr.bf16.gmra.mrb[8].mxu0 %v1718_v30  ;;  %657 = vmatmul.mubr.bf16.gmra.mrb[8].mxu1 %v1719_v31 }
  0x37   : > { %1544 = vmatpush3.bf16.msra.mxu1 %v1871_v9  ;;  %454 = vmatprep.mubr.bf16.mxu0 %v1312_v32 }
  0x38   : > { %1545 = vmatprep.subr.bf16.mxu1 %v1878_v10  ;;  %664 = vmatprep.mubr.bf16.mxu1 %v1360_v33 }
  0x3b   : > { %1546 = vmatpush3.bf16.msra.mxu1 %v1887_v13 }
  0x3c   : > { %1547 = vmatprep.subr.bf16.mxu1 %v1894_v14 }
  0x3e   : > { %455 = vmatmul.mubr.bf16.gmra.mrb[12].mxu0 %v1311_v34  ;;  %665 = vmatmul.mubr.bf16.gmra.mrb[12].mxu1 %v1359_v35 }
  0x3f   : > { %1548 = vmatpush3.bf16.msra.mxu1 %v1901_v15  ;;  %1631 = vmatprep.mubr.msk.bf16.mxu0 %vm385_vm0, %v1725_v36 }
  0x40   : > { %1549 = vmatprep.subr.bf16.mxu1 %v1908_v16  ;;  %857 = vmatprep.mubr.bf16.mxu1 %v1728_v37 }
  0x43   : > { %1550 = vmatpush3.bf16.msra.mxu1 %v1915_v17 }
  0x44   : > { %1581 = vmatprep.subr.bf16.mxu1 %v1802_v0  ;;  %v1757_v0 = vld [vmem:[%s1864_s8 + $0x12c] ss:$12 sps:$4 sm:$0xff]  }
  0x46   : > { %1632 = vmatmul.mubr.msk.bf16.vlgmr.msra.gmra.mrb[16].mxu0 %vm385_vm0, %v1729_v39  ;;  %858 = vmatmul.mubr.bf16.vlgmr.msra.gmra.mrb[16].mxu1 %v1726_v38 }
  0x47   : > { %1582 = vmatpush3.bf16.msra.mxu1 %v1807_v1  ;;  %1640 = vmatpush3.bf16.msra.mxu0 %v1922_v18  ;;  %v1758_v1 = vld [vmem:[%s1864_s8 + $0x11c] ss:$12 sps:$4 sm:$0xff]  }
  0x48   : > { %1583 = vmatprep.subr.bf16.mxu1 %v1814_v2  ;;  %1635 = vmatprep.mubr.msk.bf16.mxu0 %vm385_vm0, %v1730_v40  ;;  %v1420_v2 = vcombine.high %v1408_v63, %v1408_v63 }
  0x49   : > { %865 = vmatprep.mubr.bf16.mxu1 %v1731_v41  ;;  %1641 = vmatprep.subr.bf16.mxu0 %v1935_v23 }
  0x4b   : > { %1584 = vmatpush3.bf16.msra.mxu1 %v1821_v3  ;;  %1642 = vmatpush3.bf16.msra.mxu0 %v1935_v23  ;;  %v1760_v3 = vld [vmem:[%s1864_s8 + $0x134] ss:$12 sps:$4 sm:$0xff]  }
  0x4c   : > { %1585 = vmatprep.subr.bf16.mxu1 %v1828_v4  ;;  %1651 = vmatprep.subr.bf16.mxu0 %v1922_v18  ;;  %v1419_v4 = vcombine.low %v1408_v63, %v1408_v63 }
  0x4e   : > { %1636 = vmatmul.mubr.msk.bf16.gmra.mrb[20].mxu0 %vm385_vm0, %v1733_v42  ;;  %866 = vmatmul.mubr.bf16.gmra.mrb[20].mxu1 %v1734_v43 }
  0x4f   : > { %1586 = vmatpush3.bf16.msra.mxu1 %v1837_v5  ;;  %1643 = vmatprep.mubr.msk.bf16.mxu0 %vm385_vm0, %v1735_v44  ;;  %v1762_v5 = vld [vmem:[%s1864_s8 + $0x14c] ss:$0 sps:$4 sm:$0x11]  }
  0x50   : > { %1587 = vmatprep.subr.bf16.mxu1 %v1844_v6  ;;  %873 = vmatprep.mubr.bf16.mxu1 %v1736_v45 }
  0x53   : > { %1588 = vmatpush3.bf16.msra.mxu1 %v1852_v7 }
  0x54   : > { %1589 = vmatprep.subr.bf16.mxu1 %v1859_v8 }
  0x56   : > { %1644 = vmatmul.mubr.msk.bf16.vlgmr.msra.gmra.mrb[24].mxu0 %vm385_vm0, %v1738_v46  ;;  %874 = vmatmul.mubr.bf16.gmra.mrb[24].mxu1 %v1739_v47 }
  0x57   : > { %1590 = vmatpush3.bf16.msra.mxu1 %v1871_v9  ;;  %1652 = vmatpush3.bf16.msra.mxu0 %v1922_v18 }
  0x58   : > { %1591 = vmatprep.subr.bf16.mxu1 %v1878_v10  ;;  %1647 = vmatprep.mubr.msk.bf16.mxu0 %vm385_vm0, %v1740_v49 }
  0x59   : > { %881 = vmatprep.mubr.bf16.mxu1 %v1390_v50  ;;  %1653 = vmatprep.subr.bf16.mxu0 %v1935_v23 }
  0x5b   : > { %1592 = vmatpush3.bf16.msra.mxu1 %v1887_v13  ;;  %1654 = vmatpush3.bf16.msra.mxu0 %v1935_v23 }
  0x5c   : > { %1593 = vmatprep.subr.bf16.mxu1 %v1894_v14  ;;  %1663 = vmatprep.subr.bf16.mxu0 %v1922_v18 }
  0x5e   : > { %1648 = vmatmul.mubr.msk.bf16.gmra.mrb[28].mxu0 %vm385_vm0, %v1742_v51  ;;  %882 = vmatmul.mubr.bf16.gmra.mrb[28].mxu1 %v1389_v52 }
  0x5f   : > { %1594 = vmatpush3.bf16.msra.mxu1 %v1901_v15  ;;  %1655 = vmatprep.mubr.msk.bf16.mxu0 %vm385_vm0, %v1744_v53 }
  0x60   : > { %1595 = vmatprep.subr.bf16.mxu1 %v1908_v16  ;;  %1074 = vmatprep.mubr.bf16.mxu1 %v1747_v54 }
  0x63   : > { %1596 = vmatpush3.bf16.msra.mxu1 %v1915_v17 }
  0x66   : > { %1656 = vmatmul.mubr.msk.bf16.vlgmr.msra.gmra.mrb[32].mxu0 %vm385_vm0, %v1748_v56  ;;  %1075 = vmatmul.mubr.bf16.vlgmr.msra.gmra.mrb[32].mxu1 %v1745_v55 }
  0x67   : > { %1664 = vmatpush3.bf16.msra.mxu0 %v1922_v18  ;;  %1659 = vmatprep.mubr.msk.bf16.mxu0 %vm385_vm0, %v1749_v57 }
  0x68   : > { %1082 = vmatprep.mubr.bf16.mxu1 %v1750_v58  ;;  %1665 = vmatprep.subr.bf16.mxu0 %v1935_v23 }
  0x6b   : > { %1666 = vmatpush3.bf16.msra.mxu0 %v1935_v23 }
  0x6e   : > { %1660 = vmatmul.mubr.msk.bf16.gmra.mrb[36].mxu0 %vm385_vm0, %v1752_v59  ;;  %1083 = vmatmul.mubr.bf16.gmra.mrb[36].mxu1 %v1753_v60 }
  0x6f   : > { %1090 = vmatprep.mubr.bf16.mxu1 %v1754_v61  ;;  %1667 = vmatprep.mubr.msk.bf16.mxu0 %vm385_vm0, %v1756_v62 }
  0x76   : > { %1091 = vmatmul.mubr.bf16.gmra.mrb[40].mxu1 %v1757_v0  ;;  %1668 = vmatmul.mubr.msk.bf16.vlgmr.msra.gmra.mrb[40].mxu0 %vm385_vm0, %v1758_v1 }
  0x77   : > { %1098 = vmatprep.mubr.bf16.mxu1 %v1420_v2  ;;  %1671 = vmatprep.mubr.msk.bf16.mxu0 %vm385_vm0, %v1760_v3 }
  0x7e   : > { %1099 = vmatmul.mubr.bf16.gmra.mrb[44].mxu1 %v1419_v4  ;;  %1672 = vmatmul.mubr.msk.bf16.gmra.mrb[44].mxu0 %vm385_vm0, %v1762_v5 }
  0xf9   : > { %v1459_v6 = vpop.f32.mrb[0].mxu0  ;;  %v1505_v7 = vpop.f32.mrb[0].mxu1 }
  0xfa   : > { %v1460_v8 = vpop.f32.mrb[1].mxu0  ;;  %v1506_v9 = vpop.f32.mrb[1].mxu1 }
  0xfb   : > { %v1461_v10 = vadd.f32 %v1460_v8, %v1459_v6  ;;  %v2037_v11 = vadd.f32 %v1506_v9, %v1505_v7  ;;  %v1462_v12 = vpop.f32.mrb[2].mxu0  ;;  %v1508_v13 = vpop.f32.mrb[2].mxu1 }
  0xfc   : > { %v1463_v14 = vpop.f32.mrb[3].mxu0  ;;  %v1509_v15 = vpop.f32.mrb[3].mxu1 }
  0xfd   : > { %v1464_v16 = vadd.f32 %v1463_v14, %v1462_v12  ;;  %v2039_v17 = vadd.f32 %v1509_v15, %v1508_v13 }
 0x101   : > { %v1465_v18 = vpop.f32.mrb[4].mxu0  ;;  %v1511_v19 = vpop.f32.mrb[4].mxu1 }
 0x102   : > { %v1466_v20 = vpop.f32.mrb[5].mxu0  ;;  %v1512_v21 = vpop.f32.mrb[5].mxu1 }
 0x103   : > { %v1467_v22 = vadd.f32 %v1466_v20, %v1465_v18  ;;  %v1513_v23 = vadd.f32 %v1512_v21, %v1511_v19  ;;  %v1468_v24 = vpop.f32.mrb[6].mxu0  ;;  %v1514_v25 = vpop.f32.mrb[6].mxu1 }
 0x104   : > { %v1469_v26 = vpop.f32.mrb[7].mxu0  ;;  %v1515_v27 = vpop.f32.mrb[7].mxu1 }
 0x105   : > { %v1470_v28 = vadd.f32 %v1469_v26, %v1468_v24  ;;  %v1516_v29 = vadd.f32 %v1515_v27, %v1514_v25 }
 0x109   : > { %v1471_v30 = vpop.f32.mrb[8].mxu0  ;;  %v1517_v31 = vpop.f32.mrb[8].mxu1 }
 0x10a   : > { %v1472_v32 = vpop.f32.mrb[9].mxu0  ;;  %v1518_v33 = vpop.f32.mrb[9].mxu1 }
 0x10b   : > { %v1473_v34 = vadd.f32 %v1472_v32, %v1471_v30  ;;  %v2041_v35 = vadd.f32 %v1518_v33, %v1517_v31  ;;  %v1474_v36 = vpop.f32.mrb[10].mxu0  ;;  %v1520_v37 = vpop.f32.mrb[10].mxu1 }
 0x10c   : > { %v1475_v38 = vpop.f32.mrb[11].mxu0  ;;  %v1521_v39 = vpop.f32.mrb[11].mxu1 }
 0x10d   : > { %v1476_v40 = vadd.f32 %v1475_v38, %v1474_v36  ;;  %v2043_v41 = vadd.f32 %v1521_v39, %v1520_v37 }
 0x111   : > { %v1477_v42 = vpop.f32.mrb[12].mxu0  ;;  %v1523_v43 = vpop.f32.mrb[12].mxu1 }
 0x112   : > { %v1478_v44 = vpop.f32.mrb[13].mxu0  ;;  %v1524_v45 = vpop.f32.mrb[13].mxu1 }
 0x113   : > { %v1479_v46 = vadd.f32 %v1478_v44, %v1477_v42  ;;  %v1525_v47 = vadd.f32 %v1524_v45, %v1523_v43  ;;  %v1480_v48 = vpop.f32.mrb[14].mxu0  ;;  %v1526_v49 = vpop.f32.mrb[14].mxu1 }
 0x114   : > { %v1481_v50 = vpop.f32.mrb[15].mxu0  ;;  %v1527_v51 = vpop.f32.mrb[15].mxu1 }
 0x119   : > { %v1633_v52 = vpop.f32.mrb[16].mxu0  ;;  %v1551_v53 = vpop.f32.mrb[16].mxu1 }
 0x11a   : > { %v2045_v54 = vadd.f32 %v1633_v52, %v1467_v22  ;;  %v496_v55 = vpop.f32.mrb[17].mxu0  ;;  %v1552_v56 = vpop.f32.mrb[17].mxu1 }
 0x11b   : > { %v2047_v57 = vadd.f32 %v1461_v10, %v496_v55  ;;  %v1553_v58 = vadd.f32 %v1552_v56, %v1551_v53  ;;  %v1634_v59 = vpop.f32.mrb[18].mxu0  ;;  %v1554_v60 = vpop.f32.mrb[18].mxu1 }
 0x11c   : > { %v2049_v61 = vadd.f32 %v1634_v59, %v1470_v28  ;;  %v499_v62 = vpop.f32.mrb[19].mxu0  ;;  %v1555_v63 = vpop.f32.mrb[19].mxu1 }
 0x11d   : > { %v2051_v0 = vadd.f32 %v1464_v16, %v499_v62  ;;  %v1556_v1 = vadd.f32 %v1555_v63, %v1554_v60 }
 0x121   : > { %v1637_v2 = vpop.f32.mrb[20].mxu0  ;;  %v1557_v3 = vpop.f32.mrb[20].mxu1 }
 0x122   : > { %v2053_v4 = vadd.f32 %v1637_v2, %v1479_v46  ;;  %v512_v5 = vpop.f32.mrb[21].mxu0  ;;  %v1558_v6 = vpop.f32.mrb[21].mxu1 }
 0x123   : > { %v2055_v7 = vadd.f32 %v1473_v34, %v512_v5  ;;  %v1559_v8 = vadd.f32 %v1558_v6, %v1557_v3  ;;  %v1638_v9 = vpop.f32.mrb[22].mxu0  ;;  %v1560_v10 = vpop.f32.mrb[22].mxu1 }
 0x124   : > { %v515_v12 = vpop.f32.mrb[23].mxu0  ;;  %v1561_v13 = vpop.f32.mrb[23].mxu1 }
 0x125   : > { %v2057_v14 = vadd.f32 %v1476_v40, %v515_v12  ;;  %v1562_v15 = vadd.f32 %v1561_v13, %v1560_v10 }
 0x129   : > { %v1645_v18 = vpop.f32.mrb[24].mxu0  ;;  %v1563_v16 = vpop.f32.mrb[24].mxu1 }
 0x12a   : > { %v715_v19 = vadd.f32 %v1645_v18, %v1513_v23  ;;  %v706_v20 = vpop.f32.mrb[25].mxu0  ;;  %v1564_v21 = vpop.f32.mrb[25].mxu1 }
 0x12b   : > { %v707_v22 = vadd.f32 %v2037_v11, %v706_v20  ;;  %v1565_v24 = vadd.f32 %v1564_v21, %v1563_v16  ;;  %v1646_v25 = vpop.f32.mrb[26].mxu0  ;;  %v1566_v26 = vpop.f32.mrb[26].mxu1 }
 0x12c   : > { %v738_v27 = vmax.f32 %v2045_v54, %v715_v19  ;;  %v718_v28 = vadd.f32 %v1646_v25, %v1516_v29  ;;  %v709_v30 = vpop.f32.mrb[27].mxu0  ;;  %v1567_v31 = vpop.f32.mrb[27].mxu1 }
 0x12d   : > { %v736_v32 = vmax.f32 %v2047_v57, %v707_v22  ;;  %v710_v33 = vadd.f32 %v2039_v17, %v709_v30  ;;  %v1568_v34 = vadd.f32 %v1567_v31, %v1566_v26 }
 0x12e   : > { %v739_v36 = vmax.f32 %v2049_v61, %v718_v28 }
 0x12f   : > { %v737_v23 = vmax.f32 %v2051_v0, %v710_v33 }
 0x131   : > { %v1649_v37 = vpop.f32.mrb[28].mxu0  ;;  %v1569_v38 = vpop.f32.mrb[28].mxu1 }
 0x132   : > { %v731_v11 = vadd.f32 %v1649_v37, %v1525_v47  ;;  %v722_v39 = vpop.f32.mrb[29].mxu0  ;;  %v1570_v40 = vpop.f32.mrb[29].mxu1 }
 0x133   : > { %v723_v42 = vadd.f32 %v2041_v35, %v722_v39  ;;  %v1571_v43 = vadd.f32 %v1570_v40, %v1569_v38  ;;  %v1650_v29 = vpop.f32.mrb[30].mxu0  ;;  %v1572_v44 = vpop.f32.mrb[30].mxu1 }
 0x134   : > { %v742_v45 = vmax.f32 %v2053_v4, %v731_v11  ;;  %v725_v46 = vpop.f32.mrb[31].mxu0  ;;  %v1573_v48 = vpop.f32.mrb[31].mxu1 }
 0x135   : > { %v740_v17 = vmax.f32 %v2055_v7, %v723_v42  ;;  %v726_v49 = vadd.f32 %v2043_v41, %v725_v46 }
 0x137   : > { %v741_v50 = vmax.f32 %v2057_v14, %v726_v49 }
 0x139   : > { %v1657_v51 = vpop.f32.mrb[32].mxu0  ;;  %v1597_v52 = vpop.f32.mrb[32].mxu1 }
 0x13a   : > { %v932_v47 = vadd.f32 %v1657_v51, %v1559_v8  ;;  %v923_v53 = vpop.f32.mrb[33].mxu0  ;;  %v1598_v54 = vpop.f32.mrb[33].mxu1 }
 0x13b   : > { %v924_v55 = vadd.f32 %v1553_v58, %v923_v53  ;;  %v1599_v35 = vadd.f32 %v1598_v54, %v1597_v52  ;;  %v1658_v56 = vpop.f32.mrb[34].mxu0  ;;  %v1600_v57 = vpop.f32.mrb[34].mxu1 }
 0x13c   : > { %v955_v59 = vmax.f32 %v738_v27, %v932_v47  ;;  %v935_v60 = vadd.f32 %v1658_v56, %v1562_v15  ;;  %v926_v61 = vpop.f32.mrb[35].mxu0  ;;  %v1601_v62 = vpop.f32.mrb[35].mxu1 }
 0x13d   : > { %v953_v63 = vmax.f32 %v736_v32, %v924_v55  ;;  %v927_v0 = vadd.f32 %v1556_v1, %v926_v61  ;;  %v1602_v2 = vadd.f32 %v1601_v62, %v1600_v57 }
 0x13e   : > { %v956_v3 = vmax.f32 %v739_v36, %v935_v60 }
 0x13f   : > { %v954_v41 = vmax.f32 %v737_v23, %v927_v0 }
 0x141   : > { %v1661_v4 = vpop.f32.mrb[36].mxu0  ;;  %v1603_v5 = vpop.f32.mrb[36].mxu1 }
 0x142   : > { %v948_v6 = vadd.f32 %v1661_v4, %v1571_v43  ;;  %v939_v7 = vpop.f32.mrb[37].mxu0  ;;  %v1604_v8 = vpop.f32.mrb[37].mxu1 }
 0x143   : > { %v940_v9 = vadd.f32 %v1565_v24, %v939_v7  ;;  %v1605_v10 = vadd.f32 %v1604_v8, %v1603_v5  ;;  %v1662_v58 = vpop.f32.mrb[38].mxu0  ;;  %v1606_v12 = vpop.f32.mrb[38].mxu1  ;;  %v1426_v24 = vld [vmem:[%s2101_s2] ss:$0 sm:$0xff] }
 0x144   : > { %v2070_v13 = vmax.f32 %v742_v45, %v948_v6  ;;  %v942_v14 = vpop.f32.mrb[39].mxu0  ;;  %v1607_v15 = vpop.f32.mrb[39].mxu1 }
 0x145   : > { %v957_v18 = vmax.f32 %v740_v17, %v940_v9  ;;  %v943_v16 = vadd.f32 %v1568_v34, %v942_v14  ;;  %v1608_v19 = vadd.f32 %v1607_v15, %v1606_v12  ;;  %v1237_v9 = vld [vmem:[%s2079_s7 + $0x18] sm:$0x1] }
 0x147   : > { %v958_v1 = vmax.f32 %v741_v50, %v943_v16 }
 0x149   : > { %v1609_v20 = vpop.f32.mrb[40].mxu1  ;;  %v1669_v21 = vpop.f32.mrb[40].mxu0 }
 0x14a   : > { %v1149_v22 = vadd.f32 %v1669_v21, %v1605_v10  ;;  %v1610_v25 = vpop.f32.mrb[41].mxu1  ;;  %v1140_v26 = vpop.f32.mrb[41].mxu0 }
 0x14b   : > { %v1611_v27 = vadd.f32 %v1610_v25, %v1609_v20  ;;  %v1141_v28 = vadd.f32 %v1599_v35, %v1140_v26  ;;  %v1612_v30 = vpop.f32.mrb[42].mxu1  ;;  %v1670_v31 = vpop.f32.mrb[42].mxu0 }
 0x14c   : > { %v1172_v32 = vmax.f32 %v955_v59, %v1149_v22  ;;  %v1152_v33 = vadd.f32 %v1670_v31, %v1608_v19  ;;  %v1613_v36 = vpop.f32.mrb[43].mxu1  ;;  %v1143_v34 = vpop.f32.mrb[43].mxu0 }
 0x14d   : > { %v1170_v23 = vmax.f32 %v953_v63, %v1141_v28  ;;  %v1614_v37 = vadd.f32 %v1613_v36, %v1612_v30  ;;  %v1144_v38 = vadd.f32 %v1602_v2, %v1143_v34 }
 0x14e   : > { %v1186_v11 = vadd.f32 %v1426_v24, %v1172_v32  ;;  %v1173_v39 = vmax.f32 %v956_v3, %v1152_v33 }
 0x14f   : > { %v1184_v40 = vadd.f32 %v1426_v24, %v1170_v23  ;;  %v1171_v42 = vmax.f32 %v954_v41, %v1144_v38 }
 0x150   : > { %v1193_v43 = vmax.f32 %v1186_v11, 0.0  ;;  %v1187_v29 = vadd.f32 %v1426_v24, %v1173_v39 }
 0x151   : > { %v1191_v44 = vmax.f32 %v1184_v40, 0.0  ;;  %v1185_v45 = vadd.f32 %v1426_v24, %v1171_v42  ;;  %v1615_v46 = vpop.f32.mrb[44].mxu1  ;;  %v1673_v48 = vpop.f32.mrb[44].mxu0 }
 0x152   : > { %v1438_v17 = vpack.c.bf16 %v1193_v43, %v1193_v43  ;;  %v1194_v49 = vmax.f32 %v1187_v29, 0.0  ;;  %v1616_v50 = vpop.f32.mrb[45].mxu1  ;;  %v1156_v51 = vpop.f32.mrb[45].mxu0 }
 0x153   : > { %v1436_v52 = vpack.c.bf16 %v1191_v44, %v1191_v44  ;;  %v1192_v47 = vmax.f32 %v1185_v45, 0.0  ;;  %v1617_v53 = vadd.f32 %v1616_v50, %v1615_v46  ;;  %v1157_v54 = vadd.f32 %v1611_v27, %v1156_v51  ;;  %v1618_v55 = vpop.f32.mrb[46].mxu1  ;;  %v1674_v35 = vpop.f32.mrb[46].mxu0 }
 0x154   : > { %1230 = vst.msk [vmem:[%s2079_s7 + $0x8] sm:$0xf] %vm1227_vm1, %v1438_v17  ;;  %v1439_v56 = vpack.c.bf16 %v1194_v49, %v1194_v49  ;;  %v1619_v57 = vpop.f32.mrb[47].mxu1  ;;  %v1159_v59 = vpop.f32.mrb[47].mxu0 }
 0x155   : > { %1228 = vst.msk [vmem:[%s2079_s7] sm:$0xf] %vm1227_vm1, %v1436_v52  ;;  %v1437_v60 = vpack.c.bf16 %v1192_v47, %v1192_v47  ;;  %v1165_v61 = vadd.f32 %v1673_v48, %v1617_v53  ;;  %v1174_v62 = vmax.f32 %v957_v18, %v1157_v54  ;;  %v1160_v63 = vadd.f32 %v1614_v37, %v1159_v59 }
 0x156   : > { %1231 = vst.msk [vmem:[%s2079_s7 + $0xc] sm:$0xf] %vm1227_vm1, %v1439_v56 }
 0x157   : > { %1229 = vst.msk [vmem:[%s2079_s7 + $0x4] sm:$0xf] %vm1227_vm1, %v1437_v60  ;;  %v1176_v0 = vmax.f32 %v2070_v13, %v1165_v61  ;;  %v1188_v2 = vadd.f32 %v1426_v24, %v1174_v62  ;;  %v1175_v3 = vmax.f32 %v958_v1, %v1160_v63 }
 0x159   : > { %v1190_v41 = vadd.f32 %v1426_v24, %v1176_v0  ;;  %v1195_v4 = vmax.f32 %v1188_v2, 0.0  ;;  %v1189_v5 = vadd.f32 %v1426_v24, %v1175_v3 }
 0x15b   : > { %v1197_v6 = vmax.f32 %v1190_v41, 0.0  ;;  %v1440_v7 = vpack.c.bf16 %v1195_v4, %v1195_v4  ;;  %v1196_v8 = vmax.f32 %v1189_v5, 0.0 }
 0x15d   : > { %v1442_v10 = vpack.c.bf16 %v1197_v6, %v1197_v6  ;;  %1232 = vst.msk [vmem:[%s2079_s7 + $0x10] sm:$0xf] %vm1227_vm1, %v1440_v7  ;;  %v1441_v58 = vpack.c.bf16 %v1196_v8, %v1196_v8 }
 0x15f   : > { %v1238_v12 = vsel %vm1236_vm4, %v1442_v10, %v1237_v9  ;;  %1233 = vst.msk [vmem:[%s2079_s7 + $0x14] sm:$0xf] %vm1227_vm1, %v1441_v58 }
 0x160   : > { %1239 = vst [vmem:[%s2079_s7 + $0x18] sm:$0x1] %v1238_v12 }
 0x161 PF: > { %s13_s12 = sadd.s32 1, %s1769_s12  }
 0x162   : > { %p10_p4 = scmp.ge.s32.totalorder %s13_s12, 4  }
 0x164   :  { %12 = sbr.rel (!%p10_p4) target bundleno = 1 (0x1), region = 65 }

// kernel: cnn_forward.5
= control target key start
LH: loop header
LB: loop body
LE: loop exit
PB: predicated region body
PF: predicated region fallthrough
CT: control target
= control target key end

     0   :  { %v11639_v2 = vmov 0   ;;  %v1210_v5 = vlaneseq  ;;  %v11640_v7 = vmov 1966171168   ;;  %vm6520_vm0 = vcmask 523264   ;;  %s15053_s0 = inlined_call_operand.vmem [shape: bf16[2,3136], index: 0, kind: input, shape index: {}]   ;;  %s15054_s1 = inlined_call_operand.vmem [shape: bf16[3136,600], index: 1, kind: input, shape index: {}]   ;;  %s15055_s2 = inlined_call_operand.vmem [shape: f32[1,600], index: 2, kind: input, shape index: {}]   ;;  %s15056_s3 = inlined_call_operand.vmem [shape: bf16[600,128], index: 3, kind: input, shape index: {}]   ;;  %s15057_s4 = inlined_call_operand.vmem [shape: f32[1,128], index: 4, kind: input, shape index: {}]   ;;  %s15058_s5 = inlined_call_operand.vmem [shape: bf16[128,128], index: 5, kind: input, shape index: {}]   ;;  %s15059_s6 = inlined_call_operand.vmem [shape: f32[1,128], index: 6, kind: input, shape index: {}]   ;;  %s15060_s7 = inlined_call_operand.hbm [shape: f32[2,128], index: 7, kind: output, shape index: {}]  }
   0x1   :  { %v10190_v0 = vld [vmem:[%s15054_s1 + $0x4] ss:$20 sps:$4 sm:$0xff]   ;;  %7048 = vmatprep.mubr.bf16.mxu1 %v11639_v2  ;;  %v10194_v3 = vld [vmem:[%s15054_s1] ss:$20 sps:$4 sm:$0xff]   ;;  %v1241_v8 = vunpack.c.l.s4 %v11640_v7  ;;  %v10200_v10 = vld [vmem:[%s15054_s1 + $0x28] ss:$20 sps:$4 sm:$0xff]  }
   0x2   :  { %v10192_v1 = vld [vmem:[%s15054_s1 + $0x1e04] ss:$20 sps:$4 sm:$0xff]   ;;  %6524 = vmatprep.subr.bf16.mxu0 %v10190_v0  ;;  %v10195_v4 = vld [vmem:[%s15054_s1 + $0x1e00] ss:$20 sps:$4 sm:$0xff]   ;;  %v10201_v11 = vld [vmem:[%s15054_s1 + $0x1e28] ss:$20 sps:$4 sm:$0xff]  }
   0x3   :  { %7016 = vmatprep.subr.bf16.mxu1 %v10192_v1  ;;  %v10196_v6 = vld [vmem:[%s15054_s1 + $0x2c] ss:$20 sps:$4 sm:$0xff]   ;;  %6525 = vmatpush1.bf16.msra.mxu0 %v10194_v3  ;;  %v10202_v12 = vld [vmem:[%s15054_s1 + $0x54] ss:$20 sps:$4 sm:$0xff]   ;;  %v11712_v13 = vshrl.u32 %v1210_v5, 7  ;;  %v1242_v17 = vunpack.c.0.s8 %v1241_v8 }
   0x4   :  { %7017 = vmatpush1.bf16.msra.mxu1 %v10195_v4  ;;  %v10198_v9 = vld [vmem:[%s15054_s1 + $0x1e2c] ss:$20 sps:$4 sm:$0xff]   ;;  %6526 = vmatprep.subr.bf16.mxu0 %v10196_v6  ;;  %v10204_v14 = vld [vmem:[%s15054_s1 + $0x1e54] ss:$20 sps:$4 sm:$0xff]   ;;  %v10206_v15 = vld [vmem:[%s15054_s1 + $0x50] ss:$20 sps:$4 sm:$0xff]  }
   0x5   :  { %7018 = vmatprep.subr.bf16.mxu1 %v10198_v9  ;;  %v10207_v16 = vld [vmem:[%s15054_s1 + $0x1e50] ss:$20 sps:$4 sm:$0xff]   ;;  %v10212_v20 = vld [vmem:[%s15054_s1 + $0x78] ss:$20 sps:$4 sm:$0xff]   ;;  %v11736_v22 = vsub.s32 %v1242_v17, %v11712_v13  ;;  %v10216_v27 = vld [vmem:[%s15054_s1 + $0x8] ss:$20 sps:$4 sm:$0xff]  }
   0x6   :  { %v10208_v18 = vld [vmem:[%s15054_s1 + $0x7c] ss:$20 sps:$4 sm:$0xff]   ;;  %v10213_v21 = vld [vmem:[%s15054_s1 + $0x1e78] ss:$20 sps:$4 sm:$0xff]   ;;  %v10219_v28 = vld [vmem:[%s15054_s1 + $0xa0] ss:$20 sps:$4 sm:$0xff]  }
   0x7   :  { %6527 = vmatpush1.bf16.msra.mxu0 %v10200_v10  ;;  %v10210_v19 = vld [vmem:[%s15054_s1 + $0x1e7c] ss:$20 sps:$4 sm:$0xff]   ;;  %v8677_v23 = vld.sshfl [vmem:[%s15053_s0 + $0x18] sm:$0x1 pattern:$0x75316420] }
   0x8   :  { %7019 = vmatpush1.bf16.msra.mxu1 %v10201_v11  ;;  %6528 = vmatprep.subr.bf16.mxu0 %v10202_v12  ;;  %v10214_v24 = vld [vmem:[%s15054_s1 + $0xa4] ss:$20 sps:$4 sm:$0xff]   ;;  %v10218_v25 = vld [vmem:[%s15054_s1 + $0xc] ss:$20 sps:$4 sm:$0xff]   ;;  %v11748_v26 = vrot.slane %v8677_v23, %v11736_v22  ;;  %v10224_v30 = vld [vmem:[%s15054_s1 + $0x34] ss:$20 sps:$4 sm:$0xff]  }
   0x9   :  { %7020 = vmatprep.subr.bf16.mxu1 %v10204_v14  ;;  %v10220_v29 = vld [vmem:[%s15054_s1 + $0xcc] ss:$20 sps:$4 sm:$0xff]   ;;  %v10222_v31 = vld [vmem:[%s15054_s1 + $0x30] ss:$20 sps:$4 sm:$0xff]   ;;  %v10225_v32 = vld [vmem:[%s15054_s1 + $0xc8] ss:$20 sps:$4 sm:$0xff]  }
   0xa   :  { %v10226_v33 = vld [vmem:[%s15054_s1 + $0xf4] ss:$20 sps:$4 sm:$0xff]   ;;  %v10230_v34 = vld [vmem:[%s15054_s1 + $0x5c] ss:$20 sps:$4 sm:$0xff]   ;;  %v10228_v35 = vld [vmem:[%s15054_s1 + $0x58] ss:$20 sps:$4 sm:$0xff]  }
   0xb   :  { %6529 = vmatpush1.bf16.msra.mxu0 %v10206_v15  ;;  %v10231_v36 = vld [vmem:[%s15054_s1 + $0xf0] ss:$20 sps:$4 sm:$0xff]   ;;  %v10234_v39 = vld [vmem:[%s15054_s1 + $0x80] ss:$20 sps:$4 sm:$0xff]   ;;  %v10237_v40 = vld [vmem:[%s15054_s1 + $0x118] ss:$20 sps:$4 sm:$0xff]  }
   0xc   :  { %7021 = vmatpush1.bf16.msra.mxu1 %v10207_v16  ;;  %6530 = vmatprep.subr.bf16.mxu0 %v10208_v18  ;;  %v10232_v37 = vld [vmem:[%s15054_s1 + $0x11c] ss:$20 sps:$4 sm:$0xff]   ;;  %v10236_v38 = vld [vmem:[%s15054_s1 + $0x84] ss:$20 sps:$4 sm:$0xff]   ;;  %v10242_v42 = vld [vmem:[%s15054_s1 + $0xac] ss:$20 sps:$4 sm:$0xff]  }
   0xd   :  { %7022 = vmatprep.subr.bf16.mxu1 %v10210_v19  ;;  %v10238_v41 = vld [vmem:[%s15054_s1 + $0x144] ss:$20 sps:$4 sm:$0xff]   ;;  %v10240_v43 = vld [vmem:[%s15054_s1 + $0xa8] ss:$20 sps:$4 sm:$0xff]   ;;  %v10243_v44 = vld [vmem:[%s15054_s1 + $0x140] ss:$20 sps:$4 sm:$0xff]  }
   0xe   :  { %v10244_v45 = vld [vmem:[%s15054_s1 + $0x16c] ss:$20 sps:$4 sm:$0xff]   ;;  %v10248_v46 = vld [vmem:[%s15054_s1 + $0xd4] ss:$20 sps:$4 sm:$0xff]   ;;  %v10246_v47 = vld [vmem:[%s15054_s1 + $0xd0] ss:$20 sps:$4 sm:$0xff]  }
   0xf   :  { %6531 = vmatpush1.bf16.msra.mxu0 %v10212_v20  ;;  %v10249_v48 = vld [vmem:[%s15054_s1 + $0x168] ss:$20 sps:$4 sm:$0xff]   ;;  %v10252_v51 = vld [vmem:[%s15054_s1 + $0xf8] ss:$20 sps:$4 sm:$0xff]   ;;  %v10255_v52 = vld [vmem:[%s15054_s1 + $0x190] ss:$20 sps:$4 sm:$0xff]  }
  0x10   :  { %7023 = vmatpush1.bf16.msra.mxu1 %v10213_v21  ;;  %6532 = vmatprep.subr.bf16.mxu0 %v10214_v24  ;;  %v10250_v49 = vld [vmem:[%s15054_s1 + $0x194] ss:$20 sps:$4 sm:$0xff]   ;;  %v10254_v50 = vld [vmem:[%s15054_s1 + $0xfc] ss:$20 sps:$4 sm:$0xff]   ;;  %v10260_v54 = vld [vmem:[%s15054_s1 + $0x124] ss:$20 sps:$4 sm:$0xff]  }
  0x11   :  { %7057 = vmatprep.subr.bf16.mxu1 %v10218_v25  ;;  %v10256_v53 = vld [vmem:[%s15054_s1 + $0x1bc] ss:$20 sps:$4 sm:$0xff]   ;;  %v11839_v55 = vld [vmem:[%s15053_s0] sm:$0xff]  ;;  %v10261_v57 = vld [vmem:[%s15054_s1 + $0x1b8] ss:$20 sps:$4 sm:$0xff]  }
  0x12   :  { %v10258_v56 = vld [vmem:[%s15054_s1 + $0x120] ss:$20 sps:$4 sm:$0xff]   ;;  %v1246_v58 = vrot.slane %v11839_v55, %v11736_v22  ;;  %v10262_v59 = vld [vmem:[%s15054_s1 + $0x1e4] ss:$20 sps:$4 sm:$0xff]   ;;  %v10264_v62 = vld [vmem:[%s15054_s1 + $0x148] ss:$20 sps:$4 sm:$0xff]  }
  0x13   :  { %9658 = vmatmul.mubr.msk.bf16.vlgmr.msra.gmra.mrb[0].mxu1 %vm6520_vm0, %v11748_v26  ;;  %6533 = vmatpush1.bf16.msra.mxu0 %v10219_v28  ;;  %v10266_v60 = vld [vmem:[%s15054_s1 + $0x14c] ss:$20 sps:$4 sm:$0xff]   ;;  %v10272_v3 = vld [vmem:[%s15054_s1 + $0x174] ss:$20 sps:$4 sm:$0xff]   ;;  %v10270_v4 = vld [vmem:[%s15054_s1 + $0x170] ss:$20 sps:$4 sm:$0xff]  }
  0x14   :  { %7058 = vmatpush1.bf16.msra.mxu1 %v10216_v27  ;;  %6534 = vmatprep.subr.bf16.mxu0 %v10220_v29  ;;  %v1254_v61 = vcombine.high %v1246_v58, %v1246_v58  ;;  %v10267_v63 = vld [vmem:[%s15054_s1 + $0x1e0] ss:$20 sps:$4 sm:$0xff]   ;;  %v10273_v5 = vld [vmem:[%s15054_s1 + $0x208] ss:$20 sps:$4 sm:$0xff]   ;;  %v10276_v8 = vld [vmem:[%s15054_s1 + $0x198] ss:$20 sps:$4 sm:$0xff]   ;;  %v11909_v17 = vrot.slane %v1246_v58, %v11736_v22 }
  0x15   :  { %7059 = vmatprep.subr.bf16.mxu1 %v10224_v30  ;;  %v10268_v1 = vld [vmem:[%s15054_s1 + $0x20c] ss:$20 sps:$4 sm:$0xff]   ;;  %v10274_v6 = vld [vmem:[%s15054_s1 + $0x234] ss:$20 sps:$4 sm:$0xff]   ;;  %v10278_v7 = vld [vmem:[%s15054_s1 + $0x19c] ss:$20 sps:$4 sm:$0xff]  }
  0x16   :  { %v11862_v0 = vrot.slane %v1254_v61, %v11736_v22  ;;  %v10279_v9 = vld [vmem:[%s15054_s1 + $0x230] ss:$20 sps:$4 sm:$0xff]   ;;  %v10282_v12 = vld [vmem:[%s15054_s1 + $0x1c0] ss:$20 sps:$4 sm:$0xff]   ;;  %v10285_v14 = vld [vmem:[%s15054_s1 + $0x258] ss:$20 sps:$4 sm:$0xff]  }
  0x17   :  { %6535 = vmatpush1.bf16.msra.mxu0 %v10225_v32  ;;  %v10280_v10 = vld [vmem:[%s15054_s1 + $0x25c] ss:$20 sps:$4 sm:$0xff]   ;;  %v10284_v11 = vld [vmem:[%s15054_s1 + $0x1c4] ss:$20 sps:$4 sm:$0xff]   ;;  %v10291_v16 = vld [vmem:[%s15054_s1 + $0x1ec] ss:$20 sps:$4 sm:$0xff]  }
  0x18   :  { %7060 = vmatpush1.bf16.msra.mxu1 %v10222_v31  ;;  %6536 = vmatprep.subr.bf16.mxu0 %v10226_v33  ;;  %v10288_v15 = vld [vmem:[%s15054_s1 + $0x284] ss:$20 sps:$4 sm:$0xff]   ;;  %v10286_v18 = vld [vmem:[%s15054_s1 + $0x280] ss:$20 sps:$4 sm:$0xff]   ;;  %v10289_v19 = vld [vmem:[%s15054_s1 + $0x1e8] ss:$20 sps:$4 sm:$0xff]   ;;  %v11925_v23 = vcombine.high %v11862_v0, %v11862_v0 }
  0x19   :  { %7061 = vmatprep.subr.bf16.mxu1 %v10230_v34  ;;  %6556 = vmatprep.mubr.bf16.mxu0 %v11862_v0  ;;  %v10294_v20 = vld [vmem:[%s15054_s1 + $0x2ac] ss:$20 sps:$4 sm:$0xff]   ;;  %v10297_v21 = vld [vmem:[%s15054_s1 + $0x214] ss:$20 sps:$4 sm:$0xff]   ;;  %v10295_v25 = vld [vmem:[%s15054_s1 + $0x210] ss:$20 sps:$4 sm:$0xff]  }
  0x1a   :  { %7089 = vmatprep.mubr.bf16.mxu1 %v11862_v0  ;;  %v10292_v24 = vld [vmem:[%s15054_s1 + $0x2a8] ss:$20 sps:$4 sm:$0xff]   ;;  %v10298_v29 = vld [vmem:[%s15054_s1 + $0x2d0] ss:$20 sps:$4 sm:$0xff]   ;;  %v10301_v30 = vld [vmem:[%s15054_s1 + $0x238] ss:$20 sps:$4 sm:$0xff]  }
  0x1b   :  { %6537 = vmatpush1.bf16.msra.mxu0 %v10231_v36  ;;  %v10300_v27 = vld [vmem:[%s15054_s1 + $0x2d4] ss:$20 sps:$4 sm:$0xff]   ;;  %v10303_v28 = vld [vmem:[%s15054_s1 + $0x23c] ss:$20 sps:$4 sm:$0xff]   ;;  %v10309_v32 = vld [vmem:[%s15054_s1 + $0x264] ss:$20 sps:$4 sm:$0xff]  }
  0x1c   :  { %7062 = vmatpush1.bf16.msra.mxu1 %v10228_v35  ;;  %6538 = vmatprep.subr.bf16.mxu0 %v10232_v37  ;;  %v10306_v31 = vld [vmem:[%s15054_s1 + $0x2fc] ss:$20 sps:$4 sm:$0xff]   ;;  %v10304_v33 = vld [vmem:[%s15054_s1 + $0x2f8] ss:$20 sps:$4 sm:$0xff]   ;;  %v10307_v34 = vld [vmem:[%s15054_s1 + $0x260] ss:$20 sps:$4 sm:$0xff]  }
  0x1d   :  { %7063 = vmatprep.subr.bf16.mxu1 %v10236_v38  ;;  %v10312_v35 = vld [vmem:[%s15054_s1 + $0x324] ss:$20 sps:$4 sm:$0xff]   ;;  %v10315_v36 = vld [vmem:[%s15054_s1 + $0x28c] ss:$20 sps:$4 sm:$0xff]   ;;  %v10313_v38 = vld [vmem:[%s15054_s1 + $0x288] ss:$20 sps:$4 sm:$0xff]  }
  0x1e   :  { %v10310_v37 = vld [vmem:[%s15054_s1 + $0x320] ss:$20 sps:$4 sm:$0xff]   ;;  %v10340_v58 = vld [vmem:[%s15054_s1 + $0x3e8] ss:$20 sps:$4 sm:$0xff]  }
  0x1f   :  { %6539 = vmatpush1.bf16.msra.mxu0 %v10237_v40  ;;  %v10321_v40 = vld [vmem:[%s15054_s1 + $0x2b4] ss:$20 sps:$4 sm:$0xff]   ;;  %v10351_v61 = vld [vmem:[%s15054_s1 + $0x37c] ss:$20 sps:$4 sm:$0xff]  }
  0x20   :  { %7064 = vmatpush1.bf16.msra.mxu1 %v10234_v39  ;;  %6540 = vmatprep.subr.bf16.mxu0 %v10238_v41  ;;  %v10318_v39 = vld [vmem:[%s15054_s1 + $0x34c] ss:$20 sps:$4 sm:$0xff]   ;;  %v10316_v41 = vld [vmem:[%s15054_s1 + $0x348] ss:$20 sps:$4 sm:$0xff]  }
  0x21   :  { %7065 = vmatprep.subr.bf16.mxu1 %v10242_v42  ;;  %v10319_v42 = vld [vmem:[%s15054_s1 + $0x2b0] ss:$20 sps:$4 sm:$0xff]  }
  0x23   :  { %6541 = vmatpush1.bf16.msra.mxu0 %v10243_v44  ;;  %v10327_v44 = vld [vmem:[%s15054_s1 + $0x2dc] ss:$20 sps:$4 sm:$0xff]  }
  0x24   :  { %7066 = vmatpush1.bf16.msra.mxu1 %v10240_v43  ;;  %6542 = vmatprep.subr.bf16.mxu0 %v10244_v45  ;;  %v10324_v43 = vld [vmem:[%s15054_s1 + $0x374] ss:$20 sps:$4 sm:$0xff]   ;;  %v10322_v45 = vld [vmem:[%s15054_s1 + $0x370] ss:$20 sps:$4 sm:$0xff]  }
  0x25   :  { %7067 = vmatprep.subr.bf16.mxu1 %v10248_v46  ;;  %v10325_v46 = vld [vmem:[%s15054_s1 + $0x2d8] ss:$20 sps:$4 sm:$0xff]  }
  0x27   :  { %6543 = vmatpush1.bf16.msra.mxu0 %v10249_v48  ;;  %v10333_v48 = vld [vmem:[%s15054_s1 + $0x304] ss:$20 sps:$4 sm:$0xff]  }
  0x28   :  { %7068 = vmatpush1.bf16.msra.mxu1 %v10246_v47  ;;  %6544 = vmatprep.subr.bf16.mxu0 %v10250_v49  ;;  %v10330_v47 = vld [vmem:[%s15054_s1 + $0x39c] ss:$20 sps:$4 sm:$0xff]   ;;  %v10328_v49 = vld [vmem:[%s15054_s1 + $0x398] ss:$20 sps:$4 sm:$0xff]  }
  0x29   :  { %7069 = vmatprep.subr.bf16.mxu1 %v10254_v50  ;;  %v10331_v50 = vld [vmem:[%s15054_s1 + $0x300] ss:$20 sps:$4 sm:$0xff]  }
  0x2b   :  { %6545 = vmatpush1.bf16.msra.mxu0 %v10255_v52  ;;  %v10339_v52 = vld [vmem:[%s15054_s1 + $0x32c] ss:$20 sps:$4 sm:$0xff]  }
  0x2c   :  { %7070 = vmatpush1.bf16.msra.mxu1 %v10252_v51  ;;  %6546 = vmatprep.subr.bf16.mxu0 %v10256_v53  ;;  %v10336_v51 = vld [vmem:[%s15054_s1 + $0x3c4] ss:$20 sps:$4 sm:$0xff]   ;;  %v10334_v53 = vld [vmem:[%s15054_s1 + $0x3c0] ss:$20 sps:$4 sm:$0xff]  }
  0x2d   :  { %7071 = vmatprep.subr.bf16.mxu1 %v10260_v54  ;;  %v10337_v54 = vld [vmem:[%s15054_s1 + $0x328] ss:$20 sps:$4 sm:$0xff]  }
  0x2f   :  { %6547 = vmatpush1.bf16.msra.mxu0 %v10261_v57  ;;  %v10345_v57 = vld [vmem:[%s15054_s1 + $0x354] ss:$20 sps:$4 sm:$0xff]  }
  0x30   :  { %7072 = vmatpush1.bf16.msra.mxu1 %v10258_v56  ;;  %6548 = vmatprep.subr.bf16.mxu0 %v10262_v59  ;;  %v10342_v56 = vld [vmem:[%s15054_s1 + $0x3ec] ss:$20 sps:$4 sm:$0xff]   ;;  %v10343_v59 = vld [vmem:[%s15054_s1 + $0x350] ss:$20 sps:$4 sm:$0xff]  }
  0x31   :  { %7073 = vmatprep.subr.bf16.mxu1 %v10266_v60  ;;  %v10348_v60 = vld [vmem:[%s15054_s1 + $0x414] ss:$20 sps:$4 sm:$0xff]  }
  0x33   :  { %6549 = vmatpush1.bf16.msra.mxu0 %v10267_v63  ;;  %v10349_v63 = vld [vmem:[%s15054_s1 + $0x378] ss:$20 sps:$4 sm:$0xff]  }
  0x34   :  { %7074 = vmatpush1.bf16.msra.mxu1 %v10264_v62  ;;  %6550 = vmatprep.subr.bf16.mxu0 %v10268_v1  ;;  %v10346_v62 = vld [vmem:[%s15054_s1 + $0x410] ss:$20 sps:$4 sm:$0xff]  }
  0x35   :  { %7075 = vmatprep.subr.bf16.mxu1 %v10272_v3  ;;  %v10354_v1 = vld [vmem:[%s15054_s1 + $0x43c] ss:$20 sps:$4 sm:$0xff]   ;;  %v10357_v3 = vld [vmem:[%s15054_s1 + $0x3a4] ss:$20 sps:$4 sm:$0xff]  }
  0x37   :  { %6551 = vmatpush1.bf16.msra.mxu0 %v10273_v5  ;;  %v10355_v5 = vld [vmem:[%s15054_s1 + $0x3a0] ss:$20 sps:$4 sm:$0xff]  }
  0x38   :  { %7076 = vmatpush1.bf16.msra.mxu1 %v10270_v4  ;;  %6552 = vmatprep.subr.bf16.mxu0 %v10274_v6  ;;  %v10352_v4 = vld [vmem:[%s15054_s1 + $0x438] ss:$20 sps:$4 sm:$0xff]  }
  0x39   :  { %7077 = vmatprep.subr.bf16.mxu1 %v10278_v7  ;;  %v10360_v6 = vld [vmem:[%s15054_s1 + $0x464] ss:$20 sps:$4 sm:$0xff]   ;;  %v10363_v7 = vld [vmem:[%s15054_s1 + $0x3cc] ss:$20 sps:$4 sm:$0xff]  }
  0x3b   :  { %6553 = vmatpush1.bf16.msra.mxu0 %v10279_v9  ;;  %v10361_v9 = vld [vmem:[%s15054_s1 + $0x3c8] ss:$20 sps:$4 sm:$0xff]  }
  0x3c   :  { %7078 = vmatpush1.bf16.msra.mxu1 %v10276_v8  ;;  %6554 = vmatprep.subr.bf16.mxu0 %v10280_v10  ;;  %v10358_v8 = vld [vmem:[%s15054_s1 + $0x460] ss:$20 sps:$4 sm:$0xff]  }
  0x3d   :  { %7079 = vmatprep.subr.bf16.mxu1 %v10284_v11  ;;  %v10366_v10 = vld [vmem:[%s15054_s1 + $0x48c] ss:$20 sps:$4 sm:$0xff]   ;;  %v10369_v11 = vld [vmem:[%s15054_s1 + $0x3f4] ss:$20 sps:$4 sm:$0xff]  }
  0x3f   :  { %6555 = vmatpush1.bf16.msra.mxu0 %v10285_v14  ;;  %v10367_v14 = vld [vmem:[%s15054_s1 + $0x3f0] ss:$20 sps:$4 sm:$0xff]  }
  0x40   :  { %7080 = vmatpush1.bf16.msra.mxu1 %v10282_v12  ;;  %6565 = vmatprep.subr.bf16.mxu0 %v10288_v15  ;;  %v10364_v12 = vld [vmem:[%s15054_s1 + $0x488] ss:$20 sps:$4 sm:$0xff]  }
  0x41   :  { %7081 = vmatprep.subr.bf16.mxu1 %v10291_v16  ;;  %v10372_v15 = vld [vmem:[%s15054_s1 + $0x4b4] ss:$20 sps:$4 sm:$0xff]   ;;  %v10375_v16 = vld [vmem:[%s15054_s1 + $0x41c] ss:$20 sps:$4 sm:$0xff]  }
  0x42   :  { %6557 = vmatmul.mubr.bf16.vlgmr.msra.gmra.mrb[0].mxu0 %v11909_v17 }
  0x43   :  { %6566 = vmatpush1.bf16.msra.mxu0 %v10286_v18  ;;  %6597 = vmatprep.mubr.bf16.mxu0 %v11925_v23  ;;  %v1239_v18 = vcombine.high %v11839_v55, %v11839_v55  ;;  %v10381_v55 = vld [vmem:[%s15054_s1 + $0x444] ss:$20 sps:$4 sm:$0xff]  }
  0x44   :  { %7082 = vmatpush1.bf16.msra.mxu1 %v10289_v19  ;;  %6567 = vmatprep.subr.bf16.mxu0 %v10294_v20  ;;  %v10370_v19 = vld [vmem:[%s15054_s1 + $0x4b0] ss:$20 sps:$4 sm:$0xff]   ;;  %v10373_v20 = vld [vmem:[%s15054_s1 + $0x418] ss:$20 sps:$4 sm:$0xff]  }
  0x45   :  { %7083 = vmatprep.subr.bf16.mxu1 %v10297_v21  ;;  %v10378_v21 = vld [vmem:[%s15054_s1 + $0x4dc] ss:$20 sps:$4 sm:$0xff]  }
  0x47   :  { %6568 = vmatpush1.bf16.msra.mxu0 %v10292_v24  ;;  %v12102_v24 = vrot.slane %v1239_v18, %v11736_v22  ;;  %v10448_v18 = vld [vmem:[%s15054_s1 + $0x6b8] ss:$20 sps:$4 sm:$0xff]  }
  0x48   :  { %7084 = vmatpush1.bf16.msra.mxu1 %v10295_v25  ;;  %6569 = vmatprep.subr.bf16.mxu0 %v10300_v27  ;;  %v10376_v25 = vld [vmem:[%s15054_s1 + $0x4d8] ss:$20 sps:$4 sm:$0xff]   ;;  %v10379_v27 = vld [vmem:[%s15054_s1 + $0x440] ss:$20 sps:$4 sm:$0xff]  }
  0x49   :  { %7085 = vmatprep.subr.bf16.mxu1 %v10303_v28  ;;  %v10384_v28 = vld [vmem:[%s15054_s1 + $0x504] ss:$20 sps:$4 sm:$0xff]  }
  0x4b   :  { %6570 = vmatpush1.bf16.msra.mxu0 %v10298_v29  ;;  %v10387_v29 = vld [vmem:[%s15054_s1 + $0x46c] ss:$20 sps:$4 sm:$0xff]  }
  0x4c   :  { %7086 = vmatpush1.bf16.msra.mxu1 %v10301_v30  ;;  %6571 = vmatprep.subr.bf16.mxu0 %v10306_v31  ;;  %v1255_v30 = vcombine.high %v12102_v24, %v12102_v24  ;;  %v12120_v31 = vcombine.high %v11909_v17, %v11909_v17 }
  0x4d   :  { %7087 = vmatprep.subr.bf16.mxu1 %v10309_v32  ;;  %v10382_v32 = vld [vmem:[%s15054_s1 + $0x500] ss:$20 sps:$4 sm:$0xff]  }
  0x4f   :  { %6572 = vmatpush1.bf16.msra.mxu0 %v10304_v33  ;;  %v10385_v33 = vld [vmem:[%s15054_s1 + $0x468] ss:$20 sps:$4 sm:$0xff]  }
  0x50   :  { %7088 = vmatpush1.bf16.msra.mxu1 %v10307_v34  ;;  %6573 = vmatprep.subr.bf16.mxu0 %v10312_v35  ;;  %v10390_v34 = vld [vmem:[%s15054_s1 + $0x52c] ss:$20 sps:$4 sm:$0xff]   ;;  %v10393_v35 = vld [vmem:[%s15054_s1 + $0x494] ss:$20 sps:$4 sm:$0xff]  }
  0x51   :  { %7098 = vmatprep.subr.bf16.mxu1 %v10315_v36  ;;  %v12135_v36 = vrot.slane %v1255_v30, %v11736_v22  ;;  %v10463_v30 = vld [vmem:[%s15054_s1 + $0x670] ss:$20 sps:$4 sm:$0xff]  }
  0x53   :  { %7090 = vmatmul.mubr.bf16.vlgmr.msra.gmra.mrb[4].mxu1 %v11909_v17  ;;  %6574 = vmatpush1.bf16.msra.mxu0 %v10310_v37  ;;  %v10388_v37 = vld [vmem:[%s15054_s1 + $0x528] ss:$20 sps:$4 sm:$0xff]  }
  0x54   :  { %7099 = vmatpush1.bf16.msra.mxu1 %v10313_v38  ;;  %6575 = vmatprep.subr.bf16.mxu0 %v10318_v39  ;;  %v10391_v38 = vld [vmem:[%s15054_s1 + $0x490] ss:$20 sps:$4 sm:$0xff]   ;;  %v10396_v39 = vld [vmem:[%s15054_s1 + $0x554] ss:$20 sps:$4 sm:$0xff]  }
  0x55   :  { %7100 = vmatprep.subr.bf16.mxu1 %v10321_v40  ;;  %7130 = vmatprep.mubr.bf16.mxu1 %v11925_v23  ;;  %v10399_v40 = vld [vmem:[%s15054_s1 + $0x4bc] ss:$20 sps:$4 sm:$0xff]  }
  0x57   :  { %6576 = vmatpush1.bf16.msra.mxu0 %v10316_v41  ;;  %v10394_v41 = vld [vmem:[%s15054_s1 + $0x550] ss:$20 sps:$4 sm:$0xff]  }
  0x58   :  { %7101 = vmatpush1.bf16.msra.mxu1 %v10319_v42  ;;  %6577 = vmatprep.subr.bf16.mxu0 %v10324_v43  ;;  %v10397_v42 = vld [vmem:[%s15054_s1 + $0x4b8] ss:$20 sps:$4 sm:$0xff]   ;;  %v10402_v43 = vld [vmem:[%s15054_s1 + $0x57c] ss:$20 sps:$4 sm:$0xff]  }
  0x59   :  { %7102 = vmatprep.subr.bf16.mxu1 %v10327_v44  ;;  %v10405_v44 = vld [vmem:[%s15054_s1 + $0x4e4] ss:$20 sps:$4 sm:$0xff]  }
  0x5b   :  { %6578 = vmatpush1.bf16.msra.mxu0 %v10322_v45  ;;  %v10400_v45 = vld [vmem:[%s15054_s1 + $0x578] ss:$20 sps:$4 sm:$0xff]  }
  0x5c   :  { %7103 = vmatpush1.bf16.msra.mxu1 %v10325_v46  ;;  %6579 = vmatprep.subr.bf16.mxu0 %v10330_v47  ;;  %v10403_v46 = vld [vmem:[%s15054_s1 + $0x4e0] ss:$20 sps:$4 sm:$0xff]   ;;  %v10408_v47 = vld [vmem:[%s15054_s1 + $0x5a4] ss:$20 sps:$4 sm:$0xff]  }
  0x5d   :  { %7104 = vmatprep.subr.bf16.mxu1 %v10333_v48  ;;  %v10411_v48 = vld [vmem:[%s15054_s1 + $0x50c] ss:$20 sps:$4 sm:$0xff]  }
  0x5f   :  { %6580 = vmatpush1.bf16.msra.mxu0 %v10328_v49  ;;  %v10406_v49 = vld [vmem:[%s15054_s1 + $0x5a0] ss:$20 sps:$4 sm:$0xff]  }
  0x60   :  { %7105 = vmatpush1.bf16.msra.mxu1 %v10331_v50  ;;  %6581 = vmatprep.subr.bf16.mxu0 %v10336_v51  ;;  %v10409_v50 = vld [vmem:[%s15054_s1 + $0x508] ss:$20 sps:$4 sm:$0xff]   ;;  %v10414_v51 = vld [vmem:[%s15054_s1 + $0x5cc] ss:$20 sps:$4 sm:$0xff]  }
  0x61   :  { %7106 = vmatprep.subr.bf16.mxu1 %v10339_v52  ;;  %v10417_v52 = vld [vmem:[%s15054_s1 + $0x534] ss:$20 sps:$4 sm:$0xff]  }
  0x63   :  { %6582 = vmatpush1.bf16.msra.mxu0 %v10334_v53  ;;  %v10412_v53 = vld [vmem:[%s15054_s1 + $0x5c8] ss:$20 sps:$4 sm:$0xff]  }
  0x64   :  { %7107 = vmatpush1.bf16.msra.mxu1 %v10337_v54  ;;  %6583 = vmatprep.subr.bf16.mxu0 %v10342_v56  ;;  %v10415_v54 = vld [vmem:[%s15054_s1 + $0x530] ss:$20 sps:$4 sm:$0xff]   ;;  %v10420_v56 = vld [vmem:[%s15054_s1 + $0x5f4] ss:$20 sps:$4 sm:$0xff]  }
  0x65   :  { %7108 = vmatprep.subr.bf16.mxu1 %v10345_v57  ;;  %v10423_v57 = vld [vmem:[%s15054_s1 + $0x55c] ss:$20 sps:$4 sm:$0xff]  }
  0x67   :  { %6584 = vmatpush1.bf16.msra.mxu0 %v10340_v58  ;;  %v10418_v58 = vld [vmem:[%s15054_s1 + $0x5f0] ss:$20 sps:$4 sm:$0xff]  }
  0x68   :  { %7109 = vmatpush1.bf16.msra.mxu1 %v10343_v59  ;;  %6585 = vmatprep.subr.bf16.mxu0 %v10348_v60  ;;  %v10421_v59 = vld [vmem:[%s15054_s1 + $0x558] ss:$20 sps:$4 sm:$0xff]   ;;  %v10426_v60 = vld [vmem:[%s15054_s1 + $0x61c] ss:$20 sps:$4 sm:$0xff]  }
  0x69   :  { %7110 = vmatprep.subr.bf16.mxu1 %v10351_v61  ;;  %v10429_v61 = vld [vmem:[%s15054_s1 + $0x584] ss:$20 sps:$4 sm:$0xff]  }
  0x6b   :  { %6586 = vmatpush1.bf16.msra.mxu0 %v10346_v62  ;;  %v10424_v62 = vld [vmem:[%s15054_s1 + $0x618] ss:$20 sps:$4 sm:$0xff]  }
  0x6c   :  { %7111 = vmatpush1.bf16.msra.mxu1 %v10349_v63  ;;  %6587 = vmatprep.subr.bf16.mxu0 %v10354_v1  ;;  %v10427_v63 = vld [vmem:[%s15054_s1 + $0x580] ss:$20 sps:$4 sm:$0xff]   ;;  %v10432_v1 = vld [vmem:[%s15054_s1 + $0x644] ss:$20 sps:$4 sm:$0xff]  }
  0x6d   :  { %7112 = vmatprep.subr.bf16.mxu1 %v10357_v3  ;;  %v10435_v3 = vld [vmem:[%s15054_s1 + $0x5ac] ss:$20 sps:$4 sm:$0xff]  }
  0x6f   :  { %6588 = vmatpush1.bf16.msra.mxu0 %v10352_v4  ;;  %v10430_v4 = vld [vmem:[%s15054_s1 + $0x640] ss:$20 sps:$4 sm:$0xff]  }
  0x70   :  { %7113 = vmatpush1.bf16.msra.mxu1 %v10355_v5  ;;  %6589 = vmatprep.subr.bf16.mxu0 %v10360_v6  ;;  %v10433_v5 = vld [vmem:[%s15054_s1 + $0x5a8] ss:$20 sps:$4 sm:$0xff]   ;;  %v10438_v6 = vld [vmem:[%s15054_s1 + $0x66c] ss:$20 sps:$4 sm:$0xff]  }
  0x71   :  { %7114 = vmatprep.subr.bf16.mxu1 %v10363_v7  ;;  %v10441_v7 = vld [vmem:[%s15054_s1 + $0x5d4] ss:$20 sps:$4 sm:$0xff]  }
  0x73   :  { %6590 = vmatpush1.bf16.msra.mxu0 %v10358_v8  ;;  %v10436_v8 = vld [vmem:[%s15054_s1 + $0x668] ss:$20 sps:$4 sm:$0xff]  }
  0x74   :  { %7115 = vmatpush1.bf16.msra.mxu1 %v10361_v9  ;;  %6591 = vmatprep.subr.bf16.mxu0 %v10366_v10  ;;  %v10439_v9 = vld [vmem:[%s15054_s1 + $0x5d0] ss:$20 sps:$4 sm:$0xff]   ;;  %v10444_v10 = vld [vmem:[%s15054_s1 + $0x694] ss:$20 sps:$4 sm:$0xff]  }
  0x75   :  { %7116 = vmatprep.subr.bf16.mxu1 %v10369_v11  ;;  %v10447_v11 = vld [vmem:[%s15054_s1 + $0x5fc] ss:$20 sps:$4 sm:$0xff]  }
  0x77   :  { %6592 = vmatpush1.bf16.msra.mxu0 %v10364_v12  ;;  %v10442_v12 = vld [vmem:[%s15054_s1 + $0x690] ss:$20 sps:$4 sm:$0xff]  }
  0x78   :  { %7117 = vmatpush1.bf16.msra.mxu1 %v10367_v14  ;;  %6593 = vmatprep.subr.bf16.mxu0 %v10372_v15  ;;  %v10445_v14 = vld [vmem:[%s15054_s1 + $0x5f8] ss:$20 sps:$4 sm:$0xff]   ;;  %v10450_v15 = vld [vmem:[%s15054_s1 + $0x6bc] ss:$20 sps:$4 sm:$0xff]  }
  0x79   :  { %7118 = vmatprep.subr.bf16.mxu1 %v10375_v16  ;;  %v10453_v16 = vld [vmem:[%s15054_s1 + $0x624] ss:$20 sps:$4 sm:$0xff]  }
  0x7b   :  { %6594 = vmatpush1.bf16.msra.mxu0 %v10370_v19  ;;  %v10451_v19 = vld [vmem:[%s15054_s1 + $0x620] ss:$20 sps:$4 sm:$0xff]  }
  0x7c   :  { %7119 = vmatpush1.bf16.msra.mxu1 %v10373_v20  ;;  %6595 = vmatprep.subr.bf16.mxu0 %v10378_v21  ;;  %v10456_v20 = vld [vmem:[%s15054_s1 + $0x6e4] ss:$20 sps:$4 sm:$0xff]   ;;  %v10459_v21 = vld [vmem:[%s15054_s1 + $0x64c] ss:$20 sps:$4 sm:$0xff]  }
  0x7d   :  { %7120 = vmatprep.subr.bf16.mxu1 %v10381_v55  ;;  %v10454_v55 = vld [vmem:[%s15054_s1 + $0x6e0] ss:$20 sps:$4 sm:$0xff]  }
  0x7f   :  { %6596 = vmatpush1.bf16.msra.mxu0 %v10376_v25  ;;  %v10457_v25 = vld [vmem:[%s15054_s1 + $0x648] ss:$20 sps:$4 sm:$0xff]  }
  0x80   :  { %7121 = vmatpush1.bf16.msra.mxu1 %v10379_v27  ;;  %6606 = vmatprep.subr.bf16.mxu0 %v10384_v28  ;;  %v10462_v27 = vld [vmem:[%s15054_s1 + $0x70c] ss:$20 sps:$4 sm:$0xff]   ;;  %v10465_v28 = vld [vmem:[%s15054_s1 + $0x674] ss:$20 sps:$4 sm:$0xff]  }
  0x81   :  { %7122 = vmatprep.subr.bf16.mxu1 %v10387_v29  ;;  %v10460_v29 = vld [vmem:[%s15054_s1 + $0x708] ss:$20 sps:$4 sm:$0xff]  }
  0x82   :  { %6598 = vmatmul.mubr.bf16.vlgmr.msra.gmra.mrb[0].mxu0 %v12120_v31 }
  0x83   :  { %6607 = vmatpush1.bf16.msra.mxu0 %v10382_v32  ;;  %6638 = vmatprep.mubr.bf16.mxu0 %v12135_v36  ;;  %v10468_v32 = vld [vmem:[%s15054_s1 + $0x734] ss:$20 sps:$4 sm:$0xff]  }
  0x84   :  { %7123 = vmatpush1.bf16.msra.mxu1 %v10385_v33  ;;  %6608 = vmatprep.subr.bf16.mxu0 %v10390_v34  ;;  %v10471_v33 = vld [vmem:[%s15054_s1 + $0x69c] ss:$20 sps:$4 sm:$0xff]  }
  0x85   :  { %7124 = vmatprep.subr.bf16.mxu1 %v10393_v35  ;;  %v10466_v34 = vld [vmem:[%s15054_s1 + $0x730] ss:$20 sps:$4 sm:$0xff]   ;;  %v10469_v35 = vld [vmem:[%s15054_s1 + $0x698] ss:$20 sps:$4 sm:$0xff]  }
  0x87   :  { %6609 = vmatpush1.bf16.msra.mxu0 %v10388_v37  ;;  %v10474_v37 = vld [vmem:[%s15054_s1 + $0x75c] ss:$20 sps:$4 sm:$0xff]  }
  0x88   :  { %7125 = vmatpush1.bf16.msra.mxu1 %v10391_v38  ;;  %6610 = vmatprep.subr.bf16.mxu0 %v10396_v39  ;;  %v10477_v38 = vld [vmem:[%s15054_s1 + $0x6c4] ss:$20 sps:$4 sm:$0xff]  }
  0x89   :  { %7126 = vmatprep.subr.bf16.mxu1 %v10399_v40  ;;  %v10472_v39 = vld [vmem:[%s15054_s1 + $0x758] ss:$20 sps:$4 sm:$0xff]   ;;  %v10475_v40 = vld [vmem:[%s15054_s1 + $0x6c0] ss:$20 sps:$4 sm:$0xff]  }
  0x8b   :  { %6611 = vmatpush1.bf16.msra.mxu0 %v10394_v41  ;;  %v10481_v41 = vld [vmem:[%s15054_s1 + $0x784] ss:$20 sps:$4 sm:$0xff]  }
  0x8c   :  { %7127 = vmatpush1.bf16.msra.mxu1 %v10397_v42  ;;  %6612 = vmatprep.subr.bf16.mxu0 %v10402_v43  ;;  %v10484_v42 = vld [vmem:[%s15054_s1 + $0x6ec] ss:$20 sps:$4 sm:$0xff]   ;;  %v12323_v43 = vrot.slane %v12102_v24, %v11736_v22  ;;  %v10490_v24 = vld [vmem:[%s15054_s1 + $0x714] ss:$20 sps:$4 sm:$0xff]  }
  0x8d   :  { %7128 = vmatprep.subr.bf16.mxu1 %v10405_v44  ;;  %v10479_v44 = vld [vmem:[%s15054_s1 + $0x780] ss:$20 sps:$4 sm:$0xff]  }
  0x8f   :  { %6613 = vmatpush1.bf16.msra.mxu0 %v10400_v45  ;;  %v10482_v45 = vld [vmem:[%s15054_s1 + $0x6e8] ss:$20 sps:$4 sm:$0xff]  }
  0x90   :  { %7129 = vmatpush1.bf16.msra.mxu1 %v10403_v46  ;;  %6614 = vmatprep.subr.bf16.mxu0 %v10408_v47  ;;  %v10487_v46 = vld [vmem:[%s15054_s1 + $0x7ac] ss:$20 sps:$4 sm:$0xff]   ;;  %v12339_v47 = vcombine.high %v12135_v36, %v12135_v36 }
  0x91   :  { %7139 = vmatprep.subr.bf16.mxu1 %v10411_v48  ;;  %v10485_v48 = vld [vmem:[%s15054_s1 + $0x7a8] ss:$20 sps:$4 sm:$0xff]  }
  0x93   :  { %7131 = vmatmul.mubr.bf16.vlgmr.msra.gmra.mrb[4].mxu1 %v12120_v31  ;;  %6615 = vmatpush1.bf16.msra.mxu0 %v10406_v49  ;;  %v10488_v49 = vld [vmem:[%s15054_s1 + $0x710] ss:$20 sps:$4 sm:$0xff]  }
  0x94   :  { %7140 = vmatpush1.bf16.msra.mxu1 %v10409_v50  ;;  %6616 = vmatprep.subr.bf16.mxu0 %v10414_v51  ;;  %v10493_v50 = vld [vmem:[%s15054_s1 + $0x7d4] ss:$20 sps:$4 sm:$0xff]   ;;  %v10496_v51 = vld [vmem:[%s15054_s1 + $0x73c] ss:$20 sps:$4 sm:$0xff]  }
  0x95   :  { %7141 = vmatprep.subr.bf16.mxu1 %v10417_v52  ;;  %7171 = vmatprep.mubr.bf16.mxu1 %v12135_v36  ;;  %v10491_v52 = vld [vmem:[%s15054_s1 + $0x7d0] ss:$20 sps:$4 sm:$0xff]  }
  0x97   :  { %6617 = vmatpush1.bf16.msra.mxu0 %v10412_v53  ;;  %v10494_v53 = vld [vmem:[%s15054_s1 + $0x738] ss:$20 sps:$4 sm:$0xff]  }
  0x98   :  { %7142 = vmatpush1.bf16.msra.mxu1 %v10415_v54  ;;  %6618 = vmatprep.subr.bf16.mxu0 %v10420_v56  ;;  %v10499_v54 = vld [vmem:[%s15054_s1 + $0x7fc] ss:$20 sps:$4 sm:$0xff]   ;;  %v10502_v56 = vld [vmem:[%s15054_s1 + $0x764] ss:$20 sps:$4 sm:$0xff]  }
  0x99   :  { %7143 = vmatprep.subr.bf16.mxu1 %v10423_v57  ;;  %v10497_v57 = vld [vmem:[%s15054_s1 + $0x7f8] ss:$20 sps:$4 sm:$0xff]  }
  0x9b   :  { %6619 = vmatpush1.bf16.msra.mxu0 %v10418_v58  ;;  %v10500_v58 = vld [vmem:[%s15054_s1 + $0x760] ss:$20 sps:$4 sm:$0xff]  }
  0x9c   :  { %7144 = vmatpush1.bf16.msra.mxu1 %v10421_v59  ;;  %6620 = vmatprep.subr.bf16.mxu0 %v10426_v60  ;;  %v10505_v59 = vld [vmem:[%s15054_s1 + $0x824] ss:$20 sps:$4 sm:$0xff]   ;;  %v10508_v60 = vld [vmem:[%s15054_s1 + $0x78c] ss:$20 sps:$4 sm:$0xff]  }
  0x9d   :  { %7145 = vmatprep.subr.bf16.mxu1 %v10429_v61  ;;  %v10503_v61 = vld [vmem:[%s15054_s1 + $0x820] ss:$20 sps:$4 sm:$0xff]  }
  0x9f   :  { %6621 = vmatpush1.bf16.msra.mxu0 %v10424_v62  ;;  %v10506_v62 = vld [vmem:[%s15054_s1 + $0x788] ss:$20 sps:$4 sm:$0xff]  }
  0xa0   :  { %7146 = vmatpush1.bf16.msra.mxu1 %v10427_v63  ;;  %6622 = vmatprep.subr.bf16.mxu0 %v10432_v1  ;;  %v10511_v63 = vld [vmem:[%s15054_s1 + $0x84c] ss:$20 sps:$4 sm:$0xff]   ;;  %v10514_v1 = vld [vmem:[%s15054_s1 + $0x7b4] ss:$20 sps:$4 sm:$0xff]  }
  0xa1   :  { %7147 = vmatprep.subr.bf16.mxu1 %v10435_v3  ;;  %v10509_v3 = vld [vmem:[%s15054_s1 + $0x848] ss:$20 sps:$4 sm:$0xff]  }
  0xa3   :  { %6623 = vmatpush1.bf16.msra.mxu0 %v10430_v4  ;;  %v10512_v4 = vld [vmem:[%s15054_s1 + $0x7b0] ss:$20 sps:$4 sm:$0xff]  }
  0xa4   :  { %7148 = vmatpush1.bf16.msra.mxu1 %v10433_v5  ;;  %6624 = vmatprep.subr.bf16.mxu0 %v10438_v6  ;;  %v10517_v5 = vld [vmem:[%s15054_s1 + $0x874] ss:$20 sps:$4 sm:$0xff]   ;;  %v10520_v6 = vld [vmem:[%s15054_s1 + $0x7dc] ss:$20 sps:$4 sm:$0xff]  }
  0xa5   :  { %7149 = vmatprep.subr.bf16.mxu1 %v10441_v7  ;;  %v10515_v7 = vld [vmem:[%s15054_s1 + $0x870] ss:$20 sps:$4 sm:$0xff]  }
  0xa7   :  { %6625 = vmatpush1.bf16.msra.mxu0 %v10436_v8  ;;  %v10518_v8 = vld [vmem:[%s15054_s1 + $0x7d8] ss:$20 sps:$4 sm:$0xff]  }
  0xa8   :  { %7150 = vmatpush1.bf16.msra.mxu1 %v10439_v9  ;;  %6626 = vmatprep.subr.bf16.mxu0 %v10444_v10  ;;  %v10523_v9 = vld [vmem:[%s15054_s1 + $0x89c] ss:$20 sps:$4 sm:$0xff]   ;;  %v10526_v10 = vld [vmem:[%s15054_s1 + $0x804] ss:$20 sps:$4 sm:$0xff]  }
  0xa9   :  { %7151 = vmatprep.subr.bf16.mxu1 %v10447_v11  ;;  %v10521_v11 = vld [vmem:[%s15054_s1 + $0x898] ss:$20 sps:$4 sm:$0xff]  }
  0xab   :  { %6627 = vmatpush1.bf16.msra.mxu0 %v10442_v12  ;;  %v10524_v12 = vld [vmem:[%s15054_s1 + $0x800] ss:$20 sps:$4 sm:$0xff]  }
  0xac   :  { %7152 = vmatpush1.bf16.msra.mxu1 %v10445_v14  ;;  %6628 = vmatprep.subr.bf16.mxu0 %v10450_v15  ;;  %v10529_v14 = vld [vmem:[%s15054_s1 + $0x8c4] ss:$20 sps:$4 sm:$0xff]   ;;  %v10532_v15 = vld [vmem:[%s15054_s1 + $0x82c] ss:$20 sps:$4 sm:$0xff]  }
  0xad   :  { %7153 = vmatprep.subr.bf16.mxu1 %v10453_v16  ;;  %v10527_v16 = vld [vmem:[%s15054_s1 + $0x8c0] ss:$20 sps:$4 sm:$0xff]  }
  0xaf   :  { %6629 = vmatpush1.bf16.msra.mxu0 %v10448_v18  ;;  %v10530_v18 = vld [vmem:[%s15054_s1 + $0x828] ss:$20 sps:$4 sm:$0xff]  }
  0xb0   :  { %7154 = vmatpush1.bf16.msra.mxu1 %v10451_v19  ;;  %6630 = vmatprep.subr.bf16.mxu0 %v10456_v20  ;;  %v10535_v19 = vld [vmem:[%s15054_s1 + $0x8ec] ss:$20 sps:$4 sm:$0xff]   ;;  %v10538_v20 = vld [vmem:[%s15054_s1 + $0x854] ss:$20 sps:$4 sm:$0xff]  }
  0xb1   :  { %7155 = vmatprep.subr.bf16.mxu1 %v10459_v21  ;;  %v10533_v21 = vld [vmem:[%s15054_s1 + $0x8e8] ss:$20 sps:$4 sm:$0xff]  }
  0xb3   :  { %6631 = vmatpush1.bf16.msra.mxu0 %v10454_v55  ;;  %v10536_v55 = vld [vmem:[%s15054_s1 + $0x850] ss:$20 sps:$4 sm:$0xff]  }
  0xb4   :  { %7156 = vmatpush1.bf16.msra.mxu1 %v10457_v25  ;;  %6632 = vmatprep.subr.bf16.mxu0 %v10462_v27  ;;  %v10541_v25 = vld [vmem:[%s15054_s1 + $0x914] ss:$20 sps:$4 sm:$0xff]   ;;  %v10544_v27 = vld [vmem:[%s15054_s1 + $0x87c] ss:$20 sps:$4 sm:$0xff]  }
  0xb5   :  { %7157 = vmatprep.subr.bf16.mxu1 %v10465_v28 }
  0xb7   :  { %6633 = vmatpush1.bf16.msra.mxu0 %v10460_v29 }
  0xb8   :  { %7158 = vmatpush1.bf16.msra.mxu1 %v10463_v30  ;;  %6634 = vmatprep.subr.bf16.mxu0 %v10468_v32  ;;  %v10539_v30 = vld [vmem:[%s15054_s1 + $0x910] ss:$20 sps:$4 sm:$0xff]  }
  0xb9   :  { %7159 = vmatprep.subr.bf16.mxu1 %v10471_v33  ;;  %v10542_v33 = vld [vmem:[%s15054_s1 + $0x878] ss:$20 sps:$4 sm:$0xff]  }
  0xbb   :  { %6635 = vmatpush1.bf16.msra.mxu0 %v10466_v34  ;;  %v10547_v34 = vld [vmem:[%s15054_s1 + $0x93c] ss:$20 sps:$4 sm:$0xff]  }
  0xbc   :  { %7160 = vmatpush1.bf16.msra.mxu1 %v10469_v35  ;;  %6636 = vmatprep.subr.bf16.mxu0 %v10474_v37  ;;  %v10550_v37 = vld [vmem:[%s15054_s1 + $0x8a4] ss:$20 sps:$4 sm:$0xff]  }
  0xbd   :  { %7161 = vmatprep.subr.bf16.mxu1 %v10477_v38  ;;  %v10545_v38 = vld [vmem:[%s15054_s1 + $0x938] ss:$20 sps:$4 sm:$0xff]  }
  0xbf   :  { %6637 = vmatpush1.bf16.msra.mxu0 %v10472_v39  ;;  %v10548_v39 = vld [vmem:[%s15054_s1 + $0x8a0] ss:$20 sps:$4 sm:$0xff]  }
  0xc0   :  { %7162 = vmatpush1.bf16.msra.mxu1 %v10475_v40  ;;  %6647 = vmatprep.subr.bf16.mxu0 %v10481_v41  ;;  %v10553_v40 = vld [vmem:[%s15054_s1 + $0x964] ss:$20 sps:$4 sm:$0xff]   ;;  %v10556_v41 = vld [vmem:[%s15054_s1 + $0x8cc] ss:$20 sps:$4 sm:$0xff]  }
  0xc1   :  { %7163 = vmatprep.subr.bf16.mxu1 %v10484_v42  ;;  %v10551_v42 = vld [vmem:[%s15054_s1 + $0x960] ss:$20 sps:$4 sm:$0xff]  }
  0xc2   :  { %6639 = vmatmul.mubr.bf16.vlgmr.msra.gmra.mrb[0].mxu0 %v12323_v43 }
  0xc3   :  { %6648 = vmatpush1.bf16.msra.mxu0 %v10479_v44  ;;  %6679 = vmatprep.mubr.bf16.mxu0 %v12339_v47  ;;  %v10554_v44 = vld [vmem:[%s15054_s1 + $0x8c8] ss:$20 sps:$4 sm:$0xff]  }
  0xc4   :  { %7164 = vmatpush1.bf16.msra.mxu1 %v10482_v45  ;;  %6649 = vmatprep.subr.bf16.mxu0 %v10487_v46  ;;  %v10559_v45 = vld [vmem:[%s15054_s1 + $0x98c] ss:$20 sps:$4 sm:$0xff]   ;;  %v10562_v46 = vld [vmem:[%s15054_s1 + $0x8f4] ss:$20 sps:$4 sm:$0xff]  }
  0xc5   :  { %7165 = vmatprep.subr.bf16.mxu1 %v10490_v24  ;;  %v10557_v24 = vld [vmem:[%s15054_s1 + $0x988] ss:$20 sps:$4 sm:$0xff]  }
  0xc7   :  { %6650 = vmatpush1.bf16.msra.mxu0 %v10485_v48  ;;  %v10560_v48 = vld [vmem:[%s15054_s1 + $0x8f0] ss:$20 sps:$4 sm:$0xff]  }
  0xc8   :  { %7166 = vmatpush1.bf16.msra.mxu1 %v10488_v49  ;;  %6651 = vmatprep.subr.bf16.mxu0 %v10493_v50  ;;  %v10565_v49 = vld [vmem:[%s15054_s1 + $0x9b4] ss:$20 sps:$4 sm:$0xff]   ;;  %v10568_v50 = vld [vmem:[%s15054_s1 + $0x91c] ss:$20 sps:$4 sm:$0xff]  }
  0xc9   :  { %7167 = vmatprep.subr.bf16.mxu1 %v10496_v51  ;;  %v10563_v51 = vld [vmem:[%s15054_s1 + $0x9b0] ss:$20 sps:$4 sm:$0xff]  }
  0xcb   :  { %6652 = vmatpush1.bf16.msra.mxu0 %v10491_v52  ;;  %v12511_v52 = vld.sshfl [vmem:[%s15053_s0 + $0x8] sm:$0xff pattern:$0x75316420] }
  0xcc   :  { %7168 = vmatpush1.bf16.msra.mxu1 %v10494_v53  ;;  %6653 = vmatprep.subr.bf16.mxu0 %v10499_v54  ;;  %v10566_v53 = vld [vmem:[%s15054_s1 + $0x918] ss:$20 sps:$4 sm:$0xff]   ;;  %v10571_v54 = vld [vmem:[%s15054_s1 + $0x9dc] ss:$20 sps:$4 sm:$0xff]  }
  0xcd   :  { %7169 = vmatprep.subr.bf16.mxu1 %v10502_v56  ;;  %v10574_v56 = vld [vmem:[%s15054_s1 + $0x944] ss:$20 sps:$4 sm:$0xff]  }
  0xcf   :  { %6654 = vmatpush1.bf16.msra.mxu0 %v10497_v57  ;;  %v10569_v57 = vld [vmem:[%s15054_s1 + $0x9d8] ss:$20 sps:$4 sm:$0xff]  }
  0xd0   :  { %7170 = vmatpush1.bf16.msra.mxu1 %v10500_v58  ;;  %6655 = vmatprep.subr.bf16.mxu0 %v10505_v59  ;;  %v10572_v58 = vld [vmem:[%s15054_s1 + $0x940] ss:$20 sps:$4 sm:$0xff]   ;;  %v10577_v59 = vld [vmem:[%s15054_s1 + $0xa04] ss:$20 sps:$4 sm:$0xff]  }
  0xd1   :  { %7180 = vmatprep.subr.bf16.mxu1 %v10508_v60  ;;  %v10580_v60 = vld [vmem:[%s15054_s1 + $0x96c] ss:$20 sps:$4 sm:$0xff]  }
  0xd3   :  { %7172 = vmatmul.mubr.bf16.vlgmr.msra.gmra.mrb[4].mxu1 %v12323_v43  ;;  %6656 = vmatpush1.bf16.msra.mxu0 %v10503_v61  ;;  %v1303_v61 = vcombine.high %v12511_v52, %v12511_v52 }
  0xd4   :  { %7181 = vmatpush1.bf16.msra.mxu1 %v10506_v62  ;;  %6657 = vmatprep.subr.bf16.mxu0 %v10511_v63  ;;  %v10575_v62 = vld [vmem:[%s15054_s1 + $0xa00] ss:$20 sps:$4 sm:$0xff]   ;;  %v12541_v63 = vcombine.high %v12323_v43, %v12323_v43 }
  0xd5   :  { %7182 = vmatprep.subr.bf16.mxu1 %v10514_v1  ;;  %7212 = vmatprep.mubr.bf16.mxu1 %v12339_v47  ;;  %v10578_v1 = vld [vmem:[%s15054_s1 + $0x968] ss:$20 sps:$4 sm:$0xff]  }
  0xd7   :  { %6658 = vmatpush1.bf16.msra.mxu0 %v10509_v3  ;;  %v10583_v3 = vld [vmem:[%s15054_s1 + $0xa2c] ss:$20 sps:$4 sm:$0xff]  }
  0xd8   :  { %7183 = vmatpush1.bf16.msra.mxu1 %v10512_v4  ;;  %6659 = vmatprep.subr.bf16.mxu0 %v10517_v5  ;;  %v10586_v4 = vld [vmem:[%s15054_s1 + $0x994] ss:$20 sps:$4 sm:$0xff]   ;;  %v12553_v5 = vrot.slane %v1303_v61, %v11736_v22  ;;  %v10652_v61 = vld [vmem:[%s15054_s1 + $0xb4c] ss:$20 sps:$4 sm:$0xff]  }
  0xd9   :  { %7184 = vmatprep.subr.bf16.mxu1 %v10520_v6  ;;  %v10581_v6 = vld [vmem:[%s15054_s1 + $0xa28] ss:$20 sps:$4 sm:$0xff]  }
  0xdb   :  { %6660 = vmatpush1.bf16.msra.mxu0 %v10515_v7  ;;  %v10584_v7 = vld [vmem:[%s15054_s1 + $0x990] ss:$20 sps:$4 sm:$0xff]  }
  0xdc   :  { %7185 = vmatpush1.bf16.msra.mxu1 %v10518_v8  ;;  %6661 = vmatprep.subr.bf16.mxu0 %v10523_v9  ;;  %v10589_v8 = vld [vmem:[%s15054_s1 + $0xa54] ss:$20 sps:$4 sm:$0xff]   ;;  %v10592_v9 = vld [vmem:[%s15054_s1 + $0x9bc] ss:$20 sps:$4 sm:$0xff]  }
  0xdd   :  { %7186 = vmatprep.subr.bf16.mxu1 %v10526_v10  ;;  %v10587_v10 = vld [vmem:[%s15054_s1 + $0xa50] ss:$20 sps:$4 sm:$0xff]  }
  0xdf   :  { %6662 = vmatpush1.bf16.msra.mxu0 %v10521_v11  ;;  %v10590_v11 = vld [vmem:[%s15054_s1 + $0x9b8] ss:$20 sps:$4 sm:$0xff]  }
  0xe0   :  { %7187 = vmatpush1.bf16.msra.mxu1 %v10524_v12  ;;  %6663 = vmatprep.subr.bf16.mxu0 %v10529_v14  ;;  %v10595_v12 = vld [vmem:[%s15054_s1 + $0xa7c] ss:$20 sps:$4 sm:$0xff]   ;;  %v10598_v14 = vld [vmem:[%s15054_s1 + $0x9e4] ss:$20 sps:$4 sm:$0xff]  }
  0xe1   :  { %7188 = vmatprep.subr.bf16.mxu1 %v10532_v15  ;;  %v10593_v15 = vld [vmem:[%s15054_s1 + $0xa78] ss:$20 sps:$4 sm:$0xff]  }
  0xe3   :  { %6664 = vmatpush1.bf16.msra.mxu0 %v10527_v16  ;;  %v10596_v16 = vld [vmem:[%s15054_s1 + $0x9e0] ss:$20 sps:$4 sm:$0xff]  }
  0xe4   :  { %7189 = vmatpush1.bf16.msra.mxu1 %v10530_v18  ;;  %6665 = vmatprep.subr.bf16.mxu0 %v10535_v19  ;;  %v10601_v18 = vld [vmem:[%s15054_s1 + $0xaa4] ss:$20 sps:$4 sm:$0xff]   ;;  %v10604_v19 = vld [vmem:[%s15054_s1 + $0xa0c] ss:$20 sps:$4 sm:$0xff]  }
  0xe5   :  { %7190 = vmatprep.subr.bf16.mxu1 %v10538_v20  ;;  %v10599_v20 = vld [vmem:[%s15054_s1 + $0xaa0] ss:$20 sps:$4 sm:$0xff]  }
  0xe6   :  { %v12453_v28 = vpop.f32.mrb[0].mxu1 }
  0xe7   :  { %v12455_v29 = vpop.f32.mrb[1].mxu1  ;;  %6666 = vmatpush1.bf16.msra.mxu0 %v10533_v21  ;;  %v10602_v21 = vld [vmem:[%s15054_s1 + $0xa08] ss:$20 sps:$4 sm:$0xff]  }
  0xe8   :  { %v7054_v32 = vpop.f32.mrb[2].mxu1  ;;  %7191 = vmatpush1.bf16.msra.mxu1 %v10536_v55  ;;  %6667 = vmatprep.subr.bf16.mxu0 %v10541_v25  ;;  %v10607_v55 = vld [vmem:[%s15054_s1 + $0xacc] ss:$20 sps:$4 sm:$0xff]   ;;  %v10610_v25 = vld [vmem:[%s15054_s1 + $0xa34] ss:$20 sps:$4 sm:$0xff]  }
  0xe9   :  { %v7055_v35 = vpop.f32.mrb[3].mxu1  ;;  %7192 = vmatprep.subr.bf16.mxu1 %v10544_v27  ;;  %v10605_v27 = vld [vmem:[%s15054_s1 + $0xac8] ss:$20 sps:$4 sm:$0xff]  }
  0xea   :  { %v10613_v32 = vld [vmem:[%s15054_s1 + $0xaf4] ss:$20 sps:$4 sm:$0xff]   ;;  %v10614_v35 = vld [vmem:[%s15054_s1 + $0xa58] ss:$20 sps:$4 sm:$0xff]  }
  0xeb   :  { %6668 = vmatpush1.bf16.msra.mxu0 %v10539_v30  ;;  %v10608_v30 = vld [vmem:[%s15054_s1 + $0xa30] ss:$20 sps:$4 sm:$0xff]  }
  0xec   :  { %7193 = vmatpush1.bf16.msra.mxu1 %v10542_v33  ;;  %6669 = vmatprep.subr.bf16.mxu0 %v10547_v34  ;;  %v10616_v33 = vld [vmem:[%s15054_s1 + $0xa5c] ss:$20 sps:$4 sm:$0xff]  }
  0xed   :  { %7194 = vmatprep.subr.bf16.mxu1 %v10550_v37  ;;  %v10611_v34 = vld [vmem:[%s15054_s1 + $0xaf0] ss:$20 sps:$4 sm:$0xff]  }
  0xee   :  { %v10619_v37 = vld [vmem:[%s15054_s1 + $0xb1c] ss:$20 sps:$4 sm:$0xff]  }
  0xef   :  { %6670 = vmatpush1.bf16.msra.mxu0 %v10545_v38  ;;  %v10622_v38 = vld [vmem:[%s15054_s1 + $0xa84] ss:$20 sps:$4 sm:$0xff]  }
  0xf0   :  { %7195 = vmatpush1.bf16.msra.mxu1 %v10548_v39  ;;  %6671 = vmatprep.subr.bf16.mxu0 %v10553_v40  ;;  %v10617_v39 = vld [vmem:[%s15054_s1 + $0xb18] ss:$20 sps:$4 sm:$0xff]   ;;  %v10620_v40 = vld [vmem:[%s15054_s1 + $0xa80] ss:$20 sps:$4 sm:$0xff]  }
  0xf1   :  { %7196 = vmatprep.subr.bf16.mxu1 %v10556_v41  ;;  %v10625_v41 = vld [vmem:[%s15054_s1 + $0xb44] ss:$20 sps:$4 sm:$0xff]  }
  0xf3   :  { %6672 = vmatpush1.bf16.msra.mxu0 %v10551_v42  ;;  %v10628_v42 = vld [vmem:[%s15054_s1 + $0xaac] ss:$20 sps:$4 sm:$0xff]  }
  0xf4   :  { %7197 = vmatpush1.bf16.msra.mxu1 %v10554_v44  ;;  %6673 = vmatprep.subr.bf16.mxu0 %v10559_v45  ;;  %v10623_v44 = vld [vmem:[%s15054_s1 + $0xb40] ss:$20 sps:$4 sm:$0xff]   ;;  %v10626_v45 = vld [vmem:[%s15054_s1 + $0xaa8] ss:$20 sps:$4 sm:$0xff]  }
  0xf5   :  { %7198 = vmatprep.subr.bf16.mxu1 %v10562_v46  ;;  %v10631_v46 = vld [vmem:[%s15054_s1 + $0xb6c] ss:$20 sps:$4 sm:$0xff]  }
  0xf7   :  { %6674 = vmatpush1.bf16.msra.mxu0 %v10557_v24  ;;  %v10634_v24 = vld [vmem:[%s15054_s1 + $0xad4] ss:$20 sps:$4 sm:$0xff]  }
  0xf8   :  { %7199 = vmatpush1.bf16.msra.mxu1 %v10560_v48  ;;  %6675 = vmatprep.subr.bf16.mxu0 %v10565_v49  ;;  %v10629_v48 = vld [vmem:[%s15054_s1 + $0xb68] ss:$20 sps:$4 sm:$0xff]   ;;  %v10632_v49 = vld [vmem:[%s15054_s1 + $0xad0] ss:$20 sps:$4 sm:$0xff]  }
  0xf9   :  { %7200 = vmatprep.subr.bf16.mxu1 %v10568_v50  ;;  %v10637_v50 = vld [vmem:[%s15054_s1 + $0xb94] ss:$20 sps:$4 sm:$0xff]  }
  0xfb   :  { %6676 = vmatpush1.bf16.msra.mxu0 %v10563_v51  ;;  %v10640_v51 = vld [vmem:[%s15054_s1 + $0xafc] ss:$20 sps:$4 sm:$0xff]  }
  0xfc   :  { %7201 = vmatpush1.bf16.msra.mxu1 %v10566_v53  ;;  %6677 = vmatprep.subr.bf16.mxu0 %v10571_v54  ;;  %v10635_v53 = vld [vmem:[%s15054_s1 + $0xb90] ss:$20 sps:$4 sm:$0xff]   ;;  %v10638_v54 = vld [vmem:[%s15054_s1 + $0xaf8] ss:$20 sps:$4 sm:$0xff]  }
  0xfd   :  { %7202 = vmatprep.subr.bf16.mxu1 %v10574_v56  ;;  %v10643_v56 = vld [vmem:[%s15054_s1 + $0xbbc] ss:$20 sps:$4 sm:$0xff]  }
  0xff   :  { %6678 = vmatpush1.bf16.msra.mxu0 %v10569_v57  ;;  %v10646_v57 = vld [vmem:[%s15054_s1 + $0xb24] ss:$20 sps:$4 sm:$0xff]  }
 0x100   :  { %7203 = vmatpush1.bf16.msra.mxu1 %v10572_v58  ;;  %6688 = vmatprep.subr.bf16.mxu0 %v10577_v59  ;;  %v10641_v58 = vld [vmem:[%s15054_s1 + $0xbb8] ss:$20 sps:$4 sm:$0xff]   ;;  %v10644_v59 = vld [vmem:[%s15054_s1 + $0xb20] ss:$20 sps:$4 sm:$0xff]  }
 0x101   :  { %7204 = vmatprep.subr.bf16.mxu1 %v10580_v60  ;;  %v10649_v60 = vld [vmem:[%s15054_s1 + $0xbe4] ss:$20 sps:$4 sm:$0xff]  }
 0x102   :  { %6680 = vmatmul.mubr.bf16.vlgmr.msra.gmra.mrb[0].mxu0 %v12541_v63 }
 0x103   :  { %6689 = vmatpush1.bf16.msra.mxu0 %v10575_v62  ;;  %6720 = vmatprep.mubr.bf16.mxu0 %v12553_v5  ;;  %v10647_v62 = vld [vmem:[%s15054_s1 + $0xbe0] ss:$20 sps:$4 sm:$0xff]  }
 0x104   :  { %7205 = vmatpush1.bf16.msra.mxu1 %v10578_v1  ;;  %6690 = vmatprep.subr.bf16.mxu0 %v10583_v3  ;;  %v10650_v1 = vld [vmem:[%s15054_s1 + $0xb48] ss:$20 sps:$4 sm:$0xff]   ;;  %v10655_v3 = vld [vmem:[%s15054_s1 + $0xc0c] ss:$20 sps:$4 sm:$0xff]  }
 0x105   :  { %7206 = vmatprep.subr.bf16.mxu1 %v10586_v4  ;;  %v10658_v4 = vld [vmem:[%s15054_s1 + $0xb74] ss:$20 sps:$4 sm:$0xff]  }
 0x107   :  { %6691 = vmatpush1.bf16.msra.mxu0 %v10581_v6  ;;  %v10653_v6 = vld [vmem:[%s15054_s1 + $0xc08] ss:$20 sps:$4 sm:$0xff]  }
 0x108   :  { %7207 = vmatpush1.bf16.msra.mxu1 %v10584_v7  ;;  %6692 = vmatprep.subr.bf16.mxu0 %v10589_v8  ;;  %v10656_v7 = vld [vmem:[%s15054_s1 + $0xb70] ss:$20 sps:$4 sm:$0xff]   ;;  %v10661_v8 = vld [vmem:[%s15054_s1 + $0xc34] ss:$20 sps:$4 sm:$0xff]  }
 0x109   :  { %7208 = vmatprep.subr.bf16.mxu1 %v10592_v9  ;;  %v10664_v9 = vld [vmem:[%s15054_s1 + $0xb9c] ss:$20 sps:$4 sm:$0xff]  }
 0x10b   :  { %6693 = vmatpush1.bf16.msra.mxu0 %v10587_v10  ;;  %v10659_v10 = vld [vmem:[%s15054_s1 + $0xc30] ss:$20 sps:$4 sm:$0xff]  }
 0x10c   :  { %7209 = vmatpush1.bf16.msra.mxu1 %v10590_v11  ;;  %6694 = vmatprep.subr.bf16.mxu0 %v10595_v12  ;;  %v10662_v11 = vld [vmem:[%s15054_s1 + $0xb98] ss:$20 sps:$4 sm:$0xff]   ;;  %v10667_v12 = vld [vmem:[%s15054_s1 + $0xc5c] ss:$20 sps:$4 sm:$0xff]  }
 0x10d   :  { %7210 = vmatprep.subr.bf16.mxu1 %v10598_v14  ;;  %v10670_v14 = vld [vmem:[%s15054_s1 + $0xbc4] ss:$20 sps:$4 sm:$0xff]  }
 0x10f   :  { %6695 = vmatpush1.bf16.msra.mxu0 %v10593_v15  ;;  %v10665_v15 = vld [vmem:[%s15054_s1 + $0xc58] ss:$20 sps:$4 sm:$0xff]  }
 0x110   :  { %7211 = vmatpush1.bf16.msra.mxu1 %v10596_v16  ;;  %6696 = vmatprep.subr.bf16.mxu0 %v10601_v18  ;;  %v10668_v16 = vld [vmem:[%s15054_s1 + $0xbc0] ss:$20 sps:$4 sm:$0xff]   ;;  %v10673_v18 = vld [vmem:[%s15054_s1 + $0xc84] ss:$20 sps:$4 sm:$0xff]  }
 0x111   :  { %7221 = vmatprep.subr.bf16.mxu1 %v10604_v19  ;;  %v10676_v19 = vld [vmem:[%s15054_s1 + $0xbec] ss:$20 sps:$4 sm:$0xff]  }
 0x113   :  { %7213 = vmatmul.mubr.bf16.vlgmr.msra.gmra.mrb[4].mxu1 %v12541_v63  ;;  %6697 = vmatpush1.bf16.msra.mxu0 %v10599_v20  ;;  %v12741_v20 = vrot.slane %v12511_v52, %v11736_v22  ;;  %v10682_v52 = vld [vmem:[%s15054_s1 + $0xc14] ss:$20 sps:$4 sm:$0xff]  }
 0x114   :  { %7222 = vmatpush1.bf16.msra.mxu1 %v10602_v21  ;;  %6698 = vmatprep.subr.bf16.mxu0 %v10607_v55  ;;  %v10671_v21 = vld [vmem:[%s15054_s1 + $0xc80] ss:$20 sps:$4 sm:$0xff]   ;;  %v10674_v55 = vld [vmem:[%s15054_s1 + $0xbe8] ss:$20 sps:$4 sm:$0xff]  }
 0x115   :  { %7223 = vmatprep.subr.bf16.mxu1 %v10610_v25  ;;  %7253 = vmatprep.mubr.bf16.mxu1 %v12553_v5  ;;  %v10679_v25 = vld [vmem:[%s15054_s1 + $0xcac] ss:$20 sps:$4 sm:$0xff]  }
 0x117   :  { %6699 = vmatpush1.bf16.msra.mxu0 %v10605_v27  ;;  %v12757_v27 = vcombine.high %v12553_v5, %v12553_v5 }
 0x118   :  { %7224 = vmatpush1.bf16.msra.mxu1 %v10608_v30  ;;  %6700 = vmatprep.subr.bf16.mxu0 %v10613_v32  ;;  %v10677_v30 = vld [vmem:[%s15054_s1 + $0xca8] ss:$20 sps:$4 sm:$0xff]   ;;  %v10680_v32 = vld [vmem:[%s15054_s1 + $0xc10] ss:$20 sps:$4 sm:$0xff]  }
 0x119   :  { %7225 = vmatprep.subr.bf16.mxu1 %v10616_v33  ;;  %v10685_v33 = vld [vmem:[%s15054_s1 + $0xcd4] ss:$20 sps:$4 sm:$0xff]  }
 0x11b   :  { %6701 = vmatpush1.bf16.msra.mxu0 %v10611_v34  ;;  %v10688_v34 = vld [vmem:[%s15054_s1 + $0xc3c] ss:$20 sps:$4 sm:$0xff]  }
 0x11c   :  { %7226 = vmatpush1.bf16.msra.mxu1 %v10614_v35  ;;  %6702 = vmatprep.subr.bf16.mxu0 %v10619_v37  ;;  %v10683_v35 = vld [vmem:[%s15054_s1 + $0xcd0] ss:$20 sps:$4 sm:$0xff]   ;;  %v10686_v37 = vld [vmem:[%s15054_s1 + $0xc38] ss:$20 sps:$4 sm:$0xff]  }
 0x11d   :  { %7227 = vmatprep.subr.bf16.mxu1 %v10622_v38  ;;  %v10691_v38 = vld [vmem:[%s15054_s1 + $0xcfc] ss:$20 sps:$4 sm:$0xff]  }
 0x11f   :  { %6703 = vmatpush1.bf16.msra.mxu0 %v10617_v39  ;;  %v10694_v39 = vld [vmem:[%s15054_s1 + $0xc64] ss:$20 sps:$4 sm:$0xff]  }
 0x120   :  { %7228 = vmatpush1.bf16.msra.mxu1 %v10620_v40  ;;  %6704 = vmatprep.subr.bf16.mxu0 %v10625_v41  ;;  %v10689_v40 = vld [vmem:[%s15054_s1 + $0xcf8] ss:$20 sps:$4 sm:$0xff]   ;;  %v10692_v41 = vld [vmem:[%s15054_s1 + $0xc60] ss:$20 sps:$4 sm:$0xff]  }
 0x121   :  { %7229 = vmatprep.subr.bf16.mxu1 %v10628_v42  ;;  %v10697_v42 = vld [vmem:[%s15054_s1 + $0xd24] ss:$20 sps:$4 sm:$0xff]  }
 0x123   :  { %6705 = vmatpush1.bf16.msra.mxu0 %v10623_v44  ;;  %v10700_v44 = vld [vmem:[%s15054_s1 + $0xc8c] ss:$20 sps:$4 sm:$0xff]  }
 0x124   :  { %7230 = vmatpush1.bf16.msra.mxu1 %v10626_v45  ;;  %6706 = vmatprep.subr.bf16.mxu0 %v10631_v46  ;;  %v10695_v45 = vld [vmem:[%s15054_s1 + $0xd20] ss:$20 sps:$4 sm:$0xff]   ;;  %v10698_v46 = vld [vmem:[%s15054_s1 + $0xc88] ss:$20 sps:$4 sm:$0xff]  }
 0x125   :  { %7231 = vmatprep.subr.bf16.mxu1 %v10634_v24  ;;  %v10703_v24 = vld [vmem:[%s15054_s1 + $0xd4c] ss:$20 sps:$4 sm:$0xff]  }
 0x127   :  { %6707 = vmatpush1.bf16.msra.mxu0 %v10629_v48  ;;  %v10706_v48 = vld [vmem:[%s15054_s1 + $0xcb4] ss:$20 sps:$4 sm:$0xff]  }
 0x128   :  { %7232 = vmatpush1.bf16.msra.mxu1 %v10632_v49  ;;  %6708 = vmatprep.subr.bf16.mxu0 %v10637_v50  ;;  %v10701_v49 = vld [vmem:[%s15054_s1 + $0xd48] ss:$20 sps:$4 sm:$0xff]   ;;  %v10704_v50 = vld [vmem:[%s15054_s1 + $0xcb0] ss:$20 sps:$4 sm:$0xff]  }
 0x129   :  { %7233 = vmatprep.subr.bf16.mxu1 %v10640_v51  ;;  %v10709_v51 = vld [vmem:[%s15054_s1 + $0xd74] ss:$20 sps:$4 sm:$0xff]  }
 0x12b   :  { %6709 = vmatpush1.bf16.msra.mxu0 %v10635_v53  ;;  %v10712_v53 = vld [vmem:[%s15054_s1 + $0xcdc] ss:$20 sps:$4 sm:$0xff]  }
 0x12c   :  { %7234 = vmatpush1.bf16.msra.mxu1 %v10638_v54  ;;  %6710 = vmatprep.subr.bf16.mxu0 %v10643_v56  ;;  %v10707_v54 = vld [vmem:[%s15054_s1 + $0xd70] ss:$20 sps:$4 sm:$0xff]   ;;  %v10710_v56 = vld [vmem:[%s15054_s1 + $0xcd8] ss:$20 sps:$4 sm:$0xff]  }
 0x12d   :  { %7235 = vmatprep.subr.bf16.mxu1 %v10646_v57  ;;  %v10715_v57 = vld [vmem:[%s15054_s1 + $0xd9c] ss:$20 sps:$4 sm:$0xff]  }
 0x12f   :  { %6711 = vmatpush1.bf16.msra.mxu0 %v10641_v58  ;;  %v10718_v58 = vld [vmem:[%s15054_s1 + $0xd04] ss:$20 sps:$4 sm:$0xff]  }
 0x130   :  { %7236 = vmatpush1.bf16.msra.mxu1 %v10644_v59  ;;  %6712 = vmatprep.subr.bf16.mxu0 %v10649_v60  ;;  %v10713_v59 = vld [vmem:[%s15054_s1 + $0xd98] ss:$20 sps:$4 sm:$0xff]   ;;  %v10716_v60 = vld [vmem:[%s15054_s1 + $0xd00] ss:$20 sps:$4 sm:$0xff]  }
 0x131   :  { %7237 = vmatprep.subr.bf16.mxu1 %v10652_v61  ;;  %v10721_v61 = vld [vmem:[%s15054_s1 + $0xdc4] ss:$20 sps:$4 sm:$0xff]  }
 0x133   :  { %6713 = vmatpush1.bf16.msra.mxu0 %v10647_v62  ;;  %v10724_v62 = vld [vmem:[%s15054_s1 + $0xd2c] ss:$20 sps:$4 sm:$0xff]  }
 0x134   :  { %7238 = vmatpush1.bf16.msra.mxu1 %v10650_v1  ;;  %6714 = vmatprep.subr.bf16.mxu0 %v10655_v3  ;;  %v10719_v1 = vld [vmem:[%s15054_s1 + $0xdc0] ss:$20 sps:$4 sm:$0xff]   ;;  %v10722_v3 = vld [vmem:[%s15054_s1 + $0xd28] ss:$20 sps:$4 sm:$0xff]  }
 0x135   :  { %7239 = vmatprep.subr.bf16.mxu1 %v10658_v4  ;;  %v10727_v4 = vld [vmem:[%s15054_s1 + $0xdec] ss:$20 sps:$4 sm:$0xff]  }
 0x137   :  { %6715 = vmatpush1.bf16.msra.mxu0 %v10653_v6  ;;  %v10730_v6 = vld [vmem:[%s15054_s1 + $0xd54] ss:$20 sps:$4 sm:$0xff]  }
 0x138   :  { %7240 = vmatpush1.bf16.msra.mxu1 %v10656_v7  ;;  %6716 = vmatprep.subr.bf16.mxu0 %v10661_v8  ;;  %v10725_v7 = vld [vmem:[%s15054_s1 + $0xde8] ss:$20 sps:$4 sm:$0xff]   ;;  %v10728_v8 = vld [vmem:[%s15054_s1 + $0xd50] ss:$20 sps:$4 sm:$0xff]  }
 0x139   :  { %7241 = vmatprep.subr.bf16.mxu1 %v10664_v9  ;;  %v10733_v9 = vld [vmem:[%s15054_s1 + $0xe14] ss:$20 sps:$4 sm:$0xff]  }
 0x13b   :  { %6717 = vmatpush1.bf16.msra.mxu0 %v10659_v10  ;;  %v10736_v10 = vld [vmem:[%s15054_s1 + $0xd7c] ss:$20 sps:$4 sm:$0xff]  }
 0x13c   :  { %7242 = vmatpush1.bf16.msra.mxu1 %v10662_v11  ;;  %6718 = vmatprep.subr.bf16.mxu0 %v10667_v12  ;;  %v10731_v11 = vld [vmem:[%s15054_s1 + $0xe10] ss:$20 sps:$4 sm:$0xff]   ;;  %v10734_v12 = vld [vmem:[%s15054_s1 + $0xd78] ss:$20 sps:$4 sm:$0xff]  }
 0x13d   :  { %7243 = vmatprep.subr.bf16.mxu1 %v10670_v14  ;;  %v10739_v14 = vld [vmem:[%s15054_s1 + $0xe3c] ss:$20 sps:$4 sm:$0xff]  }
 0x13f   :  { %6719 = vmatpush1.bf16.msra.mxu0 %v10665_v15  ;;  %v10742_v15 = vld [vmem:[%s15054_s1 + $0xda4] ss:$20 sps:$4 sm:$0xff]  }
 0x140   :  { %7244 = vmatpush1.bf16.msra.mxu1 %v10668_v16  ;;  %6729 = vmatprep.subr.bf16.mxu0 %v10673_v18  ;;  %v10737_v16 = vld [vmem:[%s15054_s1 + $0xe38] ss:$20 sps:$4 sm:$0xff]   ;;  %v10740_v18 = vld [vmem:[%s15054_s1 + $0xda0] ss:$20 sps:$4 sm:$0xff]  }
 0x141   :  { %7245 = vmatprep.subr.bf16.mxu1 %v10676_v19  ;;  %v10745_v19 = vld [vmem:[%s15054_s1 + $0xe64] ss:$20 sps:$4 sm:$0xff]  }
 0x142   :  { %6721 = vmatmul.mubr.bf16.vlgmr.msra.gmra.mrb[0].mxu0 %v12741_v20 }
 0x143   :  { %6730 = vmatpush1.bf16.msra.mxu0 %v10671_v21  ;;  %6761 = vmatprep.mubr.bf16.mxu0 %v12757_v27  ;;  %v10748_v21 = vld [vmem:[%s15054_s1 + $0xdcc] ss:$20 sps:$4 sm:$0xff]  }
 0x144   :  { %7246 = vmatpush1.bf16.msra.mxu1 %v10674_v55  ;;  %6731 = vmatprep.subr.bf16.mxu0 %v10679_v25  ;;  %v10743_v55 = vld [vmem:[%s15054_s1 + $0xe60] ss:$20 sps:$4 sm:$0xff]   ;;  %v10746_v25 = vld [vmem:[%s15054_s1 + $0xdc8] ss:$20 sps:$4 sm:$0xff]  }
 0x145   :  { %7247 = vmatprep.subr.bf16.mxu1 %v10682_v52  ;;  %v10751_v52 = vld [vmem:[%s15054_s1 + $0xe8c] ss:$20 sps:$4 sm:$0xff]  }
 0x147   :  { %6732 = vmatpush1.bf16.msra.mxu0 %v10677_v30  ;;  %v10754_v30 = vld [vmem:[%s15054_s1 + $0xdf4] ss:$20 sps:$4 sm:$0xff]  }
 0x148   :  { %7248 = vmatpush1.bf16.msra.mxu1 %v10680_v32  ;;  %6733 = vmatprep.subr.bf16.mxu0 %v10685_v33  ;;  %v10749_v32 = vld [vmem:[%s15054_s1 + $0xe88] ss:$20 sps:$4 sm:$0xff]   ;;  %v10752_v33 = vld [vmem:[%s15054_s1 + $0xdf0] ss:$20 sps:$4 sm:$0xff]  }
 0x149   :  { %7249 = vmatprep.subr.bf16.mxu1 %v10688_v34  ;;  %v10757_v34 = vld [vmem:[%s15054_s1 + $0xeb4] ss:$20 sps:$4 sm:$0xff]  }
 0x14b   :  { %6734 = vmatpush1.bf16.msra.mxu0 %v10683_v35  ;;  %v10760_v35 = vld [vmem:[%s15054_s1 + $0xe1c] ss:$20 sps:$4 sm:$0xff]  }
 0x14c   :  { %7250 = vmatpush1.bf16.msra.mxu1 %v10686_v37  ;;  %6735 = vmatprep.subr.bf16.mxu0 %v10691_v38  ;;  %v11611_v37 = vld [vmem:[%s15053_s0 + $0x8] sm:$0xff] }
 0x14d   :  { %7251 = vmatprep.subr.bf16.mxu1 %v10694_v39  ;;  %v1288_v38 = vcombine.high %v11611_v37, %v11611_v37  ;;  %v10755_v39 = vld [vmem:[%s15054_s1 + $0xeb0] ss:$20 sps:$4 sm:$0xff]   ;;  %v10818_v37 = vld [vmem:[%s15054_s1 + $0xfa8] ss:$20 sps:$4 sm:$0xff]  }
 0x14f   :  { %6736 = vmatpush1.bf16.msra.mxu0 %v10689_v40  ;;  %v10758_v40 = vld [vmem:[%s15054_s1 + $0xe18] ss:$20 sps:$4 sm:$0xff]  }
 0x150   :  { %7252 = vmatpush1.bf16.msra.mxu1 %v10692_v41  ;;  %6737 = vmatprep.subr.bf16.mxu0 %v10697_v42  ;;  %v10763_v41 = vld [vmem:[%s15054_s1 + $0xedc] ss:$20 sps:$4 sm:$0xff]   ;;  %v10766_v42 = vld [vmem:[%s15054_s1 + $0xe44] ss:$20 sps:$4 sm:$0xff]  }
 0x151   :  { %7262 = vmatprep.subr.bf16.mxu1 %v10700_v44  ;;  %v12935_v44 = vrot.slane %v1288_v38, %v11736_v22  ;;  %v10823_v38 = vld [vmem:[%s15054_s1 + $0x106c] ss:$20 sps:$4 sm:$0xff]  }
 0x153   :  { %7254 = vmatmul.mubr.bf16.vlgmr.msra.gmra.mrb[4].mxu1 %v12741_v20  ;;  %6738 = vmatpush1.bf16.msra.mxu0 %v10695_v45  ;;  %v10761_v45 = vld [vmem:[%s15054_s1 + $0xed8] ss:$20 sps:$4 sm:$0xff]  }
 0x154   :  { %7263 = vmatpush1.bf16.msra.mxu1 %v10698_v46  ;;  %6739 = vmatprep.subr.bf16.mxu0 %v10703_v24  ;;  %v10764_v46 = vld [vmem:[%s15054_s1 + $0xe40] ss:$20 sps:$4 sm:$0xff]   ;;  %v10769_v24 = vld [vmem:[%s15054_s1 + $0xf04] ss:$20 sps:$4 sm:$0xff]  }
 0x155   :  { %7264 = vmatprep.subr.bf16.mxu1 %v10706_v48  ;;  %7294 = vmatprep.mubr.bf16.mxu1 %v12757_v27  ;;  %v10772_v48 = vld [vmem:[%s15054_s1 + $0xe6c] ss:$20 sps:$4 sm:$0xff]  }
 0x157   :  { %6740 = vmatpush1.bf16.msra.mxu0 %v10701_v49  ;;  %v1304_v49 = vcombine.high %v12935_v44, %v12935_v44 }
 0x158   :  { %7265 = vmatpush1.bf16.msra.mxu1 %v10704_v50  ;;  %6741 = vmatprep.subr.bf16.mxu0 %v10709_v51  ;;  %v12953_v50 = vcombine.high %v12741_v20, %v12741_v20  ;;  %v10767_v51 = vld [vmem:[%s15054_s1 + $0xf00] ss:$20 sps:$4 sm:$0xff]  }
 0x159   :  { %7266 = vmatprep.subr.bf16.mxu1 %v10712_v53  ;;  %v10770_v53 = vld [vmem:[%s15054_s1 + $0xe68] ss:$20 sps:$4 sm:$0xff]  }
 0x15b   :  { %6742 = vmatpush1.bf16.msra.mxu0 %v10707_v54  ;;  %v10775_v54 = vld [vmem:[%s15054_s1 + $0xf2c] ss:$20 sps:$4 sm:$0xff]  }
 0x15c   :  { %7267 = vmatpush1.bf16.msra.mxu1 %v10710_v56  ;;  %6743 = vmatprep.subr.bf16.mxu0 %v10715_v57  ;;  %v10778_v56 = vld [vmem:[%s15054_s1 + $0xe94] ss:$20 sps:$4 sm:$0xff]   ;;  %v12968_v57 = vrot.slane %v1304_v49, %v11736_v22  ;;  %v10838_v49 = vld [vmem:[%s15054_s1 + $0x1024] ss:$20 sps:$4 sm:$0xff]  }
 0x15d   :  { %7268 = vmatprep.subr.bf16.mxu1 %v10718_v58  ;;  %v10773_v58 = vld [vmem:[%s15054_s1 + $0xf28] ss:$20 sps:$4 sm:$0xff]  }
 0x15f   :  { %6744 = vmatpush1.bf16.msra.mxu0 %v10713_v59  ;;  %v10776_v59 = vld [vmem:[%s15054_s1 + $0xe90] ss:$20 sps:$4 sm:$0xff]  }
 0x160   :  { %7269 = vmatpush1.bf16.msra.mxu1 %v10716_v60  ;;  %6745 = vmatprep.subr.bf16.mxu0 %v10721_v61  ;;  %v10781_v60 = vld [vmem:[%s15054_s1 + $0xf54] ss:$20 sps:$4 sm:$0xff]   ;;  %v10784_v61 = vld [vmem:[%s15054_s1 + $0xebc] ss:$20 sps:$4 sm:$0xff]  }
 0x161   :  { %7270 = vmatprep.subr.bf16.mxu1 %v10724_v62  ;;  %v10779_v62 = vld [vmem:[%s15054_s1 + $0xf50] ss:$20 sps:$4 sm:$0xff]  }
 0x163   :  { %6746 = vmatpush1.bf16.msra.mxu0 %v10719_v1  ;;  %v10782_v1 = vld [vmem:[%s15054_s1 + $0xeb8] ss:$20 sps:$4 sm:$0xff]  }
 0x164   :  { %7271 = vmatpush1.bf16.msra.mxu1 %v10722_v3  ;;  %6747 = vmatprep.subr.bf16.mxu0 %v10727_v4  ;;  %v10787_v3 = vld [vmem:[%s15054_s1 + $0xf7c] ss:$20 sps:$4 sm:$0xff]   ;;  %v10790_v4 = vld [vmem:[%s15054_s1 + $0xee4] ss:$20 sps:$4 sm:$0xff]  }
 0x165   :  { %7272 = vmatprep.subr.bf16.mxu1 %v10730_v6  ;;  %v10785_v6 = vld [vmem:[%s15054_s1 + $0xf78] ss:$20 sps:$4 sm:$0xff]  }
 0x167   :  { %6748 = vmatpush1.bf16.msra.mxu0 %v10725_v7  ;;  %v10788_v7 = vld [vmem:[%s15054_s1 + $0xee0] ss:$20 sps:$4 sm:$0xff]  }
 0x168   :  { %7273 = vmatpush1.bf16.msra.mxu1 %v10728_v8  ;;  %6749 = vmatprep.subr.bf16.mxu0 %v10733_v9  ;;  %v10793_v8 = vld [vmem:[%s15054_s1 + $0xfa4] ss:$20 sps:$4 sm:$0xff]   ;;  %v10796_v9 = vld [vmem:[%s15054_s1 + $0xf0c] ss:$20 sps:$4 sm:$0xff]  }
 0x169   :  { %7274 = vmatprep.subr.bf16.mxu1 %v10736_v10  ;;  %v10791_v10 = vld [vmem:[%s15054_s1 + $0xfa0] ss:$20 sps:$4 sm:$0xff]  }
 0x16b   :  { %6750 = vmatpush1.bf16.msra.mxu0 %v10731_v11  ;;  %v10794_v11 = vld [vmem:[%s15054_s1 + $0xf08] ss:$20 sps:$4 sm:$0xff]  }
 0x16c   :  { %7275 = vmatpush1.bf16.msra.mxu1 %v10734_v12  ;;  %6751 = vmatprep.subr.bf16.mxu0 %v10739_v14  ;;  %v10799_v12 = vld [vmem:[%s15054_s1 + $0xfcc] ss:$20 sps:$4 sm:$0xff]   ;;  %v10802_v14 = vld [vmem:[%s15054_s1 + $0xf34] ss:$20 sps:$4 sm:$0xff]  }
 0x16d   :  { %7276 = vmatprep.subr.bf16.mxu1 %v10742_v15  ;;  %v10797_v15 = vld [vmem:[%s15054_s1 + $0xfc8] ss:$20 sps:$4 sm:$0xff]  }
 0x16f   :  { %6752 = vmatpush1.bf16.msra.mxu0 %v10737_v16  ;;  %v10800_v16 = vld [vmem:[%s15054_s1 + $0xf30] ss:$20 sps:$4 sm:$0xff]  }
 0x170   :  { %7277 = vmatpush1.bf16.msra.mxu1 %v10740_v18  ;;  %6753 = vmatprep.subr.bf16.mxu0 %v10745_v19  ;;  %v10805_v18 = vld [vmem:[%s15054_s1 + $0xff4] ss:$20 sps:$4 sm:$0xff]   ;;  %v10808_v19 = vld [vmem:[%s15054_s1 + $0xf5c] ss:$20 sps:$4 sm:$0xff]  }
 0x171   :  { %7278 = vmatprep.subr.bf16.mxu1 %v10748_v21  ;;  %v10803_v21 = vld [vmem:[%s15054_s1 + $0xff0] ss:$20 sps:$4 sm:$0xff]  }
 0x173   :  { %6754 = vmatpush1.bf16.msra.mxu0 %v10743_v55  ;;  %v10806_v55 = vld [vmem:[%s15054_s1 + $0xf58] ss:$20 sps:$4 sm:$0xff]  }
 0x174   :  { %7279 = vmatpush1.bf16.msra.mxu1 %v10746_v25  ;;  %6755 = vmatprep.subr.bf16.mxu0 %v10751_v52  ;;  %v10811_v25 = vld [vmem:[%s15054_s1 + $0x101c] ss:$20 sps:$4 sm:$0xff]   ;;  %v10814_v52 = vld [vmem:[%s15054_s1 + $0xf84] ss:$20 sps:$4 sm:$0xff]  }
 0x175   :  { %7280 = vmatprep.subr.bf16.mxu1 %v10754_v30  ;;  %v10809_v30 = vld [vmem:[%s15054_s1 + $0x1018] ss:$20 sps:$4 sm:$0xff]  }
 0x177   :  { %6756 = vmatpush1.bf16.msra.mxu0 %v10749_v32  ;;  %v10812_v32 = vld [vmem:[%s15054_s1 + $0xf80] ss:$20 sps:$4 sm:$0xff]  }
 0x178   :  { %7281 = vmatpush1.bf16.msra.mxu1 %v10752_v33  ;;  %6757 = vmatprep.subr.bf16.mxu0 %v10757_v34  ;;  %v10817_v33 = vld [vmem:[%s15054_s1 + $0x1044] ss:$20 sps:$4 sm:$0xff]   ;;  %v10820_v34 = vld [vmem:[%s15054_s1 + $0xfac] ss:$20 sps:$4 sm:$0xff]  }
 0x179   :  { %7282 = vmatprep.subr.bf16.mxu1 %v10760_v35  ;;  %v10815_v35 = vld [vmem:[%s15054_s1 + $0x1040] ss:$20 sps:$4 sm:$0xff]  }
 0x17b   :  { %6758 = vmatpush1.bf16.msra.mxu0 %v10755_v39  ;;  %v10826_v39 = vld [vmem:[%s15054_s1 + $0xfd4] ss:$20 sps:$4 sm:$0xff]  }
 0x17c   :  { %7283 = vmatpush1.bf16.msra.mxu1 %v10758_v40  ;;  %6759 = vmatprep.subr.bf16.mxu0 %v10763_v41  ;;  %v10821_v40 = vld [vmem:[%s15054_s1 + $0x1068] ss:$20 sps:$4 sm:$0xff]   ;;  %v10824_v41 = vld [vmem:[%s15054_s1 + $0xfd0] ss:$20 sps:$4 sm:$0xff]  }
 0x17d   :  { %7284 = vmatprep.subr.bf16.mxu1 %v10766_v42  ;;  %v10829_v42 = vld [vmem:[%s15054_s1 + $0x1094] ss:$20 sps:$4 sm:$0xff]  }
 0x17f   :  { %6760 = vmatpush1.bf16.msra.mxu0 %v10761_v45  ;;  %v10832_v45 = vld [vmem:[%s15054_s1 + $0xffc] ss:$20 sps:$4 sm:$0xff]  }
 0x180   :  { %7285 = vmatpush1.bf16.msra.mxu1 %v10764_v46  ;;  %6770 = vmatprep.subr.bf16.mxu0 %v10769_v24  ;;  %v10827_v46 = vld [vmem:[%s15054_s1 + $0x1090] ss:$20 sps:$4 sm:$0xff]   ;;  %v10830_v24 = vld [vmem:[%s15054_s1 + $0xff8] ss:$20 sps:$4 sm:$0xff]  }
 0x181   :  { %7286 = vmatprep.subr.bf16.mxu1 %v10772_v48  ;;  %v10835_v48 = vld [vmem:[%s15054_s1 + $0x10bc] ss:$20 sps:$4 sm:$0xff]  }
 0x182   :  { %6762 = vmatmul.mubr.bf16.vlgmr.msra.gmra.mrb[0].mxu0 %v12953_v50 }
 0x183   :  { %6771 = vmatpush1.bf16.msra.mxu0 %v10767_v51  ;;  %6802 = vmatprep.mubr.bf16.mxu0 %v12968_v57  ;;  %v10833_v51 = vld [vmem:[%s15054_s1 + $0x10b8] ss:$20 sps:$4 sm:$0xff]  }
 0x184   :  { %7287 = vmatpush1.bf16.msra.mxu1 %v10770_v53  ;;  %6772 = vmatprep.subr.bf16.mxu0 %v10775_v54  ;;  %v10836_v53 = vld [vmem:[%s15054_s1 + $0x1020] ss:$20 sps:$4 sm:$0xff]   ;;  %v10841_v54 = vld [vmem:[%s15054_s1 + $0x10e4] ss:$20 sps:$4 sm:$0xff]  }
 0x185   :  { %7288 = vmatprep.subr.bf16.mxu1 %v10778_v56  ;;  %v10844_v56 = vld [vmem:[%s15054_s1 + $0x104c] ss:$20 sps:$4 sm:$0xff]  }
 0x187   :  { %6773 = vmatpush1.bf16.msra.mxu0 %v10773_v58  ;;  %v10839_v58 = vld [vmem:[%s15054_s1 + $0x10e0] ss:$20 sps:$4 sm:$0xff]  }
 0x188   :  { %7289 = vmatpush1.bf16.msra.mxu1 %v10776_v59  ;;  %6774 = vmatprep.subr.bf16.mxu0 %v10781_v60  ;;  %v10842_v59 = vld [vmem:[%s15054_s1 + $0x1048] ss:$20 sps:$4 sm:$0xff]   ;;  %v10847_v60 = vld [vmem:[%s15054_s1 + $0x110c] ss:$20 sps:$4 sm:$0xff]  }
 0x189   :  { %7290 = vmatprep.subr.bf16.mxu1 %v10784_v61  ;;  %v10850_v61 = vld [vmem:[%s15054_s1 + $0x1074] ss:$20 sps:$4 sm:$0xff]  }
 0x18b   :  { %6775 = vmatpush1.bf16.msra.mxu0 %v10779_v62  ;;  %v10845_v62 = vld [vmem:[%s15054_s1 + $0x1108] ss:$20 sps:$4 sm:$0xff]  }
 0x18c   :  { %7291 = vmatpush1.bf16.msra.mxu1 %v10782_v1  ;;  %6776 = vmatprep.subr.bf16.mxu0 %v10787_v3  ;;  %v10848_v1 = vld [vmem:[%s15054_s1 + $0x1070] ss:$20 sps:$4 sm:$0xff]   ;;  %v10853_v3 = vld [vmem:[%s15054_s1 + $0x1134] ss:$20 sps:$4 sm:$0xff]  }
 0x18d   :  { %7292 = vmatprep.subr.bf16.mxu1 %v10790_v4  ;;  %v10856_v4 = vld [vmem:[%s15054_s1 + $0x109c] ss:$20 sps:$4 sm:$0xff]  }
 0x18f   :  { %6777 = vmatpush1.bf16.msra.mxu0 %v10785_v6  ;;  %v10851_v6 = vld [vmem:[%s15054_s1 + $0x1130] ss:$20 sps:$4 sm:$0xff]  }
 0x190   :  { %7293 = vmatpush1.bf16.msra.mxu1 %v10788_v7  ;;  %6778 = vmatprep.subr.bf16.mxu0 %v10793_v8  ;;  %v10854_v7 = vld [vmem:[%s15054_s1 + $0x1098] ss:$20 sps:$4 sm:$0xff]   ;;  %v10859_v8 = vld [vmem:[%s15054_s1 + $0x115c] ss:$20 sps:$4 sm:$0xff]  }
 0x191   :  { %7303 = vmatprep.subr.bf16.mxu1 %v10796_v9  ;;  %v10862_v9 = vld [vmem:[%s15054_s1 + $0x10c4] ss:$20 sps:$4 sm:$0xff]  }
 0x193   :  { %7295 = vmatmul.mubr.bf16.vlgmr.msra.gmra.mrb[4].mxu1 %v12953_v50  ;;  %6779 = vmatpush1.bf16.msra.mxu0 %v10791_v10  ;;  %v10857_v10 = vld [vmem:[%s15054_s1 + $0x1158] ss:$20 sps:$4 sm:$0xff]  }
 0x194   :  { %7304 = vmatpush1.bf16.msra.mxu1 %v10794_v11  ;;  %6780 = vmatprep.subr.bf16.mxu0 %v10799_v12  ;;  %v10860_v11 = vld [vmem:[%s15054_s1 + $0x10c0] ss:$20 sps:$4 sm:$0xff]   ;;  %v10866_v12 = vld [vmem:[%s15054_s1 + $0x1184] ss:$20 sps:$4 sm:$0xff]  }
 0x195   :  { %7305 = vmatprep.subr.bf16.mxu1 %v10802_v14  ;;  %7335 = vmatprep.mubr.bf16.mxu1 %v12968_v57  ;;  %v10869_v14 = vld [vmem:[%s15054_s1 + $0x10ec] ss:$20 sps:$4 sm:$0xff]  }
 0x197   :  { %6781 = vmatpush1.bf16.msra.mxu0 %v10797_v15  ;;  %v13156_v15 = vrot.slane %v12935_v44, %v11736_v22  ;;  %v10875_v44 = vld [vmem:[%s15054_s1 + $0x1114] ss:$20 sps:$4 sm:$0xff]  }
 0x198   :  { %7306 = vmatpush1.bf16.msra.mxu1 %v10800_v16  ;;  %6782 = vmatprep.subr.bf16.mxu0 %v10805_v18  ;;  %v10864_v16 = vld [vmem:[%s15054_s1 + $0x1180] ss:$20 sps:$4 sm:$0xff]   ;;  %v10867_v18 = vld [vmem:[%s15054_s1 + $0x10e8] ss:$20 sps:$4 sm:$0xff]  }
 0x199   :  { %7307 = vmatprep.subr.bf16.mxu1 %v10808_v19  ;;  %v10872_v19 = vld [vmem:[%s15054_s1 + $0x11ac] ss:$20 sps:$4 sm:$0xff]  }
 0x19b   :  { %6783 = vmatpush1.bf16.msra.mxu0 %v10803_v21  ;;  %v13172_v21 = vcombine.high %v12968_v57, %v12968_v57 }
 0x19c   :  { %7308 = vmatpush1.bf16.msra.mxu1 %v10806_v55  ;;  %6784 = vmatprep.subr.bf16.mxu0 %v10811_v25  ;;  %v10870_v55 = vld [vmem:[%s15054_s1 + $0x11a8] ss:$20 sps:$4 sm:$0xff]   ;;  %v10873_v25 = vld [vmem:[%s15054_s1 + $0x1110] ss:$20 sps:$4 sm:$0xff]  }
 0x19d   :  { %7309 = vmatprep.subr.bf16.mxu1 %v10814_v52  ;;  %v10878_v52 = vld [vmem:[%s15054_s1 + $0x11d4] ss:$20 sps:$4 sm:$0xff]  }
 0x19f   :  { %6785 = vmatpush1.bf16.msra.mxu0 %v10809_v30  ;;  %v10881_v30 = vld [vmem:[%s15054_s1 + $0x113c] ss:$20 sps:$4 sm:$0xff]  }
 0x1a0   :  { %7310 = vmatpush1.bf16.msra.mxu1 %v10812_v32  ;;  %6786 = vmatprep.subr.bf16.mxu0 %v10817_v33  ;;  %v10876_v32 = vld [vmem:[%s15054_s1 + $0x11d0] ss:$20 sps:$4 sm:$0xff]   ;;  %v10879_v33 = vld [vmem:[%s15054_s1 + $0x1138] ss:$20 sps:$4 sm:$0xff]  }
 0x1a1   :  { %7311 = vmatprep.subr.bf16.mxu1 %v10820_v34  ;;  %v10884_v34 = vld [vmem:[%s15054_s1 + $0x11fc] ss:$20 sps:$4 sm:$0xff]  }
 0x1a3   :  { %6787 = vmatpush1.bf16.msra.mxu0 %v10815_v35  ;;  %v10887_v35 = vld [vmem:[%s15054_s1 + $0x1164] ss:$20 sps:$4 sm:$0xff]  }
 0x1a4   :  { %7312 = vmatpush1.bf16.msra.mxu1 %v10818_v37  ;;  %6788 = vmatprep.subr.bf16.mxu0 %v10823_v38  ;;  %v10882_v37 = vld [vmem:[%s15054_s1 + $0x11f8] ss:$20 sps:$4 sm:$0xff]   ;;  %v10885_v38 = vld [vmem:[%s15054_s1 + $0x1160] ss:$20 sps:$4 sm:$0xff]  }
 0x1a5   :  { %7313 = vmatprep.subr.bf16.mxu1 %v10826_v39  ;;  %v10890_v39 = vld [vmem:[%s15054_s1 + $0x1224] ss:$20 sps:$4 sm:$0xff]  }
 0x1a7   :  { %6789 = vmatpush1.bf16.msra.mxu0 %v10821_v40  ;;  %v10893_v40 = vld [vmem:[%s15054_s1 + $0x118c] ss:$20 sps:$4 sm:$0xff]  }
 0x1a8   :  { %7314 = vmatpush1.bf16.msra.mxu1 %v10824_v41  ;;  %6790 = vmatprep.subr.bf16.mxu0 %v10829_v42  ;;  %v10888_v41 = vld [vmem:[%s15054_s1 + $0x1220] ss:$20 sps:$4 sm:$0xff]   ;;  %v10891_v42 = vld [vmem:[%s15054_s1 + $0x1188] ss:$20 sps:$4 sm:$0xff]  }
 0x1a9   :  { %7315 = vmatprep.subr.bf16.mxu1 %v10832_v45  ;;  %v10896_v45 = vld [vmem:[%s15054_s1 + $0x124c] ss:$20 sps:$4 sm:$0xff]  }
 0x1ab   :  { %6791 = vmatpush1.bf16.msra.mxu0 %v10827_v46  ;;  %v10899_v46 = vld [vmem:[%s15054_s1 + $0x11b4] ss:$20 sps:$4 sm:$0xff]  }
 0x1ac   :  { %7316 = vmatpush1.bf16.msra.mxu1 %v10830_v24  ;;  %6792 = vmatprep.subr.bf16.mxu0 %v10835_v48  ;;  %v10894_v24 = vld [vmem:[%s15054_s1 + $0x1248] ss:$20 sps:$4 sm:$0xff]   ;;  %v10897_v48 = vld [vmem:[%s15054_s1 + $0x11b0] ss:$20 sps:$4 sm:$0xff]  }
 0x1ad   :  { %7317 = vmatprep.subr.bf16.mxu1 %v10838_v49  ;;  %v10902_v49 = vld [vmem:[%s15054_s1 + $0x1274] ss:$20 sps:$4 sm:$0xff]  }
 0x1af   :  { %6793 = vmatpush1.bf16.msra.mxu0 %v10833_v51  ;;  %v10905_v51 = vld [vmem:[%s15054_s1 + $0x11dc] ss:$20 sps:$4 sm:$0xff]  }
 0x1b0   :  { %7318 = vmatpush1.bf16.msra.mxu1 %v10836_v53  ;;  %6794 = vmatprep.subr.bf16.mxu0 %v10841_v54  ;;  %v10900_v53 = vld [vmem:[%s15054_s1 + $0x1270] ss:$20 sps:$4 sm:$0xff]   ;;  %v10903_v54 = vld [vmem:[%s15054_s1 + $0x11d8] ss:$20 sps:$4 sm:$0xff]  }
 0x1b1   :  { %7319 = vmatprep.subr.bf16.mxu1 %v10844_v56  ;;  %v10908_v56 = vld [vmem:[%s15054_s1 + $0x129c] ss:$20 sps:$4 sm:$0xff]  }
 0x1b3   :  { %6795 = vmatpush1.bf16.msra.mxu0 %v10839_v58  ;;  %v10911_v58 = vld [vmem:[%s15054_s1 + $0x1204] ss:$20 sps:$4 sm:$0xff]  }
 0x1b4   :  { %7320 = vmatpush1.bf16.msra.mxu1 %v10842_v59  ;;  %6796 = vmatprep.subr.bf16.mxu0 %v10847_v60  ;;  %v10906_v59 = vld [vmem:[%s15054_s1 + $0x1298] ss:$20 sps:$4 sm:$0xff]   ;;  %v10909_v60 = vld [vmem:[%s15054_s1 + $0x1200] ss:$20 sps:$4 sm:$0xff]  }
 0x1b5   :  { %7321 = vmatprep.subr.bf16.mxu1 %v10850_v61  ;;  %v10914_v61 = vld [vmem:[%s15054_s1 + $0x12c4] ss:$20 sps:$4 sm:$0xff]  }
 0x1b7   :  { %6797 = vmatpush1.bf16.msra.mxu0 %v10845_v62  ;;  %v10917_v62 = vld [vmem:[%s15054_s1 + $0x122c] ss:$20 sps:$4 sm:$0xff]  }
 0x1b8   :  { %7322 = vmatpush1.bf16.msra.mxu1 %v10848_v1  ;;  %6798 = vmatprep.subr.bf16.mxu0 %v10853_v3  ;;  %v10912_v1 = vld [vmem:[%s15054_s1 + $0x12c0] ss:$20 sps:$4 sm:$0xff]   ;;  %v10915_v3 = vld [vmem:[%s15054_s1 + $0x1228] ss:$20 sps:$4 sm:$0xff]  }
 0x1b9   :  { %7323 = vmatprep.subr.bf16.mxu1 %v10856_v4  ;;  %v10920_v4 = vld [vmem:[%s15054_s1 + $0x12ec] ss:$20 sps:$4 sm:$0xff]  }
 0x1bb   :  { %6799 = vmatpush1.bf16.msra.mxu0 %v10851_v6  ;;  %v10923_v6 = vld [vmem:[%s15054_s1 + $0x1254] ss:$20 sps:$4 sm:$0xff]  }
 0x1bc   :  { %7324 = vmatpush1.bf16.msra.mxu1 %v10854_v7  ;;  %6800 = vmatprep.subr.bf16.mxu0 %v10859_v8  ;;  %v10918_v7 = vld [vmem:[%s15054_s1 + $0x12e8] ss:$20 sps:$4 sm:$0xff]   ;;  %v10921_v8 = vld [vmem:[%s15054_s1 + $0x1250] ss:$20 sps:$4 sm:$0xff]  }
 0x1bd   :  { %7325 = vmatprep.subr.bf16.mxu1 %v10862_v9  ;;  %v10926_v9 = vld [vmem:[%s15054_s1 + $0x1314] ss:$20 sps:$4 sm:$0xff]  }
 0x1bf   :  { %6801 = vmatpush1.bf16.msra.mxu0 %v10857_v10  ;;  %v10929_v10 = vld [vmem:[%s15054_s1 + $0x127c] ss:$20 sps:$4 sm:$0xff]  }
 0x1c0   :  { %7326 = vmatpush1.bf16.msra.mxu1 %v10860_v11  ;;  %6811 = vmatprep.subr.bf16.mxu0 %v10866_v12  ;;  %v10924_v11 = vld [vmem:[%s15054_s1 + $0x1310] ss:$20 sps:$4 sm:$0xff]   ;;  %v10927_v12 = vld [vmem:[%s15054_s1 + $0x1278] ss:$20 sps:$4 sm:$0xff]  }
 0x1c1   :  { %7327 = vmatprep.subr.bf16.mxu1 %v10869_v14  ;;  %v10932_v14 = vld [vmem:[%s15054_s1 + $0x133c] ss:$20 sps:$4 sm:$0xff]  }
 0x1c2   :  { %6803 = vmatmul.mubr.bf16.vlgmr.msra.gmra.mrb[0].mxu0 %v13156_v15 }
 0x1c3   :  { %6812 = vmatpush1.bf16.msra.mxu0 %v10864_v16  ;;  %6843 = vmatprep.mubr.bf16.mxu0 %v13172_v21  ;;  %v10935_v16 = vld [vmem:[%s15054_s1 + $0x12a4] ss:$20 sps:$4 sm:$0xff]  }
 0x1c4   :  { %7328 = vmatpush1.bf16.msra.mxu1 %v10867_v18  ;;  %6813 = vmatprep.subr.bf16.mxu0 %v10872_v19  ;;  %v10930_v18 = vld [vmem:[%s15054_s1 + $0x1338] ss:$20 sps:$4 sm:$0xff]   ;;  %v10933_v19 = vld [vmem:[%s15054_s1 + $0x12a0] ss:$20 sps:$4 sm:$0xff]  }
 0x1c5   :  { %7329 = vmatprep.subr.bf16.mxu1 %v10875_v44  ;;  %v10938_v44 = vld [vmem:[%s15054_s1 + $0x1364] ss:$20 sps:$4 sm:$0xff]  }
 0x1c7   :  { %6814 = vmatpush1.bf16.msra.mxu0 %v10870_v55  ;;  %v10941_v55 = vld [vmem:[%s15054_s1 + $0x12cc] ss:$20 sps:$4 sm:$0xff]  }
 0x1c8   :  { %7330 = vmatpush1.bf16.msra.mxu1 %v10873_v25  ;;  %6815 = vmatprep.subr.bf16.mxu0 %v10878_v52  ;;  %v10936_v25 = vld [vmem:[%s15054_s1 + $0x1360] ss:$20 sps:$4 sm:$0xff]   ;;  %v10939_v52 = vld [vmem:[%s15054_s1 + $0x12c8] ss:$20 sps:$4 sm:$0xff]  }
 0x1c9   :  { %7331 = vmatprep.subr.bf16.mxu1 %v10881_v30  ;;  %v10944_v30 = vld [vmem:[%s15054_s1 + $0x138c] ss:$20 sps:$4 sm:$0xff]  }
 0x1cb   :  { %6816 = vmatpush1.bf16.msra.mxu0 %v10876_v32  ;;  %v10947_v32 = vld [vmem:[%s15054_s1 + $0x12f4] ss:$20 sps:$4 sm:$0xff]  }
 0x1cc   :  { %7332 = vmatpush1.bf16.msra.mxu1 %v10879_v33  ;;  %6817 = vmatprep.subr.bf16.mxu0 %v10884_v34  ;;  %v10942_v33 = vld [vmem:[%s15054_s1 + $0x1388] ss:$20 sps:$4 sm:$0xff]   ;;  %v10945_v34 = vld [vmem:[%s15054_s1 + $0x12f0] ss:$20 sps:$4 sm:$0xff]  }
 0x1cd   :  { %7333 = vmatprep.subr.bf16.mxu1 %v10887_v35  ;;  %v10950_v35 = vld [vmem:[%s15054_s1 + $0x13b4] ss:$20 sps:$4 sm:$0xff]  }
 0x1cf   :  { %6818 = vmatpush1.bf16.msra.mxu0 %v10882_v37  ;;  %v10953_v37 = vld [vmem:[%s15054_s1 + $0x131c] ss:$20 sps:$4 sm:$0xff]  }
 0x1d0   :  { %7334 = vmatpush1.bf16.msra.mxu1 %v10885_v38  ;;  %6819 = vmatprep.subr.bf16.mxu0 %v10890_v39  ;;  %v13337_v38 = vld.sshfl [vmem:[%s15053_s0 + $0x10] sm:$0xff pattern:$0x75316420] }
 0x1d1   :  { %7344 = vmatprep.subr.bf16.mxu1 %v10893_v40  ;;  %v10948_v39 = vld [vmem:[%s15054_s1 + $0x13b0] ss:$20 sps:$4 sm:$0xff]   ;;  %v10951_v40 = vld [vmem:[%s15054_s1 + $0x1318] ss:$20 sps:$4 sm:$0xff]  }
 0x1d3   :  { %7336 = vmatmul.mubr.bf16.vlgmr.msra.gmra.mrb[4].mxu1 %v13156_v15  ;;  %6820 = vmatpush1.bf16.msra.mxu0 %v10888_v41  ;;  %v10956_v41 = vld [vmem:[%s15054_s1 + $0x13dc] ss:$20 sps:$4 sm:$0xff]  }
 0x1d4   :  { %7345 = vmatpush1.bf16.msra.mxu1 %v10891_v42  ;;  %6821 = vmatprep.subr.bf16.mxu0 %v10896_v45  ;;  %v10959_v42 = vld [vmem:[%s15054_s1 + $0x1344] ss:$20 sps:$4 sm:$0xff]  }
 0x1d5   :  { %7346 = vmatprep.subr.bf16.mxu1 %v10899_v46  ;;  %7376 = vmatprep.mubr.bf16.mxu1 %v13172_v21  ;;  %v10954_v45 = vld [vmem:[%s15054_s1 + $0x13d8] ss:$20 sps:$4 sm:$0xff]   ;;  %v10957_v46 = vld [vmem:[%s15054_s1 + $0x1340] ss:$20 sps:$4 sm:$0xff]  }
 0x1d7   :  { %6822 = vmatpush1.bf16.msra.mxu0 %v10894_v24  ;;  %v10962_v24 = vld [vmem:[%s15054_s1 + $0x1404] ss:$20 sps:$4 sm:$0xff]  }
 0x1d8   :  { %7347 = vmatpush1.bf16.msra.mxu1 %v10897_v48  ;;  %6823 = vmatprep.subr.bf16.mxu0 %v10902_v49  ;;  %v10965_v48 = vld [vmem:[%s15054_s1 + $0x136c] ss:$20 sps:$4 sm:$0xff]   ;;  %v1352_v49 = vcombine.high %v13337_v38, %v13337_v38 }
 0x1d9   :  { %7348 = vmatprep.subr.bf16.mxu1 %v10905_v51  ;;  %v13367_v51 = vcombine.high %v13156_v15, %v13156_v15 }
 0x1db   :  { %6824 = vmatpush1.bf16.msra.mxu0 %v10900_v53  ;;  %v10960_v53 = vld [vmem:[%s15054_s1 + $0x1400] ss:$20 sps:$4 sm:$0xff]  }
 0x1dc   :  { %7349 = vmatpush1.bf16.msra.mxu1 %v10903_v54  ;;  %6825 = vmatprep.subr.bf16.mxu0 %v10908_v56  ;;  %v10963_v54 = vld [vmem:[%s15054_s1 + $0x1368] ss:$20 sps:$4 sm:$0xff]   ;;  %v10968_v56 = vld [vmem:[%s15054_s1 + $0x142c] ss:$20 sps:$4 sm:$0xff]  }
 0x1dd   :  { %7350 = vmatprep.subr.bf16.mxu1 %v10911_v58  ;;  %v10971_v58 = vld [vmem:[%s15054_s1 + $0x1394] ss:$20 sps:$4 sm:$0xff]  }
 0x1df   :  { %6826 = vmatpush1.bf16.msra.mxu0 %v10906_v59  ;;  %v13382_v59 = vrot.slane %v1352_v49, %v11736_v22  ;;  %v11025_v49 = vld [vmem:[%s15054_s1 + $0x14fc] ss:$20 sps:$4 sm:$0xff]  }
 0x1e0   :  { %7351 = vmatpush1.bf16.msra.mxu1 %v10909_v60  ;;  %6827 = vmatprep.subr.bf16.mxu0 %v10914_v61  ;;  %v10966_v60 = vld [vmem:[%s15054_s1 + $0x1428] ss:$20 sps:$4 sm:$0xff]   ;;  %v10969_v61 = vld [vmem:[%s15054_s1 + $0x1390] ss:$20 sps:$4 sm:$0xff]  }
 0x1e1   :  { %7352 = vmatprep.subr.bf16.mxu1 %v10917_v62  ;;  %v10974_v62 = vld [vmem:[%s15054_s1 + $0x1454] ss:$20 sps:$4 sm:$0xff]  }
 0x1e3   :  { %6828 = vmatpush1.bf16.msra.mxu0 %v10912_v1  ;;  %v10977_v1 = vld [vmem:[%s15054_s1 + $0x13bc] ss:$20 sps:$4 sm:$0xff]  }
 0x1e4   :  { %7353 = vmatpush1.bf16.msra.mxu1 %v10915_v3  ;;  %6829 = vmatprep.subr.bf16.mxu0 %v10920_v4  ;;  %v10972_v3 = vld [vmem:[%s15054_s1 + $0x1450] ss:$20 sps:$4 sm:$0xff]   ;;  %v10975_v4 = vld [vmem:[%s15054_s1 + $0x13b8] ss:$20 sps:$4 sm:$0xff]  }
 0x1e5   :  { %7354 = vmatprep.subr.bf16.mxu1 %v10923_v6  ;;  %v10980_v6 = vld [vmem:[%s15054_s1 + $0x147c] ss:$20 sps:$4 sm:$0xff]  }
 0x1e7   :  { %6830 = vmatpush1.bf16.msra.mxu0 %v10918_v7  ;;  %v10983_v7 = vld [vmem:[%s15054_s1 + $0x13e4] ss:$20 sps:$4 sm:$0xff]  }
 0x1e8   :  { %7355 = vmatpush1.bf16.msra.mxu1 %v10921_v8  ;;  %6831 = vmatprep.subr.bf16.mxu0 %v10926_v9  ;;  %v10978_v8 = vld [vmem:[%s15054_s1 + $0x1478] ss:$20 sps:$4 sm:$0xff]   ;;  %v10981_v9 = vld [vmem:[%s15054_s1 + $0x13e0] ss:$20 sps:$4 sm:$0xff]  }
 0x1e9   :  { %7356 = vmatprep.subr.bf16.mxu1 %v10929_v10  ;;  %v10986_v10 = vld [vmem:[%s15054_s1 + $0x14a4] ss:$20 sps:$4 sm:$0xff]  }
 0x1eb   :  { %6832 = vmatpush1.bf16.msra.mxu0 %v10924_v11  ;;  %v10989_v11 = vld [vmem:[%s15054_s1 + $0x140c] ss:$20 sps:$4 sm:$0xff]  }
 0x1ec   :  { %7357 = vmatpush1.bf16.msra.mxu1 %v10927_v12  ;;  %6833 = vmatprep.subr.bf16.mxu0 %v10932_v14  ;;  %v10984_v12 = vld [vmem:[%s15054_s1 + $0x14a0] ss:$20 sps:$4 sm:$0xff]   ;;  %v10987_v14 = vld [vmem:[%s15054_s1 + $0x1408] ss:$20 sps:$4 sm:$0xff]  }
 0x1ed   :  { %7358 = vmatprep.subr.bf16.mxu1 %v10935_v16  ;;  %v10992_v16 = vld [vmem:[%s15054_s1 + $0x14cc] ss:$20 sps:$4 sm:$0xff]  }
 0x1ef   :  { %6834 = vmatpush1.bf16.msra.mxu0 %v10930_v18  ;;  %v10995_v18 = vld [vmem:[%s15054_s1 + $0x1434] ss:$20 sps:$4 sm:$0xff]  }
 0x1f0   :  { %7359 = vmatpush1.bf16.msra.mxu1 %v10933_v19  ;;  %6835 = vmatprep.subr.bf16.mxu0 %v10938_v44  ;;  %v10990_v19 = vld [vmem:[%s15054_s1 + $0x14c8] ss:$20 sps:$4 sm:$0xff]   ;;  %v10993_v44 = vld [vmem:[%s15054_s1 + $0x1430] ss:$20 sps:$4 sm:$0xff]  }
 0x1f1   :  { %7360 = vmatprep.subr.bf16.mxu1 %v10941_v55  ;;  %v10998_v55 = vld [vmem:[%s15054_s1 + $0x14f4] ss:$20 sps:$4 sm:$0xff]  }
 0x1f3   :  { %6836 = vmatpush1.bf16.msra.mxu0 %v10936_v25  ;;  %v11001_v25 = vld [vmem:[%s15054_s1 + $0x145c] ss:$20 sps:$4 sm:$0xff]  }
 0x1f4   :  { %7361 = vmatpush1.bf16.msra.mxu1 %v10939_v52  ;;  %6837 = vmatprep.subr.bf16.mxu0 %v10944_v30  ;;  %v10996_v52 = vld [vmem:[%s15054_s1 + $0x14f0] ss:$20 sps:$4 sm:$0xff]   ;;  %v10999_v30 = vld [vmem:[%s15054_s1 + $0x1458] ss:$20 sps:$4 sm:$0xff]  }
 0x1f5   :  { %7362 = vmatprep.subr.bf16.mxu1 %v10947_v32  ;;  %v11004_v32 = vld [vmem:[%s15054_s1 + $0x151c] ss:$20 sps:$4 sm:$0xff]  }
 0x1f7   :  { %6838 = vmatpush1.bf16.msra.mxu0 %v10942_v33  ;;  %v11007_v33 = vld [vmem:[%s15054_s1 + $0x1484] ss:$20 sps:$4 sm:$0xff]  }
 0x1f8   :  { %7363 = vmatpush1.bf16.msra.mxu1 %v10945_v34  ;;  %6839 = vmatprep.subr.bf16.mxu0 %v10950_v35  ;;  %v11002_v34 = vld [vmem:[%s15054_s1 + $0x1518] ss:$20 sps:$4 sm:$0xff]   ;;  %v11005_v35 = vld [vmem:[%s15054_s1 + $0x1480] ss:$20 sps:$4 sm:$0xff]  }
 0x1f9   :  { %7364 = vmatprep.subr.bf16.mxu1 %v10953_v37  ;;  %v11010_v37 = vld [vmem:[%s15054_s1 + $0x1544] ss:$20 sps:$4 sm:$0xff]  }
 0x1fb   :  { %6840 = vmatpush1.bf16.msra.mxu0 %v10948_v39  ;;  %v11013_v39 = vld [vmem:[%s15054_s1 + $0x14ac] ss:$20 sps:$4 sm:$0xff]  }
 0x1fc   :  { %7365 = vmatpush1.bf16.msra.mxu1 %v10951_v40  ;;  %6841 = vmatprep.subr.bf16.mxu0 %v10956_v41  ;;  %v11008_v40 = vld [vmem:[%s15054_s1 + $0x1540] ss:$20 sps:$4 sm:$0xff]   ;;  %v11011_v41 = vld [vmem:[%s15054_s1 + $0x14a8] ss:$20 sps:$4 sm:$0xff]  }
 0x1fd   :  { %7366 = vmatprep.subr.bf16.mxu1 %v10959_v42  ;;  %v11016_v42 = vld [vmem:[%s15054_s1 + $0x156c] ss:$20 sps:$4 sm:$0xff]  }
 0x1ff   :  { %6842 = vmatpush1.bf16.msra.mxu0 %v10954_v45  ;;  %v11019_v45 = vld [vmem:[%s15054_s1 + $0x14d4] ss:$20 sps:$4 sm:$0xff]  }
 0x200   :  { %7367 = vmatpush1.bf16.msra.mxu1 %v10957_v46  ;;  %6852 = vmatprep.subr.bf16.mxu0 %v10962_v24  ;;  %v11014_v46 = vld [vmem:[%s15054_s1 + $0x1568] ss:$20 sps:$4 sm:$0xff]   ;;  %v11017_v24 = vld [vmem:[%s15054_s1 + $0x14d0] ss:$20 sps:$4 sm:$0xff]  }
 0x201   :  { %7368 = vmatprep.subr.bf16.mxu1 %v10965_v48  ;;  %v11022_v48 = vld [vmem:[%s15054_s1 + $0x1594] ss:$20 sps:$4 sm:$0xff]  }
 0x202   :  { %6844 = vmatmul.mubr.bf16.vlgmr.msra.gmra.mrb[0].mxu0 %v13367_v51 }
 0x203   :  { %6853 = vmatpush1.bf16.msra.mxu0 %v10960_v53  ;;  %6884 = vmatprep.mubr.bf16.mxu0 %v13382_v59  ;;  %v11020_v53 = vld [vmem:[%s15054_s1 + $0x1590] ss:$20 sps:$4 sm:$0xff]  }
 0x204   :  { %7369 = vmatpush1.bf16.msra.mxu1 %v10963_v54  ;;  %6854 = vmatprep.subr.bf16.mxu0 %v10968_v56  ;;  %v11023_v54 = vld [vmem:[%s15054_s1 + $0x14f8] ss:$20 sps:$4 sm:$0xff]   ;;  %v11028_v56 = vld [vmem:[%s15054_s1 + $0x15bc] ss:$20 sps:$4 sm:$0xff]  }
 0x205   :  { %7370 = vmatprep.subr.bf16.mxu1 %v10971_v58  ;;  %v11031_v58 = vld [vmem:[%s15054_s1 + $0x1524] ss:$20 sps:$4 sm:$0xff]  }
 0x207   :  { %6855 = vmatpush1.bf16.msra.mxu0 %v10966_v60  ;;  %v11026_v60 = vld [vmem:[%s15054_s1 + $0x15b8] ss:$20 sps:$4 sm:$0xff]  }
 0x208   :  { %7371 = vmatpush1.bf16.msra.mxu1 %v10969_v61  ;;  %6856 = vmatprep.subr.bf16.mxu0 %v10974_v62  ;;  %v11029_v61 = vld [vmem:[%s15054_s1 + $0x1520] ss:$20 sps:$4 sm:$0xff]   ;;  %v11034_v62 = vld [vmem:[%s15054_s1 + $0x15e4] ss:$20 sps:$4 sm:$0xff]  }
 0x209   :  { %7372 = vmatprep.subr.bf16.mxu1 %v10977_v1  ;;  %v11037_v1 = vld [vmem:[%s15054_s1 + $0x154c] ss:$20 sps:$4 sm:$0xff]  }
 0x20b   :  { %6857 = vmatpush1.bf16.msra.mxu0 %v10972_v3  ;;  %v11032_v3 = vld [vmem:[%s15054_s1 + $0x15e0] ss:$20 sps:$4 sm:$0xff]  }
 0x20c   :  { %7373 = vmatpush1.bf16.msra.mxu1 %v10975_v4  ;;  %6858 = vmatprep.subr.bf16.mxu0 %v10980_v6  ;;  %v11035_v4 = vld [vmem:[%s15054_s1 + $0x1548] ss:$20 sps:$4 sm:$0xff]   ;;  %v11040_v6 = vld [vmem:[%s15054_s1 + $0x160c] ss:$20 sps:$4 sm:$0xff]  }
 0x20d   :  { %7374 = vmatprep.subr.bf16.mxu1 %v10983_v7  ;;  %v11043_v7 = vld [vmem:[%s15054_s1 + $0x1574] ss:$20 sps:$4 sm:$0xff]  }
 0x20f   :  { %6859 = vmatpush1.bf16.msra.mxu0 %v10978_v8  ;;  %v11038_v8 = vld [vmem:[%s15054_s1 + $0x1608] ss:$20 sps:$4 sm:$0xff]  }
 0x210   :  { %7375 = vmatpush1.bf16.msra.mxu1 %v10981_v9  ;;  %6860 = vmatprep.subr.bf16.mxu0 %v10986_v10  ;;  %v11041_v9 = vld [vmem:[%s15054_s1 + $0x1570] ss:$20 sps:$4 sm:$0xff]   ;;  %v11046_v10 = vld [vmem:[%s15054_s1 + $0x1634] ss:$20 sps:$4 sm:$0xff]  }
 0x211   :  { %7385 = vmatprep.subr.bf16.mxu1 %v10989_v11  ;;  %v11049_v11 = vld [vmem:[%s15054_s1 + $0x159c] ss:$20 sps:$4 sm:$0xff]  }
 0x213   :  { %7377 = vmatmul.mubr.bf16.vlgmr.msra.gmra.mrb[4].mxu1 %v13367_v51  ;;  %6861 = vmatpush1.bf16.msra.mxu0 %v10984_v12  ;;  %v11044_v12 = vld [vmem:[%s15054_s1 + $0x1630] ss:$20 sps:$4 sm:$0xff]  }
 0x214   :  { %7386 = vmatpush1.bf16.msra.mxu1 %v10987_v14  ;;  %6862 = vmatprep.subr.bf16.mxu0 %v10992_v16  ;;  %v11047_v14 = vld [vmem:[%s15054_s1 + $0x1598] ss:$20 sps:$4 sm:$0xff]   ;;  %v11052_v16 = vld [vmem:[%s15054_s1 + $0x165c] ss:$20 sps:$4 sm:$0xff]  }
 0x215   :  { %7387 = vmatprep.subr.bf16.mxu1 %v10995_v18  ;;  %7417 = vmatprep.mubr.bf16.mxu1 %v13382_v59  ;;  %v11055_v18 = vld [vmem:[%s15054_s1 + $0x15c4] ss:$20 sps:$4 sm:$0xff]  }
 0x217   :  { %6863 = vmatpush1.bf16.msra.mxu0 %v10990_v19  ;;  %v11050_v19 = vld [vmem:[%s15054_s1 + $0x1658] ss:$20 sps:$4 sm:$0xff]  }
 0x218   :  { %7388 = vmatpush1.bf16.msra.mxu1 %v10993_v44  ;;  %6864 = vmatprep.subr.bf16.mxu0 %v10998_v55  ;;  %v11053_v44 = vld [vmem:[%s15054_s1 + $0x15c0] ss:$20 sps:$4 sm:$0xff]   ;;  %v11058_v55 = vld [vmem:[%s15054_s1 + $0x1684] ss:$20 sps:$4 sm:$0xff]  }
 0x219   :  { %7389 = vmatprep.subr.bf16.mxu1 %v11001_v25  ;;  %v11061_v25 = vld [vmem:[%s15054_s1 + $0x15ec] ss:$20 sps:$4 sm:$0xff]  }
 0x21b   :  { %6865 = vmatpush1.bf16.msra.mxu0 %v10996_v52  ;;  %v13570_v52 = vrot.slane %v13337_v38, %v11736_v22  ;;  %v11067_v38 = vld [vmem:[%s15054_s1 + $0x1614] ss:$20 sps:$4 sm:$0xff]  }
 0x21c   :  { %7390 = vmatpush1.bf16.msra.mxu1 %v10999_v30  ;;  %6866 = vmatprep.subr.bf16.mxu0 %v11004_v32  ;;  %v11056_v30 = vld [vmem:[%s15054_s1 + $0x1680] ss:$20 sps:$4 sm:$0xff]   ;;  %v11059_v32 = vld [vmem:[%s15054_s1 + $0x15e8] ss:$20 sps:$4 sm:$0xff]  }
 0x21d   :  { %7391 = vmatprep.subr.bf16.mxu1 %v11007_v33  ;;  %v11064_v33 = vld [vmem:[%s15054_s1 + $0x16ac] ss:$20 sps:$4 sm:$0xff]  }
 0x21f   :  { %6867 = vmatpush1.bf16.msra.mxu0 %v11002_v34  ;;  %v13586_v34 = vcombine.high %v13382_v59, %v13382_v59 }
 0x220   :  { %7392 = vmatpush1.bf16.msra.mxu1 %v11005_v35  ;;  %6868 = vmatprep.subr.bf16.mxu0 %v11010_v37  ;;  %v11062_v35 = vld [vmem:[%s15054_s1 + $0x16a8] ss:$20 sps:$4 sm:$0xff]   ;;  %v11065_v37 = vld [vmem:[%s15054_s1 + $0x1610] ss:$20 sps:$4 sm:$0xff]  }
 0x221   :  { %7393 = vmatprep.subr.bf16.mxu1 %v11013_v39  ;;  %v11070_v39 = vld [vmem:[%s15054_s1 + $0x16d4] ss:$20 sps:$4 sm:$0xff]  }
 0x223   :  { %6869 = vmatpush1.bf16.msra.mxu0 %v11008_v40  ;;  %v11073_v40 = vld [vmem:[%s15054_s1 + $0x163c] ss:$20 sps:$4 sm:$0xff]  }
 0x224   :  { %7394 = vmatpush1.bf16.msra.mxu1 %v11011_v41  ;;  %6870 = vmatprep.subr.bf16.mxu0 %v11016_v42  ;;  %v11068_v41 = vld [vmem:[%s15054_s1 + $0x16d0] ss:$20 sps:$4 sm:$0xff]   ;;  %v11071_v42 = vld [vmem:[%s15054_s1 + $0x1638] ss:$20 sps:$4 sm:$0xff]  }
 0x225   :  { %7395 = vmatprep.subr.bf16.mxu1 %v11019_v45  ;;  %v11076_v45 = vld [vmem:[%s15054_s1 + $0x16fc] ss:$20 sps:$4 sm:$0xff]  }
 0x227   :  { %6871 = vmatpush1.bf16.msra.mxu0 %v11014_v46  ;;  %v11079_v46 = vld [vmem:[%s15054_s1 + $0x1664] ss:$20 sps:$4 sm:$0xff]  }
 0x228   :  { %7396 = vmatpush1.bf16.msra.mxu1 %v11017_v24  ;;  %6872 = vmatprep.subr.bf16.mxu0 %v11022_v48  ;;  %v11074_v24 = vld [vmem:[%s15054_s1 + $0x16f8] ss:$20 sps:$4 sm:$0xff]   ;;  %v11077_v48 = vld [vmem:[%s15054_s1 + $0x1660] ss:$20 sps:$4 sm:$0xff]  }
 0x229   :  { %7397 = vmatprep.subr.bf16.mxu1 %v11025_v49  ;;  %v11082_v49 = vld [vmem:[%s15054_s1 + $0x1724] ss:$20 sps:$4 sm:$0xff]  }
 0x22b   :  { %6873 = vmatpush1.bf16.msra.mxu0 %v11020_v53  ;;  %v11085_v53 = vld [vmem:[%s15054_s1 + $0x168c] ss:$20 sps:$4 sm:$0xff]  }
 0x22c   :  { %7398 = vmatpush1.bf16.msra.mxu1 %v11023_v54  ;;  %6874 = vmatprep.subr.bf16.mxu0 %v11028_v56  ;;  %v11080_v54 = vld [vmem:[%s15054_s1 + $0x1720] ss:$20 sps:$4 sm:$0xff]   ;;  %v11083_v56 = vld [vmem:[%s15054_s1 + $0x1688] ss:$20 sps:$4 sm:$0xff]  }
 0x22d   :  { %7399 = vmatprep.subr.bf16.mxu1 %v11031_v58  ;;  %v11088_v58 = vld [vmem:[%s15054_s1 + $0x174c] ss:$20 sps:$4 sm:$0xff]  }
 0x22f   :  { %6875 = vmatpush1.bf16.msra.mxu0 %v11026_v60  ;;  %v11091_v60 = vld [vmem:[%s15054_s1 + $0x16b4] ss:$20 sps:$4 sm:$0xff]  }
 0x230   :  { %7400 = vmatpush1.bf16.msra.mxu1 %v11029_v61  ;;  %6876 = vmatprep.subr.bf16.mxu0 %v11034_v62  ;;  %v11086_v61 = vld [vmem:[%s15054_s1 + $0x1748] ss:$20 sps:$4 sm:$0xff]   ;;  %v11089_v62 = vld [vmem:[%s15054_s1 + $0x16b0] ss:$20 sps:$4 sm:$0xff]  }
 0x231   :  { %7401 = vmatprep.subr.bf16.mxu1 %v11037_v1  ;;  %v11094_v1 = vld [vmem:[%s15054_s1 + $0x1774] ss:$20 sps:$4 sm:$0xff]  }
 0x233   :  { %6877 = vmatpush1.bf16.msra.mxu0 %v11032_v3  ;;  %v11097_v3 = vld [vmem:[%s15054_s1 + $0x16dc] ss:$20 sps:$4 sm:$0xff]  }
 0x234   :  { %7402 = vmatpush1.bf16.msra.mxu1 %v11035_v4  ;;  %6878 = vmatprep.subr.bf16.mxu0 %v11040_v6  ;;  %v11092_v4 = vld [vmem:[%s15054_s1 + $0x1770] ss:$20 sps:$4 sm:$0xff]   ;;  %v11095_v6 = vld [vmem:[%s15054_s1 + $0x16d8] ss:$20 sps:$4 sm:$0xff]  }
 0x235   :  { %7403 = vmatprep.subr.bf16.mxu1 %v11043_v7  ;;  %v11100_v7 = vld [vmem:[%s15054_s1 + $0x179c] ss:$20 sps:$4 sm:$0xff]  }
 0x237   :  { %6879 = vmatpush1.bf16.msra.mxu0 %v11038_v8  ;;  %v11103_v8 = vld [vmem:[%s15054_s1 + $0x1704] ss:$20 sps:$4 sm:$0xff]  }
 0x238   :  { %7404 = vmatpush1.bf16.msra.mxu1 %v11041_v9  ;;  %6880 = vmatprep.subr.bf16.mxu0 %v11046_v10  ;;  %v11098_v9 = vld [vmem:[%s15054_s1 + $0x1798] ss:$20 sps:$4 sm:$0xff]   ;;  %v11101_v10 = vld [vmem:[%s15054_s1 + $0x1700] ss:$20 sps:$4 sm:$0xff]  }
 0x239   :  { %7405 = vmatprep.subr.bf16.mxu1 %v11049_v11  ;;  %v11106_v11 = vld [vmem:[%s15054_s1 + $0x17c4] ss:$20 sps:$4 sm:$0xff]  }
 0x23b   :  { %6881 = vmatpush1.bf16.msra.mxu0 %v11044_v12  ;;  %v11109_v12 = vld [vmem:[%s15054_s1 + $0x172c] ss:$20 sps:$4 sm:$0xff]  }
 0x23c   :  { %7406 = vmatpush1.bf16.msra.mxu1 %v11047_v14  ;;  %6882 = vmatprep.subr.bf16.mxu0 %v11052_v16  ;;  %v11104_v14 = vld [vmem:[%s15054_s1 + $0x17c0] ss:$20 sps:$4 sm:$0xff]   ;;  %v11107_v16 = vld [vmem:[%s15054_s1 + $0x1728] ss:$20 sps:$4 sm:$0xff]  }
 0x23d   :  { %7407 = vmatprep.subr.bf16.mxu1 %v11055_v18  ;;  %v11112_v18 = vld [vmem:[%s15054_s1 + $0x17ec] ss:$20 sps:$4 sm:$0xff]  }
 0x23f   :  { %6883 = vmatpush1.bf16.msra.mxu0 %v11050_v19  ;;  %v11115_v19 = vld [vmem:[%s15054_s1 + $0x1754] ss:$20 sps:$4 sm:$0xff]  }
 0x240   :  { %7408 = vmatpush1.bf16.msra.mxu1 %v11053_v44  ;;  %6893 = vmatprep.subr.bf16.mxu0 %v11058_v55  ;;  %v11110_v44 = vld [vmem:[%s15054_s1 + $0x17e8] ss:$20 sps:$4 sm:$0xff]   ;;  %v11113_v55 = vld [vmem:[%s15054_s1 + $0x1750] ss:$20 sps:$4 sm:$0xff]  }
 0x241   :  { %7409 = vmatprep.subr.bf16.mxu1 %v11061_v25  ;;  %v11118_v25 = vld [vmem:[%s15054_s1 + $0x1814] ss:$20 sps:$4 sm:$0xff]  }
 0x242   :  { %6885 = vmatmul.mubr.bf16.vlgmr.msra.gmra.mrb[0].mxu0 %v13570_v52 }
 0x243   :  { %6894 = vmatpush1.bf16.msra.mxu0 %v11056_v30  ;;  %6925 = vmatprep.mubr.bf16.mxu0 %v13586_v34  ;;  %v11121_v30 = vld [vmem:[%s15054_s1 + $0x177c] ss:$20 sps:$4 sm:$0xff]  }
 0x244   :  { %7410 = vmatpush1.bf16.msra.mxu1 %v11059_v32  ;;  %6895 = vmatprep.subr.bf16.mxu0 %v11064_v33  ;;  %v11116_v32 = vld [vmem:[%s15054_s1 + $0x1810] ss:$20 sps:$4 sm:$0xff]   ;;  %v11119_v33 = vld [vmem:[%s15054_s1 + $0x1778] ss:$20 sps:$4 sm:$0xff]  }
 0x245   :  { %7411 = vmatprep.subr.bf16.mxu1 %v11067_v38  ;;  %v11124_v38 = vld [vmem:[%s15054_s1 + $0x183c] ss:$20 sps:$4 sm:$0xff]  }
 0x247   :  { %6896 = vmatpush1.bf16.msra.mxu0 %v11062_v35  ;;  %v11127_v35 = vld [vmem:[%s15054_s1 + $0x17a4] ss:$20 sps:$4 sm:$0xff]  }
 0x248   :  { %7412 = vmatpush1.bf16.msra.mxu1 %v11065_v37  ;;  %6897 = vmatprep.subr.bf16.mxu0 %v11070_v39  ;;  %v11122_v37 = vld [vmem:[%s15054_s1 + $0x1838] ss:$20 sps:$4 sm:$0xff]   ;;  %v11125_v39 = vld [vmem:[%s15054_s1 + $0x17a0] ss:$20 sps:$4 sm:$0xff]  }
 0x249   :  { %7413 = vmatprep.subr.bf16.mxu1 %v11073_v40  ;;  %v11130_v40 = vld [vmem:[%s15054_s1 + $0x1864] ss:$20 sps:$4 sm:$0xff]  }
 0x24b   :  { %6898 = vmatpush1.bf16.msra.mxu0 %v11068_v41  ;;  %v11133_v41 = vld [vmem:[%s15054_s1 + $0x17cc] ss:$20 sps:$4 sm:$0xff]  }
 0x24c   :  { %7414 = vmatpush1.bf16.msra.mxu1 %v11071_v42  ;;  %6899 = vmatprep.subr.bf16.mxu0 %v11076_v45  ;;  %v11128_v42 = vld [vmem:[%s15054_s1 + $0x1860] ss:$20 sps:$4 sm:$0xff]   ;;  %v11131_v45 = vld [vmem:[%s15054_s1 + $0x17c8] ss:$20 sps:$4 sm:$0xff]  }
 0x24d   :  { %7415 = vmatprep.subr.bf16.mxu1 %v11079_v46  ;;  %v11136_v46 = vld [vmem:[%s15054_s1 + $0x188c] ss:$20 sps:$4 sm:$0xff]  }
 0x24f   :  { %6900 = vmatpush1.bf16.msra.mxu0 %v11074_v24  ;;  %v11139_v24 = vld [vmem:[%s15054_s1 + $0x17f4] ss:$20 sps:$4 sm:$0xff]  }
 0x250   :  { %7416 = vmatpush1.bf16.msra.mxu1 %v11077_v48  ;;  %6901 = vmatprep.subr.bf16.mxu0 %v11082_v49  ;;  %v11134_v48 = vld [vmem:[%s15054_s1 + $0x1888] ss:$20 sps:$4 sm:$0xff]   ;;  %v11137_v49 = vld [vmem:[%s15054_s1 + $0x17f0] ss:$20 sps:$4 sm:$0xff]  }
 0x251   :  { %7426 = vmatprep.subr.bf16.mxu1 %v11085_v53  ;;  %v11142_v53 = vld [vmem:[%s15054_s1 + $0x18b4] ss:$20 sps:$4 sm:$0xff]  }
 0x253   :  { %7418 = vmatmul.mubr.bf16.vlgmr.msra.gmra.mrb[4].mxu1 %v13570_v52  ;;  %6902 = vmatpush1.bf16.msra.mxu0 %v11080_v54  ;;  %v11145_v54 = vld [vmem:[%s15054_s1 + $0x181c] ss:$20 sps:$4 sm:$0xff]  }
 0x254   :  { %7427 = vmatpush1.bf16.msra.mxu1 %v11083_v56  ;;  %6903 = vmatprep.subr.bf16.mxu0 %v11088_v58  ;;  %v11612_v56 = vld [vmem:[%s15053_s0 + $0x10] sm:$0xff] }
 0x255   :  { %7428 = vmatprep.subr.bf16.mxu1 %v11091_v60  ;;  %7458 = vmatprep.mubr.bf16.mxu1 %v13586_v34  ;;  %v1337_v58 = vcombine.high %v11612_v56, %v11612_v56  ;;  %v11140_v60 = vld [vmem:[%s15054_s1 + $0x18b0] ss:$20 sps:$4 sm:$0xff]   ;;  %v11191_v56 = vld [vmem:[%s15054_s1 + $0x1958] ss:$20 sps:$4 sm:$0xff]  }
 0x257   :  { %6904 = vmatpush1.bf16.msra.mxu0 %v11086_v61  ;;  %v11143_v61 = vld [vmem:[%s15054_s1 + $0x1818] ss:$20 sps:$4 sm:$0xff]  }
 0x258   :  { %7429 = vmatpush1.bf16.msra.mxu1 %v11089_v62  ;;  %6905 = vmatprep.subr.bf16.mxu0 %v11094_v1  ;;  %v11148_v62 = vld [vmem:[%s15054_s1 + $0x18dc] ss:$20 sps:$4 sm:$0xff]   ;;  %v11151_v1 = vld [vmem:[%s15054_s1 + $0x1844] ss:$20 sps:$4 sm:$0xff]  }
 0x259   :  { %7430 = vmatprep.subr.bf16.mxu1 %v11097_v3  ;;  %v13764_v3 = vrot.slane %v1337_v58, %v11736_v22  ;;  %v11196_v58 = vld [vmem:[%s15054_s1 + $0x1a1c] ss:$20 sps:$4 sm:$0xff]  }
 0x25b   :  { %6906 = vmatpush1.bf16.msra.mxu0 %v11092_v4  ;;  %v11146_v4 = vld [vmem:[%s15054_s1 + $0x18d8] ss:$20 sps:$4 sm:$0xff]  }
 0x25c   :  { %7431 = vmatpush1.bf16.msra.mxu1 %v11095_v6  ;;  %6907 = vmatprep.subr.bf16.mxu0 %v11100_v7  ;;  %v11149_v6 = vld [vmem:[%s15054_s1 + $0x1840] ss:$20 sps:$4 sm:$0xff]   ;;  %v11154_v7 = vld [vmem:[%s15054_s1 + $0x1904] ss:$20 sps:$4 sm:$0xff]  }
 0x25d   :  { %7432 = vmatprep.subr.bf16.mxu1 %v11103_v8  ;;  %v11157_v8 = vld [vmem:[%s15054_s1 + $0x186c] ss:$20 sps:$4 sm:$0xff]  }
 0x25f   :  { %6908 = vmatpush1.bf16.msra.mxu0 %v11098_v9  ;;  %v11152_v9 = vld [vmem:[%s15054_s1 + $0x1900] ss:$20 sps:$4 sm:$0xff]  }
 0x260   :  { %7433 = vmatpush1.bf16.msra.mxu1 %v11101_v10  ;;  %6909 = vmatprep.subr.bf16.mxu0 %v11106_v11  ;;  %v11155_v10 = vld [vmem:[%s15054_s1 + $0x1868] ss:$20 sps:$4 sm:$0xff]   ;;  %v1353_v11 = vcombine.high %v13764_v3, %v13764_v3 }
 0x261   :  { %7434 = vmatprep.subr.bf16.mxu1 %v11109_v12  ;;  %v13788_v12 = vcombine.high %v13570_v52, %v13570_v52 }
 0x263   :  { %6910 = vmatpush1.bf16.msra.mxu0 %v11104_v14  ;;  %v11160_v14 = vld [vmem:[%s15054_s1 + $0x192c] ss:$20 sps:$4 sm:$0xff]  }
 0x264   :  { %7435 = vmatpush1.bf16.msra.mxu1 %v11107_v16  ;;  %6911 = vmatprep.subr.bf16.mxu0 %v11112_v18  ;;  %v11163_v16 = vld [vmem:[%s15054_s1 + $0x1894] ss:$20 sps:$4 sm:$0xff]   ;;  %v13797_v18 = vrot.slane %v1353_v11, %v11736_v22  ;;  %v11209_v11 = vld [vmem:[%s15054_s1 + $0x19d0] ss:$20 sps:$4 sm:$0xff]  }
 0x265   :  { %7436 = vmatprep.subr.bf16.mxu1 %v11115_v19  ;;  %v11158_v19 = vld [vmem:[%s15054_s1 + $0x1928] ss:$20 sps:$4 sm:$0xff]  }
 0x267   :  { %6912 = vmatpush1.bf16.msra.mxu0 %v11110_v44  ;;  %v11161_v44 = vld [vmem:[%s15054_s1 + $0x1890] ss:$20 sps:$4 sm:$0xff]  }
 0x268   :  { %7437 = vmatpush1.bf16.msra.mxu1 %v11113_v55  ;;  %6913 = vmatprep.subr.bf16.mxu0 %v11118_v25  ;;  %v11166_v55 = vld [vmem:[%s15054_s1 + $0x1954] ss:$20 sps:$4 sm:$0xff]   ;;  %v11169_v25 = vld [vmem:[%s15054_s1 + $0x18bc] ss:$20 sps:$4 sm:$0xff]  }
 0x269   :  { %7438 = vmatprep.subr.bf16.mxu1 %v11121_v30  ;;  %v11164_v30 = vld [vmem:[%s15054_s1 + $0x1950] ss:$20 sps:$4 sm:$0xff]  }
 0x26b   :  { %6914 = vmatpush1.bf16.msra.mxu0 %v11116_v32  ;;  %v11167_v32 = vld [vmem:[%s15054_s1 + $0x18b8] ss:$20 sps:$4 sm:$0xff]  }
 0x26c   :  { %7439 = vmatpush1.bf16.msra.mxu1 %v11119_v33  ;;  %6915 = vmatprep.subr.bf16.mxu0 %v11124_v38  ;;  %v11172_v33 = vld [vmem:[%s15054_s1 + $0x197c] ss:$20 sps:$4 sm:$0xff]   ;;  %v11175_v38 = vld [vmem:[%s15054_s1 + $0x18e4] ss:$20 sps:$4 sm:$0xff]  }
 0x26d   :  { %7440 = vmatprep.subr.bf16.mxu1 %v11127_v35  ;;  %v11170_v35 = vld [vmem:[%s15054_s1 + $0x1978] ss:$20 sps:$4 sm:$0xff]  }
 0x26f   :  { %6916 = vmatpush1.bf16.msra.mxu0 %v11122_v37  ;;  %v11173_v37 = vld [vmem:[%s15054_s1 + $0x18e0] ss:$20 sps:$4 sm:$0xff]  }
 0x270   :  { %7441 = vmatpush1.bf16.msra.mxu1 %v11125_v39  ;;  %6917 = vmatprep.subr.bf16.mxu0 %v11130_v40  ;;  %v11178_v39 = vld [vmem:[%s15054_s1 + $0x19a4] ss:$20 sps:$4 sm:$0xff]   ;;  %v11181_v40 = vld [vmem:[%s15054_s1 + $0x190c] ss:$20 sps:$4 sm:$0xff]  }
 0x271   :  { %7442 = vmatprep.subr.bf16.mxu1 %v11133_v41  ;;  %v11176_v41 = vld [vmem:[%s15054_s1 + $0x19a0] ss:$20 sps:$4 sm:$0xff]  }
 0x273   :  { %6918 = vmatpush1.bf16.msra.mxu0 %v11128_v42  ;;  %v11179_v42 = vld [vmem:[%s15054_s1 + $0x1908] ss:$20 sps:$4 sm:$0xff]  }
 0x274   :  { %7443 = vmatpush1.bf16.msra.mxu1 %v11131_v45  ;;  %6919 = vmatprep.subr.bf16.mxu0 %v11136_v46  ;;  %v11184_v45 = vld [vmem:[%s15054_s1 + $0x19cc] ss:$20 sps:$4 sm:$0xff]   ;;  %v11187_v46 = vld [vmem:[%s15054_s1 + $0x1934] ss:$20 sps:$4 sm:$0xff]  }
 0x275   :  { %7444 = vmatprep.subr.bf16.mxu1 %v11139_v24  ;;  %v11182_v24 = vld [vmem:[%s15054_s1 + $0x19c8] ss:$20 sps:$4 sm:$0xff]  }
 0x277   :  { %6920 = vmatpush1.bf16.msra.mxu0 %v11134_v48  ;;  %v11185_v48 = vld [vmem:[%s15054_s1 + $0x1930] ss:$20 sps:$4 sm:$0xff]  }
 0x278   :  { %7445 = vmatpush1.bf16.msra.mxu1 %v11137_v49  ;;  %6921 = vmatprep.subr.bf16.mxu0 %v11142_v53  ;;  %v11190_v49 = vld [vmem:[%s15054_s1 + $0x19f4] ss:$20 sps:$4 sm:$0xff]   ;;  %v11193_v53 = vld [vmem:[%s15054_s1 + $0x195c] ss:$20 sps:$4 sm:$0xff]  }
 0x279   :  { %7446 = vmatprep.subr.bf16.mxu1 %v11145_v54  ;;  %v11188_v54 = vld [vmem:[%s15054_s1 + $0x19f0] ss:$20 sps:$4 sm:$0xff]  }
 0x27b   :  { %6922 = vmatpush1.bf16.msra.mxu0 %v11140_v60  ;;  %v11199_v60 = vld [vmem:[%s15054_s1 + $0x1984] ss:$20 sps:$4 sm:$0xff]  }
 0x27c   :  { %7447 = vmatpush1.bf16.msra.mxu1 %v11143_v61  ;;  %6923 = vmatprep.subr.bf16.mxu0 %v11148_v62  ;;  %v11194_v61 = vld [vmem:[%s15054_s1 + $0x1a18] ss:$20 sps:$4 sm:$0xff]   ;;  %v11197_v62 = vld [vmem:[%s15054_s1 + $0x1980] ss:$20 sps:$4 sm:$0xff]  }
 0x27d   :  { %7448 = vmatprep.subr.bf16.mxu1 %v11151_v1  ;;  %v11202_v1 = vld [vmem:[%s15054_s1 + $0x1a44] ss:$20 sps:$4 sm:$0xff]  }
 0x27f   :  { %6924 = vmatpush1.bf16.msra.mxu0 %v11146_v4  ;;  %v11205_v4 = vld [vmem:[%s15054_s1 + $0x19ac] ss:$20 sps:$4 sm:$0xff]  }
 0x280   :  { %7449 = vmatpush1.bf16.msra.mxu1 %v11149_v6  ;;  %6934 = vmatprep.subr.bf16.mxu0 %v11154_v7  ;;  %v11200_v6 = vld [vmem:[%s15054_s1 + $0x1a40] ss:$20 sps:$4 sm:$0xff]   ;;  %v11203_v7 = vld [vmem:[%s15054_s1 + $0x19a8] ss:$20 sps:$4 sm:$0xff]  }
 0x281   :  { %7450 = vmatprep.subr.bf16.mxu1 %v11157_v8  ;;  %v11208_v8 = vld [vmem:[%s15054_s1 + $0x1a6c] ss:$20 sps:$4 sm:$0xff]  }
 0x282   :  { %6926 = vmatmul.mubr.bf16.vlgmr.msra.gmra.mrb[0].mxu0 %v13788_v12 }
 0x283   :  { %6935 = vmatpush1.bf16.msra.mxu0 %v11152_v9  ;;  %6966 = vmatprep.mubr.bf16.mxu0 %v13797_v18  ;;  %v11211_v9 = vld [vmem:[%s15054_s1 + $0x19d4] ss:$20 sps:$4 sm:$0xff]  }
 0x284   :  { %7451 = vmatpush1.bf16.msra.mxu1 %v11155_v10  ;;  %6936 = vmatprep.subr.bf16.mxu0 %v11160_v14  ;;  %v11206_v10 = vld [vmem:[%s15054_s1 + $0x1a68] ss:$20 sps:$4 sm:$0xff]  }
 0x285   :  { %7452 = vmatprep.subr.bf16.mxu1 %v11163_v16  ;;  %v11214_v14 = vld [vmem:[%s15054_s1 + $0x1a94] ss:$20 sps:$4 sm:$0xff]   ;;  %v11217_v16 = vld [vmem:[%s15054_s1 + $0x19fc] ss:$20 sps:$4 sm:$0xff]  }
 0x287   :  { %6937 = vmatpush1.bf16.msra.mxu0 %v11158_v19  ;;  %v11212_v19 = vld [vmem:[%s15054_s1 + $0x1a90] ss:$20 sps:$4 sm:$0xff]  }
 0x288   :  { %7453 = vmatpush1.bf16.msra.mxu1 %v11161_v44  ;;  %6938 = vmatprep.subr.bf16.mxu0 %v11166_v55  ;;  %v11215_v44 = vld [vmem:[%s15054_s1 + $0x19f8] ss:$20 sps:$4 sm:$0xff]   ;;  %v11220_v55 = vld [vmem:[%s15054_s1 + $0x1abc] ss:$20 sps:$4 sm:$0xff]  }
 0x289   :  { %7454 = vmatprep.subr.bf16.mxu1 %v11169_v25  ;;  %v11223_v25 = vld [vmem:[%s15054_s1 + $0x1a24] ss:$20 sps:$4 sm:$0xff]  }
 0x28b   :  { %6939 = vmatpush1.bf16.msra.mxu0 %v11164_v30  ;;  %v11218_v30 = vld [vmem:[%s15054_s1 + $0x1ab8] ss:$20 sps:$4 sm:$0xff]  }
 0x28c   :  { %7455 = vmatpush1.bf16.msra.mxu1 %v11167_v32  ;;  %6940 = vmatprep.subr.bf16.mxu0 %v11172_v33  ;;  %v11221_v32 = vld [vmem:[%s15054_s1 + $0x1a20] ss:$20 sps:$4 sm:$0xff]   ;;  %v11226_v33 = vld [vmem:[%s15054_s1 + $0x1ae4] ss:$20 sps:$4 sm:$0xff]  }
 0x28d   :  { %7456 = vmatprep.subr.bf16.mxu1 %v11175_v38  ;;  %v11229_v38 = vld [vmem:[%s15054_s1 + $0x1a4c] ss:$20 sps:$4 sm:$0xff]  }
 0x28f   :  { %6941 = vmatpush1.bf16.msra.mxu0 %v11170_v35  ;;  %v11224_v35 = vld [vmem:[%s15054_s1 + $0x1ae0] ss:$20 sps:$4 sm:$0xff]  }
 0x290   :  { %7457 = vmatpush1.bf16.msra.mxu1 %v11173_v37  ;;  %6942 = vmatprep.subr.bf16.mxu0 %v11178_v39  ;;  %v11227_v37 = vld [vmem:[%s15054_s1 + $0x1a48] ss:$20 sps:$4 sm:$0xff]   ;;  %v11232_v39 = vld [vmem:[%s15054_s1 + $0x1b0c] ss:$20 sps:$4 sm:$0xff]  }
 0x291   :  { %7467 = vmatprep.subr.bf16.mxu1 %v11181_v40  ;;  %v11235_v40 = vld [vmem:[%s15054_s1 + $0x1a74] ss:$20 sps:$4 sm:$0xff]  }
 0x293   :  { %7459 = vmatmul.mubr.bf16.vlgmr.msra.gmra.mrb[4].mxu1 %v13788_v12  ;;  %6943 = vmatpush1.bf16.msra.mxu0 %v11176_v41  ;;  %v11230_v41 = vld [vmem:[%s15054_s1 + $0x1b08] ss:$20 sps:$4 sm:$0xff]  }
 0x294   :  { %7468 = vmatpush1.bf16.msra.mxu1 %v11179_v42  ;;  %6944 = vmatprep.subr.bf16.mxu0 %v11184_v45  ;;  %v11233_v42 = vld [vmem:[%s15054_s1 + $0x1a70] ss:$20 sps:$4 sm:$0xff]   ;;  %v11238_v45 = vld [vmem:[%s15054_s1 + $0x1b34] ss:$20 sps:$4 sm:$0xff]  }
 0x295   :  { %7469 = vmatprep.subr.bf16.mxu1 %v11187_v46  ;;  %7499 = vmatprep.mubr.bf16.mxu1 %v13797_v18  ;;  %v11241_v46 = vld [vmem:[%s15054_s1 + $0x1a9c] ss:$20 sps:$4 sm:$0xff]  }
 0x297   :  { %6945 = vmatpush1.bf16.msra.mxu0 %v11182_v24  ;;  %v11236_v24 = vld [vmem:[%s15054_s1 + $0x1b30] ss:$20 sps:$4 sm:$0xff]  }
 0x298   :  { %7470 = vmatpush1.bf16.msra.mxu1 %v11185_v48  ;;  %6946 = vmatprep.subr.bf16.mxu0 %v11190_v49  ;;  %v11239_v48 = vld [vmem:[%s15054_s1 + $0x1a98] ss:$20 sps:$4 sm:$0xff]   ;;  %v11244_v49 = vld [vmem:[%s15054_s1 + $0x1b5c] ss:$20 sps:$4 sm:$0xff]  }
 0x299   :  { %7471 = vmatprep.subr.bf16.mxu1 %v11193_v53  ;;  %v11247_v53 = vld [vmem:[%s15054_s1 + $0x1ac4] ss:$20 sps:$4 sm:$0xff]  }
 0x29b   :  { %6947 = vmatpush1.bf16.msra.mxu0 %v11188_v54 }
 0x29c   :  { %7472 = vmatpush1.bf16.msra.mxu1 %v11191_v56  ;;  %6948 = vmatprep.subr.bf16.mxu0 %v11196_v58 }
 0x29d   :  { %7473 = vmatprep.subr.bf16.mxu1 %v11199_v60 }
 0x29f   :  { %6949 = vmatpush1.bf16.msra.mxu0 %v11194_v61 }
 0x2a0   :  { %7474 = vmatpush1.bf16.msra.mxu1 %v11197_v62  ;;  %6950 = vmatprep.subr.bf16.mxu0 %v11202_v1 }
 0x2a1   :  { %7475 = vmatprep.subr.bf16.mxu1 %v11205_v4 }
 0x2a3   :  { %6951 = vmatpush1.bf16.msra.mxu0 %v11200_v6 }
 0x2a4   :  { %7476 = vmatpush1.bf16.msra.mxu1 %v11203_v7  ;;  %6952 = vmatprep.subr.bf16.mxu0 %v11208_v8 }
 0x2a5   :  { %7477 = vmatprep.subr.bf16.mxu1 %v11211_v9 }
 0x2a7   :  { %6953 = vmatpush1.bf16.msra.mxu0 %v11206_v10 }
 0x2a8   :  { %7478 = vmatpush1.bf16.msra.mxu1 %v11209_v11  ;;  %6954 = vmatprep.subr.bf16.mxu0 %v11214_v14 }
 0x2a9   :  { %7479 = vmatprep.subr.bf16.mxu1 %v11217_v16 }
 0x2ab   :  { %6955 = vmatpush1.bf16.msra.mxu0 %v11212_v19 }
 0x2ac   :  { %7480 = vmatpush1.bf16.msra.mxu1 %v11215_v44  ;;  %6956 = vmatprep.subr.bf16.mxu0 %v11220_v55 }
 0x2ad   :  { %7481 = vmatprep.subr.bf16.mxu1 %v11223_v25 }
 0x2af   :  { %6957 = vmatpush1.bf16.msra.mxu0 %v11218_v30 }
 0x2b0   :  { %7482 = vmatpush1.bf16.msra.mxu1 %v11221_v32  ;;  %6958 = vmatprep.subr.bf16.mxu0 %v11226_v33 }
 0x2b1   :  { %7483 = vmatprep.subr.bf16.mxu1 %v11229_v38 }
 0x2b3   :  { %6959 = vmatpush1.bf16.msra.mxu0 %v11224_v35 }
 0x2b4   :  { %7484 = vmatpush1.bf16.msra.mxu1 %v11227_v37  ;;  %6960 = vmatprep.subr.bf16.mxu0 %v11232_v39 }
 0x2b5   :  { %7485 = vmatprep.subr.bf16.mxu1 %v11235_v40 }
 0x2b7   :  { %6961 = vmatpush1.bf16.msra.mxu0 %v11230_v41 }
 0x2b8   :  { %7486 = vmatpush1.bf16.msra.mxu1 %v11233_v42  ;;  %6962 = vmatprep.subr.bf16.mxu0 %v11238_v45 }
 0x2b9   :  { %7487 = vmatprep.subr.bf16.mxu1 %v11241_v46 }
 0x2ba   :  { %12 = vsyncpa [#allocation3], 0  ;;  %v11242_v54 = vld [vmem:[%s15054_s1 + $0x1b58] ss:$20 sps:$4 sm:$0xff]   ;;  %v11245_v56 = vld [vmem:[%s15054_s1 + $0x1ac0] ss:$20 sps:$4 sm:$0xff]   ;;  %v13985_v61 = vrot.slane %v13764_v3, %v11736_v22  ;;  %v14001_v3 = vcombine.high %v13797_v18, %v13797_v18 }
 0x2bb   :  { %6963 = vmatpush1.bf16.msra.mxu0 %v11236_v24  ;;  %v11251_v58 = vld [vmem:[%s15054_s1 + $0x1b84] ss:$20 sps:$4 sm:$0xff]   ;;  %v11254_v60 = vld [vmem:[%s15054_s1 + $0x1aec] ss:$20 sps:$4 sm:$0xff]   ;;  %v11252_v1 = vld [vmem:[%s15054_s1 + $0x1ae8] ss:$20 sps:$4 sm:$0xff]  }
 0x2bc   :  { %7488 = vmatpush1.bf16.msra.mxu1 %v11239_v48  ;;  %6964 = vmatprep.subr.bf16.mxu0 %v11244_v49  ;;  %v11249_v62 = vld [vmem:[%s15054_s1 + $0x1b80] ss:$20 sps:$4 sm:$0xff]   ;;  %v11255_v6 = vld [vmem:[%s15054_s1 + $0x1ba8] ss:$20 sps:$4 sm:$0xff]   ;;  %v11258_v7 = vld [vmem:[%s15054_s1 + $0x1b10] ss:$20 sps:$4 sm:$0xff]  }
 0x2bd   :  { %7489 = vmatprep.subr.bf16.mxu1 %v11247_v53  ;;  %v11257_v4 = vld [vmem:[%s15054_s1 + $0x1bac] ss:$20 sps:$4 sm:$0xff]   ;;  %v11260_v22 = vld [vmem:[%s15054_s1 + $0x1b14] ss:$20 sps:$4 sm:$0xff]   ;;  %v11266_v9 = vld [vmem:[%s15054_s1 + $0x1b3c] ss:$20 sps:$4 sm:$0xff]  }
 0x2be   :  { %v11263_v8 = vld [vmem:[%s15054_s1 + $0x1bd4] ss:$20 sps:$4 sm:$0xff]   ;;  %v11261_v10 = vld [vmem:[%s15054_s1 + $0x1bd0] ss:$20 sps:$4 sm:$0xff]   ;;  %v11264_v11 = vld [vmem:[%s15054_s1 + $0x1b38] ss:$20 sps:$4 sm:$0xff]  }
 0x2bf   :  { %6965 = vmatpush1.bf16.msra.mxu0 %v11242_v54  ;;  %v11269_v14 = vld [vmem:[%s15054_s1 + $0x1bfc] ss:$20 sps:$4 sm:$0xff]   ;;  %v11272_v16 = vld [vmem:[%s15054_s1 + $0x1b64] ss:$20 sps:$4 sm:$0xff]   ;;  %v11270_v44 = vld [vmem:[%s15054_s1 + $0x1b60] ss:$20 sps:$4 sm:$0xff]  }
 0x2c0   :  { %7490 = vmatpush1.bf16.msra.mxu1 %v11245_v56  ;;  %6975 = vmatprep.subr.bf16.mxu0 %v11251_v58  ;;  %v11267_v19 = vld [vmem:[%s15054_s1 + $0x1bf8] ss:$20 sps:$4 sm:$0xff]   ;;  %v11273_v30 = vld [vmem:[%s15054_s1 + $0x1c20] ss:$20 sps:$4 sm:$0xff]   ;;  %v11276_v32 = vld [vmem:[%s15054_s1 + $0x1b88] ss:$20 sps:$4 sm:$0xff]  }
 0x2c1   :  { %7491 = vmatprep.subr.bf16.mxu1 %v11254_v60  ;;  %v11275_v55 = vld [vmem:[%s15054_s1 + $0x1c24] ss:$20 sps:$4 sm:$0xff]   ;;  %v11278_v25 = vld [vmem:[%s15054_s1 + $0x1b8c] ss:$20 sps:$4 sm:$0xff]   ;;  %v11284_v38 = vld [vmem:[%s15054_s1 + $0x1bb4] ss:$20 sps:$4 sm:$0xff]  }
 0x2c2   :  { %6967 = vmatmul.mubr.bf16.vlgmr.msra.gmra.mrb[0].mxu0 %v13985_v61  ;;  %v11281_v33 = vld [vmem:[%s15054_s1 + $0x1c4c] ss:$20 sps:$4 sm:$0xff]   ;;  %v11279_v35 = vld [vmem:[%s15054_s1 + $0x1c48] ss:$20 sps:$4 sm:$0xff]   ;;  %v11282_v37 = vld [vmem:[%s15054_s1 + $0x1bb0] ss:$20 sps:$4 sm:$0xff]  }
 0x2c3   :  { %6976 = vmatpush1.bf16.msra.mxu0 %v11249_v62  ;;  %7007 = vmatprep.mubr.bf16.mxu0 %v14001_v3  ;;  %v11287_v39 = vld [vmem:[%s15054_s1 + $0x1c74] ss:$20 sps:$4 sm:$0xff]   ;;  %v11290_v40 = vld [vmem:[%s15054_s1 + $0x1bdc] ss:$20 sps:$4 sm:$0xff]   ;;  %v11288_v42 = vld [vmem:[%s15054_s1 + $0x1bd8] ss:$20 sps:$4 sm:$0xff]  }
 0x2c4   :  { %7492 = vmatpush1.bf16.msra.mxu1 %v11252_v1  ;;  %6977 = vmatprep.subr.bf16.mxu0 %v11257_v4  ;;  %v11285_v41 = vld [vmem:[%s15054_s1 + $0x1c70] ss:$20 sps:$4 sm:$0xff]   ;;  %v11291_v24 = vld [vmem:[%s15054_s1 + $0x1c98] ss:$20 sps:$4 sm:$0xff]   ;;  %v11294_v48 = vld [vmem:[%s15054_s1 + $0x1c00] ss:$20 sps:$4 sm:$0xff]  }
 0x2c5   :  { %7493 = vmatprep.subr.bf16.mxu1 %v11260_v22  ;;  %v11293_v45 = vld [vmem:[%s15054_s1 + $0x1c9c] ss:$20 sps:$4 sm:$0xff]   ;;  %v11296_v46 = vld [vmem:[%s15054_s1 + $0x1c04] ss:$20 sps:$4 sm:$0xff]   ;;  %v11302_v53 = vld [vmem:[%s15054_s1 + $0x1c2c] ss:$20 sps:$4 sm:$0xff]  }
 0x2c6   :  { %v11299_v49 = vld [vmem:[%s15054_s1 + $0x1cc4] ss:$20 sps:$4 sm:$0xff]   ;;  %v11297_v54 = vld [vmem:[%s15054_s1 + $0x1cc0] ss:$20 sps:$4 sm:$0xff]   ;;  %v11300_v56 = vld [vmem:[%s15054_s1 + $0x1c28] ss:$20 sps:$4 sm:$0xff]  }
 0x2c7   :  { %6978 = vmatpush1.bf16.msra.mxu0 %v11255_v6  ;;  %v11305_v58 = vld [vmem:[%s15054_s1 + $0x1cec] ss:$20 sps:$4 sm:$0xff]   ;;  %v11308_v60 = vld [vmem:[%s15054_s1 + $0x1c54] ss:$20 sps:$4 sm:$0xff]   ;;  %v11306_v1 = vld [vmem:[%s15054_s1 + $0x1c50] ss:$20 sps:$4 sm:$0xff]  }
 0x2c8   :  { %7494 = vmatpush1.bf16.msra.mxu1 %v11258_v7  ;;  %6979 = vmatprep.subr.bf16.mxu0 %v11263_v8  ;;  %v11303_v62 = vld [vmem:[%s15054_s1 + $0x1ce8] ss:$20 sps:$4 sm:$0xff]   ;;  %v11309_v6 = vld [vmem:[%s15054_s1 + $0x1d10] ss:$20 sps:$4 sm:$0xff]   ;;  %v11312_v7 = vld [vmem:[%s15054_s1 + $0x1c78] ss:$20 sps:$4 sm:$0xff]  }
 0x2c9   :  { %7495 = vmatprep.subr.bf16.mxu1 %v11266_v9  ;;  %v11311_v4 = vld [vmem:[%s15054_s1 + $0x1d14] ss:$20 sps:$4 sm:$0xff]   ;;  %v11314_v22 = vld [vmem:[%s15054_s1 + $0x1c7c] ss:$20 sps:$4 sm:$0xff]   ;;  %v11320_v9 = vld [vmem:[%s15054_s1 + $0x1ca4] ss:$20 sps:$4 sm:$0xff]  }
 0x2ca   :  { %v11317_v8 = vld [vmem:[%s15054_s1 + $0x1d3c] ss:$20 sps:$4 sm:$0xff]   ;;  %vm11642_vm1 = vmmov 0   ;;  %vm8426_vm2 = vcmask 1043456   ;;  %vm8422_vm3 = vcmask 719872   ;;  %s11643_s28 = smov [#allocation2]  }
 0x2cb   :  { %6980 = vmatpush1.bf16.msra.mxu0 %v11261_v10  ;;  %v11315_v10 = vld [vmem:[%s15054_s1 + $0x1d38] ss:$20 sps:$4 sm:$0xff]   ;;  %s8669_s29 = sshll.u32 %s11643_s28, 4  ;;  %s8670_s29 = int_to_ptr.vmem [resolvable:$true] %s8669_s29 }
 0x2cc   :  { %7496 = vmatpush1.bf16.msra.mxu1 %v11264_v11  ;;  %6981 = vmatprep.subr.bf16.mxu0 %v11269_v14  ;;  %v11318_v11 = vld [vmem:[%s15054_s1 + $0x1ca0] ss:$20 sps:$4 sm:$0xff]   ;;  %v11323_v14 = vld [vmem:[%s15054_s1 + $0x1d64] ss:$20 sps:$4 sm:$0xff]   ;;  %p11620_p1 = scmp.lt.s32.totalorder %s8670_s29, %s8670_s29 }
 0x2cd   :  { %7497 = vmatprep.subr.bf16.mxu1 %v11272_v16  ;;  %v11326_v16 = vld [vmem:[%s15054_s1 + $0x1ccc] ss:$20 sps:$4 sm:$0xff]  }
 0x2cf   :  { %6982 = vmatpush1.bf16.msra.mxu0 %v11267_v19  ;;  %v11321_v19 = vld [vmem:[%s15054_s1 + $0x1d60] ss:$20 sps:$4 sm:$0xff]  }
 0x2d0   :  { %7498 = vmatpush1.bf16.msra.mxu1 %v11270_v44  ;;  %6983 = vmatprep.subr.bf16.mxu0 %v11275_v55  ;;  %v11324_v44 = vld [vmem:[%s15054_s1 + $0x1cc8] ss:$20 sps:$4 sm:$0xff]   ;;  %v11329_v55 = vld [vmem:[%s15054_s1 + $0x1d8c] ss:$20 sps:$4 sm:$0xff]  }
 0x2d1   :  { %7508 = vmatprep.subr.bf16.mxu1 %v11278_v25  ;;  %v11332_v25 = vld [vmem:[%s15054_s1 + $0x1cf4] ss:$20 sps:$4 sm:$0xff]  }
 0x2d3   :  { %7500 = vmatmul.mubr.bf16.vlgmr.msra.gmra.mrb[4].mxu1 %v13985_v61  ;;  %6984 = vmatpush1.bf16.msra.mxu0 %v11273_v30  ;;  %v11327_v30 = vld [vmem:[%s15054_s1 + $0x1d88] ss:$20 sps:$4 sm:$0xff]  }
 0x2d4   :  { %7509 = vmatpush1.bf16.msra.mxu1 %v11276_v32  ;;  %6985 = vmatprep.subr.bf16.mxu0 %v11281_v33  ;;  %v11330_v32 = vld [vmem:[%s15054_s1 + $0x1cf0] ss:$20 sps:$4 sm:$0xff]   ;;  %v11335_v33 = vld [vmem:[%s15054_s1 + $0x1db4] ss:$20 sps:$4 sm:$0xff]  }
 0x2d5   :  { %7510 = vmatprep.subr.bf16.mxu1 %v11284_v38  ;;  %7540 = vmatprep.mubr.bf16.mxu1 %v14001_v3  ;;  %v11338_v38 = vld [vmem:[%s15054_s1 + $0x1d1c] ss:$20 sps:$4 sm:$0xff]  }
 0x2d7   :  { %6986 = vmatpush1.bf16.msra.mxu0 %v11279_v35  ;;  %v11333_v35 = vld [vmem:[%s15054_s1 + $0x1db0] ss:$20 sps:$4 sm:$0xff]  }
 0x2d8   :  { %7511 = vmatpush1.bf16.msra.mxu1 %v11282_v37  ;;  %6987 = vmatprep.subr.bf16.mxu0 %v11287_v39  ;;  %v11336_v37 = vld [vmem:[%s15054_s1 + $0x1d18] ss:$20 sps:$4 sm:$0xff]   ;;  %v11341_v39 = vld [vmem:[%s15054_s1 + $0x1ddc] ss:$20 sps:$4 sm:$0xff]  }
 0x2d9   :  { %7512 = vmatprep.subr.bf16.mxu1 %v11290_v40  ;;  %v11344_v40 = vld [vmem:[%s15054_s1 + $0x1d44] ss:$20 sps:$4 sm:$0xff]  }
 0x2db   :  { %6988 = vmatpush1.bf16.msra.mxu0 %v11285_v41  ;;  %v11339_v41 = vld [vmem:[%s15054_s1 + $0x1dd8] ss:$20 sps:$4 sm:$0xff]  }
 0x2dc   :  { %7513 = vmatpush1.bf16.msra.mxu1 %v11288_v42  ;;  %6989 = vmatprep.subr.bf16.mxu0 %v11293_v45  ;;  %v11342_v42 = vld [vmem:[%s15054_s1 + $0x1d40] ss:$20 sps:$4 sm:$0xff]  }
 0x2dd   :  { %7514 = vmatprep.subr.bf16.mxu1 %v11296_v46  ;;  %v11347_v45 = vld [vmem:[%s15054_s1 + $0x1d6c] ss:$20 sps:$4 sm:$0xff]   ;;  %v11348_v46 = vld [vmem:[%s15054_s1 + $0x150] ss:$20 sps:$4 sm:$0xff]  }
 0x2df   :  { %6990 = vmatpush1.bf16.msra.mxu0 %v11291_v24  ;;  %v14189_v24 = vcombine.high %v13985_v61, %v13985_v61 }
 0x2e0   :  { %7515 = vmatpush1.bf16.msra.mxu1 %v11294_v48  ;;  %6991 = vmatprep.subr.bf16.mxu0 %v11299_v49  ;;  %v11345_v48 = vld [vmem:[%s15054_s1 + $0x1d68] ss:$20 sps:$4 sm:$0xff]   ;;  %v11349_v49 = vld [vmem:[%s15054_s1 + $0x10] ss:$20 sps:$4 sm:$0xff]  }
 0x2e1   :  { %7516 = vmatprep.subr.bf16.mxu1 %v11302_v53  ;;  %v11352_v53 = vld [vmem:[%s15054_s1 + $0x1d94] ss:$20 sps:$4 sm:$0xff]  }
 0x2e3   :  { %6992 = vmatpush1.bf16.msra.mxu0 %v11297_v54  ;;  %v11353_v54 = vld [vmem:[%s15054_s1 + $0x178] ss:$20 sps:$4 sm:$0xff]  }
 0x2e4   :  { %7517 = vmatpush1.bf16.msra.mxu1 %v11300_v56  ;;  %6993 = vmatprep.subr.bf16.mxu0 %v11305_v58  ;;  %v11350_v56 = vld [vmem:[%s15054_s1 + $0x1d90] ss:$20 sps:$4 sm:$0xff]   ;;  %v11354_v58 = vld [vmem:[%s15054_s1 + $0x38] ss:$20 sps:$4 sm:$0xff]  }
 0x2e5   :  { %7518 = vmatprep.subr.bf16.mxu1 %v11308_v60  ;;  %v11357_v60 = vld [vmem:[%s15054_s1 + $0x1dbc] ss:$20 sps:$4 sm:$0xff]  }
 0x2e7   :  { %6994 = vmatpush1.bf16.msra.mxu0 %v11303_v62  ;;  %v11358_v62 = vld [vmem:[%s15054_s1 + $0x1a0] ss:$20 sps:$4 sm:$0xff]  }
 0x2e8   :  { %7519 = vmatpush1.bf16.msra.mxu1 %v11306_v1  ;;  %6995 = vmatprep.subr.bf16.mxu0 %v11311_v4  ;;  %v11355_v1 = vld [vmem:[%s15054_s1 + $0x1db8] ss:$20 sps:$4 sm:$0xff]   ;;  %v11359_v4 = vld [vmem:[%s15054_s1 + $0x60] ss:$20 sps:$4 sm:$0xff]  }
 0x2e9   :  { %7520 = vmatprep.subr.bf16.mxu1 %v11314_v22  ;;  %v11362_v22 = vld [vmem:[%s15054_s1 + $0x1de4] ss:$20 sps:$4 sm:$0xff]  }
 0x2eb   :  { %6996 = vmatpush1.bf16.msra.mxu0 %v11309_v6  ;;  %v11360_v6 = vld [vmem:[%s15054_s1 + $0x1de0] ss:$20 sps:$4 sm:$0xff]  }
 0x2ec   :  { %7521 = vmatpush1.bf16.msra.mxu1 %v11312_v7  ;;  %6997 = vmatprep.subr.bf16.mxu0 %v11317_v8  ;;  %v11364_v7 = vld [vmem:[%s15054_s1 + $0x88] ss:$20 sps:$4 sm:$0xff]   ;;  %v11367_v8 = vld [vmem:[%s15054_s1 + $0x1e0c] ss:$20 sps:$4 sm:$0xff]  }
 0x2ed   :  { %7522 = vmatprep.subr.bf16.mxu1 %v11320_v9  ;;  %v11368_v9 = vld [vmem:[%s15054_s1 + $0x1f0] ss:$20 sps:$4 sm:$0xff]  }
 0x2ef   :  { %6998 = vmatpush1.bf16.msra.mxu0 %v11315_v10  ;;  %v11365_v10 = vld [vmem:[%s15054_s1 + $0x1e08] ss:$20 sps:$4 sm:$0xff]  }
 0x2f0   :  { %7523 = vmatpush1.bf16.msra.mxu1 %v11318_v11  ;;  %6999 = vmatprep.subr.bf16.mxu0 %v11323_v14  ;;  %v11369_v11 = vld [vmem:[%s15054_s1 + $0xb0] ss:$20 sps:$4 sm:$0xff]   ;;  %v11372_v14 = vld [vmem:[%s15054_s1 + $0x1e34] ss:$20 sps:$4 sm:$0xff]  }
 0x2f1   :  { %7524 = vmatprep.subr.bf16.mxu1 %v11326_v16  ;;  %v11373_v16 = vld [vmem:[%s15054_s1 + $0x218] ss:$20 sps:$4 sm:$0xff]  }
 0x2f3   :  { %7000 = vmatpush1.bf16.msra.mxu0 %v11321_v19  ;;  %v11370_v19 = vld [vmem:[%s15054_s1 + $0x1e30] ss:$20 sps:$4 sm:$0xff]  }
 0x2f4   :  { %7525 = vmatpush1.bf16.msra.mxu1 %v11324_v44  ;;  %7001 = vmatprep.subr.bf16.mxu0 %v11329_v55  ;;  %v11374_v44 = vld [vmem:[%s15054_s1 + $0xd8] ss:$20 sps:$4 sm:$0xff]   ;;  %v11377_v55 = vld [vmem:[%s15054_s1 + $0x1e5c] ss:$20 sps:$4 sm:$0xff]  }
 0x2f5   :  { %7526 = vmatprep.subr.bf16.mxu1 %v11332_v25  ;;  %v11378_v25 = vld [vmem:[%s15054_s1 + $0x240] ss:$20 sps:$4 sm:$0xff]  }
 0x2f7   :  { %7002 = vmatpush1.bf16.msra.mxu0 %v11327_v30  ;;  %v11375_v30 = vld [vmem:[%s15054_s1 + $0x1e58] ss:$20 sps:$4 sm:$0xff]  }
 0x2f8   :  { %7527 = vmatpush1.bf16.msra.mxu1 %v11330_v32  ;;  %7003 = vmatprep.subr.bf16.mxu0 %v11335_v33  ;;  %v11379_v32 = vld [vmem:[%s15054_s1 + $0x100] ss:$20 sps:$4 sm:$0xff]   ;;  %v11382_v33 = vld [vmem:[%s15054_s1 + $0x1e84] ss:$20 sps:$4 sm:$0xff]  }
 0x2f9   :  { %7528 = vmatprep.subr.bf16.mxu1 %v11338_v38  ;;  %v11380_v38 = vld [vmem:[%s15054_s1 + $0x1e80] ss:$20 sps:$4 sm:$0xff]  }
 0x2fb   :  { %7004 = vmatpush1.bf16.msra.mxu0 %v11333_v35  ;;  %v11384_v35 = vld [vmem:[%s15054_s1 + $0x128] ss:$20 sps:$4 sm:$0xff]  }
 0x2fc   :  { %7529 = vmatpush1.bf16.msra.mxu1 %v11336_v37  ;;  %7005 = vmatprep.subr.bf16.mxu0 %v11341_v39  ;;  %v11385_v37 = vld [vmem:[%s15054_s1 + $0x3d0] ss:$20 sps:$4 sm:$0xff]  }
 0x2fd   :  { %7530 = vmatprep.subr.bf16.mxu1 %v11344_v40  ;;  %v11387_v39 = vld [vmem:[%s15054_s1 + $0x650] ss:$20 sps:$4 sm:$0xff]  }
 0x2fe   :  { %v11386_v40 = vld [vmem:[%s15054_s1 + $0x290] ss:$20 sps:$4 sm:$0xff]  }
 0x2ff   :  { %7006 = vmatpush1.bf16.msra.mxu0 %v11339_v41  ;;  %v11388_v41 = vld [vmem:[%s15054_s1 + $0x510] ss:$20 sps:$4 sm:$0xff]  }
 0x300   :  { %7531 = vmatpush1.bf16.msra.mxu1 %v11342_v42  ;;  %9710 = vmatprep.subr.bf16.mxu0 %v11348_v46  ;;  %v11389_v42 = vld [vmem:[%s15054_s1 + $0x3f8] ss:$20 sps:$4 sm:$0xff]  }
 0x301   :  { %7532 = vmatprep.subr.bf16.mxu1 %v11347_v45  ;;  %v11391_v45 = vld [vmem:[%s15054_s1 + $0x678] ss:$20 sps:$4 sm:$0xff]  }
 0x302   :  { %7008 = vmatmul.mubr.bf16.vlgmr.msra.gmra.mrb[0].mxu0 %v14189_v24  ;;  %v11390_v46 = vld [vmem:[%s15054_s1 + $0x2b8] ss:$20 sps:$4 sm:$0xff]  }
 0x303   :  { %9711 = vmatpush3.bf16.msra.mxu0 %v11349_v49  ;;  %7622 = vmatprep.mubr.bf16.mxu0 %v11862_v0  ;;  %v11363_v0 = vld [vmem:[%s15054_s1 + $0x1c8] ss:$20 sps:$4 sm:$0xff]   ;;  %v11393_v49 = vld [vmem:[%s15054_s1 + $0x420] ss:$20 sps:$4 sm:$0xff]  }
 0x304   :  { %7533 = vmatpush1.bf16.msra.mxu1 %v11345_v48  ;;  %9712 = vmatprep.subr.bf16.mxu0 %v11353_v54  ;;  %v11392_v48 = vld [vmem:[%s15054_s1 + $0x538] ss:$20 sps:$4 sm:$0xff]   ;;  %v11396_v54 = vld [vmem:[%s15054_s1 + $0x560] ss:$20 sps:$4 sm:$0xff]  }
 0x305   :  { %7534 = vmatprep.subr.bf16.mxu1 %v11352_v53  ;;  %v11394_v53 = vld [vmem:[%s15054_s1 + $0x2e0] ss:$20 sps:$4 sm:$0xff]  }
 0x307   :  { %9713 = vmatpush3.bf16.msra.mxu0 %v11354_v58  ;;  %v11400_v58 = vld [vmem:[%s15054_s1 + $0x588] ss:$20 sps:$4 sm:$0xff]  }
 0x308   :  { %7535 = vmatpush1.bf16.msra.mxu1 %v11350_v56  ;;  %9714 = vmatprep.subr.bf16.mxu0 %v11358_v62  ;;  %v11397_v56 = vld [vmem:[%s15054_s1 + $0x448] ss:$20 sps:$4 sm:$0xff]   ;;  %v11403_v62 = vld [vmem:[%s15054_s1 + $0x6f0] ss:$20 sps:$4 sm:$0xff]  }
 0x309   :  { %7536 = vmatprep.subr.bf16.mxu1 %v11357_v60  ;;  %v11401_v60 = vld [vmem:[%s15054_s1 + $0x470] ss:$20 sps:$4 sm:$0xff]  }
 0x30b   :  { %9715 = vmatpush3.bf16.msra.mxu0 %v11359_v4  ;;  %v11404_v4 = vld [vmem:[%s15054_s1 + $0x5b0] ss:$20 sps:$4 sm:$0xff]  }
 0x30c   :  { %7537 = vmatpush1.bf16.msra.mxu1 %v11355_v1  ;;  %9716 = vmatprep.subr.bf16.mxu0 %v11363_v0  ;;  %v11402_v1 = vld [vmem:[%s15054_s1 + $0x330] ss:$20 sps:$4 sm:$0xff]   ;;  %v11407_v0 = vld [vmem:[%s15054_s1 + $0x718] ss:$20 sps:$4 sm:$0xff]  }
 0x30d   :  { %7538 = vmatprep.subr.bf16.mxu1 %v11362_v22  ;;  %v11405_v22 = vld [vmem:[%s15054_s1 + $0x498] ss:$20 sps:$4 sm:$0xff]  }
 0x30f   :  { %9717 = vmatpush3.bf16.msra.mxu0 %v11364_v7  ;;  %v11408_v7 = vld [vmem:[%s15054_s1 + $0x5d8] ss:$20 sps:$4 sm:$0xff]  }
 0x310   :  { %7539 = vmatpush1.bf16.msra.mxu1 %v11360_v6  ;;  %9718 = vmatprep.subr.bf16.mxu0 %v11368_v9  ;;  %v11406_v6 = vld [vmem:[%s15054_s1 + $0x358] ss:$20 sps:$4 sm:$0xff]   ;;  %v11411_v9 = vld [vmem:[%s15054_s1 + $0x740] ss:$20 sps:$4 sm:$0xff]  }
 0x311   :  { %7549 = vmatprep.subr.bf16.mxu1 %v11367_v8  ;;  %v11409_v8 = vld [vmem:[%s15054_s1 + $0x4c0] ss:$20 sps:$4 sm:$0xff]  }
 0x313   :  { %7541 = vmatmul.mubr.bf16.vlgmr.msra.gmra.mrb[4].mxu1 %v14189_v24  ;;  %9719 = vmatpush3.bf16.msra.mxu0 %v11369_v11  ;;  %v11412_v11 = vld [vmem:[%s15054_s1 + $0x600] ss:$20 sps:$4 sm:$0xff]  }
 0x314   :  { %7550 = vmatpush1.bf16.msra.mxu1 %v11365_v10  ;;  %9720 = vmatprep.subr.bf16.mxu0 %v11373_v16  ;;  %v11410_v10 = vld [vmem:[%s15054_s1 + $0x380] ss:$20 sps:$4 sm:$0xff]   ;;  %v11415_v16 = vld [vmem:[%s15054_s1 + $0x768] ss:$20 sps:$4 sm:$0xff]  }
 0x315   :  { %7551 = vmatprep.subr.bf16.mxu1 %v11372_v14  ;;  %7581 = vmatprep.mubr.bf16.mxu1 %v11639_v2  ;;  %v11383_v2 = vld [vmem:[%s15054_s1 + $0x268] ss:$20 sps:$4 sm:$0xff]  }
 0x316   :  { %v11413_v14 = vld [vmem:[%s15054_s1 + $0x4e8] ss:$20 sps:$4 sm:$0xff]  }
 0x317   :  { %9721 = vmatpush3.bf16.msra.mxu0 %v11374_v44  ;;  %v11416_v44 = vld [vmem:[%s15054_s1 + $0x628] ss:$20 sps:$4 sm:$0xff]  }
 0x318   :  { %7552 = vmatpush1.bf16.msra.mxu1 %v11370_v19  ;;  %9722 = vmatprep.subr.bf16.mxu0 %v11378_v25  ;;  %v11414_v19 = vld [vmem:[%s15054_s1 + $0x3a8] ss:$20 sps:$4 sm:$0xff]   ;;  %v11419_v25 = vld [vmem:[%s15054_s1 + $0xb50] ss:$20 sps:$4 sm:$0xff]  }
 0x319   :  { %7553 = vmatprep.subr.bf16.mxu1 %v11377_v55  ;;  %v11417_v55 = vld [vmem:[%s15054_s1 + $0x8d0] ss:$20 sps:$4 sm:$0xff]  }
 0x31b   :  { %9723 = vmatpush3.bf16.msra.mxu0 %v11379_v32  ;;  %v11420_v32 = vld [vmem:[%s15054_s1 + $0xa10] ss:$20 sps:$4 sm:$0xff]  }
 0x31c   :  { %7554 = vmatpush1.bf16.msra.mxu1 %v11375_v30  ;;  %9724 = vmatprep.subr.bf16.mxu0 %v11383_v2  ;;  %v11418_v30 = vld [vmem:[%s15054_s1 + $0x790] ss:$20 sps:$4 sm:$0xff]   ;;  %v11423_v2 = vld [vmem:[%s15054_s1 + $0xb78] ss:$20 sps:$4 sm:$0xff]  }
 0x31d   :  { %7555 = vmatprep.subr.bf16.mxu1 %v11382_v33  ;;  %v11421_v33 = vld [vmem:[%s15054_s1 + $0x8f8] ss:$20 sps:$4 sm:$0xff]  }
 0x31f   :  { %9725 = vmatpush3.bf16.msra.mxu0 %v11384_v35  ;;  %v11424_v35 = vld [vmem:[%s15054_s1 + $0xa38] ss:$20 sps:$4 sm:$0xff]  }
 0x320   :  { %7556 = vmatpush1.bf16.msra.mxu1 %v11380_v38  ;;  %9754 = vmatprep.subr.bf16.mxu0 %v11387_v39  ;;  %v11422_v38 = vld [vmem:[%s15054_s1 + $0x7b8] ss:$20 sps:$4 sm:$0xff]   ;;  %v11428_v39 = vld [vmem:[%s15054_s1 + $0xa60] ss:$20 sps:$4 sm:$0xff]  }
 0x321   :  { %9732 = vmatprep.subr.bf16.mxu1 %v11385_v37  ;;  %v11425_v37 = vld [vmem:[%s15054_s1 + $0x920] ss:$20 sps:$4 sm:$0xff]  }
 0x322   :  { %7623 = vmatmul.mubr.bf16.vlgmr.msra.gmra.mrb[4].mxu0 %v11909_v17  ;;  %v11395_v17 = vld [vmem:[%s15054_s1 + $0x6a0] ss:$20 sps:$4 sm:$0xff]  }
 0x323   :  { %9659 = vmatmul.mubr.msk.bf16.vlgmr.msra.gmra.mrb[4].mxu1 %vm6520_vm0, %v11748_v26  ;;  %9755 = vmatpush3.bf16.msra.mxu0 %v11388_v41  ;;  %v11432_v41 = vld [vmem:[%s15054_s1 + $0xa88] ss:$20 sps:$4 sm:$0xff]  }
 0x324   :  { %9733 = vmatpush3.bf16.msra.mxu1 %v11386_v40  ;;  %9756 = vmatprep.subr.bf16.mxu0 %v11391_v45  ;;  %v11429_v40 = vld [vmem:[%s15054_s1 + $0x948] ss:$20 sps:$4 sm:$0xff]   ;;  %v11435_v45 = vld [vmem:[%s15054_s1 + $0xbf0] ss:$20 sps:$4 sm:$0xff]  }
 0x325   :  { %9734 = vmatprep.subr.bf16.mxu1 %v11389_v42  ;;  %7662 = vmatprep.mubr.bf16.mxu1 %v11925_v23  ;;  %v11399_v23 = vld [vmem:[%s15054_s1 + $0x6c8] ss:$20 sps:$4 sm:$0xff]   ;;  %v11433_v42 = vld [vmem:[%s15054_s1 + $0x970] ss:$20 sps:$4 sm:$0xff]  }
 0x326   :  { %7702 = vmatprep.mubr.bf16.mxu0 %v12135_v36  ;;  %v11398_v36 = vld [vmem:[%s15054_s1 + $0x308] ss:$20 sps:$4 sm:$0xff]  }
 0x327   :  { %9757 = vmatpush3.bf16.msra.mxu0 %v11392_v48  ;;  %v11436_v48 = vld [vmem:[%s15054_s1 + $0xab0] ss:$20 sps:$4 sm:$0xff]  }
 0x328   :  { %9735 = vmatpush3.bf16.msra.mxu1 %v11390_v46  ;;  %9758 = vmatprep.subr.bf16.mxu0 %v11395_v17  ;;  %v11434_v46 = vld [vmem:[%s15054_s1 + $0x830] ss:$20 sps:$4 sm:$0xff]   ;;  %v11439_v17 = vld [vmem:[%s15054_s1 + $0xc18] ss:$20 sps:$4 sm:$0xff]  }
 0x329   :  { %9736 = vmatprep.subr.bf16.mxu1 %v11393_v49  ;;  %v11437_v49 = vld [vmem:[%s15054_s1 + $0x998] ss:$20 sps:$4 sm:$0xff]  }
 0x32b   :  { %9759 = vmatpush3.bf16.msra.mxu0 %v11396_v54  ;;  %v11440_v54 = vld [vmem:[%s15054_s1 + $0xad8] ss:$20 sps:$4 sm:$0xff]  }
 0x32c   :  { %9737 = vmatpush3.bf16.msra.mxu1 %v11394_v53  ;;  %9760 = vmatprep.subr.bf16.mxu0 %v11399_v23  ;;  %v11438_v53 = vld [vmem:[%s15054_s1 + $0x858] ss:$20 sps:$4 sm:$0xff]   ;;  %v11443_v23 = vld [vmem:[%s15054_s1 + $0xc40] ss:$20 sps:$4 sm:$0xff]  }
 0x32d   :  { %9738 = vmatprep.subr.bf16.mxu1 %v11397_v56  ;;  %v11441_v56 = vld [vmem:[%s15054_s1 + $0x9c0] ss:$20 sps:$4 sm:$0xff]  }
 0x32f   :  { %9761 = vmatpush3.bf16.msra.mxu0 %v11400_v58  ;;  %v11444_v58 = vld [vmem:[%s15054_s1 + $0xb00] ss:$20 sps:$4 sm:$0xff]  }
 0x330   :  { %9739 = vmatpush3.bf16.msra.mxu1 %v11398_v36  ;;  %9762 = vmatprep.subr.bf16.mxu0 %v11403_v62  ;;  %v11442_v36 = vld [vmem:[%s15054_s1 + $0x880] ss:$20 sps:$4 sm:$0xff]   ;;  %v11447_v62 = vld [vmem:[%s15054_s1 + $0xc68] ss:$20 sps:$4 sm:$0xff]  }
 0x331   :  { %9740 = vmatprep.subr.bf16.mxu1 %v11401_v60  ;;  %v11445_v60 = vld [vmem:[%s15054_s1 + $0x9e8] ss:$20 sps:$4 sm:$0xff]  }
 0x333   :  { %9763 = vmatpush3.bf16.msra.mxu0 %v11404_v4  ;;  %v11448_v4 = vld [vmem:[%s15054_s1 + $0xb28] ss:$20 sps:$4 sm:$0xff]  }
 0x334   :  { %9741 = vmatpush3.bf16.msra.mxu1 %v11402_v1  ;;  %9764 = vmatprep.subr.bf16.mxu0 %v11407_v0  ;;  %v11446_v1 = vld [vmem:[%s15054_s1 + $0x8a8] ss:$20 sps:$4 sm:$0xff]   ;;  %v11451_v0 = vld [vmem:[%s15054_s1 + $0x1050] ss:$20 sps:$4 sm:$0xff]  }
 0x335   :  { %9742 = vmatprep.subr.bf16.mxu1 %v11405_v22  ;;  %v11449_v22 = vld [vmem:[%s15054_s1 + $0xdd0] ss:$20 sps:$4 sm:$0xff]  }
 0x337   :  { %9765 = vmatpush3.bf16.msra.mxu0 %v11408_v7  ;;  %v11452_v7 = vld [vmem:[%s15054_s1 + $0xf10] ss:$20 sps:$4 sm:$0xff]  }
 0x338   :  { %9743 = vmatpush3.bf16.msra.mxu1 %v11406_v6  ;;  %9766 = vmatprep.subr.bf16.mxu0 %v11411_v9  ;;  %v11450_v6 = vld [vmem:[%s15054_s1 + $0xc90] ss:$20 sps:$4 sm:$0xff]   ;;  %v11455_v9 = vld [vmem:[%s15054_s1 + $0x1078] ss:$20 sps:$4 sm:$0xff]  }
 0x339   :  { %9744 = vmatprep.subr.bf16.mxu1 %v11409_v8  ;;  %v11453_v8 = vld [vmem:[%s15054_s1 + $0xdf8] ss:$20 sps:$4 sm:$0xff]  }
 0x33b   :  { %9767 = vmatpush3.bf16.msra.mxu0 %v11412_v11  ;;  %v11456_v11 = vld [vmem:[%s15054_s1 + $0xf38] ss:$20 sps:$4 sm:$0xff]  }
 0x33c   :  { %9745 = vmatpush3.bf16.msra.mxu1 %v11410_v10  ;;  %9768 = vmatprep.subr.bf16.mxu0 %v11415_v16  ;;  %v11454_v10 = vld [vmem:[%s15054_s1 + $0xcb8] ss:$20 sps:$4 sm:$0xff]   ;;  %v11460_v16 = vld [vmem:[%s15054_s1 + $0xf60] ss:$20 sps:$4 sm:$0xff]  }
 0x33d   :  { %9746 = vmatprep.subr.bf16.mxu1 %v11413_v14  ;;  %v11457_v14 = vld [vmem:[%s15054_s1 + $0xe20] ss:$20 sps:$4 sm:$0xff]  }
 0x33f   :  { %9769 = vmatpush3.bf16.msra.mxu0 %v11416_v44  ;;  %v11464_v44 = vld [vmem:[%s15054_s1 + $0xf88] ss:$20 sps:$4 sm:$0xff]  }
 0x340   :  { %9747 = vmatpush3.bf16.msra.mxu1 %v11414_v19  ;;  %9798 = vmatprep.subr.bf16.mxu0 %v11419_v25  ;;  %v11461_v19 = vld [vmem:[%s15054_s1 + $0xe48] ss:$20 sps:$4 sm:$0xff]   ;;  %v11467_v25 = vld [vmem:[%s15054_s1 + $0x10f0] ss:$20 sps:$4 sm:$0xff]  }
 0x341   :  { %9776 = vmatprep.subr.bf16.mxu1 %v11417_v55  ;;  %v11465_v55 = vld [vmem:[%s15054_s1 + $0xe70] ss:$20 sps:$4 sm:$0xff]  }
 0x342   :  { %7703 = vmatmul.mubr.bf16.vlgmr.msra.gmra.mrb[8].mxu0 %v12323_v43  ;;  %v11426_v43 = vld [vmem:[%s15054_s1 + $0x7e0] ss:$20 sps:$4 sm:$0xff]  }
 0x343   :  { %7663 = vmatmul.mubr.bf16.vlgmr.msra.gmra.mrb[8].mxu1 %v12120_v31  ;;  %9799 = vmatpush3.bf16.msra.mxu0 %v11420_v32  ;;  %v11427_v31 = vld [vmem:[%s15054_s1 + $0xba0] ss:$20 sps:$4 sm:$0xff]   ;;  %v11468_v32 = vld [vmem:[%s15054_s1 + $0xfb0] ss:$20 sps:$4 sm:$0xff]  }
 0x344   :  { %9777 = vmatpush3.bf16.msra.mxu1 %v11418_v30  ;;  %9800 = vmatprep.subr.bf16.mxu0 %v11423_v2  ;;  %v11466_v30 = vld [vmem:[%s15054_s1 + $0xd30] ss:$20 sps:$4 sm:$0xff]   ;;  %v11471_v2 = vld [vmem:[%s15054_s1 + $0x1118] ss:$20 sps:$4 sm:$0xff]  }
 0x345   :  { %9778 = vmatprep.subr.bf16.mxu1 %v11421_v33  ;;  %7742 = vmatprep.mubr.bf16.mxu1 %v12339_v47  ;;  %v11431_v47 = vld [vmem:[%s15054_s1 + $0xbc8] ss:$20 sps:$4 sm:$0xff]   ;;  %v11469_v33 = vld [vmem:[%s15054_s1 + $0xe98] ss:$20 sps:$4 sm:$0xff]  }
 0x346   :  { %7782 = vmatprep.mubr.bf16.mxu0 %v12553_v5  ;;  %v11430_v5 = vld [vmem:[%s15054_s1 + $0x808] ss:$20 sps:$4 sm:$0xff]  }
 0x347   :  { %9801 = vmatpush3.bf16.msra.mxu0 %v11424_v35  ;;  %v11472_v35 = vld [vmem:[%s15054_s1 + $0xfd8] ss:$20 sps:$4 sm:$0xff]  }
 0x348   :  { %9779 = vmatpush3.bf16.msra.mxu1 %v11422_v38  ;;  %9802 = vmatprep.subr.bf16.mxu0 %v11427_v31  ;;  %v11470_v38 = vld [vmem:[%s15054_s1 + $0xd58] ss:$20 sps:$4 sm:$0xff]   ;;  %v11475_v31 = vld [vmem:[%s15054_s1 + $0x1140] ss:$20 sps:$4 sm:$0xff]  }
 0x349   :  { %9780 = vmatprep.subr.bf16.mxu1 %v11425_v37  ;;  %v11473_v37 = vld [vmem:[%s15054_s1 + $0xec0] ss:$20 sps:$4 sm:$0xff]  }
 0x34b   :  { %9803 = vmatpush3.bf16.msra.mxu0 %v11428_v39  ;;  %v11476_v39 = vld [vmem:[%s15054_s1 + $0x1000] ss:$20 sps:$4 sm:$0xff]  }
 0x34c   :  { %9781 = vmatpush3.bf16.msra.mxu1 %v11426_v43  ;;  %9804 = vmatprep.subr.bf16.mxu0 %v11431_v47  ;;  %v11474_v43 = vld [vmem:[%s15054_s1 + $0xd80] ss:$20 sps:$4 sm:$0xff]   ;;  %v11479_v47 = vld [vmem:[%s15054_s1 + $0x1168] ss:$20 sps:$4 sm:$0xff]  }
 0x34d   :  { %9782 = vmatprep.subr.bf16.mxu1 %v11429_v40  ;;  %v11477_v40 = vld [vmem:[%s15054_s1 + $0xee8] ss:$20 sps:$4 sm:$0xff]  }
 0x34f   :  { %9805 = vmatpush3.bf16.msra.mxu0 %v11432_v41  ;;  %v11480_v41 = vld [vmem:[%s15054_s1 + $0x1028] ss:$20 sps:$4 sm:$0xff]  }
 0x350   :  { %9783 = vmatpush3.bf16.msra.mxu1 %v11430_v5  ;;  %9806 = vmatprep.subr.bf16.mxu0 %v11435_v45  ;;  %v11478_v5 = vld [vmem:[%s15054_s1 + $0xda8] ss:$20 sps:$4 sm:$0xff]   ;;  %v11483_v45 = vld [vmem:[%s15054_s1 + $0x1550] ss:$20 sps:$4 sm:$0xff]  }
 0x351   :  { %9784 = vmatprep.subr.bf16.mxu1 %v11433_v42  ;;  %v11481_v42 = vld [vmem:[%s15054_s1 + $0x12d0] ss:$20 sps:$4 sm:$0xff]  }
 0x353   :  { %9807 = vmatpush3.bf16.msra.mxu0 %v11436_v48  ;;  %v11484_v48 = vld [vmem:[%s15054_s1 + $0x1410] ss:$20 sps:$4 sm:$0xff]  }
 0x354   :  { %9785 = vmatpush3.bf16.msra.mxu1 %v11434_v46  ;;  %9808 = vmatprep.subr.bf16.mxu0 %v11439_v17  ;;  %v11482_v46 = vld [vmem:[%s15054_s1 + $0x1190] ss:$20 sps:$4 sm:$0xff]   ;;  %v11487_v17 = vld [vmem:[%s15054_s1 + $0x1578] ss:$20 sps:$4 sm:$0xff]  }
 0x355   :  { %9786 = vmatprep.subr.bf16.mxu1 %v11437_v49  ;;  %v11485_v49 = vld [vmem:[%s15054_s1 + $0x12f8] ss:$20 sps:$4 sm:$0xff]  }
 0x357   :  { %9809 = vmatpush3.bf16.msra.mxu0 %v11440_v54  ;;  %v11488_v54 = vld [vmem:[%s15054_s1 + $0x1438] ss:$20 sps:$4 sm:$0xff]  }
 0x358   :  { %9787 = vmatpush3.bf16.msra.mxu1 %v11438_v53  ;;  %9810 = vmatprep.subr.bf16.mxu0 %v11443_v23  ;;  %v11486_v53 = vld [vmem:[%s15054_s1 + $0x11b8] ss:$20 sps:$4 sm:$0xff]   ;;  %v11492_v23 = vld [vmem:[%s15054_s1 + $0x1460] ss:$20 sps:$4 sm:$0xff]  }
 0x359   :  { %9788 = vmatprep.subr.bf16.mxu1 %v11441_v56  ;;  %v11489_v56 = vld [vmem:[%s15054_s1 + $0x1320] ss:$20 sps:$4 sm:$0xff]  }
 0x35b   :  { %9811 = vmatpush3.bf16.msra.mxu0 %v11444_v58  ;;  %v11496_v58 = vld [vmem:[%s15054_s1 + $0x1488] ss:$20 sps:$4 sm:$0xff]  }
 0x35c   :  { %9789 = vmatpush3.bf16.msra.mxu1 %v11442_v36  ;;  %9812 = vmatprep.subr.bf16.mxu0 %v11447_v62  ;;  %v11493_v36 = vld [vmem:[%s15054_s1 + $0x1348] ss:$20 sps:$4 sm:$0xff]   ;;  %v11499_v62 = vld [vmem:[%s15054_s1 + $0x15f0] ss:$20 sps:$4 sm:$0xff]  }
 0x35d   :  { %9790 = vmatprep.subr.bf16.mxu1 %v11445_v60  ;;  %v11497_v60 = vld [vmem:[%s15054_s1 + $0x1370] ss:$20 sps:$4 sm:$0xff]  }
 0x35f   :  { %9813 = vmatpush3.bf16.msra.mxu0 %v11448_v4  ;;  %v11500_v4 = vld [vmem:[%s15054_s1 + $0x14b0] ss:$20 sps:$4 sm:$0xff]  }
 0x360   :  { %9791 = vmatpush3.bf16.msra.mxu1 %v11446_v1  ;;  %9842 = vmatprep.subr.bf16.mxu0 %v11451_v0  ;;  %v11498_v1 = vld [vmem:[%s15054_s1 + $0x1230] ss:$20 sps:$4 sm:$0xff]   ;;  %v11503_v0 = vld [vmem:[%s15054_s1 + $0x1618] ss:$20 sps:$4 sm:$0xff]  }
 0x361   :  { %9820 = vmatprep.subr.bf16.mxu1 %v11449_v22  ;;  %v11501_v22 = vld [vmem:[%s15054_s1 + $0x1398] ss:$20 sps:$4 sm:$0xff]  }
 0x362   :  { %7783 = vmatmul.mubr.bf16.vlgmr.msra.gmra.mrb[12].mxu0 %v12741_v20  ;;  %v11458_v20 = vld [vmem:[%s15054_s1 + $0xce0] ss:$20 sps:$4 sm:$0xff]  }
 0x363   :  { %7743 = vmatmul.mubr.bf16.vlgmr.msra.gmra.mrb[12].mxu1 %v12541_v63  ;;  %9843 = vmatpush3.bf16.msra.mxu0 %v11452_v7  ;;  %v11459_v63 = vld [vmem:[%s15054_s1 + $0x10a0] ss:$20 sps:$4 sm:$0xff]   ;;  %v11504_v7 = vld [vmem:[%s15054_s1 + $0x14d8] ss:$20 sps:$4 sm:$0xff]  }
 0x364   :  { %9821 = vmatpush3.bf16.msra.mxu1 %v11450_v6  ;;  %9844 = vmatprep.subr.bf16.mxu0 %v11455_v9  ;;  %v11502_v6 = vld [vmem:[%s15054_s1 + $0x1258] ss:$20 sps:$4 sm:$0xff]   ;;  %v11507_v9 = vld [vmem:[%s15054_s1 + $0x1640] ss:$20 sps:$4 sm:$0xff]  }
 0x365   :  { %9822 = vmatprep.subr.bf16.mxu1 %v11453_v8  ;;  %7822 = vmatprep.mubr.bf16.mxu1 %v12757_v27  ;;  %v11463_v27 = vld [vmem:[%s15054_s1 + $0x10c8] ss:$20 sps:$4 sm:$0xff]   ;;  %v11505_v8 = vld [vmem:[%s15054_s1 + $0x13c0] ss:$20 sps:$4 sm:$0xff]  }
 0x366   :  { %7862 = vmatprep.mubr.bf16.mxu0 %v12968_v57  ;;  %v11462_v57 = vld [vmem:[%s15054_s1 + $0xd08] ss:$20 sps:$4 sm:$0xff]  }
 0x367   :  { %9845 = vmatpush3.bf16.msra.mxu0 %v11456_v11  ;;  %v11508_v11 = vld [vmem:[%s15054_s1 + $0x1500] ss:$20 sps:$4 sm:$0xff]  }
 0x368   :  { %9823 = vmatpush3.bf16.msra.mxu1 %v11454_v10  ;;  %9846 = vmatprep.subr.bf16.mxu0 %v11459_v63  ;;  %v11506_v10 = vld [vmem:[%s15054_s1 + $0x1280] ss:$20 sps:$4 sm:$0xff]   ;;  %v11511_v63 = vld [vmem:[%s15054_s1 + $0x1668] ss:$20 sps:$4 sm:$0xff]  }
 0x369   :  { %9824 = vmatprep.subr.bf16.mxu1 %v11457_v14  ;;  %v11509_v14 = vld [vmem:[%s15054_s1 + $0x13e8] ss:$20 sps:$4 sm:$0xff]  }
 0x36b   :  { %9847 = vmatpush3.bf16.msra.mxu0 %v11460_v16  ;;  %v11512_v16 = vld [vmem:[%s15054_s1 + $0x1528] ss:$20 sps:$4 sm:$0xff]  }
 0x36c   :  { %9825 = vmatpush3.bf16.msra.mxu1 %v11458_v20  ;;  %9848 = vmatprep.subr.bf16.mxu0 %v11463_v27  ;;  %v11510_v20 = vld [vmem:[%s15054_s1 + $0x12a8] ss:$20 sps:$4 sm:$0xff]   ;;  %v11515_v27 = vld [vmem:[%s15054_s1 + $0x1a50] ss:$20 sps:$4 sm:$0xff]  }
 0x36d   :  { %9826 = vmatprep.subr.bf16.mxu1 %v11461_v19  ;;  %v11513_v19 = vld [vmem:[%s15054_s1 + $0x17d0] ss:$20 sps:$4 sm:$0xff]  }
 0x36f   :  { %9849 = vmatpush3.bf16.msra.mxu0 %v11464_v44  ;;  %v11516_v44 = vld [vmem:[%s15054_s1 + $0x1910] ss:$20 sps:$4 sm:$0xff]  }
 0x370   :  { %9827 = vmatpush3.bf16.msra.mxu1 %v11462_v57  ;;  %9850 = vmatprep.subr.bf16.mxu0 %v11467_v25  ;;  %v11514_v57 = vld [vmem:[%s15054_s1 + $0x1690] ss:$20 sps:$4 sm:$0xff]   ;;  %v11519_v25 = vld [vmem:[%s15054_s1 + $0x1a78] ss:$20 sps:$4 sm:$0xff]  }
 0x371   :  { %9828 = vmatprep.subr.bf16.mxu1 %v11465_v55  ;;  %v11517_v55 = vld [vmem:[%s15054_s1 + $0x17f8] ss:$20 sps:$4 sm:$0xff]  }
 0x373   :  { %9851 = vmatpush3.bf16.msra.mxu0 %v11468_v32  ;;  %v11520_v32 = vld [vmem:[%s15054_s1 + $0x1938] ss:$20 sps:$4 sm:$0xff]  }
 0x374   :  { %9829 = vmatpush3.bf16.msra.mxu1 %v11466_v30  ;;  %9852 = vmatprep.subr.bf16.mxu0 %v11471_v2  ;;  %v11518_v30 = vld [vmem:[%s15054_s1 + $0x16b8] ss:$20 sps:$4 sm:$0xff]   ;;  %v11524_v2 = vld [vmem:[%s15054_s1 + $0x1960] ss:$20 sps:$4 sm:$0xff]  }
 0x375   :  { %9830 = vmatprep.subr.bf16.mxu1 %v11469_v33  ;;  %v11521_v33 = vld [vmem:[%s15054_s1 + $0x1820] ss:$20 sps:$4 sm:$0xff]  }
 0x377   :  { %9853 = vmatpush3.bf16.msra.mxu0 %v11472_v35  ;;  %v11528_v35 = vld [vmem:[%s15054_s1 + $0x1988] ss:$20 sps:$4 sm:$0xff]  }
 0x378   :  { %9831 = vmatpush3.bf16.msra.mxu1 %v11470_v38  ;;  %9854 = vmatprep.subr.bf16.mxu0 %v11475_v31  ;;  %v11525_v38 = vld [vmem:[%s15054_s1 + $0x1848] ss:$20 sps:$4 sm:$0xff]   ;;  %v11531_v31 = vld [vmem:[%s15054_s1 + $0x1af0] ss:$20 sps:$4 sm:$0xff]  }
 0x379   :  { %9832 = vmatprep.subr.bf16.mxu1 %v11473_v37  ;;  %v11529_v37 = vld [vmem:[%s15054_s1 + $0x1870] ss:$20 sps:$4 sm:$0xff]  }
 0x37b   :  { %9855 = vmatpush3.bf16.msra.mxu0 %v11476_v39  ;;  %v11532_v39 = vld [vmem:[%s15054_s1 + $0x19b0] ss:$20 sps:$4 sm:$0xff]  }
 0x37c   :  { %9833 = vmatpush3.bf16.msra.mxu1 %v11474_v43  ;;  %9856 = vmatprep.subr.bf16.mxu0 %v11479_v47  ;;  %v11530_v43 = vld [vmem:[%s15054_s1 + $0x1730] ss:$20 sps:$4 sm:$0xff]   ;;  %v11535_v47 = vld [vmem:[%s15054_s1 + $0x1b18] ss:$20 sps:$4 sm:$0xff]  }
 0x37d   :  { %9834 = vmatprep.subr.bf16.mxu1 %v11477_v40  ;;  %v11533_v40 = vld [vmem:[%s15054_s1 + $0x1898] ss:$20 sps:$4 sm:$0xff]  }
 0x37f   :  { %9857 = vmatpush3.bf16.msra.mxu0 %v11480_v41  ;;  %v11536_v41 = vld [vmem:[%s15054_s1 + $0x19d8] ss:$20 sps:$4 sm:$0xff]  }
 0x380   :  { %9835 = vmatpush3.bf16.msra.mxu1 %v11478_v5  ;;  %9886 = vmatprep.subr.bf16.mxu0 %v11483_v45  ;;  %v11534_v5 = vld [vmem:[%s15054_s1 + $0x1758] ss:$20 sps:$4 sm:$0xff]   ;;  %v11539_v45 = vld [vmem:[%s15054_s1 + $0x1b40] ss:$20 sps:$4 sm:$0xff]  }
 0x381   :  { %9864 = vmatprep.subr.bf16.mxu1 %v11481_v42  ;;  %v11537_v42 = vld [vmem:[%s15054_s1 + $0x18c0] ss:$20 sps:$4 sm:$0xff]  }
 0x382   :  { %7863 = vmatmul.mubr.bf16.vlgmr.msra.gmra.mrb[16].mxu0 %v13156_v15  ;;  %v11490_v15 = vld [vmem:[%s15054_s1 + $0x11e0] ss:$20 sps:$4 sm:$0xff]  }
 0x383   :  { %7823 = vmatmul.mubr.bf16.vlgmr.msra.gmra.mrb[16].mxu1 %v12953_v50  ;;  %9887 = vmatpush3.bf16.msra.mxu0 %v11484_v48  ;;  %v11491_v50 = vld [vmem:[%s15054_s1 + $0x15a0] ss:$20 sps:$4 sm:$0xff]  }
 0x384   :  { %9865 = vmatpush3.bf16.msra.mxu1 %v11482_v46  ;;  %9888 = vmatprep.subr.bf16.mxu0 %v11487_v17  ;;  %v11538_v46 = vld [vmem:[%s15054_s1 + $0x1780] ss:$20 sps:$4 sm:$0xff]   ;;  %v11543_v17 = vld [vmem:[%s15054_s1 + $0x1b68] ss:$20 sps:$4 sm:$0xff]  }
 0x385   :  { %9866 = vmatprep.subr.bf16.mxu1 %v11485_v49  ;;  %7902 = vmatprep.mubr.bf16.mxu1 %v13172_v21  ;;  %v11495_v21 = vld [vmem:[%s15054_s1 + $0x15c8] ss:$20 sps:$4 sm:$0xff]   ;;  %v11540_v48 = vld [vmem:[%s15054_s1 + $0x1a00] ss:$20 sps:$4 sm:$0xff]  }
 0x386   :  { %7942 = vmatprep.mubr.bf16.mxu0 %v13382_v59  ;;  %v11494_v59 = vld [vmem:[%s15054_s1 + $0x1208] ss:$20 sps:$4 sm:$0xff]  }
 0x387   :  { %9889 = vmatpush3.bf16.msra.mxu0 %v11488_v54  ;;  %v11541_v49 = vld [vmem:[%s15054_s1 + $0x18e8] ss:$20 sps:$4 sm:$0xff]  }
 0x388   :  { %9867 = vmatpush3.bf16.msra.mxu1 %v11486_v53  ;;  %9890 = vmatprep.subr.bf16.mxu0 %v11491_v50  ;;  %v11542_v53 = vld [vmem:[%s15054_s1 + $0x17a8] ss:$20 sps:$4 sm:$0xff]   ;;  %v11546_v50 = vld [vmem:[%s15054_s1 + $0x1b90] ss:$20 sps:$4 sm:$0xff]  }
 0x389   :  { %9868 = vmatprep.subr.bf16.mxu1 %v11489_v56  ;;  %v11544_v54 = vld [vmem:[%s15054_s1 + $0x1a28] ss:$20 sps:$4 sm:$0xff]   ;;  %v11545_v56 = vld [vmem:[%s15054_s1 + $0x1cd0] ss:$20 sps:$4 sm:$0xff]  }
 0x38b   :  { %9891 = vmatpush3.bf16.msra.mxu0 %v11492_v23  ;;  %v11547_v23 = vld [vmem:[%s15054_s1 + $0x1cf8] ss:$20 sps:$4 sm:$0xff]  }
 0x38c   :  { %9869 = vmatpush3.bf16.msra.mxu1 %v11490_v15  ;;  %9892 = vmatprep.subr.bf16.mxu0 %v11495_v21  ;;  %v11551_v15 = vld [vmem:[%s15054_s1 + $0x1e10] ss:$20 sps:$4 sm:$0xff]   ;;  %v11548_v21 = vld [vmem:[%s15054_s1 + $0x1bb8] ss:$20 sps:$4 sm:$0xff]  }
 0x38d   :  { %9870 = vmatprep.subr.bf16.mxu1 %v11493_v36  ;;  %v11641_v36 = vmov 0.0  }
 0x38f   :  { %9893 = vmatpush3.bf16.msra.mxu0 %v11496_v58  ;;  %v11549_v58 = vld [vmem:[%s15054_s1 + $0x1d20] ss:$20 sps:$4 sm:$0xff]  }
 0x390   :  { %9871 = vmatpush3.bf16.msra.mxu1 %v11494_v59  ;;  %9894 = vmatprep.subr.bf16.mxu0 %v11499_v62  ;;  %v11554_v59 = vld [vmem:[%s15054_s1 + $0x1e38] ss:$20 sps:$4 sm:$0xff]   ;;  %v11560_v62 = vld [vmem:[%s15054_s1 + $0x1e88] ss:$20 sps:$4 sm:$0xff]  }
 0x391   :  { %9872 = vmatprep.subr.bf16.mxu1 %v11497_v60  ;;  %v11552_v60 = vld [vmem:[%s15054_s1 + $0x1d48] ss:$20 sps:$4 sm:$0xff]  }
 0x393   :  { %9895 = vmatpush3.bf16.msra.mxu0 %v11500_v4  ;;  %v11563_v4 = vld [vmem:[%s15056_s3 + $0xc0] sm:$0xff]  }
 0x394   :  { %9873 = vmatpush3.bf16.msra.mxu1 %v11498_v1  ;;  %9896 = vmatprep.subr.bf16.mxu0 %v11503_v0  ;;  %v11555_v1 = vld [vmem:[%s15054_s1 + $0x1d70] ss:$20 sps:$4 sm:$0xff]  }
 0x395   :  { %9874 = vmatprep.subr.bf16.mxu1 %v11501_v22  ;;  %v1212_v22 = vsub.s32 0, %v11712_v13  ;;  %v11556_v0 = vld [vmem:[%s15054_s1 + $0x1c30] ss:$20 sps:$4 sm:$0xff]  }
 0x397   :  { %9897 = vmatpush3.bf16.msra.mxu0 %v11504_v7  ;;  %v1216_v7 = vsub.s32 1, %v11712_v13 }
 0x398   :  { %9875 = vmatpush3.bf16.msra.mxu1 %v11502_v6  ;;  %9898 = vmatprep.subr.bf16.mxu0 %v11507_v9  ;;  %v14844_v6 = vld [vmem:[%s15055_s2] sm:$0x1f]  ;;  %v11558_v9 = vld [vmem:[%s15054_s1 + $0x1d98] ss:$20 sps:$4 sm:$0xff]  }
 0x399   :  { %9876 = vmatprep.subr.bf16.mxu1 %v11505_v8  ;;  %v11564_v8 = vld [vmem:[%s15056_s3 + $0x80] sm:$0xff]  }
 0x39b   :  { %9899 = vmatpush3.bf16.msra.mxu0 %v11508_v11  ;;  %v1213_v11 = vrot.slane %v14844_v6, %v1212_v22 }
 0x39c   :  { %9877 = vmatpush3.bf16.msra.mxu1 %v11506_v10  ;;  %9900 = vmatprep.subr.bf16.mxu0 %v11511_v63  ;;  %v11567_v10 = vld [vmem:[%s15056_s3 + $0xc8] sm:$0xff]  }
 0x39d   :  { %9878 = vmatprep.subr.bf16.mxu1 %v11509_v14  ;;  %v1217_v14 = vrot.slane %v14844_v6, %v1216_v7  ;;  %v11559_v63 = vld [vmem:[%s15054_s1 + $0x1c58] ss:$20 sps:$4 sm:$0xff]  }
 0x39f   :  { %9901 = vmatpush3.bf16.msra.mxu0 %v11512_v16  ;;  %v11561_v16 = vld [vmem:[%s15054_s1 + $0x1dc0] ss:$20 sps:$4 sm:$0xff]  }
 0x3a0   :  { %9879 = vmatpush3.bf16.msra.mxu1 %v11510_v20  ;;  %9930 = vmatprep.subr.bf16.mxu0 %v11515_v27  ;;  %v11568_v20 = vld [vmem:[%s15056_s3 + $0x88] sm:$0xff]  }
 0x3a1   :  { %9908 = vmatprep.subr.bf16.mxu1 %v11513_v19 }
 0x3a2   :  { %7943 = vmatmul.mubr.bf16.vlgmr.msra.gmra.mrb[20].mxu0 %v13570_v52  ;;  %v11522_v52 = vld [vmem:[%s15054_s1 + $0x16e0] ss:$20 sps:$4 sm:$0xff]  }
 0x3a3   :  { %7903 = vmatmul.mubr.bf16.vlgmr.msra.gmra.mrb[20].mxu1 %v13367_v51  ;;  %9931 = vmatpush3.bf16.msra.mxu0 %v11516_v44  ;;  %v11523_v51 = vld [vmem:[%s15054_s1 + $0x1aa0] ss:$20 sps:$4 sm:$0xff]  }
 0x3a4   :  { %9909 = vmatpush3.bf16.msra.mxu1 %v11514_v57  ;;  %9932 = vmatprep.subr.bf16.mxu0 %v11519_v25  ;;  %v11562_v25 = vld [vmem:[%s15054_s1 + $0x1c80] ss:$20 sps:$4 sm:$0xff]  }
 0x3a5   :  { %9910 = vmatprep.subr.bf16.mxu1 %v11517_v55  ;;  %7982 = vmatprep.mubr.bf16.mxu1 %v13586_v34  ;;  %v11527_v34 = vld [vmem:[%s15054_s1 + $0x1ac8] ss:$20 sps:$4 sm:$0xff]  }
 0x3a6   :  { %8022 = vmatprep.mubr.bf16.mxu0 %v13797_v18  ;;  %v11526_v18 = vld [vmem:[%s15054_s1 + $0x1708] ss:$20 sps:$4 sm:$0xff]  }
 0x3a7   :  { %9933 = vmatpush3.bf16.msra.mxu0 %v11520_v32 }
 0x3a8   :  { %9911 = vmatpush3.bf16.msra.mxu1 %v11518_v30  ;;  %9934 = vmatprep.subr.bf16.mxu0 %v11523_v51  ;;  %v11572_v30 = vld [vmem:[%s15056_s3 + $0x90] sm:$0xff]   ;;  %v11565_v51 = vld [vmem:[%s15054_s1 + $0x1de8] ss:$20 sps:$4 sm:$0xff]  }
 0x3a9   :  { %9912 = vmatprep.subr.bf16.mxu1 %v11521_v33 }
 0x3ab   :  { %9935 = vmatpush3.bf16.msra.mxu0 %v11524_v2 }
 0x3ac   :  { %9913 = vmatpush3.bf16.msra.mxu1 %v11522_v52  ;;  %9936 = vmatprep.subr.bf16.mxu0 %v11527_v34  ;;  %v11575_v52 = vld [vmem:[%s15056_s3 + $0xd8] sm:$0xff]   ;;  %v11569_v34 = vld [vmem:[%s15056_s3 + $0x40] sm:$0xff]  }
 0x3ad   :  { %9914 = vmatprep.subr.bf16.mxu1 %v11525_v38  ;;  %v11566_v38 = vld [vmem:[%s15054_s1 + $0x1ca8] ss:$20 sps:$4 sm:$0xff]  }
 0x3af   :  { %9937 = vmatpush3.bf16.msra.mxu0 %v11528_v35  ;;  %v11573_v35 = vld [vmem:[%s15056_s3 + $0x48] sm:$0xff]  }
 0x3b0   :  { %9915 = vmatpush3.bf16.msra.mxu1 %v11526_v18  ;;  %9938 = vmatprep.subr.bf16.mxu0 %v11531_v31  ;;  %v11570_v18 = vld [vmem:[%s15056_s3] sm:$0xff]  }
 0x3b1   :  { %9916 = vmatprep.subr.bf16.mxu1 %v11529_v37  ;;  %v11580_v37 = vld [vmem:[%s15056_s3 + $0xa0] sm:$0xff]  }
 0x3b3   :  { %9939 = vmatpush3.bf16.msra.mxu0 %v11532_v39  ;;  %v11574_v39 = vld [vmem:[%s15056_s3 + $0x8] sm:$0xff]  }
 0x3b4   :  { %9917 = vmatpush3.bf16.msra.mxu1 %v11530_v43  ;;  %9940 = vmatprep.subr.bf16.mxu0 %v11535_v47  ;;  %v11583_v43 = vld [vmem:[%s15056_s3 + $0xe8] sm:$0xff]  }
 0x3b5   :  { %9918 = vmatprep.subr.bf16.mxu1 %v11533_v40  ;;  %v11577_v40 = vld [vmem:[%s15056_s3 + $0x50] sm:$0xff]   ;;  %v11584_v47 = vld [vmem:[%s15056_s3 + $0xa8] sm:$0xff]  }
 0x3b7   :  { %9941 = vmatpush3.bf16.msra.mxu0 %v11536_v41  ;;  %v11581_v41 = vld [vmem:[%s15056_s3 + $0x58] sm:$0xff]  }
 0x3b8   :  { %9919 = vmatpush3.bf16.msra.mxu1 %v11534_v5  ;;  %9942 = vmatprep.subr.bf16.mxu0 %v11539_v45  ;;  %v11578_v5 = vld [vmem:[%s15056_s3 + $0x10] sm:$0xff]   ;;  %v11591_v45 = vld [vmem:[%s15056_s3 + $0xf8] sm:$0xff]  }
 0x3b9   :  { %9920 = vmatprep.subr.bf16.mxu1 %v11537_v42  ;;  %v11588_v42 = vld [vmem:[%s15056_s3 + $0xb0] sm:$0xff]  }
 0x3bb   :  { %9943 = vmatpush3.bf16.msra.mxu0 %v11540_v48  ;;  %v11585_v48 = vld [vmem:[%s15056_s3 + $0x60] sm:$0xff]  }
 0x3bc   :  { %9921 = vmatpush3.bf16.msra.mxu1 %v11538_v46  ;;  %9944 = vmatprep.subr.bf16.mxu0 %v11543_v17  ;;  %v11582_v46 = vld [vmem:[%s15056_s3 + $0x18] sm:$0xff]   ;;  %v1220_v17 = vsub.s32 2, %v11712_v13 }
 0x3bd   :  { %9922 = vmatprep.subr.bf16.mxu1 %v11541_v49  ;;  %v11592_v49 = vld [vmem:[%s15056_s3 + $0xb8] sm:$0xff]  }
 0x3bf   :  { %9945 = vmatpush3.bf16.msra.mxu0 %v11544_v54  ;;  %v1224_v54 = vsub.s32 3, %v11712_v13 }
 0x3c0   :  { %9923 = vmatpush3.bf16.msra.mxu1 %v11542_v53  ;;  %10039 = vmatprep.subr.bf16.mxu0 %v11641_v36  ;;  %v11586_v53 = vld [vmem:[%s15056_s3 + $0x20] sm:$0xff]  }
 0x3c1   :  { %9952 = vmatprep.subr.bf16.mxu1 %v11545_v56  ;;  %v11589_v56 = vld [vmem:[%s15056_s3 + $0x68] sm:$0xff]  }
 0x3c2   :  { %8023 = vmatmul.mubr.bf16.vlgmr.msra.gmra.mrb[24].mxu0 %v13985_v61  ;;  %v11557_v61 = vld [vmem:[%s15054_s1 + $0x1e60] ss:$20 sps:$4 sm:$0xff]  }
 0x3c3   :  { %7983 = vmatmul.mubr.bf16.vlgmr.msra.gmra.mrb[24].mxu1 %v13788_v12  ;;  %10040 = vmatpush3.bf16.msra.mxu0 %v11551_v15  ;;  %v11550_v12 = vld [vmem:[%s15054_s1 + $0x1be0] ss:$20 sps:$4 sm:$0xff]   ;;  %v1221_v15 = vrot.slane %v14844_v6, %v1220_v17 }
 0x3c4   :  { %9953 = vmatpush3.bf16.msra.mxu1 %v11546_v50  ;;  %10041 = vmatprep.subr.bf16.mxu0 %v11641_v36  ;;  %v1228_v50 = vsub.s32 4, %v11712_v13 }
 0x3c5   :  { %9954 = vmatprep.subr.bf16.mxu1 %v11547_v23  ;;  %10047 = vmatprep.mubr.msk.bf16.mxu0 %vm11642_vm1, %v11641_v36  ;;  %v1225_v23 = vrot.slane %v14844_v6, %v1224_v54 }
 0x3c6   :  { %8062 = vmatprep.mubr.bf16.mxu1 %v14001_v3  ;;  %v11553_v3 = vld [vmem:[%s15054_s1 + $0x1c08] ss:$20 sps:$4 sm:$0xff]   ;;  %v1229_v13 = vrot.slane %v14844_v6, %v1228_v50 }
 0x3c7   :  { %10042 = vmatpush3.bf16.msra.mxu0 %v11554_v59  ;;  %v11593_v59 = vld [vmem:[%s15056_s3 + $0x70] sm:$0xff]  }
 0x3c8   :  { %9955 = vmatpush3.bf16.msra.mxu1 %v11548_v21  ;;  %10043 = vmatprep.subr.bf16.mxu0 %v11641_v36  ;;  %v11590_v21 = vld [vmem:[%s15056_s3 + $0x28] sm:$0xff]  }
 0x3c9   :  { %9956 = vmatprep.subr.bf16.mxu1 %v11549_v58 }
 0x3cb   :  { %10044 = vmatpush3.bf16.msra.mxu0 %v11557_v61 }
 0x3cc   :  { %9957 = vmatpush3.bf16.msra.mxu1 %v11550_v12  ;;  %10045 = vmatprep.subr.bf16.mxu0 %v11641_v36 }
 0x3cd   :  { %9958 = vmatprep.subr.bf16.mxu1 %v11552_v60 }
 0x3cf   :  { %10046 = vmatpush3.bf16.msra.mxu0 %v11560_v62 }
 0x3d0   :  { %9959 = vmatpush3.bf16.msra.mxu1 %v11553_v3  ;;  %10001 = vmatprep.subr.bf16.mxu0 %v11563_v4  ;;  %v11594_v4 = vld [vmem:[%s15056_s3 + $0x30] sm:$0xff]  }
 0x3d1   :  { %9960 = vmatprep.subr.bf16.mxu1 %v11555_v1 }
 0x3d2   :  { %10048 = vmatmul.mubr.msk.bf16.vlgmr.msra.gmra.mrb[28].mxu0 %vm6520_vm0, %v11748_v26  ;;  %v11571_v26 = vld [vmem:[%s15056_s3 + $0xd0] sm:$0xff]  }
 0x3d3   :  { %10002 = vmatpush3.bf16.msra.mxu0 %v11564_v8  ;;  %v11595_v8 = vld [vmem:[%s15056_s3 + $0x78] sm:$0xff]  }
 0x3d4   :  { %9961 = vmatpush3.bf16.msra.mxu1 %v11556_v0  ;;  %10003 = vmatprep.subr.bf16.mxu0 %v11567_v10 }
 0x3d5   :  { %9962 = vmatprep.subr.bf16.mxu1 %v11558_v9  ;;  %v7009_v19 = vpop.f32.mrb[0].mxu0 }
 0x3d6   :  { %v10087_v27 = vadd.f32 %v7009_v19, %v1213_v11  ;;  %v7011_v57 = vpop.f32.mrb[1].mxu0 }
 0x3d7   :  { %v10089_v44 = vadd.f32 %v7011_v57, %v1217_v14  ;;  %v7013_v55 = vpop.f32.mrb[2].mxu0  ;;  %10004 = vmatpush3.bf16.msra.mxu0 %v11568_v20  ;;  %v11596_v14 = vld [vmem:[%s15056_s3 + $0x38] sm:$0xff]  }
 0x3d8   :  { %9963 = vmatpush3.bf16.msra.mxu1 %v11559_v63  ;;  %v14879_v32 = vadd.f32 %v10087_v27, %v12453_v28  ;;  %v7014_v33 = vpop.f32.mrb[3].mxu0  ;;  %10005 = vmatprep.subr.bf16.mxu0 %v11571_v26  ;;  %v11576_v28 = vld [vmem:[%s15056_s3 + $0x98] sm:$0xff]  }
 0x3d9   :  { %9964 = vmatprep.subr.bf16.mxu1 %v11561_v16  ;;  %v10090_v2 = vadd.f32 %v10089_v44, %v12455_v29  ;;  %v11579_v29 = vld [vmem:[%s15056_s3 + $0xe0] sm:$0xff]  }
 0x3da   :  { %v8110_v63 = vpack.c.bf16 %v14879_v32, %v14879_v32  ;;  %v11597_v32 = vld [vmem:[%s15056_s3 + $0x100] sm:$0xff]  }
 0x3db   :  { %10006 = vmatpush3.bf16.msra.mxu0 %v11572_v30  ;;  %v8111_v31 = vpack.c.bf16 %v10090_v2, %v10090_v2  ;;  %v11599_v2 = vld [vmem:[%s15056_s3 + $0x110] sm:$0xff]  }
 0x3dc   :  { %9965 = vmatpush3.bf16.msra.mxu1 %v11562_v25  ;;  %10007 = vmatprep.subr.bf16.mxu0 %v11575_v52  ;;  %v11598_v52 = vld [vmem:[%s15056_s3 + $0x108] sm:$0xff]  }
 0x3dd   :  { %9966 = vmatprep.subr.bf16.mxu1 %v11565_v51 }
 0x3df   :  { %10008 = vmatpush3.bf16.msra.mxu0 %v11576_v28 }
 0x3e0   :  { %9967 = vmatpush3.bf16.msra.mxu1 %v11566_v38  ;;  %10009 = vmatprep.subr.bf16.mxu0 %v11579_v29  ;;  %v11600_v38 = vld [vmem:[%s15056_s3 + $0x118] sm:$0xff]  }
 0x3e1   :  { %9979 = vmatprep.subr.bf16.mxu1 %v11569_v34 }
 0x3e3   :  { %8063 = vmatmul.mubr.bf16.vlgmr.msra.gmra.mrb[28].mxu1 %v14189_v24  ;;  %10010 = vmatpush3.bf16.msra.mxu0 %v11580_v37  ;;  %v11587_v24 = vld [vmem:[%s15056_s3 + $0xf0] sm:$0xff]  }
 0x3e4   :  { %9980 = vmatpush3.bf16.msra.mxu1 %v11570_v18  ;;  %8462 = vmatprep.mubr.bf16.mxu1 %v8111_v31 }
 0x3e5   :  { %9981 = vmatprep.subr.bf16.mxu1 %v11573_v35  ;;  %10011 = vmatprep.subr.bf16.mxu0 %v11583_v43  ;;  %v11601_v35 = vld [vmem:[%s15056_s3 + $0x120] sm:$0xff]  }
 0x3e7   :  { %10012 = vmatpush3.bf16.msra.mxu0 %v11584_v47 }
 0x3e8   :  { %9982 = vmatpush3.bf16.msra.mxu1 %v11574_v39  ;;  %10013 = vmatprep.subr.bf16.mxu0 %v11587_v24 }
 0x3e9   :  { %9983 = vmatprep.subr.bf16.mxu1 %v11577_v40 }
 0x3eb   :  { %10014 = vmatpush3.bf16.msra.mxu0 %v11588_v42 }
 0x3ec   :  { %9984 = vmatpush3.bf16.msra.mxu1 %v11578_v5  ;;  %10015 = vmatprep.subr.bf16.mxu0 %v11591_v45  ;;  %v11602_v5 = vld [vmem:[%s15056_s3 + $0x128] ss:$0 sps:$4 sm:$0xff]  }
 0x3ed   :  { %9985 = vmatprep.subr.bf16.mxu1 %v11581_v41  ;;  %v8428_v42 = vsel %vm8426_vm2, %v11602_v5, 0  ;;  %v9661_v5 = vld [vmem:[%s15057_s4] ss:$0 sm:$0xff] }
 0x3ef   :  { %10016 = vmatpush3.bf16.msra.mxu0 %v11592_v49 }
 0x3f0   :  { %9986 = vmatpush3.bf16.msra.mxu1 %v11582_v46  ;;  %10067 = vmatprep.subr.bf16.mxu0 %v11641_v36 }
 0x3f1   :  { %9987 = vmatprep.subr.bf16.mxu1 %v11585_v48 }
 0x3f4   :  { %9988 = vmatpush3.bf16.msra.mxu1 %v11586_v53 }
 0x3f5   :  { %9989 = vmatprep.subr.bf16.mxu1 %v11589_v56  ;;  %v9726_v12 = vpop.f32.mrb[4].mxu0 }
 0x3f6   :  { %v7583_v58 = vpop.f32.mrb[4].mxu1  ;;  %v9727_v3 = vpop.f32.mrb[5].mxu0 }
 0x3f7   :  { %v10091_v61 = vadd.f32 %v7583_v58, %v1221_v15  ;;  %v7585_v60 = vpop.f32.mrb[5].mxu1  ;;  %v9728_v22 = vadd.f32 %v9727_v3, %v9726_v12  ;;  %v9729_v0 = vpop.f32.mrb[6].mxu0  ;;  %v11604_v58 = vld [vmem:[%s15058_s5 + $0x8] sm:$0xff]   ;;  %v11605_v12 = vld [vmem:[%s15058_s5 + $0x10] sm:$0xff]  }
 0x3f8   :  { %v10092_v62 = vadd.f32 %v7585_v60, %v1225_v23  ;;  %v7587_v1 = vpop.f32.mrb[6].mxu1  ;;  %9990 = vmatpush3.bf16.msra.mxu1 %v11590_v21  ;;  %v9730_v9 = vpop.f32.mrb[7].mxu0  ;;  %v11603_v21 = vld [vmem:[%s15058_s5] sm:$0xff]   ;;  %v11608_v60 = vld [vmem:[%s15058_s5 + $0x28] sm:$0xff]   ;;  %v11609_v3 = vld [vmem:[%s15058_s5 + $0x30] sm:$0xff]  }
 0x3f9   :  { %v7588_v7 = vpop.f32.mrb[7].mxu1  ;;  %9991 = vmatprep.subr.bf16.mxu1 %v11593_v59  ;;  %v7625_v10 = vadd.f32 %v9728_v22, %v1229_v13  ;;  %v8112_v11 = vpack.c.bf16 %v10091_v61, %v10091_v61  ;;  %v11606_v13 = vld [vmem:[%s15058_s5 + $0x18] sm:$0xff]   ;;  %v11607_v61 = vld [vmem:[%s15058_s5 + $0x20] sm:$0xff]  }
 0x3fa   :  { %v8113_v6 = vpack.c.bf16 %v10092_v62, %v10092_v62 }
 0x3fc   :  { %9992 = vmatpush3.bf16.msra.mxu1 %v11594_v4  ;;  %8502 = vmatprep.mubr.bf16.mxu0 %v8113_v6 }
 0x3fd   :  { %8503 = vmatmul.mubr.bf16.vlgmr.msra.gmra.mrb[32].mxu0 %v8112_v11  ;;  %9993 = vmatprep.subr.bf16.mxu1 %v11595_v8 }
 0x3fe   :  { %10083 = vmatprep.mubr.msk.bf16.mxu0 %vm11642_vm1, %v11641_v36  ;;  %10068 = vmatpush3.bf16.msra.mxu0 %v11603_v21  ;;  %v9701_v21 = vld [vmem:[%s15059_s6] ss:$0 sm:$0xff] }
 0x3ff   :  { %10069 = vmatprep.subr.bf16.mxu0 %v11641_v36 }
 0x400   :  { %9994 = vmatpush3.bf16.msra.mxu1 %v11596_v14 }
 0x401   :  { %10051 = vmatprep.subr.bf16.mxu1 %v11641_v36 }
 0x402   :  { %10070 = vmatpush3.bf16.msra.mxu0 %v11604_v58 }
 0x403   :  { %8463 = vmatmul.mubr.bf16.vlgmr.msra.gmra.mrb[32].mxu1 %v8110_v63  ;;  %10071 = vmatprep.subr.bf16.mxu0 %v11641_v36 }
 0x404   :  { %10063 = vmatprep.mubr.msk.bf16.mxu1 %vm11642_vm1, %v11641_v36  ;;  %10052 = vmatpush3.bf16.msra.mxu1 %v11597_v32 }
 0x405   :  { %10053 = vmatprep.subr.bf16.mxu1 %v11641_v36 }
 0x406   :  { %10072 = vmatpush3.bf16.msra.mxu0 %v11605_v12 }
 0x407   :  { %10073 = vmatprep.subr.bf16.mxu0 %v11641_v36 }
 0x408   :  { %10054 = vmatpush3.bf16.msra.mxu1 %v11598_v52 }
 0x409   :  { %10055 = vmatprep.subr.bf16.mxu1 %v11641_v36 }
 0x40a   :  { %10074 = vmatpush3.bf16.msra.mxu0 %v11606_v13 }
 0x40b   :  { %10075 = vmatprep.subr.bf16.mxu0 %v11641_v36 }
 0x40c   :  { %10056 = vmatpush3.bf16.msra.mxu1 %v11599_v2 }
 0x40d   :  { %10057 = vmatprep.subr.bf16.mxu1 %v11641_v36 }
 0x40e   :  { %10076 = vmatpush3.bf16.msra.mxu0 %v11607_v61 }
 0x40f   :  { %10077 = vmatprep.subr.bf16.mxu0 %v11641_v36 }
 0x410   :  { %10058 = vmatpush3.bf16.msra.mxu1 %v11600_v38 }
 0x411   :  { %10059 = vmatprep.subr.bf16.mxu1 %v11641_v36 }
 0x412   :  { %10078 = vmatpush3.bf16.msra.mxu0 %v11608_v60 }
 0x413   :  { %10079 = vmatprep.subr.bf16.mxu0 %v11641_v36 }
 0x414   :  { %10060 = vmatpush3.bf16.msra.mxu1 %v11601_v35 }
 0x415   :  { %v9770_v16 = vpop.f32.mrb[8].mxu0  ;;  %10061 = vmatprep.subr.bf16.mxu1 %v11641_v36 }
 0x416   :  { %v9748_v20 = vpop.f32.mrb[8].mxu1  ;;  %v9771_v19 = vpop.f32.mrb[9].mxu0  ;;  %10080 = vmatpush3.bf16.msra.mxu0 %v11609_v3 }
 0x417   :  { %v9749_v26 = vpop.f32.mrb[9].mxu1  ;;  %v9772_v44 = vadd.f32 %v9771_v19, %v9770_v16  ;;  %v9773_v55 = vpop.f32.mrb[10].mxu0  ;;  %10081 = vmatprep.subr.bf16.mxu0 %v11641_v36 }
 0x418   :  { %v9750_v27 = vadd.f32 %v9749_v26, %v9748_v20  ;;  %v9751_v57 = vpop.f32.mrb[10].mxu1  ;;  %v9774_v30 = vpop.f32.mrb[11].mxu0  ;;  %10062 = vmatpush3.bf16.msra.mxu1 %v8428_v42 }
 0x419   :  { %v9752_v25 = vpop.f32.mrb[11].mxu1 }
 0x41a   :  { %v7665_v33 = vadd.f32 %v9750_v27, %v7625_v10 }
 0x41c   :  { %v7705_v51 = vadd.f32 %v9772_v44, %v7665_v33 }
 0x435   :  { %v9814_v34 = vpop.f32.mrb[12].mxu0 }
 0x436   :  { %v9792_v28 = vpop.f32.mrb[12].mxu1  ;;  %v9815_v18 = vpop.f32.mrb[13].mxu0 }
 0x437   :  { %v9793_v29 = vpop.f32.mrb[13].mxu1  ;;  %v9816_v43 = vadd.f32 %v9815_v18, %v9814_v34  ;;  %v9817_v39 = vpop.f32.mrb[14].mxu0 }
 0x438   :  { %v9794_v37 = vadd.f32 %v9793_v29, %v9792_v28  ;;  %v9795_v31 = vpop.f32.mrb[14].mxu1  ;;  %v9818_v47 = vpop.f32.mrb[15].mxu0 }
 0x439   :  { %v9796_v40 = vpop.f32.mrb[15].mxu1 }
 0x43a   :  { %v7745_v24 = vadd.f32 %v9794_v37, %v7705_v51 }
 0x43c   :  { %v7785_v41 = vadd.f32 %v9816_v43, %v7745_v24 }
 0x455   :  { %v9858_v46 = vpop.f32.mrb[16].mxu0 }
 0x456   :  { %v9836_v45 = vpop.f32.mrb[16].mxu1  ;;  %v9859_v49 = vpop.f32.mrb[17].mxu0 }
 0x457   :  { %v9837_v48 = vpop.f32.mrb[17].mxu1  ;;  %v9860_v54 = vadd.f32 %v9859_v49, %v9858_v46  ;;  %v9861_v56 = vpop.f32.mrb[18].mxu0 }
 0x458   :  { %v9838_v17 = vadd.f32 %v9837_v48, %v9836_v45  ;;  %v9839_v53 = vpop.f32.mrb[18].mxu1  ;;  %v9862_v15 = vpop.f32.mrb[19].mxu0 }
 0x459   :  { %v9840_v50 = vpop.f32.mrb[19].mxu1 }
 0x45a   :  { %v7825_v23 = vadd.f32 %v9838_v17, %v7785_v41  ;;  %v11610_v17 = vld [vmem:[%s15058_s5 + $0x38] sm:$0xff]   ;;  %s11615_s5 = scalar_lea.vmem %s8670_s29, 32 }
 0x45b   :  { %10082 = vmatpush3.bf16.msra.mxu0 %v11610_v17  ;;  %p11616_p0 = scmp.ne.s32.totalorder %s8670_s29, %s11615_s5  ;;  %p11621_p2 = scmp.lt.s32.totalorder %s11615_s5, %s11615_s5 }
 0x45c   :  { %v7865_v59 = vadd.f32 %v9860_v54, %v7825_v23 }
 0x45d   :  { %p11622_p3 = por %p11621_p2, %p11620_p1 }
 0x45f   :  { %p11623_p4 = pnand %p11622_p3, %p11616_p0 }
 0x475   :  { %v9902_v1 = vpop.f32.mrb[20].mxu0 }
 0x476   :  { %v9880_v62 = vpop.f32.mrb[20].mxu1  ;;  %v9903_v22 = vpop.f32.mrb[21].mxu0 }
 0x477   :  { %v9881_v4 = vpop.f32.mrb[21].mxu1  ;;  %v9904_v8 = vadd.f32 %v9903_v22, %v9902_v1  ;;  %v9905_v9 = vpop.f32.mrb[22].mxu0 }
 0x478   :  { %v9882_v0 = vadd.f32 %v9881_v4, %v9880_v62  ;;  %v9883_v7 = vpop.f32.mrb[22].mxu1  ;;  %v9906_v10 = vpop.f32.mrb[23].mxu0 }
 0x479   :  { %v9884_v6 = vpop.f32.mrb[23].mxu1 }
 0x47a   :  { %v7905_v11 = vadd.f32 %v9882_v0, %v7865_v59 }
 0x47c   :  { %v7945_v14 = vadd.f32 %v9904_v8, %v7905_v11 }
 0x495   :  { %v9946_v20 = vpop.f32.mrb[24].mxu0 }
 0x496   :  { %v9924_v63 = vpop.f32.mrb[24].mxu1  ;;  %v9947_v26 = vpop.f32.mrb[25].mxu0 }
 0x497   :  { %v9925_v16 = vpop.f32.mrb[25].mxu1  ;;  %v9948_v57 = vadd.f32 %v9947_v26, %v9946_v20  ;;  %v9949_v36 = vpop.f32.mrb[26].mxu0 }
 0x498   :  { %v9926_v19 = vadd.f32 %v9925_v16, %v9924_v63  ;;  %v9927_v27 = vpop.f32.mrb[26].mxu1  ;;  %v9950_v55 = vpop.f32.mrb[27].mxu0 }
 0x499   :  { %v9928_v44 = vpop.f32.mrb[27].mxu1 }
 0x49a   :  { %v7985_v25 = vadd.f32 %v9926_v19, %v7945_v14 }
 0x49c   :  { %v8025_v30 = vadd.f32 %v9948_v57, %v7985_v25 }
 0x4a5   :  { %v8104_v33 = vpop.f32.mrb[28].mxu0 }
 0x4a6   :  { %v10049_v51 = vpop.f32.mrb[29].mxu0 }
 0x4a7   :  { %v8107_v32 = vpop.f32.mrb[30].mxu0 }
 0x4a8   :  { %v10050_v52 = vpop.f32.mrb[31].mxu0 }
 0x4b6   :  { %v9968_v2 = vpop.f32.mrb[28].mxu1 }
 0x4b7   :  { %v9969_v38 = vpop.f32.mrb[29].mxu1 }
 0x4b8   :  { %v9970_v28 = vadd.f32 %v9969_v38, %v9968_v2  ;;  %v9971_v34 = vpop.f32.mrb[30].mxu1 }
 0x4b9   :  { %v9972_v29 = vpop.f32.mrb[31].mxu1 }
 0x4ba   :  { %v8065_v18 = vadd.f32 %v9970_v28, %v8025_v30 }
 0x4bc   :  { %v8105_v35 = vadd.f32 %v8104_v33, %v8065_v18 }
 0x4be   :  { %v8114_v37 = vpack.c.bf16 %v8105_v35, %v8105_v35 }
 0x4c0   :  { %10064 = vmatmul.mubr.msk.bf16.vlgmr.msra.gmra.mrb[36].mxu1 %vm8422_vm3, %v8114_v37 }
 0x4d0   :  { %v10017_v31 = vpop.f32.mrb[32].mxu0 }
 0x4d1   :  { %v10018_v43 = vpop.f32.mrb[33].mxu0 }
 0x4d2   :  { %v10019_v39 = vadd.f32 %v10018_v43, %v10017_v31  ;;  %v10020_v40 = vpop.f32.mrb[34].mxu0 }
 0x4d3   :  { %v10021_v47 = vpop.f32.mrb[35].mxu0 }
 0x4d6   :  { %v9995_v24 = vpop.f32.mrb[32].mxu1 }
 0x4d7   :  { %v9996_v41 = vpop.f32.mrb[33].mxu1 }
 0x4d8   :  { %v9997_v42 = vadd.f32 %v9996_v41, %v9995_v24  ;;  %v9998_v45 = vpop.f32.mrb[34].mxu1 }
 0x4d9   :  { %v9999_v46 = vpop.f32.mrb[35].mxu1 }
 0x4da   :  { %v8465_v48 = vadd.f32 %v9997_v42, %v9661_v5 }
 0x4dc   :  { %v8505_v49 = vadd.f32 %v10019_v39, %v8465_v48 }
 0x593   :  { %v8544_v53 = vpop.f32.mrb[36].mxu1 }
 0x594   :  { %v8545_v54 = vadd.f32 %v8544_v53, %v8505_v49  ;;  %v10065_v56 = vpop.f32.mrb[37].mxu1 }
 0x595   :  { %v8547_v50 = vpop.f32.mrb[38].mxu1 }
 0x596   :  { %v8550_v15 = vpack.c.bf16 %v8545_v54, %v8545_v54  ;;  %v10066_v23 = vpop.f32.mrb[39].mxu1 }
 0x598   :  { %10084 = vmatmul.mubr.bf16.vlgmr.msra.gmra.mrb[36].mxu0 %v8550_v15 }
 0x66b   :  { %v8656_v59 = vpop.f32.mrb[36].mxu0 }
 0x66c   :  { %v8657_v58 = vadd.f32 %v9701_v21, %v8656_v59  ;;  %v10085_v12 = vpop.f32.mrb[37].mxu0 }
 0x66d   :  { %v8659_v13 = vpop.f32.mrb[38].mxu0 }
 0x66e   :  { %8662 = vst [vmem:[#allocation2] sm:$0x3] %v8657_v58  ;;  %v10086_v61 = vpop.f32.mrb[39].mxu0 }
 0x66f   :  { %11626 = shalt.err (!%p11623_p4)
}
 0x670   :  { %s11627_s6 = scalar_lea.hbm %s15060_s7, 32 }
 0x671   :  { %p11628_p5 = scmp.ne.s32.totalorder %s15060_s7, %s11627_s6  ;;  %p11631_p6 = scmp.lt.u32.totalorder %s11627_s6, %s15060_s7 }
 0x673   :  { %p11633_p7 = pnand %p11631_p6, %p11628_p5 }
 0x675   :  { %11636 = shalt.err (!%p11633_p7)
}
 0x676   :  { %8672 = dma.vmem_to_hbm [thread:$0]  %s8670_s29, 32, %s15060_s7, [#allocation3]  }
 0x677   :  { %11637 = dma.done.wait [#allocation3], 32  }
 0x678   :  { %11638 = vsyncadd [#allocation3], 4294967264 }
 0x679   :  { %8676 = vsyncpa [#allocation3], 1 }

</bundles_post_ra>
